<compile_context>
chip_gen: v6e
topology: v6e:2x2x1
jax: 0.10.0
libtpu: 0.0.40
codegen_flags: <defaults>
</compile_context>

<pallas_src>
import functools
import math

import jax
import jax.numpy as jnp
from jax import lax
from jax.experimental import pallas as pl
from jax.experimental.pallas import tpu as pltpu

_SQRT_2_OVER_PI = 0.7978845608028654
_TILE_M = 512  # row tile for all row-tiled kernels (multiple of 8, VMEM-safe on v5e/v6e/v7x)


# --------------------------------------------------------------------------------------
# Kernel bodies
# --------------------------------------------------------------------------------------
def _gelu_tanh(x):
    # TODO(synk): PyTorch nn.GELU default is erf-exact; tanh approximation used here.
    return 0.5 * x * (1.0 + jnp.tanh(_SQRT_2_OVER_PI * (x + 0.044715 * x * x * x)))


def _layernorm(x, g, b):
    mu = jnp.mean(x, axis=-1, keepdims=True)
    xc = x - mu
    var = jnp.mean(xc * xc, axis=-1, keepdims=True)
    return xc * lax.rsqrt(var + 1e-5) * g + b


def _linear_kernel(x_ref, w_ref, b_ref, o_ref, *, act):
    x = x_ref[...].astype(jnp.float32)
    y = jnp.dot(x, w_ref[...], preferred_element_type=jnp.float32) + b_ref[...]
    if act == "gelu":
        y = _gelu_tanh(y)
    elif act == "relu":
        y = jnp.maximum(y, 0.0)
    o_ref[...] = y.astype(o_ref.dtype)


def _ln_linear_kernel(x_ref, g_ref, b_ref, w_ref, wb_ref, o_ref):
    """LayerNorm over last dim, then x_ln @ W + b (fused: no HBM round trip for the LN output)."""
    x = x_ref[...].astype(jnp.float32)
    xn = _layernorm(x, g_ref[...], b_ref[...])
    o_ref[...] = (jnp.dot(xn, w_ref[...], preferred_element_type=jnp.float32)
                  + wb_ref[...]).astype(o_ref.dtype)


def _ln_ffn_kernel(x_ref, g_ref, b_ref, w1_ref, b1_ref, w2_ref, b2_ref, o_ref):
    """out = x + FFN2(relu(FFN1(LN(x)))) — hidden activation stays in VMEM, residual fused."""
    x = x_ref[...].astype(jnp.float32)
    xn = _layernorm(x, g_ref[...], b_ref[...])
    h = jnp.dot(xn, w1_ref[...], preferred_element_type=jnp.float32) + b1_ref[...]
    h = jnp.maximum(h, 0.0)
    y = jnp.dot(h, w2_ref[...], preferred_element_type=jnp.float32) + b2_ref[...]
    o_ref[...] = (x + y).astype(o_ref.dtype)


def _seq_head_kernel(x_ref, w1_ref, b1_ref, w2_ref, b2_ref, o_ref):
    """seq_predict: linear(36) -> GELU -> linear(9) fused."""
    x = x_ref[...].astype(jnp.float32)
    h = jnp.dot(x, w1_ref[...], preferred_element_type=jnp.float32) + b1_ref[...]
    h = _gelu_tanh(h)
    o_ref[...] = (jnp.dot(h, w2_ref[...], preferred_element_type=jnp.float32)
                  + b2_ref[...]).astype(o_ref.dtype)


def _constraint_kernel(s_ref, p_ref, ws_ref, bs_ref, wa_ref, ba_ref, o_ref):
    """All six constraint heads in one pass: symmetric heads from `sym`, asym heads from `pair`."""
    ns = ws_ref.shape[1]
    ys = jnp.dot(s_ref[...].astype(jnp.float32), ws_ref[...],
                 preferred_element_type=jnp.float32) + bs_ref[...]
    ya = jnp.dot(p_ref[...].astype(jnp.float32), wa_ref[...],
                 preferred_element_type=jnp.float32) + ba_ref[...]
    o_ref[:, :ns] = ys.astype(o_ref.dtype)
    o_ref[:, ns:] = ya.astype(o_ref.dtype)


def _attn_kernel(*refs, n_heads, dh, scale, has_bias):
    """Per-batch attention over all heads + output projection + residual, fused.

    qkv block: (1, L, 3D); bias block (optional): (1, H, L, L); seq block: (1, L, D).
    Output: seq + concat_h(softmax(q_h k_h^T * scale + bias_h) v_h) @ Wo + bo.
    """
    if has_bias:
        qkv_ref, bias_ref, seq_ref, wo_ref, bo_ref, o_ref = refs
    else:
        qkv_ref, seq_ref, wo_ref, bo_ref, o_ref = refs
        bias_ref = None
    L = seq_ref.shape[1]
    D = n_heads * dh

    y = jnp.zeros((L, D), jnp.float32)
    for h in range(n_heads):
        q = qkv_ref[0, :, h * dh:(h + 1) * dh].astype(jnp.float32) * scale   # scale folded into q
        k = qkv_ref[0, :, D + h * dh:D + (h + 1) * dh].astype(jnp.float32)
        v = qkv_ref[0, :, 2 * D + h * dh:2 * D + (h + 1) * dh].astype(jnp.float32)
        s = lax.dot_general(q, k, (((1,), (1,)), ((), ())),
                            preferred_element_type=jnp.float32)              # (L, L)
        if has_bias:
            s = s + bias_ref[0, h].astype(jnp.float32)
        m = jnp.max(s, axis=-1, keepdims=True)
        p = jnp.exp(s - m)
        p = p * pl.reciprocal(jnp.sum(p, axis=-1, keepdims=True), approx=True)
        o_h = jnp.dot(p, v, preferred_element_type=jnp.float32)              # (L, dh)
        # accumulate the output projection per head: attn @ Wo == sum_h o_h @ Wo[h*dh:(h+1)*dh, :]
        y = y + jnp.dot(o_h, wo_ref[h * dh:(h + 1) * dh, :],
                        preferred_element_type=jnp.float32)
    o_ref[0] = (seq_ref[0].astype(jnp.float32) + y + bo_ref[...]).astype(o_ref.dtype)


# --------------------------------------------------------------------------------------
# pallas_call wrappers
# --------------------------------------------------------------------------------------
def _row_tiled_call(kernel, row_inputs, full_inputs, n_out):
    """Run `kernel` over row tiles of 2-D (M, K_i) arrays; `full_inputs` are small 2-D arrays
    replicated to every grid step.  Returns an (M, n_out) f32 array."""
    M = row_inputs[0].shape[0]
    tm = M if M <= _TILE_M else _TILE_M
    grid = (pl.cdiv(M, tm),)
    in_specs = [pl.BlockSpec((tm, a.shape[1]), lambda i: (i, 0)) for a in row_inputs]
    in_specs += [pl.BlockSpec(a.shape, lambda i: (0, 0)) for a in full_inputs]
    return pl.pallas_call(
        kernel,
        out_shape=jax.ShapeDtypeStruct((M, n_out), jnp.float32),
        grid=grid,
        in_specs=in_specs,
        out_specs=pl.BlockSpec((tm, n_out), lambda i: (i, 0)),
        compiler_params=pltpu.CompilerParams(dimension_semantics=("parallel",)),
    )(*row_inputs, *full_inputs)


def pallas_linear(x, w, b, act=None):
    lead = x.shape[:-1]
    K, N = w.shape
    out = _row_tiled_call(functools.partial(_linear_kernel, act=act),
                          [x.reshape(-1, K)], [w, b.reshape(1, N)], N)
    return out.reshape(*lead, N)


def pallas_ln_linear(x, ln, w, b):
    lead = x.shape[:-1]
    C = x.shape[-1]
    N = w.shape[1]
    out = _row_tiled_call(_ln_linear_kernel, [x.reshape(-1, C)],
                          [ln["g"].reshape(1, C), ln["b"].reshape(1, C), w, b.reshape(1, N)], N)
    return out.reshape(*lead, N)


def pallas_ln_ffn(x, ln, w1, b1, w2, b2):
    lead = x.shape[:-1]
    D = x.shape[-1]
    H = w1.shape[1]
    out = _row_tiled_call(_ln_ffn_kernel, [x.reshape(-1, D)],
                          [ln["g"].reshape(1, D), ln["b"].reshape(1, D),
                           w1, b1.reshape(1, H), w2, b2.reshape(1, D)], D)
    return out.reshape(*lead, D)


def pallas_attention(qkv, seq, wo, bo, n_heads, bias=None):
    """qkv: (B, L, 3D), seq: (B, L, D), bias (optional): (B, H, L, L) -> (B, L, D)."""
    B, L, D = seq.shape
    dh = D // n_heads
    scale = 1.0 / math.sqrt(dh)

    in_arrays = [qkv]
    in_specs = [pl.BlockSpec((1, L, 3 * D), lambda b: (b, 0, 0))]
    if bias is not None:
        in_arrays.append(bias)
        in_specs.append(pl.BlockSpec((1, n_heads, L, L), lambda b: (b, 0, 0, 0)))
    in_arrays += [seq, wo, bo.reshape(1, D)]
    in_specs += [pl.BlockSpec((1, L, D), lambda b: (b, 0, 0)),
                 pl.BlockSpec((D, D), lambda b: (0, 0)),
                 pl.BlockSpec((1, D), lambda b: (0, 0))]

    return pl.pallas_call(
        functools.partial(_attn_kernel, n_heads=n_heads, dh=dh, scale=scale,
                          has_bias=bias is not None),
        out_shape=jax.ShapeDtypeStruct((B, L, D), jnp.float32),
        grid=(B,),
        in_specs=in_specs,
        out_specs=pl.BlockSpec((1, L, D), lambda b: (b, 0, 0)),
        compiler_params=pltpu.CompilerParams(dimension_semantics=("parallel",)),
    )(*in_arrays)


# --------------------------------------------------------------------------------------
# Parameter init (deterministic, PyTorch nn.Linear-style uniform init)
# --------------------------------------------------------------------------------------
def _dense(key, fan_in, fan_out):
    kw, kb = jax.random.split(key)
    bound = 1.0 / math.sqrt(fan_in)
    return {"w": jax.random.uniform(kw, (fan_in, fan_out), jnp.float32, -bound, bound),
            "b": jax.random.uniform(kb, (fan_out,), jnp.float32, -bound, bound)}


def _layernorm_params(dim):
    return {"g": jnp.ones((dim,), jnp.float32), "b": jnp.zeros((dim,), jnp.float32)}


def init_params(key, cfg):
    keys = iter(jax.random.split(key, 256))
    D, C, H = cfg["seq_dim"], cfg["pair_dim"], cfg["n_heads"]

    def enc_layer():
        wq, wk, wv = (_dense(next(keys), D, D) for _ in range(3))
        bias = _dense(next(keys), C, H)
        wo = _dense(next(keys), D, D)
        f1 = _dense(next(keys), D, cfg["hidden_dim"])
        f2 = _dense(next(keys), cfg["hidden_dim"], D)
        return {
            "ln1": _layernorm_params(D),
            "wqkv": jnp.concatenate([wq["w"], wk["w"], wv["w"]], axis=1),   # fused QKV weight
            "bqkv": jnp.concatenate([wq["b"], wk["b"], wv["b"]], axis=0),
            "ln_pair": _layernorm_params(C),
            "wb": bias["w"], "bb": bias["b"],
            "wo": wo["w"], "bo": wo["b"],
            "ln2": _layernorm_params(D),
            "w1": f1["w"], "b1": f1["b"], "w2": f2["w"], "b2": f2["b"],
        }

    # ConstraintHead(pair_dim) — reconstructed logit heads (bin counts assumed), weights fused.
    sym_heads = ([_dense(next(keys), C, cfg["dist_bins"]) for _ in range(3)]
                 + [_dense(next(keys), C, cfg["angle_bins"])])
    asym_heads = [_dense(next(keys), C, cfg["angle_bins"]),
                  _dense(next(keys), C, cfg["phi_bins"])]
    sp1 = _dense(next(keys), D, 36)
    sp2 = _dense(next(keys), 36, 9)

    return {
        # InputEmbed_SingleSeq(input_seq_dim, 1, seq_dim, pair_dim, 14, 65) — reconstructed.
        # TODO(synk): role of the `14` ctor argument is unknown in the provided snippet.
        "embed": {
            "seq": _dense(next(keys), cfg["input_seq_dim"], D),
            "pair": _dense(next(keys), 1, C),
            "relpos": _dense(next(keys), cfg["relpos_bins"], C),
            "left": _dense(next(keys), D, C),
            "right": _dense(next(keys), D, C),
        },
        "transformer_1": [enc_layer() for _ in range(cfg["n_layers_1"])],
        "transformer_2": [enc_layer() for _ in range(cfg["n_layers_2"])],
        "seq_predict": {"w1": sp1["w"], "b1": sp1["b"], "w2": sp2["w"], "b2": sp2["b"]},
        "constraint": {
            "ws": jnp.concatenate([h["w"] for h in sym_heads], axis=1),
            "bs": jnp.concatenate([h["b"] for h in sym_heads], axis=0),
            "wa": jnp.concatenate([h["w"] for h in asym_heads], axis=1),
            "ba": jnp.concatenate([h["b"] for h in asym_heads], axis=0),
        },
    }


# --------------------------------------------------------------------------------------
# Forward pass (mirrors SingleSeqTransformer.forward)
# --------------------------------------------------------------------------------------
def input_embed(p, seq, pair, relpos_bins):
    B, L, _ = seq.shape
    seq_e = pallas_linear(seq, p["seq"]["w"], p["seq"]["b"])       # (B, L, seq_dim)
    left = pallas_linear(seq_e, p["left"]["w"], p["left"]["b"])    # (B, L, pair_dim)
    right = pallas_linear(seq_e, p["right"]["w"], p["right"]["b"])

    # relative position embedding via table gather (no one-hot / dense matmul)
    idx = jnp.arange(L)
    half = relpos_bins // 2
    d = jnp.clip(idx[:, None] - idx[None, :], -half, half) + half
    table = p["relpos"]["w"] + p["relpos"]["b"][None, :]           # (bins, pair_dim)
    relpos = jnp.take(table, d, axis=0)                            # (L, L, pair_dim)

    # pair channel is 1 -> the projection is a broadcast multiply+add (fused by XLA elementwise)
    wp = p["pair"]["w"][0]                                         # (pair_dim,)
    bp = p["pair"]["b"]
    pair_e = pair * wp + bp + relpos[None] + left[:, :, None, :] + right[:, None, :, :]
    return seq_e, pair_e


def encoder_layer(p, seq, pair, n_heads, use_pair_bias):
    # fused LN1 + QKV projection
    qkv = pallas_ln_linear(seq, p["ln1"], p["wqkv"], p["bqkv"])    # (B, L, 3D)

    bias = None
    if use_pair_bias:
        # fused LN(pair) + per-head bias projection, then layout to (B, H, L, L)
        bias = pallas_ln_linear(pair, p["ln_pair"], p["wb"], p["bb"])   # (B, L, L, H)
        bias = jnp.transpose(bias, (0, 3, 1, 2))                        # (B, H, L, L)

    # attention (all heads per batch) + Wo projection + residual, fused; no zero-bias tensor
    seq = pallas_attention(qkv, seq, p["wo"], p["bo"], n_heads, bias=bias)

    # fused LN2 + FFN + residual
    seq = pallas_ln_ffn(seq, p["ln2"], p["w1"], p["b1"], p["w2"], p["b2"])
    return seq, pair


def constraint_head(p, pair, cfg):
    B, L = pair.shape[0], pair.shape[1]
    C = pair.shape[-1]
    sym = 0.5 * (pair + jnp.swapaxes(pair, 1, 2))                  # symmetrize (i, j) <-> (j, i)
    n_out = p["ws"].shape[1] + p["wa"].shape[1]
    out = _row_tiled_call(
        _constraint_kernel,
        [sym.reshape(-1, C), pair.reshape(-1, C)],
        [p["ws"], p["bs"].reshape(1, -1), p["wa"], p["ba"].reshape(1, -1)],
        n_out).reshape(B, L, L, n_out)

    db, ab, pb = cfg["dist_bins"], cfg["angle_bins"], cfg["phi_bins"]
    o = 0
    dist_C4 = out[..., o:o + db]; o += db
    dist_C1 = out[..., o:o + db]; o += db
    dist_N = out[..., o:o + db]; o += db
    Omega = out[..., o:o + ab]; o += ab
    Theta = out[..., o:o + ab]; o += ab                            # theta/phi are asymmetric
    Phi = out[..., o:o + pb]
    return dist_C4, dist_C1, dist_N, Omega, Theta, Phi


def forward(params, seq, pair, cfg):
    # pair: NCHW (B, 1, L, L) -> NHWC (B, L, L, 1)   (== pair.permute(0, 2, 3, 1))
    pair = jnp.transpose(pair, (0, 2, 3, 1))
    seq, pair = input_embed(params["embed"], seq, pair, cfg["relpos_bins"])
    for lp in params["transformer_1"]:
        seq, pair = encoder_layer(lp, seq, pair, cfg["n_heads"], use_pair_bias=True)
    for lp in params["transformer_2"]:
        seq, pair = encoder_layer(lp, seq, pair, cfg["n_heads"], use_pair_bias=False)

    sp = params["seq_predict"]
    lead = seq.shape[:-1]
    seq_out = _row_tiled_call(
        _seq_head_kernel, [seq.reshape(-1, seq.shape[-1])],
        [sp["w1"], sp["b1"].reshape(1, -1), sp["w2"], sp["b2"].reshape(1, -1)],
        sp["w2"].shape[1]).reshape(*lead, sp["w2"].shape[1])

    dist_C4, dist_C1, dist_N, Omega, Theta, Phi = constraint_head(params["constraint"], pair, cfg)
    return [seq_out, dist_C4, dist_C1, dist_N, Omega, Theta, Phi]


# --------------------------------------------------------------------------------------
if __name__ == "__main__":
    cfg = dict(input_seq_dim=4, seq_dim=32, pair_dim=16, n_heads=4, hidden_dim=64,
               n_layers_1=2, n_layers_2=2, relpos_bins=65,
               dist_bins=37, angle_bins=25, phi_bins=13)
    B, L = 2, 16

    root = jax.random.PRNGKey(0)
    k_params, k_seq, k_pair = jax.random.split(root, 3)
    params = init_params(k_params, cfg)

    seq_in = jax.random.normal(k_seq, (B, L, cfg["input_seq_dim"]), jnp.float32)
    pair_in = jax.random.normal(k_pair, (B, 1, L, L), jnp.float32)   # NCHW, C=1

    fwd = jax.jit(functools.partial(forward, cfg=cfg))
    outs = fwd(params, seq_in, pair_in)
    jax.block_until_ready(outs)

    assert outs[0].shape == (B, L, 9)
    assert outs[1].shape == (B, L, L, cfg["dist_bins"])
    assert outs[2].shape == (B, L, L, cfg["dist_bins"])
    assert outs[3].shape == (B, L, L, cfg["dist_bins"])
    assert outs[4].shape == (B, L, L, cfg["angle_bins"])
    assert outs[5].shape == (B, L, L, cfg["angle_bins"])
    assert outs[6].shape == (B, L, L, cfg["phi_bins"])
    assert all(bool(jnp.all(jnp.isfinite(o))) for o in outs)
    print("KERNEL_OK")
</pallas_src>

<mosaic_0001>
module attributes {stable_mosaic.version = 11 : i64} {
  func.func @_linear_kernel(%arg0: i32, %arg1: memref<32x32xf32, #tpu.memory_space<vmem>>, %arg2: memref<32x16xf32, #tpu.memory_space<vmem>>, %arg3: memref<1x16xf32, #tpu.memory_space<vmem>>, %arg4: memref<32x16xf32, #tpu.memory_space<vmem>>) attributes {dimension_semantics = [#tpu.dimension_semantics<parallel>], iteration_bounds = array<i64: 1>, scalar_prefetch = 0 : i64, scratch_operands = 0 : i64, tpu.core_type = #tpu.core_type<tc>, window_params = [{transform_indices = @transform_0, window_bounds = array<i64: 32, 32>}, {pipeline_mode = #tpu.pipeline_mode<synchronous>, transform_indices = @transform_1, window_bounds = array<i64: 32, 16>}, {pipeline_mode = #tpu.pipeline_mode<synchronous>, transform_indices = @transform_2, window_bounds = array<i64: 1, 16>}, {transform_indices = @transform_3, window_bounds = array<i64: 32, 16>}]} {
    %c0 = arith.constant 0 : index
    %c0_0 = arith.constant 0 : index
    %0 = vector.load %arg1[%c0, %c0_0] : memref<32x32xf32, #tpu.memory_space<vmem>>, vector<32x32xf32>
    %c0_1 = arith.constant 0 : index
    %c0_2 = arith.constant 0 : index
    %1 = vector.load %arg2[%c0_1, %c0_2] : memref<32x16xf32, #tpu.memory_space<vmem>>, vector<32x16xf32>
    %cst = arith.constant dense<0.000000e+00> : vector<32x16xf32>
    %2 = tpu.matmul %0, %1, %cst {dimension_numbers = #tpu.dot_dimension_numbers<[1], [0], [0], [1], [0, 0, 1, 1], [], []>} : vector<32x32xf32>, vector<32x16xf32>, vector<32x16xf32> -> vector<32x16xf32>
    %c0_3 = arith.constant 0 : index
    %c0_4 = arith.constant 0 : index
    %3 = vector.load %arg3[%c0_3, %c0_4] : memref<1x16xf32, #tpu.memory_space<vmem>>, vector<1x16xf32>
    %4 = vector.broadcast %3 : vector<1x16xf32> to vector<32x16xf32>
    %5 = arith.addf %2, %4 : vector<32x16xf32>
    %c0_5 = arith.constant 0 : index
    %c0_6 = arith.constant 0 : index
    %6 = vector.load %arg4[%c0_5, %c0_6] : memref<32x16xf32, #tpu.memory_space<vmem>>, vector<32x16xf32>
    tpu.vector_store %arg4[%c0_5, %c0_6], %5 {strides = array<i32>} : memref<32x16xf32, #tpu.memory_space<vmem>>, vector<32x16xf32>,
    return
  }
  func.func @transform_0(%arg0: i32) -> (i32, i32) {
    %c0_i32 = arith.constant 0 : i32
    %c0_i32_0 = arith.constant 0 : i32
    return %arg0, %c0_i32 : i32, i32
  }
  func.func @transform_1(%arg0: i32) -> (i32, i32) {
    %c0_i32 = arith.constant 0 : i32
    %c0_i32_0 = arith.constant 0 : i32
    %c0_i32_1 = arith.constant 0 : i32
    return %c0_i32, %c0_i32_0 : i32, i32
  }
  func.func @transform_2(%arg0: i32) -> (i32, i32) {
    %c0_i32 = arith.constant 0 : i32
    %c0_i32_0 = arith.constant 0 : i32
    %c0_i32_1 = arith.constant 0 : i32
    return %c0_i32, %c0_i32_0 : i32, i32
  }
  func.func @transform_3(%arg0: i32) -> (i32, i32) {
    %c0_i32 = arith.constant 0 : i32
    %c0_i32_0 = arith.constant 0 : i32
    return %arg0, %c0_i32 : i32, i32
  }
}

module attributes {stable_mosaic.version = 11 : i64} {
  func.func @_linear_kernel(%arg0: i32, %arg1: memref<32x4xf32, #tpu.memory_space<vmem>>, %arg2: memref<4x32xf32, #tpu.memory_space<vmem>>, %arg3: memref<1x32xf32, #tpu.memory_space<vmem>>, %arg4: memref<32x32xf32, #tpu.memory_space<vmem>>) attributes {dimension_semantics = [#tpu.dimension_semantics<parallel>], iteration_bounds = array<i64: 1>, scalar_prefetch = 0 : i64, scratch_operands = 0 : i64, tpu.core_type = #tpu.core_type<tc>, window_params = [{transform_indices = @transform_0, window_bounds = array<i64: 32, 4>}, {pipeline_mode = #tpu.pipeline_mode<synchronous>, transform_indices = @transform_1, window_bounds = array<i64: 4, 32>}, {pipeline_mode = #tpu.pipeline_mode<synchronous>, transform_indices = @transform_2, window_bounds = array<i64: 1, 32>}, {transform_indices = @transform_3, window_bounds = array<i64: 32, 32>}]} {
    %c0 = arith.constant 0 : index
    %c0_0 = arith.constant 0 : index
    %0 = vector.load %arg1[%c0, %c0_0] : memref<32x4xf32, #tpu.memory_space<vmem>>, vector<32x4xf32>
    %c0_1 = arith.constant 0 : index
    %c0_2 = arith.constant 0 : index
    %1 = vector.load %arg2[%c0_1, %c0_2] : memref<4x32xf32, #tpu.memory_space<vmem>>, vector<4x32xf32>
    %cst = arith.constant dense<0.000000e+00> : vector<32x32xf32>
    %2 = tpu.matmul %0, %1, %cst {dimension_numbers = #tpu.dot_dimension_numbers<[1], [0], [0], [1], [0, 0, 1, 1], [], []>} : vector<32x4xf32>, vector<4x32xf32>, vector<32x32xf32> -> vector<32x32xf32>
    %c0_3 = arith.constant 0 : index
    %c0_4 = arith.constant 0 : index
    %3 = vector.load %arg3[%c0_3, %c0_4] : memref<1x32xf32, #tpu.memory_space<vmem>>, vector<1x32xf32>
    %4 = vector.broadcast %3 : vector<1x32xf32> to vector<32x32xf32>
    %5 = arith.addf %2, %4 : vector<32x32xf32>
    %c0_5 = arith.constant 0 : index
    %c0_6 = arith.constant 0 : index
    %6 = vector.load %arg4[%c0_5, %c0_6] : memref<32x32xf32, #tpu.memory_space<vmem>>, vector<32x32xf32>
    tpu.vector_store %arg4[%c0_5, %c0_6], %5 {strides = array<i32>} : memref<32x32xf32, #tpu.memory_space<vmem>>, vector<32x32xf32>,
    return
  }
  func.func @transform_0(%arg0: i32) -> (i32, i32) {
    %c0_i32 = arith.constant 0 : i32
    %c0_i32_0 = arith.constant 0 : i32
    return %arg0, %c0_i32 : i32, i32
  }
  func.func @transform_1(%arg0: i32) -> (i32, i32) {
    %c0_i32 = arith.constant 0 : i32
    %c0_i32_0 = arith.constant 0 : i32
    %c0_i32_1 = arith.constant 0 : i32
    return %c0_i32, %c0_i32_0 : i32, i32
  }
  func.func @transform_2(%arg0: i32) -> (i32, i32) {
    %c0_i32 = arith.constant 0 : i32
    %c0_i32_0 = arith.constant 0 : i32
    %c0_i32_1 = arith.constant 0 : i32
    return %c0_i32, %c0_i32_0 : i32, i32
  }
  func.func @transform_3(%arg0: i32) -> (i32, i32) {
    %c0_i32 = arith.constant 0 : i32
    %c0_i32_0 = arith.constant 0 : i32
    return %arg0, %c0_i32 : i32, i32
  }
}

module attributes {stable_mosaic.version = 11 : i64} {
  func.func @_ln_linear_kernel(%arg0: i32, %arg1: memref<512x16xf32, #tpu.memory_space<vmem>>, %arg2: memref<1x16xf32, #tpu.memory_space<vmem>>, %arg3: memref<1x16xf32, #tpu.memory_space<vmem>>, %arg4: memref<16x4xf32, #tpu.memory_space<vmem>>, %arg5: memref<1x4xf32, #tpu.memory_space<vmem>>, %arg6: memref<512x4xf32, #tpu.memory_space<vmem>>) attributes {dimension_semantics = [#tpu.dimension_semantics<parallel>], iteration_bounds = array<i64: 1>, scalar_prefetch = 0 : i64, scratch_operands = 0 : i64, tpu.core_type = #tpu.core_type<tc>, window_params = [{transform_indices = @transform_0, window_bounds = array<i64: 512, 16>}, {pipeline_mode = #tpu.pipeline_mode<synchronous>, transform_indices = @transform_1, window_bounds = array<i64: 1, 16>}, {pipeline_mode = #tpu.pipeline_mode<synchronous>, transform_indices = @transform_2, window_bounds = array<i64: 1, 16>}, {pipeline_mode = #tpu.pipeline_mode<synchronous>, transform_indices = @transform_3, window_bounds = array<i64: 16, 4>}, {pipeline_mode = #tpu.pipeline_mode<synchronous>, transform_indices = @transform_4, window_bounds = array<i64: 1, 4>}, {transform_indices = @transform_5, window_bounds = array<i64: 512, 4>}]} {
    %c0 = arith.constant 0 : index
    %c0_0 = arith.constant 0 : index
    %0 = vector.load %arg1[%c0, %c0_0] : memref<512x16xf32, #tpu.memory_space<vmem>>, vector<512x16xf32>
    %c0_1 = arith.constant 0 : index
    %c0_2 = arith.constant 0 : index
    %1 = vector.load %arg2[%c0_1, %c0_2] : memref<1x16xf32, #tpu.memory_space<vmem>>, vector<1x16xf32>
    %c0_3 = arith.constant 0 : index
    %c0_4 = arith.constant 0 : index
    %2 = vector.load %arg3[%c0_3, %c0_4] : memref<1x16xf32, #tpu.memory_space<vmem>>, vector<1x16xf32>
    %cst = arith.constant dense<0.000000e+00> : vector<512xf32>
    %3 = vector.multi_reduction <add>, %0, %cst [1] : vector<512x16xf32> to vector<512xf32>
    %4 = vector.shape_cast %3 : vector<512xf32> to vector<512x1xf32>
    %cst_5 = arith.constant 1.600000e+01 : f32
    %5 = vector.broadcast %cst_5 : f32 to vector<512x1xf32>
    %6 = arith.divf %4, %5 : vector<512x1xf32>
    %7 = vector.broadcast %6 : vector<512x1xf32> to vector<512x16xf32>
    %8 = arith.subf %0, %7 : vector<512x16xf32>
    %9 = arith.mulf %8, %8 : vector<512x16xf32>
    %cst_6 = arith.constant dense<0.000000e+00> : vector<512xf32>
    %10 = vector.multi_reduction <add>, %9, %cst_6 [1] : vector<512x16xf32> to vector<512xf32>
    %11 = vector.shape_cast %10 : vector<512xf32> to vector<512x1xf32>
    %cst_7 = arith.constant 1.600000e+01 : f32
    %12 = vector.broadcast %cst_7 : f32 to vector<512x1xf32>
    %13 = arith.divf %11, %12 : vector<512x1xf32>
    %cst_8 = arith.constant 9.99999974E-6 : f32
    %14 = vector.broadcast %cst_8 : f32 to vector<512x1xf32>
    %15 = arith.addf %13, %14 : vector<512x1xf32>
    %16 = math.rsqrt %15 : vector<512x1xf32>
    %17 = vector.broadcast %16 : vector<512x1xf32> to vector<512x16xf32>
    %18 = arith.mulf %8, %17 : vector<512x16xf32>
    %19 = vector.broadcast %1 : vector<1x16xf32> to vector<512x16xf32>
    %20 = arith.mulf %18, %19 : vector<512x16xf32>
    %21 = vector.broadcast %2 : vector<1x16xf32> to vector<512x16xf32>
    %22 = arith.addf %20, %21 : vector<512x16xf32>
    %c0_9 = arith.constant 0 : index
    %c0_10 = arith.constant 0 : index
    %23 = vector.load %arg4[%c0_9, %c0_10] : memref<16x4xf32, #tpu.memory_space<vmem>>, vector<16x4xf32>
    %cst_11 = arith.constant dense<0.000000e+00> : vector<512x4xf32>
    %24 = tpu.matmul %22, %23, %cst_11 {dimension_numbers = #tpu.dot_dimension_numbers<[1], [0], [0], [1], [0, 0, 1, 1], [], []>} : vector<512x16xf32>, vector<16x4xf32>, vector<512x4xf32> -> vector<512x4xf32>
    %c0_12 = arith.constant 0 : index
    %c0_13 = arith.constant 0 : index
    %25 = vector.load %arg5[%c0_12, %c0_13] : memref<1x4xf32, #tpu.memory_space<vmem>>, vector<1x4xf32>
    %26 = vector.broadcast %25 : vector<1x4xf32> to vector<512x4xf32>
    %27 = arith.addf %24, %26 : vector<512x4xf32>
    %c0_14 = arith.constant 0 : index
    %c0_15 = arith.constant 0 : index
    %28 = vector.load %arg6[%c0_14, %c0_15] : memref<512x4xf32, #tpu.memory_space<vmem>>, vector<512x4xf32>
    tpu.vector_store %arg6[%c0_14, %c0_15], %27 {strides = array<i32>} : memref<512x4xf32, #tpu.memory_space<vmem>>, vector<512x4xf32>,
    return
  }
  func.func @transform_0(%arg0: i32) -> (i32, i32) {
    %c0_i32 = arith.constant 0 : i32
    %c0_i32_0 = arith.constant 0 : i32
    return %arg0, %c0_i32 : i32, i32
  }
  func.func @transform_1(%arg0: i32) -> (i32, i32) {
    %c0_i32 = arith.constant 0 : i32
    %c0_i32_0 = arith.constant 0 : i32
    %c0_i32_1 = arith.constant 0 : i32
    return %c0_i32, %c0_i32_0 : i32, i32
  }
  func.func @transform_2(%arg0: i32) -> (i32, i32) {
    %c0_i32 = arith.constant 0 : i32
    %c0_i32_0 = arith.constant 0 : i32
    %c0_i32_1 = arith.constant 0 : i32
    return %c0_i32, %c0_i32_0 : i32, i32
  }
  func.func @transform_3(%arg0: i32) -> (i32, i32) {
    %c0_i32 = arith.constant 0 : i32
    %c0_i32_0 = arith.constant 0 : i32
    %c0_i32_1 = arith.constant 0 : i32
    return %c0_i32, %c0_i32_0 : i32, i32
  }
  func.func @transform_4(%arg0: i32) -> (i32, i32) {
    %c0_i32 = arith.constant 0 : i32
    %c0_i32_0 = arith.constant 0 : i32
    %c0_i32_1 = arith.constant 0 : i32
    return %c0_i32, %c0_i32_0 : i32, i32
  }
  func.func @transform_5(%arg0: i32) -> (i32, i32) {
    %c0_i32 = arith.constant 0 : i32
    %c0_i32_0 = arith.constant 0 : i32
    return %arg0, %c0_i32 : i32, i32
  }
}

module attributes {stable_mosaic.version = 11 : i64} {
  func.func @_ln_linear_kernel(%arg0: i32, %arg1: memref<32x32xf32, #tpu.memory_space<vmem>>, %arg2: memref<1x32xf32, #tpu.memory_space<vmem>>, %arg3: memref<1x32xf32, #tpu.memory_space<vmem>>, %arg4: memref<32x96xf32, #tpu.memory_space<vmem>>, %arg5: memref<1x96xf32, #tpu.memory_space<vmem>>, %arg6: memref<32x96xf32, #tpu.memory_space<vmem>>) attributes {dimension_semantics = [#tpu.dimension_semantics<parallel>], iteration_bounds = array<i64: 1>, scalar_prefetch = 0 : i64, scratch_operands = 0 : i64, tpu.core_type = #tpu.core_type<tc>, window_params = [{transform_indices = @transform_0, window_bounds = array<i64: 32, 32>}, {pipeline_mode = #tpu.pipeline_mode<synchronous>, transform_indices = @transform_1, window_bounds = array<i64: 1, 32>}, {pipeline_mode = #tpu.pipeline_mode<synchronous>, transform_indices = @transform_2, window_bounds = array<i64: 1, 32>}, {pipeline_mode = #tpu.pipeline_mode<synchronous>, transform_indices = @transform_3, window_bounds = array<i64: 32, 96>}, {pipeline_mode = #tpu.pipeline_mode<synchronous>, transform_indices = @transform_4, window_bounds = array<i64: 1, 96>}, {transform_indices = @transform_5, window_bounds = array<i64: 32, 96>}]} {
    %c0 = arith.constant 0 : index
    %c0_0 = arith.constant 0 : index
    %0 = vector.load %arg1[%c0, %c0_0] : memref<32x32xf32, #tpu.memory_space<vmem>>, vector<32x32xf32>
    %c0_1 = arith.constant 0 : index
    %c0_2 = arith.constant 0 : index
    %1 = vector.load %arg2[%c0_1, %c0_2] : memref<1x32xf32, #tpu.memory_space<vmem>>, vector<1x32xf32>
    %c0_3 = arith.constant 0 : index
    %c0_4 = arith.constant 0 : index
    %2 = vector.load %arg3[%c0_3, %c0_4] : memref<1x32xf32, #tpu.memory_space<vmem>>, vector<1x32xf32>
    %cst = arith.constant dense<0.000000e+00> : vector<32xf32>
    %3 = vector.multi_reduction <add>, %0, %cst [1] : vector<32x32xf32> to vector<32xf32>
    %4 = vector.shape_cast %3 : vector<32xf32> to vector<32x1xf32>
    %cst_5 = arith.constant 3.200000e+01 : f32
    %5 = vector.broadcast %cst_5 : f32 to vector<32x1xf32>
    %6 = arith.divf %4, %5 : vector<32x1xf32>
    %7 = vector.broadcast %6 : vector<32x1xf32> to vector<32x32xf32>
    %8 = arith.subf %0, %7 : vector<32x32xf32>
    %9 = arith.mulf %8, %8 : vector<32x32xf32>
    %cst_6 = arith.constant dense<0.000000e+00> : vector<32xf32>
    %10 = vector.multi_reduction <add>, %9, %cst_6 [1] : vector<32x32xf32> to vector<32xf32>
    %11 = vector.shape_cast %10 : vector<32xf32> to vector<32x1xf32>
    %cst_7 = arith.constant 3.200000e+01 : f32
    %12 = vector.broadcast %cst_7 : f32 to vector<32x1xf32>
    %13 = arith.divf %11, %12 : vector<32x1xf32>
    %cst_8 = arith.constant 9.99999974E-6 : f32
    %14 = vector.broadcast %cst_8 : f32 to vector<32x1xf32>
    %15 = arith.addf %13, %14 : vector<32x1xf32>
    %16 = math.rsqrt %15 : vector<32x1xf32>
    %17 = vector.broadcast %16 : vector<32x1xf32> to vector<32x32xf32>
    %18 = arith.mulf %8, %17 : vector<32x32xf32>
    %19 = vector.broadcast %1 : vector<1x32xf32> to vector<32x32xf32>
    %20 = arith.mulf %18, %19 : vector<32x32xf32>
    %21 = vector.broadcast %2 : vector<1x32xf32> to vector<32x32xf32>
    %22 = arith.addf %20, %21 : vector<32x32xf32>
    %c0_9 = arith.constant 0 : index
    %c0_10 = arith.constant 0 : index
    %23 = vector.load %arg4[%c0_9, %c0_10] : memref<32x96xf32, #tpu.memory_space<vmem>>, vector<32x96xf32>
    %cst_11 = arith.constant dense<0.000000e+00> : vector<32x96xf32>
    %24 = tpu.matmul %22, %23, %cst_11 {dimension_numbers = #tpu.dot_dimension_numbers<[1], [0], [0], [1], [0, 0, 1, 1], [], []>} : vector<32x32xf32>, vector<32x96xf32>, vector<32x96xf32> -> vector<32x96xf32>
    %c0_12 = arith.constant 0 : index
    %c0_13 = arith.constant 0 : index
    %25 = vector.load %arg5[%c0_12, %c0_13] : memref<1x96xf32, #tpu.memory_space<vmem>>, vector<1x96xf32>
    %26 = vector.broadcast %25 : vector<1x96xf32> to vector<32x96xf32>
    %27 = arith.addf %24, %26 : vector<32x96xf32>
    %c0_14 = arith.constant 0 : index
    %c0_15 = arith.constant 0 : index
    %28 = vector.load %arg6[%c0_14, %c0_15] : memref<32x96xf32, #tpu.memory_space<vmem>>, vector<32x96xf32>
    tpu.vector_store %arg6[%c0_14, %c0_15], %27 {strides = array<i32>} : memref<32x96xf32, #tpu.memory_space<vmem>>, vector<32x96xf32>,
    return
  }
  func.func @transform_0(%arg0: i32) -> (i32, i32) {
    %c0_i32 = arith.constant 0 : i32
    %c0_i32_0 = arith.constant 0 : i32
    return %arg0, %c0_i32 : i32, i32
  }
  func.func @transform_1(%arg0: i32) -> (i32, i32) {
    %c0_i32 = arith.constant 0 : i32
    %c0_i32_0 = arith.constant 0 : i32
    %c0_i32_1 = arith.constant 0 : i32
    return %c0_i32, %c0_i32_0 : i32, i32
  }
  func.func @transform_2(%arg0: i32) -> (i32, i32) {
    %c0_i32 = arith.constant 0 : i32
    %c0_i32_0 = arith.constant 0 : i32
    %c0_i32_1 = arith.constant 0 : i32
    return %c0_i32, %c0_i32_0 : i32, i32
  }
  func.func @transform_3(%arg0: i32) -> (i32, i32) {
    %c0_i32 = arith.constant 0 : i32
    %c0_i32_0 = arith.constant 0 : i32
    %c0_i32_1 = arith.constant 0 : i32
    return %c0_i32, %c0_i32_0 : i32, i32
  }
  func.func @transform_4(%arg0: i32) -> (i32, i32) {
    %c0_i32 = arith.constant 0 : i32
    %c0_i32_0 = arith.constant 0 : i32
    %c0_i32_1 = arith.constant 0 : i32
    return %c0_i32, %c0_i32_0 : i32, i32
  }
  func.func @transform_5(%arg0: i32) -> (i32, i32) {
    %c0_i32 = arith.constant 0 : i32
    %c0_i32_0 = arith.constant 0 : i32
    return %arg0, %c0_i32 : i32, i32
  }
}

module attributes {stable_mosaic.version = 11 : i64} {
  func.func @_attn_kernel(%arg0: i32, %arg1: memref<1x16x96xf32, #tpu.memory_space<vmem>>, %arg2: memref<1x4x16x16xf32, #tpu.memory_space<vmem>>, %arg3: memref<1x16x32xf32, #tpu.memory_space<vmem>>, %arg4: memref<32x32xf32, #tpu.memory_space<vmem>>, %arg5: memref<1x32xf32, #tpu.memory_space<vmem>>, %arg6: memref<1x16x32xf32, #tpu.memory_space<vmem>>) attributes {dimension_semantics = [#tpu.dimension_semantics<parallel>], iteration_bounds = array<i64: 2>, scalar_prefetch = 0 : i64, scratch_operands = 0 : i64, tpu.core_type = #tpu.core_type<tc>, window_params = [{transform_indices = @transform_0, window_bounds = array<i64: 1, 16, 96>}, {transform_indices = @transform_1, window_bounds = array<i64: 1, 4, 16, 16>}, {transform_indices = @transform_2, window_bounds = array<i64: 1, 16, 32>}, {pipeline_mode = #tpu.pipeline_mode<synchronous>, transform_indices = @transform_3, window_bounds = array<i64: 32, 32>}, {pipeline_mode = #tpu.pipeline_mode<synchronous>, transform_indices = @transform_4, window_bounds = array<i64: 1, 32>}, {transform_indices = @transform_5, window_bounds = array<i64: 1, 16, 32>}]} {
    %cst = arith.constant 0.000000e+00 : f32
    %0 = vector.broadcast %cst : f32 to vector<16x32xf32>
    %c0 = arith.constant 0 : index
    %c0_0 = arith.constant 0 : index
    %c0_1 = arith.constant 0 : index
    %1 = vector.load %arg1[%c0, %c0_0, %c0_1] : memref<1x16x96xf32, #tpu.memory_space<vmem>>, vector<1x16x8xf32>
    %2 = vector.shape_cast %1 : vector<1x16x8xf32> to vector<16x8xf32>
    %cst_2 = arith.constant 0.353553385 : f32
    %3 = vector.broadcast %cst_2 : f32 to vector<16x8xf32>
    %4 = arith.mulf %2, %3 : vector<16x8xf32>
    %c0_3 = arith.constant 0 : index
    %c0_4 = arith.constant 0 : index
    %c32 = arith.constant 32 : index
    %5 = vector.load %arg1[%c0_3, %c0_4, %c32] : memref<1x16x96xf32, #tpu.memory_space<vmem>>, vector<1x16x8xf32>
    %6 = vector.shape_cast %5 : vector<1x16x8xf32> to vector<16x8xf32>
    %c0_5 = arith.constant 0 : index
    %c0_6 = arith.constant 0 : index
    %c64 = arith.constant 64 : index
    %7 = vector.load %arg1[%c0_5, %c0_6, %c64] : memref<1x16x96xf32, #tpu.memory_space<vmem>>, vector<1x16x8xf32>
    %8 = vector.shape_cast %7 : vector<1x16x8xf32> to vector<16x8xf32>
    %cst_7 = arith.constant dense<0.000000e+00> : vector<16x16xf32>
    %9 = tpu.matmul %4, %6, %cst_7 {dimension_numbers = #tpu.dot_dimension_numbers<[1], [1], [0], [0], [0, 0, 1, 0], [], []>} : vector<16x8xf32>, vector<16x8xf32>, vector<16x16xf32> -> vector<16x16xf32>
    %c0_8 = arith.constant 0 : index
    %c0_9 = arith.constant 0 : index
    %c0_10 = arith.constant 0 : index
    %c0_11 = arith.constant 0 : index
    %10 = vector.load %arg2[%c0_8, %c0_9, %c0_10, %c0_11] : memref<1x4x16x16xf32, #tpu.memory_space<vmem>>, vector<1x1x16x16xf32>
    %11 = vector.shape_cast %10 : vector<1x1x16x16xf32> to vector<16x16xf32>
    %12 = arith.addf %9, %11 : vector<16x16xf32>
    %cst_12 = arith.constant dense<0xFF800000> : vector<16xf32>
    %13 = vector.multi_reduction <maximumf>, %12, %cst_12 [1] : vector<16x16xf32> to vector<16xf32>
    %14 = vector.shape_cast %13 : vector<16xf32> to vector<16x1xf32>
    %15 = vector.broadcast %14 : vector<16x1xf32> to vector<16x16xf32>
    %16 = arith.subf %12, %15 : vector<16x16xf32>
    %17 = math.exp %16 : vector<16x16xf32>
    %cst_13 = arith.constant dense<0.000000e+00> : vector<16xf32>
    %18 = vector.multi_reduction <add>, %17, %cst_13 [1] : vector<16x16xf32> to vector<16xf32>
    %19 = vector.shape_cast %18 : vector<16xf32> to vector<16x1xf32>
    %20 = tpu.reciprocal %19 {approx = true} : vector<16x1xf32> -> vector<16x1xf32>
    %21 = vector.broadcast %20 : vector<16x1xf32> to vector<16x16xf32>
    %22 = arith.mulf %17, %21 : vector<16x16xf32>
    %cst_14 = arith.constant dense<0.000000e+00> : vector<16x8xf32>
    %23 = tpu.matmul %22, %8, %cst_14 {dimension_numbers = #tpu.dot_dimension_numbers<[1], [0], [0], [1], [0, 0, 1, 1], [], []>} : vector<16x16xf32>, vector<16x8xf32>, vector<16x8xf32> -> vector<16x8xf32>
    %c0_15 = arith.constant 0 : index
    %c0_16 = arith.constant 0 : index
    %24 = vector.load %arg4[%c0_15, %c0_16] : memref<32x32xf32, #tpu.memory_space<vmem>>, vector<8x32xf32>
    %cst_17 = arith.constant dense<0.000000e+00> : vector<16x32xf32>
    %25 = tpu.matmul %23, %24, %cst_17 {dimension_numbers = #tpu.dot_dimension_numbers<[1], [0], [0], [1], [0, 0, 1, 1], [], []>} : vector<16x8xf32>, vector<8x32xf32>, vector<16x32xf32> -> vector<16x32xf32>
    %26 = arith.addf %0, %25 : vector<16x32xf32>
    %c0_18 = arith.constant 0 : index
    %c0_19 = arith.constant 0 : index
    %c8 = arith.constant 8 : index
    %27 = vector.load %arg1[%c0_18, %c0_19, %c8] : memref<1x16x96xf32, #tpu.memory_space<vmem>>, vector<1x16x8xf32>
    %28 = vector.shape_cast %27 : vector<1x16x8xf32> to vector<16x8xf32>
    %cst_20 = arith.constant 0.353553385 : f32
    %29 = vector.broadcast %cst_20 : f32 to vector<16x8xf32>
    %30 = arith.mulf %28, %29 : vector<16x8xf32>
    %c0_21 = arith.constant 0 : index
    %c0_22 = arith.constant 0 : index
    %c40 = arith.constant 40 : index
    %31 = vector.load %arg1[%c0_21, %c0_22, %c40] : memref<1x16x96xf32, #tpu.memory_space<vmem>>, vector<1x16x8xf32>
    %32 = vector.shape_cast %31 : vector<1x16x8xf32> to vector<16x8xf32>
    %c0_23 = arith.constant 0 : index
    %c0_24 = arith.constant 0 : index
    %c72 = arith.constant 72 : index
    %33 = vector.load %arg1[%c0_23, %c0_24, %c72] : memref<1x16x96xf32, #tpu.memory_space<vmem>>, vector<1x16x8xf32>
    %34 = vector.shape_cast %33 : vector<1x16x8xf32> to vector<16x8xf32>
    %cst_25 = arith.constant dense<0.000000e+00> : vector<16x16xf32>
    %35 = tpu.matmul %30, %32, %cst_25 {dimension_numbers = #tpu.dot_dimension_numbers<[1], [1], [0], [0], [0, 0, 1, 0], [], []>} : vector<16x8xf32>, vector<16x8xf32>, vector<16x16xf32> -> vector<16x16xf32>
    %c0_26 = arith.constant 0 : index
    %c1 = arith.constant 1 : index
    %c0_27 = arith.constant 0 : index
    %c0_28 = arith.constant 0 : index
    %36 = vector.load %arg2[%c0_26, %c1, %c0_27, %c0_28] : memref<1x4x16x16xf32, #tpu.memory_space<vmem>>, vector<1x1x16x16xf32>
    %37 = vector.shape_cast %36 : vector<1x1x16x16xf32> to vector<16x16xf32>
    %38 = arith.addf %35, %37 : vector<16x16xf32>
    %cst_29 = arith.constant dense<0xFF800000> : vector<16xf32>
    %39 = vector.multi_reduction <maximumf>, %38, %cst_29 [1] : vector<16x16xf32> to vector<16xf32>
    %40 = vector.shape_cast %39 : vector<16xf32> to vector<16x1xf32>
    %41 = vector.broadcast %40 : vector<16x1xf32> to vector<16x16xf32>
    %42 = arith.subf %38, %41 : vector<16x16xf32>
    %43 = math.exp %42 : vector<16x16xf32>
    %cst_30 = arith.constant dense<0.000000e+00> : vector<16xf32>
    %44 = vector.multi_reduction <add>, %43, %cst_30 [1] : vector<16x16xf32> to vector<16xf32>
    %45 = vector.shape_cast %44 : vector<16xf32> to vector<16x1xf32>
    %46 = tpu.reciprocal %45 {approx = true} : vector<16x1xf32> -> vector<16x1xf32>
    %47 = vector.broadcast %46 : vector<16x1xf32> to vector<16x16xf32>
    %48 = arith.mulf %43, %47 : vector<16x16xf32>
    %cst_31 = arith.constant dense<0.000000e+00> : vector<16x8xf32>
    %49 = tpu.matmul %48, %34, %cst_31 {dimension_numbers = #tpu.dot_dimension_numbers<[1], [0], [0], [1], [0, 0, 1, 1], [], []>} : vector<16x16xf32>, vector<16x8xf32>, vector<16x8xf32> -> vector<16x8xf32>
    %c8_32 = arith.constant 8 : index
    %c0_33 = arith.constant 0 : index
    %50 = vector.load %arg4[%c8_32, %c0_33] : memref<32x32xf32, #tpu.memory_space<vmem>>, vector<8x32xf32>
    %cst_34 = arith.constant dense<0.000000e+00> : vector<16x32xf32>
    %51 = tpu.matmul %49, %50, %cst_34 {dimension_numbers = #tpu.dot_dimension_numbers<[1], [0], [0], [1], [0, 0, 1, 1], [], []>} : vector<16x8xf32>, vector<8x32xf32>, vector<16x32xf32> -> vector<16x32xf32>
    %52 = arith.addf %26, %51 : vector<16x32xf32>
    %c0_35 = arith.constant 0 : index
    %c0_36 = arith.constant 0 : index
    %c16 = arith.constant 16 : index
    %53 = vector.load %arg1[%c0_35, %c0_36, %c16] : memref<1x16x96xf32, #tpu.memory_space<vmem>>, vector<1x16x8xf32>
    %54 = vector.shape_cast %53 : vector<1x16x8xf32> to vector<16x8xf32>
    %cst_37 = arith.constant 0.353553385 : f32
    %55 = vector.broadcast %cst_37 : f32 to vector<16x8xf32>
    %56 = arith.mulf %54, %55 : vector<16x8xf32>
    %c0_38 = arith.constant 0 : index
    %c0_39 = arith.constant 0 : index
    %c48 = arith.constant 48 : index
    %57 = vector.load %arg1[%c0_38, %c0_39, %c48] : memref<1x16x96xf32, #tpu.memory_space<vmem>>, vector<1x16x8xf32>
    %58 = vector.shape_cast %57 : vector<1x16x8xf32> to vector<16x8xf32>
    %c0_40 = arith.constant 0 : index
    %c0_41 = arith.constant 0 : index
    %c80 = arith.constant 80 : index
    %59 = vector.load %arg1[%c0_40, %c0_41, %c80] : memref<1x16x96xf32, #tpu.memory_space<vmem>>, vector<1x16x8xf32>
    %60 = vector.shape_cast %59 : vector<1x16x8xf32> to vector<16x8xf32>
    %cst_42 = arith.constant dense<0.000000e+00> : vector<16x16xf32>
    %61 = tpu.matmul %56, %58, %cst_42 {dimension_numbers = #tpu.dot_dimension_numbers<[1], [1], [0], [0], [0, 0, 1, 0], [], []>} : vector<16x8xf32>, vector<16x8xf32>, vector<16x16xf32> -> vector<16x16xf32>
    %c0_43 = arith.constant 0 : index
    %c2 = arith.constant 2 : index
    %c0_44 = arith.constant 0 : index
    %c0_45 = arith.constant 0 : index
    %62 = vector.load %arg2[%c0_43, %c2, %c0_44, %c0_45] : memref<1x4x16x16xf32, #tpu.memory_space<vmem>>, vector<1x1x16x16xf32>
    %63 = vector.shape_cast %62 : vector<1x1x16x16xf32> to vector<16x16xf32>
    %64 = arith.addf %61, %63 : vector<16x16xf32>
    %cst_46 = arith.constant dense<0xFF800000> : vector<16xf32>
    %65 = vector.multi_reduction <maximumf>, %64, %cst_46 [1] : vector<16x16xf32> to vector<16xf32>
    %66 = vector.shape_cast %65 : vector<16xf32> to vector<16x1xf32>
    %67 = vector.broadcast %66 : vector<16x1xf32> to vector<16x16xf32>
    %68 = arith.subf %64, %67 : vector<16x16xf32>
    %69 = math.exp %68 : vector<16x16xf32>
    %cst_47 = arith.constant dense<0.000000e+00> : vector<16xf32>
    %70 = vector.multi_reduction <add>, %69, %cst_47 [1] : vector<16x16xf32> to vector<16xf32>
    %71 = vector.shape_cast %70 : vector<16xf32> to vector<16x1xf32>
    %72 = tpu.reciprocal %71 {approx = true} : vector<16x1xf32> -> vector<16x1xf32>
    %73 = vector.broadcast %72 : vector<16x1xf32> to vector<16x16xf32>
    %74 = arith.mulf %69, %73 : vector<16x16xf32>
    %cst_48 = arith.constant dense<0.000000e+00> : vector<16x8xf32>
    %75 = tpu.matmul %74, %60, %cst_48 {dimension_numbers = #tpu.dot_dimension_numbers<[1], [0], [0], [1], [0, 0, 1, 1], [], []>} : vector<16x16xf32>, vector<16x8xf32>, vector<16x8xf32> -> vector<16x8xf32>
    %c16_49 = arith.constant 16 : index
    %c0_50 = arith.constant 0 : index
    %76 = vector.load %arg4[%c16_49, %c0_50] : memref<32x32xf32, #tpu.memory_space<vmem>>, vector<8x32xf32>
    %cst_51 = arith.constant dense<0.000000e+00> : vector<16x32xf32>
    %77 = tpu.matmul %75, %76, %cst_51 {dimension_numbers = #tpu.dot_dimension_numbers<[1], [0], [0], [1], [0, 0, 1, 1], [], []>} : vector<16x8xf32>, vector<8x32xf32>, vector<16x32xf32> -> vector<16x32xf32>
    %78 = arith.addf %52, %77 : vector<16x32xf32>
    %c0_52 = arith.constant 0 : index
    %c0_53 = arith.constant 0 : index
    %c24 = arith.constant 24 : index
    %79 = vector.load %arg1[%c0_52, %c0_53, %c24] : memref<1x16x96xf32, #tpu.memory_space<vmem>>, vector<1x16x8xf32>
    %80 = vector.shape_cast %79 : vector<1x16x8xf32> to vector<16x8xf32>
    %cst_54 = arith.constant 0.353553385 : f32
    %81 = vector.broadcast %cst_54 : f32 to vector<16x8xf32>
    %82 = arith.mulf %80, %81 : vector<16x8xf32>
    %c0_55 = arith.constant 0 : index
    %c0_56 = arith.constant 0 : index
    %c56 = arith.constant 56 : index
    %83 = vector.load %arg1[%c0_55, %c0_56, %c56] : memref<1x16x96xf32, #tpu.memory_space<vmem>>, vector<1x16x8xf32>
    %84 = vector.shape_cast %83 : vector<1x16x8xf32> to vector<16x8xf32>
    %c0_57 = arith.constant 0 : index
    %c0_58 = arith.constant 0 : index
    %c88 = arith.constant 88 : index
    %85 = vector.load %arg1[%c0_57, %c0_58, %c88] : memref<1x16x96xf32, #tpu.memory_space<vmem>>, vector<1x16x8xf32>
    %86 = vector.shape_cast %85 : vector<1x16x8xf32> to vector<16x8xf32>
    %cst_59 = arith.constant dense<0.000000e+00> : vector<16x16xf32>
    %87 = tpu.matmul %82, %84, %cst_59 {dimension_numbers = #tpu.dot_dimension_numbers<[1], [1], [0], [0], [0, 0, 1, 0], [], []>} : vector<16x8xf32>, vector<16x8xf32>, vector<16x16xf32> -> vector<16x16xf32>
    %c0_60 = arith.constant 0 : index
    %c3 = arith.constant 3 : index
    %c0_61 = arith.constant 0 : index
    %c0_62 = arith.constant 0 : index
    %88 = vector.load %arg2[%c0_60, %c3, %c0_61, %c0_62] : memref<1x4x16x16xf32, #tpu.memory_space<vmem>>, vector<1x1x16x16xf32>
    %89 = vector.shape_cast %88 : vector<1x1x16x16xf32> to vector<16x16xf32>
    %90 = arith.addf %87, %89 : vector<16x16xf32>
    %cst_63 = arith.constant dense<0xFF800000> : vector<16xf32>
    %91 = vector.multi_reduction <maximumf>, %90, %cst_63 [1] : vector<16x16xf32> to vector<16xf32>
    %92 = vector.shape_cast %91 : vector<16xf32> to vector<16x1xf32>
    %93 = vector.broadcast %92 : vector<16x1xf32> to vector<16x16xf32>
    %94 = arith.subf %90, %93 : vector<16x16xf32>
    %95 = math.exp %94 : vector<16x16xf32>
    %cst_64 = arith.constant dense<0.000000e+00> : vector<16xf32>
    %96 = vector.multi_reduction <add>, %95, %cst_64 [1] : vector<16x16xf32> to vector<16xf32>
    %97 = vector.shape_cast %96 : vector<16xf32> to vector<16x1xf32>
    %98 = tpu.reciprocal %97 {approx = true} : vector<16x1xf32> -> vector<16x1xf32>
    %99 = vector.broadcast %98 : vector<16x1xf32> to vector<16x16xf32>
    %100 = arith.mulf %95, %99 : vector<16x16xf32>
    %cst_65 = arith.constant dense<0.000000e+00> : vector<16x8xf32>
    %101 = tpu.matmul %100, %86, %cst_65 {dimension_numbers = #tpu.dot_dimension_numbers<[1], [0], [0], [1], [0, 0, 1, 1], [], []>} : vector<16x16xf32>, vector<16x8xf32>, vector<16x8xf32> -> vector<16x8xf32>
    %c24_66 = arith.constant 24 : index
    %c0_67 = arith.constant 0 : index
    %102 = vector.load %arg4[%c24_66, %c0_67] : memref<32x32xf32, #tpu.memory_space<vmem>>, vector<8x32xf32>
    %cst_68 = arith.constant dense<0.000000e+00> : vector<16x32xf32>
    %103 = tpu.matmul %101, %102, %cst_68 {dimension_numbers = #tpu.dot_dimension_numbers<[1], [0], [0], [1], [0, 0, 1, 1], [], []>} : vector<16x8xf32>, vector<8x32xf32>, vector<16x32xf32> -> vector<16x32xf32>
    %104 = arith.addf %78, %103 : vector<16x32xf32>
    %c0_69 = arith.constant 0 : index
    %c0_70 = arith.constant 0 : index
    %c0_71 = arith.constant 0 : index
    %105 = vector.load %arg3[%c0_69, %c0_70, %c0_71] : memref<1x16x32xf32, #tpu.memory_space<vmem>>, vector<1x16x32xf32>
    %106 = vector.shape_cast %105 : vector<1x16x32xf32> to vector<16x32xf32>
    %107 = arith.addf %106, %104 : vector<16x32xf32>
    %c0_72 = arith.constant 0 : index
    %c0_73 = arith.constant 0 : index
    %108 = vector.load %arg5[%c0_72, %c0_73] : memref<1x32xf32, #tpu.memory_space<vmem>>, vector<1x32xf32>
    %109 = vector.broadcast %108 : vector<1x32xf32> to vector<16x32xf32>
    %110 = arith.addf %107, %109 : vector<16x32xf32>
    %c0_74 = arith.constant 0 : index
    %c0_75 = arith.constant 0 : index
    %c0_76 = arith.constant 0 : index
    %111 = vector.load %arg6[%c0_74, %c0_75, %c0_76] : memref<1x16x32xf32, #tpu.memory_space<vmem>>, vector<1x16x32xf32>
    %112 = vector.shape_cast %111 : vector<1x16x32xf32> to vector<16x32xf32>
    %113 = vector.shape_cast %110 : vector<16x32xf32> to vector<1x16x32xf32>
    tpu.vector_store %arg6[%c0_74, %c0_75, %c0_76], %113 {strides = array<i32>} : memref<1x16x32xf32, #tpu.memory_space<vmem>>, vector<1x16x32xf32>,
    return
  }
  func.func @transform_0(%arg0: i32) -> (i32, i32, i32) {
    %c0_i32 = arith.constant 0 : i32
    %c0_i32_0 = arith.constant 0 : i32
    %c0_i32_1 = arith.constant 0 : i32
    return %arg0, %c0_i32, %c0_i32_0 : i32, i32, i32
  }
  func.func @transform_1(%arg0: i32) -> (i32, i32, i32, i32) {
    %c0_i32 = arith.constant 0 : i32
    %c0_i32_0 = arith.constant 0 : i32
    %c0_i32_1 = arith.constant 0 : i32
    %c0_i32_2 = arith.constant 0 : i32
    return %arg0, %c0_i32, %c0_i32_0, %c0_i32_1 : i32, i32, i32, i32
  }
  func.func @transform_2(%arg0: i32) -> (i32, i32, i32) {
    %c0_i32 = arith.constant 0 : i32
    %c0_i32_0 = arith.constant 0 : i32
    %c0_i32_1 = arith.constant 0 : i32
    return %arg0, %c0_i32, %c0_i32_0 : i32, i32, i32
  }
  func.func @transform_3(%arg0: i32) -> (i32, i32) {
    %c0_i32 = arith.constant 0 : i32
    %c0_i32_0 = arith.constant 0 : i32
    %c0_i32_1 = arith.constant 0 : i32
    return %c0_i32, %c0_i32_0 : i32, i32
  }
  func.func @transform_4(%arg0: i32) -> (i32, i32) {
    %c0_i32 = arith.constant 0 : i32
    %c0_i32_0 = arith.constant 0 : i32
    %c0_i32_1 = arith.constant 0 : i32
    return %c0_i32, %c0_i32_0 : i32, i32
  }
  func.func @transform_5(%arg0: i32) -> (i32, i32, i32) {
    %c0_i32 = arith.constant 0 : i32
    %c0_i32_0 = arith.constant 0 : i32
    %c0_i32_1 = arith.constant 0 : i32
    return %arg0, %c0_i32, %c0_i32_0 : i32, i32, i32
  }
}

module attributes {stable_mosaic.version = 11 : i64} {
  func.func @_ln_ffn_kernel(%arg0: i32, %arg1: memref<32x32xf32, #tpu.memory_space<vmem>>, %arg2: memref<1x32xf32, #tpu.memory_space<vmem>>, %arg3: memref<1x32xf32, #tpu.memory_space<vmem>>, %arg4: memref<32x64xf32, #tpu.memory_space<vmem>>, %arg5: memref<1x64xf32, #tpu.memory_space<vmem>>, %arg6: memref<64x32xf32, #tpu.memory_space<vmem>>, %arg7: memref<1x32xf32, #tpu.memory_space<vmem>>, %arg8: memref<32x32xf32, #tpu.memory_space<vmem>>) attributes {dimension_semantics = [#tpu.dimension_semantics<parallel>], iteration_bounds = array<i64: 1>, scalar_prefetch = 0 : i64, scratch_operands = 0 : i64, tpu.core_type = #tpu.core_type<tc>, window_params = [{transform_indices = @transform_0, window_bounds = array<i64: 32, 32>}, {pipeline_mode = #tpu.pipeline_mode<synchronous>, transform_indices = @transform_1, window_bounds = array<i64: 1, 32>}, {pipeline_mode = #tpu.pipeline_mode<synchronous>, transform_indices = @transform_2, window_bounds = array<i64: 1, 32>}, {pipeline_mode = #tpu.pipeline_mode<synchronous>, transform_indices = @transform_3, window_bounds = array<i64: 32, 64>}, {pipeline_mode = #tpu.pipeline_mode<synchronous>, transform_indices = @transform_4, window_bounds = array<i64: 1, 64>}, {pipeline_mode = #tpu.pipeline_mode<synchronous>, transform_indices = @transform_5, window_bounds = array<i64: 64, 32>}, {pipeline_mode = #tpu.pipeline_mode<synchronous>, transform_indices = @transform_6, window_bounds = array<i64: 1, 32>}, {transform_indices = @transform_7, window_bounds = array<i64: 32, 32>}]} {
    %c0 = arith.constant 0 : index
    %c0_0 = arith.constant 0 : index
    %0 = vector.load %arg1[%c0, %c0_0] : memref<32x32xf32, #tpu.memory_space<vmem>>, vector<32x32xf32>
    %c0_1 = arith.constant 0 : index
    %c0_2 = arith.constant 0 : index
    %1 = vector.load %arg2[%c0_1, %c0_2] : memref<1x32xf32, #tpu.memory_space<vmem>>, vector<1x32xf32>
    %c0_3 = arith.constant 0 : index
    %c0_4 = arith.constant 0 : index
    %2 = vector.load %arg3[%c0_3, %c0_4] : memref<1x32xf32, #tpu.memory_space<vmem>>, vector<1x32xf32>
    %cst = arith.constant dense<0.000000e+00> : vector<32xf32>
    %3 = vector.multi_reduction <add>, %0, %cst [1] : vector<32x32xf32> to vector<32xf32>
    %4 = vector.shape_cast %3 : vector<32xf32> to vector<32x1xf32>
    %cst_5 = arith.constant 3.200000e+01 : f32
    %5 = vector.broadcast %cst_5 : f32 to vector<32x1xf32>
    %6 = arith.divf %4, %5 : vector<32x1xf32>
    %7 = vector.broadcast %6 : vector<32x1xf32> to vector<32x32xf32>
    %8 = arith.subf %0, %7 : vector<32x32xf32>
    %9 = arith.mulf %8, %8 : vector<32x32xf32>
    %cst_6 = arith.constant dense<0.000000e+00> : vector<32xf32>
    %10 = vector.multi_reduction <add>, %9, %cst_6 [1] : vector<32x32xf32> to vector<32xf32>
    %11 = vector.shape_cast %10 : vector<32xf32> to vector<32x1xf32>
    %cst_7 = arith.constant 3.200000e+01 : f32
    %12 = vector.broadcast %cst_7 : f32 to vector<32x1xf32>
    %13 = arith.divf %11, %12 : vector<32x1xf32>
    %cst_8 = arith.constant 9.99999974E-6 : f32
    %14 = vector.broadcast %cst_8 : f32 to vector<32x1xf32>
    %15 = arith.addf %13, %14 : vector<32x1xf32>
    %16 = math.rsqrt %15 : vector<32x1xf32>
    %17 = vector.broadcast %16 : vector<32x1xf32> to vector<32x32xf32>
    %18 = arith.mulf %8, %17 : vector<32x32xf32>
    %19 = vector.broadcast %1 : vector<1x32xf32> to vector<32x32xf32>
    %20 = arith.mulf %18, %19 : vector<32x32xf32>
    %21 = vector.broadcast %2 : vector<1x32xf32> to vector<32x32xf32>
    %22 = arith.addf %20, %21 : vector<32x32xf32>
    %c0_9 = arith.constant 0 : index
    %c0_10 = arith.constant 0 : index
    %23 = vector.load %arg4[%c0_9, %c0_10] : memref<32x64xf32, #tpu.memory_space<vmem>>, vector<32x64xf32>
    %cst_11 = arith.constant dense<0.000000e+00> : vector<32x64xf32>
    %24 = tpu.matmul %22, %23, %cst_11 {dimension_numbers = #tpu.dot_dimension_numbers<[1], [0], [0], [1], [0, 0, 1, 1], [], []>} : vector<32x32xf32>, vector<32x64xf32>, vector<32x64xf32> -> vector<32x64xf32>
    %c0_12 = arith.constant 0 : index
    %c0_13 = arith.constant 0 : index
    %25 = vector.load %arg5[%c0_12, %c0_13] : memref<1x64xf32, #tpu.memory_space<vmem>>, vector<1x64xf32>
    %26 = vector.broadcast %25 : vector<1x64xf32> to vector<32x64xf32>
    %27 = arith.addf %24, %26 : vector<32x64xf32>
    %cst_14 = arith.constant 0.000000e+00 : f32
    %28 = vector.broadcast %cst_14 : f32 to vector<32x64xf32>
    %29 = arith.maximumf %27, %28 : vector<32x64xf32>
    %c0_15 = arith.constant 0 : index
    %c0_16 = arith.constant 0 : index
    %30 = vector.load %arg6[%c0_15, %c0_16] : memref<64x32xf32, #tpu.memory_space<vmem>>, vector<64x32xf32>
    %cst_17 = arith.constant dense<0.000000e+00> : vector<32x32xf32>
    %31 = tpu.matmul %29, %30, %cst_17 {dimension_numbers = #tpu.dot_dimension_numbers<[1], [0], [0], [1], [0, 0, 1, 1], [], []>} : vector<32x64xf32>, vector<64x32xf32>, vector<32x32xf32> -> vector<32x32xf32>
    %c0_18 = arith.constant 0 : index
    %c0_19 = arith.constant 0 : index
    %32 = vector.load %arg7[%c0_18, %c0_19] : memref<1x32xf32, #tpu.memory_space<vmem>>, vector<1x32xf32>
    %33 = vector.broadcast %32 : vector<1x32xf32> to vector<32x32xf32>
    %34 = arith.addf %31, %33 : vector<32x32xf32>
    %35 = arith.addf %0, %34 : vector<32x32xf32>
    %c0_20 = arith.constant 0 : index
    %c0_21 = arith.constant 0 : index
    %36 = vector.load %arg8[%c0_20, %c0_21] : memref<32x32xf32, #tpu.memory_space<vmem>>, vector<32x32xf32>
    tpu.vector_store %arg8[%c0_20, %c0_21], %35 {strides = array<i32>} : memref<32x32xf32, #tpu.memory_space<vmem>>, vector<32x32xf32>,
    return
  }
  func.func @transform_0(%arg0: i32) -> (i32, i32) {
    %c0_i32 = arith.constant 0 : i32
    %c0_i32_0 = arith.constant 0 : i32
    return %arg0, %c0_i32 : i32, i32
  }
  func.func @transform_1(%arg0: i32) -> (i32, i32) {
    %c0_i32 = arith.constant 0 : i32
    %c0_i32_0 = arith.constant 0 : i32
    %c0_i32_1 = arith.constant 0 : i32
    return %c0_i32, %c0_i32_0 : i32, i32
  }
  func.func @transform_2(%arg0: i32) -> (i32, i32) {
    %c0_i32 = arith.constant 0 : i32
    %c0_i32_0 = arith.constant 0 : i32
    %c0_i32_1 = arith.constant 0 : i32
    return %c0_i32, %c0_i32_0 : i32, i32
  }
  func.func @transform_3(%arg0: i32) -> (i32, i32) {
    %c0_i32 = arith.constant 0 : i32
    %c0_i32_0 = arith.constant 0 : i32
    %c0_i32_1 = arith.constant 0 : i32
    return %c0_i32, %c0_i32_0 : i32, i32
  }
  func.func @transform_4(%arg0: i32) -> (i32, i32) {
    %c0_i32 = arith.constant 0 : i32
    %c0_i32_0 = arith.constant 0 : i32
    %c0_i32_1 = arith.constant 0 : i32
    return %c0_i32, %c0_i32_0 : i32, i32
  }
  func.func @transform_5(%arg0: i32) -> (i32, i32) {
    %c0_i32 = arith.constant 0 : i32
    %c0_i32_0 = arith.constant 0 : i32
    %c0_i32_1 = arith.constant 0 : i32
    return %c0_i32, %c0_i32_0 : i32, i32
  }
  func.func @transform_6(%arg0: i32) -> (i32, i32) {
    %c0_i32 = arith.constant 0 : i32
    %c0_i32_0 = arith.constant 0 : i32
    %c0_i32_1 = arith.constant 0 : i32
    return %c0_i32, %c0_i32_0 : i32, i32
  }
  func.func @transform_7(%arg0: i32) -> (i32, i32) {
    %c0_i32 = arith.constant 0 : i32
    %c0_i32_0 = arith.constant 0 : i32
    return %arg0, %c0_i32 : i32, i32
  }
}

module attributes {stable_mosaic.version = 11 : i64} {
  func.func @_attn_kernel(%arg0: i32, %arg1: memref<1x16x96xf32, #tpu.memory_space<vmem>>, %arg2: memref<1x16x32xf32, #tpu.memory_space<vmem>>, %arg3: memref<32x32xf32, #tpu.memory_space<vmem>>, %arg4: memref<1x32xf32, #tpu.memory_space<vmem>>, %arg5: memref<1x16x32xf32, #tpu.memory_space<vmem>>) attributes {dimension_semantics = [#tpu.dimension_semantics<parallel>], iteration_bounds = array<i64: 2>, scalar_prefetch = 0 : i64, scratch_operands = 0 : i64, tpu.core_type = #tpu.core_type<tc>, window_params = [{transform_indices = @transform_0, window_bounds = array<i64: 1, 16, 96>}, {transform_indices = @transform_1, window_bounds = array<i64: 1, 16, 32>}, {pipeline_mode = #tpu.pipeline_mode<synchronous>, transform_indices = @transform_2, window_bounds = array<i64: 32, 32>}, {pipeline_mode = #tpu.pipeline_mode<synchronous>, transform_indices = @transform_3, window_bounds = array<i64: 1, 32>}, {transform_indices = @transform_4, window_bounds = array<i64: 1, 16, 32>}]} {
    %cst = arith.constant 0.000000e+00 : f32
    %0 = vector.broadcast %cst : f32 to vector<16x32xf32>
    %c0 = arith.constant 0 : index
    %c0_0 = arith.constant 0 : index
    %c0_1 = arith.constant 0 : index
    %1 = vector.load %arg1[%c0, %c0_0, %c0_1] : memref<1x16x96xf32, #tpu.memory_space<vmem>>, vector<1x16x8xf32>
    %2 = vector.shape_cast %1 : vector<1x16x8xf32> to vector<16x8xf32>
    %cst_2 = arith.constant 0.353553385 : f32
    %3 = vector.broadcast %cst_2 : f32 to vector<16x8xf32>
    %4 = arith.mulf %2, %3 : vector<16x8xf32>
    %c0_3 = arith.constant 0 : index
    %c0_4 = arith.constant 0 : index
    %c32 = arith.constant 32 : index
    %5 = vector.load %arg1[%c0_3, %c0_4, %c32] : memref<1x16x96xf32, #tpu.memory_space<vmem>>, vector<1x16x8xf32>
    %6 = vector.shape_cast %5 : vector<1x16x8xf32> to vector<16x8xf32>
    %c0_5 = arith.constant 0 : index
    %c0_6 = arith.constant 0 : index
    %c64 = arith.constant 64 : index
    %7 = vector.load %arg1[%c0_5, %c0_6, %c64] : memref<1x16x96xf32, #tpu.memory_space<vmem>>, vector<1x16x8xf32>
    %8 = vector.shape_cast %7 : vector<1x16x8xf32> to vector<16x8xf32>
    %cst_7 = arith.constant dense<0.000000e+00> : vector<16x16xf32>
    %9 = tpu.matmul %4, %6, %cst_7 {dimension_numbers = #tpu.dot_dimension_numbers<[1], [1], [0], [0], [0, 0, 1, 0], [], []>} : vector<16x8xf32>, vector<16x8xf32>, vector<16x16xf32> -> vector<16x16xf32>
    %cst_8 = arith.constant dense<0xFF800000> : vector<16xf32>
    %10 = vector.multi_reduction <maximumf>, %9, %cst_8 [1] : vector<16x16xf32> to vector<16xf32>
    %11 = vector.shape_cast %10 : vector<16xf32> to vector<16x1xf32>
    %12 = vector.broadcast %11 : vector<16x1xf32> to vector<16x16xf32>
    %13 = arith.subf %9, %12 : vector<16x16xf32>
    %14 = math.exp %13 : vector<16x16xf32>
    %cst_9 = arith.constant dense<0.000000e+00> : vector<16xf32>
    %15 = vector.multi_reduction <add>, %14, %cst_9 [1] : vector<16x16xf32> to vector<16xf32>
    %16 = vector.shape_cast %15 : vector<16xf32> to vector<16x1xf32>
    %17 = tpu.reciprocal %16 {approx = true} : vector<16x1xf32> -> vector<16x1xf32>
    %18 = vector.broadcast %17 : vector<16x1xf32> to vector<16x16xf32>
    %19 = arith.mulf %14, %18 : vector<16x16xf32>
    %cst_10 = arith.constant dense<0.000000e+00> : vector<16x8xf32>
    %20 = tpu.matmul %19, %8, %cst_10 {dimension_numbers = #tpu.dot_dimension_numbers<[1], [0], [0], [1], [0, 0, 1, 1], [], []>} : vector<16x16xf32>, vector<16x8xf32>, vector<16x8xf32> -> vector<16x8xf32>
    %c0_11 = arith.constant 0 : index
    %c0_12 = arith.constant 0 : index
    %21 = vector.load %arg3[%c0_11, %c0_12] : memref<32x32xf32, #tpu.memory_space<vmem>>, vector<8x32xf32>
    %cst_13 = arith.constant dense<0.000000e+00> : vector<16x32xf32>
    %22 = tpu.matmul %20, %21, %cst_13 {dimension_numbers = #tpu.dot_dimension_numbers<[1], [0], [0], [1], [0, 0, 1, 1], [], []>} : vector<16x8xf32>, vector<8x32xf32>, vector<16x32xf32> -> vector<16x32xf32>
    %23 = arith.addf %0, %22 : vector<16x32xf32>
    %c0_14 = arith.constant 0 : index
    %c0_15 = arith.constant 0 : index
    %c8 = arith.constant 8 : index
    %24 = vector.load %arg1[%c0_14, %c0_15, %c8] : memref<1x16x96xf32, #tpu.memory_space<vmem>>, vector<1x16x8xf32>
    %25 = vector.shape_cast %24 : vector<1x16x8xf32> to vector<16x8xf32>
    %cst_16 = arith.constant 0.353553385 : f32
    %26 = vector.broadcast %cst_16 : f32 to vector<16x8xf32>
    %27 = arith.mulf %25, %26 : vector<16x8xf32>
    %c0_17 = arith.constant 0 : index
    %c0_18 = arith.constant 0 : index
    %c40 = arith.constant 40 : index
    %28 = vector.load %arg1[%c0_17, %c0_18, %c40] : memref<1x16x96xf32, #tpu.memory_space<vmem>>, vector<1x16x8xf32>
    %29 = vector.shape_cast %28 : vector<1x16x8xf32> to vector<16x8xf32>
    %c0_19 = arith.constant 0 : index
    %c0_20 = arith.constant 0 : index
    %c72 = arith.constant 72 : index
    %30 = vector.load %arg1[%c0_19, %c0_20, %c72] : memref<1x16x96xf32, #tpu.memory_space<vmem>>, vector<1x16x8xf32>
    %31 = vector.shape_cast %30 : vector<1x16x8xf32> to vector<16x8xf32>
    %cst_21 = arith.constant dense<0.000000e+00> : vector<16x16xf32>
    %32 = tpu.matmul %27, %29, %cst_21 {dimension_numbers = #tpu.dot_dimension_numbers<[1], [1], [0], [0], [0, 0, 1, 0], [], []>} : vector<16x8xf32>, vector<16x8xf32>, vector<16x16xf32> -> vector<16x16xf32>
    %cst_22 = arith.constant dense<0xFF800000> : vector<16xf32>
    %33 = vector.multi_reduction <maximumf>, %32, %cst_22 [1] : vector<16x16xf32> to vector<16xf32>
    %34 = vector.shape_cast %33 : vector<16xf32> to vector<16x1xf32>
    %35 = vector.broadcast %34 : vector<16x1xf32> to vector<16x16xf32>
    %36 = arith.subf %32, %35 : vector<16x16xf32>
    %37 = math.exp %36 : vector<16x16xf32>
    %cst_23 = arith.constant dense<0.000000e+00> : vector<16xf32>
    %38 = vector.multi_reduction <add>, %37, %cst_23 [1] : vector<16x16xf32> to vector<16xf32>
    %39 = vector.shape_cast %38 : vector<16xf32> to vector<16x1xf32>
    %40 = tpu.reciprocal %39 {approx = true} : vector<16x1xf32> -> vector<16x1xf32>
    %41 = vector.broadcast %40 : vector<16x1xf32> to vector<16x16xf32>
    %42 = arith.mulf %37, %41 : vector<16x16xf32>
    %cst_24 = arith.constant dense<0.000000e+00> : vector<16x8xf32>
    %43 = tpu.matmul %42, %31, %cst_24 {dimension_numbers = #tpu.dot_dimension_numbers<[1], [0], [0], [1], [0, 0, 1, 1], [], []>} : vector<16x16xf32>, vector<16x8xf32>, vector<16x8xf32> -> vector<16x8xf32>
    %c8_25 = arith.constant 8 : index
    %c0_26 = arith.constant 0 : index
    %44 = vector.load %arg3[%c8_25, %c0_26] : memref<32x32xf32, #tpu.memory_space<vmem>>, vector<8x32xf32>
    %cst_27 = arith.constant dense<0.000000e+00> : vector<16x32xf32>
    %45 = tpu.matmul %43, %44, %cst_27 {dimension_numbers = #tpu.dot_dimension_numbers<[1], [0], [0], [1], [0, 0, 1, 1], [], []>} : vector<16x8xf32>, vector<8x32xf32>, vector<16x32xf32> -> vector<16x32xf32>
    %46 = arith.addf %23, %45 : vector<16x32xf32>
    %c0_28 = arith.constant 0 : index
    %c0_29 = arith.constant 0 : index
    %c16 = arith.constant 16 : index
    %47 = vector.load %arg1[%c0_28, %c0_29, %c16] : memref<1x16x96xf32, #tpu.memory_space<vmem>>, vector<1x16x8xf32>
    %48 = vector.shape_cast %47 : vector<1x16x8xf32> to vector<16x8xf32>
    %cst_30 = arith.constant 0.353553385 : f32
    %49 = vector.broadcast %cst_30 : f32 to vector<16x8xf32>
    %50 = arith.mulf %48, %49 : vector<16x8xf32>
    %c0_31 = arith.constant 0 : index
    %c0_32 = arith.constant 0 : index
    %c48 = arith.constant 48 : index
    %51 = vector.load %arg1[%c0_31, %c0_32, %c48] : memref<1x16x96xf32, #tpu.memory_space<vmem>>, vector<1x16x8xf32>
    %52 = vector.shape_cast %51 : vector<1x16x8xf32> to vector<16x8xf32>
    %c0_33 = arith.constant 0 : index
    %c0_34 = arith.constant 0 : index
    %c80 = arith.constant 80 : index
    %53 = vector.load %arg1[%c0_33, %c0_34, %c80] : memref<1x16x96xf32, #tpu.memory_space<vmem>>, vector<1x16x8xf32>
    %54 = vector.shape_cast %53 : vector<1x16x8xf32> to vector<16x8xf32>
    %cst_35 = arith.constant dense<0.000000e+00> : vector<16x16xf32>
    %55 = tpu.matmul %50, %52, %cst_35 {dimension_numbers = #tpu.dot_dimension_numbers<[1], [1], [0], [0], [0, 0, 1, 0], [], []>} : vector<16x8xf32>, vector<16x8xf32>, vector<16x16xf32> -> vector<16x16xf32>
    %cst_36 = arith.constant dense<0xFF800000> : vector<16xf32>
    %56 = vector.multi_reduction <maximumf>, %55, %cst_36 [1] : vector<16x16xf32> to vector<16xf32>
    %57 = vector.shape_cast %56 : vector<16xf32> to vector<16x1xf32>
    %58 = vector.broadcast %57 : vector<16x1xf32> to vector<16x16xf32>
    %59 = arith.subf %55, %58 : vector<16x16xf32>
    %60 = math.exp %59 : vector<16x16xf32>
    %cst_37 = arith.constant dense<0.000000e+00> : vector<16xf32>
    %61 = vector.multi_reduction <add>, %60, %cst_37 [1] : vector<16x16xf32> to vector<16xf32>
    %62 = vector.shape_cast %61 : vector<16xf32> to vector<16x1xf32>
    %63 = tpu.reciprocal %62 {approx = true} : vector<16x1xf32> -> vector<16x1xf32>
    %64 = vector.broadcast %63 : vector<16x1xf32> to vector<16x16xf32>
    %65 = arith.mulf %60, %64 : vector<16x16xf32>
    %cst_38 = arith.constant dense<0.000000e+00> : vector<16x8xf32>
    %66 = tpu.matmul %65, %54, %cst_38 {dimension_numbers = #tpu.dot_dimension_numbers<[1], [0], [0], [1], [0, 0, 1, 1], [], []>} : vector<16x16xf32>, vector<16x8xf32>, vector<16x8xf32> -> vector<16x8xf32>
    %c16_39 = arith.constant 16 : index
    %c0_40 = arith.constant 0 : index
    %67 = vector.load %arg3[%c16_39, %c0_40] : memref<32x32xf32, #tpu.memory_space<vmem>>, vector<8x32xf32>
    %cst_41 = arith.constant dense<0.000000e+00> : vector<16x32xf32>
    %68 = tpu.matmul %66, %67, %cst_41 {dimension_numbers = #tpu.dot_dimension_numbers<[1], [0], [0], [1], [0, 0, 1, 1], [], []>} : vector<16x8xf32>, vector<8x32xf32>, vector<16x32xf32> -> vector<16x32xf32>
    %69 = arith.addf %46, %68 : vector<16x32xf32>
    %c0_42 = arith.constant 0 : index
    %c0_43 = arith.constant 0 : index
    %c24 = arith.constant 24 : index
    %70 = vector.load %arg1[%c0_42, %c0_43, %c24] : memref<1x16x96xf32, #tpu.memory_space<vmem>>, vector<1x16x8xf32>
    %71 = vector.shape_cast %70 : vector<1x16x8xf32> to vector<16x8xf32>
    %cst_44 = arith.constant 0.353553385 : f32
    %72 = vector.broadcast %cst_44 : f32 to vector<16x8xf32>
    %73 = arith.mulf %71, %72 : vector<16x8xf32>
    %c0_45 = arith.constant 0 : index
    %c0_46 = arith.constant 0 : index
    %c56 = arith.constant 56 : index
    %74 = vector.load %arg1[%c0_45, %c0_46, %c56] : memref<1x16x96xf32, #tpu.memory_space<vmem>>, vector<1x16x8xf32>
    %75 = vector.shape_cast %74 : vector<1x16x8xf32> to vector<16x8xf32>
    %c0_47 = arith.constant 0 : index
    %c0_48 = arith.constant 0 : index
    %c88 = arith.constant 88 : index
    %76 = vector.load %arg1[%c0_47, %c0_48, %c88] : memref<1x16x96xf32, #tpu.memory_space<vmem>>, vector<1x16x8xf32>
    %77 = vector.shape_cast %76 : vector<1x16x8xf32> to vector<16x8xf32>
    %cst_49 = arith.constant dense<0.000000e+00> : vector<16x16xf32>
    %78 = tpu.matmul %73, %75, %cst_49 {dimension_numbers = #tpu.dot_dimension_numbers<[1], [1], [0], [0], [0, 0, 1, 0], [], []>} : vector<16x8xf32>, vector<16x8xf32>, vector<16x16xf32> -> vector<16x16xf32>
    %cst_50 = arith.constant dense<0xFF800000> : vector<16xf32>
    %79 = vector.multi_reduction <maximumf>, %78, %cst_50 [1] : vector<16x16xf32> to vector<16xf32>
    %80 = vector.shape_cast %79 : vector<16xf32> to vector<16x1xf32>
    %81 = vector.broadcast %80 : vector<16x1xf32> to vector<16x16xf32>
    %82 = arith.subf %78, %81 : vector<16x16xf32>
    %83 = math.exp %82 : vector<16x16xf32>
    %cst_51 = arith.constant dense<0.000000e+00> : vector<16xf32>
    %84 = vector.multi_reduction <add>, %83, %cst_51 [1] : vector<16x16xf32> to vector<16xf32>
    %85 = vector.shape_cast %84 : vector<16xf32> to vector<16x1xf32>
    %86 = tpu.reciprocal %85 {approx = true} : vector<16x1xf32> -> vector<16x1xf32>
    %87 = vector.broadcast %86 : vector<16x1xf32> to vector<16x16xf32>
    %88 = arith.mulf %83, %87 : vector<16x16xf32>
    %cst_52 = arith.constant dense<0.000000e+00> : vector<16x8xf32>
    %89 = tpu.matmul %88, %77, %cst_52 {dimension_numbers = #tpu.dot_dimension_numbers<[1], [0], [0], [1], [0, 0, 1, 1], [], []>} : vector<16x16xf32>, vector<16x8xf32>, vector<16x8xf32> -> vector<16x8xf32>
    %c24_53 = arith.constant 24 : index
    %c0_54 = arith.constant 0 : index
    %90 = vector.load %arg3[%c24_53, %c0_54] : memref<32x32xf32, #tpu.memory_space<vmem>>, vector<8x32xf32>
    %cst_55 = arith.constant dense<0.000000e+00> : vector<16x32xf32>
    %91 = tpu.matmul %89, %90, %cst_55 {dimension_numbers = #tpu.dot_dimension_numbers<[1], [0], [0], [1], [0, 0, 1, 1], [], []>} : vector<16x8xf32>, vector<8x32xf32>, vector<16x32xf32> -> vector<16x32xf32>
    %92 = arith.addf %69, %91 : vector<16x32xf32>
    %c0_56 = arith.constant 0 : index
    %c0_57 = arith.constant 0 : index
    %c0_58 = arith.constant 0 : index
    %93 = vector.load %arg2[%c0_56, %c0_57, %c0_58] : memref<1x16x32xf32, #tpu.memory_space<vmem>>, vector<1x16x32xf32>
    %94 = vector.shape_cast %93 : vector<1x16x32xf32> to vector<16x32xf32>
    %95 = arith.addf %94, %92 : vector<16x32xf32>
    %c0_59 = arith.constant 0 : index
    %c0_60 = arith.constant 0 : index
    %96 = vector.load %arg4[%c0_59, %c0_60] : memref<1x32xf32, #tpu.memory_space<vmem>>, vector<1x32xf32>
    %97 = vector.broadcast %96 : vector<1x32xf32> to vector<16x32xf32>
    %98 = arith.addf %95, %97 : vector<16x32xf32>
    %c0_61 = arith.constant 0 : index
    %c0_62 = arith.constant 0 : index
    %c0_63 = arith.constant 0 : index
    %99 = vector.load %arg5[%c0_61, %c0_62, %c0_63] : memref<1x16x32xf32, #tpu.memory_space<vmem>>, vector<1x16x32xf32>
    %100 = vector.shape_cast %99 : vector<1x16x32xf32> to vector<16x32xf32>
    %101 = vector.shape_cast %98 : vector<16x32xf32> to vector<1x16x32xf32>
    tpu.vector_store %arg5[%c0_61, %c0_62, %c0_63], %101 {strides = array<i32>} : memref<1x16x32xf32, #tpu.memory_space<vmem>>, vector<1x16x32xf32>,
    return
  }
  func.func @transform_0(%arg0: i32) -> (i32, i32, i32) {
    %c0_i32 = arith.constant 0 : i32
    %c0_i32_0 = arith.constant 0 : i32
    %c0_i32_1 = arith.constant 0 : i32
    return %arg0, %c0_i32, %c0_i32_0 : i32, i32, i32
  }
  func.func @transform_1(%arg0: i32) -> (i32, i32, i32) {
    %c0_i32 = arith.constant 0 : i32
    %c0_i32_0 = arith.constant 0 : i32
    %c0_i32_1 = arith.constant 0 : i32
    return %arg0, %c0_i32, %c0_i32_0 : i32, i32, i32
  }
  func.func @transform_2(%arg0: i32) -> (i32, i32) {
    %c0_i32 = arith.constant 0 : i32
    %c0_i32_0 = arith.constant 0 : i32
    %c0_i32_1 = arith.constant 0 : i32
    return %c0_i32, %c0_i32_0 : i32, i32
  }
  func.func @transform_3(%arg0: i32) -> (i32, i32) {
    %c0_i32 = arith.constant 0 : i32
    %c0_i32_0 = arith.constant 0 : i32
    %c0_i32_1 = arith.constant 0 : i32
    return %c0_i32, %c0_i32_0 : i32, i32
  }
  func.func @transform_4(%arg0: i32) -> (i32, i32, i32) {
    %c0_i32 = arith.constant 0 : i32
    %c0_i32_0 = arith.constant 0 : i32
    %c0_i32_1 = arith.constant 0 : i32
    return %arg0, %c0_i32, %c0_i32_0 : i32, i32, i32
  }
}

module attributes {stable_mosaic.version = 11 : i64} {
  func.func @_seq_head_kernel(%arg0: i32, %arg1: memref<32x32xf32, #tpu.memory_space<vmem>>, %arg2: memref<32x36xf32, #tpu.memory_space<vmem>>, %arg3: memref<1x36xf32, #tpu.memory_space<vmem>>, %arg4: memref<36x9xf32, #tpu.memory_space<vmem>>, %arg5: memref<1x9xf32, #tpu.memory_space<vmem>>, %arg6: memref<32x9xf32, #tpu.memory_space<vmem>>) attributes {dimension_semantics = [#tpu.dimension_semantics<parallel>], iteration_bounds = array<i64: 1>, scalar_prefetch = 0 : i64, scratch_operands = 0 : i64, tpu.core_type = #tpu.core_type<tc>, window_params = [{transform_indices = @transform_0, window_bounds = array<i64: 32, 32>}, {pipeline_mode = #tpu.pipeline_mode<synchronous>, transform_indices = @transform_1, window_bounds = array<i64: 32, 36>}, {pipeline_mode = #tpu.pipeline_mode<synchronous>, transform_indices = @transform_2, window_bounds = array<i64: 1, 36>}, {pipeline_mode = #tpu.pipeline_mode<synchronous>, transform_indices = @transform_3, window_bounds = array<i64: 36, 9>}, {pipeline_mode = #tpu.pipeline_mode<synchronous>, transform_indices = @transform_4, window_bounds = array<i64: 1, 9>}, {transform_indices = @transform_5, window_bounds = array<i64: 32, 9>}]} {
    %c0 = arith.constant 0 : index
    %c0_0 = arith.constant 0 : index
    %0 = vector.load %arg1[%c0, %c0_0] : memref<32x32xf32, #tpu.memory_space<vmem>>, vector<32x32xf32>
    %c0_1 = arith.constant 0 : index
    %c0_2 = arith.constant 0 : index
    %1 = vector.load %arg2[%c0_1, %c0_2] : memref<32x36xf32, #tpu.memory_space<vmem>>, vector<32x36xf32>
    %cst = arith.constant dense<0.000000e+00> : vector<32x36xf32>
    %2 = tpu.matmul %0, %1, %cst {dimension_numbers = #tpu.dot_dimension_numbers<[1], [0], [0], [1], [0, 0, 1, 1], [], []>} : vector<32x32xf32>, vector<32x36xf32>, vector<32x36xf32> -> vector<32x36xf32>
    %c0_3 = arith.constant 0 : index
    %c0_4 = arith.constant 0 : index
    %3 = vector.load %arg3[%c0_3, %c0_4] : memref<1x36xf32, #tpu.memory_space<vmem>>, vector<1x36xf32>
    %4 = vector.broadcast %3 : vector<1x36xf32> to vector<32x36xf32>
    %5 = arith.addf %2, %4 : vector<32x36xf32>
    %cst_5 = arith.constant 5.000000e-01 : f32
    %6 = vector.broadcast %cst_5 : f32 to vector<32x36xf32>
    %7 = arith.mulf %6, %5 : vector<32x36xf32>
    %cst_6 = arith.constant 4.471500e-02 : f32
    %8 = vector.broadcast %cst_6 : f32 to vector<32x36xf32>
    %9 = arith.mulf %8, %5 : vector<32x36xf32>
    %10 = arith.mulf %9, %5 : vector<32x36xf32>
    %11 = arith.mulf %10, %5 : vector<32x36xf32>
    %12 = arith.addf %5, %11 : vector<32x36xf32>
    %cst_7 = arith.constant 0.797884583 : f32
    %13 = vector.broadcast %cst_7 : f32 to vector<32x36xf32>
    %14 = arith.mulf %13, %12 : vector<32x36xf32>
    %15 = math.tanh %14 : vector<32x36xf32>
    %cst_8 = arith.constant 1.000000e+00 : f32
    %16 = vector.broadcast %cst_8 : f32 to vector<32x36xf32>
    %17 = arith.addf %16, %15 : vector<32x36xf32>
    %18 = arith.mulf %7, %17 : vector<32x36xf32>
    %c0_9 = arith.constant 0 : index
    %c0_10 = arith.constant 0 : index
    %19 = vector.load %arg4[%c0_9, %c0_10] : memref<36x9xf32, #tpu.memory_space<vmem>>, vector<36x9xf32>
    %cst_11 = arith.constant dense<0.000000e+00> : vector<32x9xf32>
    %20 = tpu.matmul %18, %19, %cst_11 {dimension_numbers = #tpu.dot_dimension_numbers<[1], [0], [0], [1], [0, 0, 1, 1], [], []>} : vector<32x36xf32>, vector<36x9xf32>, vector<32x9xf32> -> vector<32x9xf32>
    %c0_12 = arith.constant 0 : index
    %c0_13 = arith.constant 0 : index
    %21 = vector.load %arg5[%c0_12, %c0_13] : memref<1x9xf32, #tpu.memory_space<vmem>>, vector<1x9xf32>
    %22 = vector.broadcast %21 : vector<1x9xf32> to vector<32x9xf32>
    %23 = arith.addf %20, %22 : vector<32x9xf32>
    %c0_14 = arith.constant 0 : index
    %c0_15 = arith.constant 0 : index
    %24 = vector.load %arg6[%c0_14, %c0_15] : memref<32x9xf32, #tpu.memory_space<vmem>>, vector<32x9xf32>
    tpu.vector_store %arg6[%c0_14, %c0_15], %23 {strides = array<i32>} : memref<32x9xf32, #tpu.memory_space<vmem>>, vector<32x9xf32>,
    return
  }
  func.func @transform_0(%arg0: i32) -> (i32, i32) {
    %c0_i32 = arith.constant 0 : i32
    %c0_i32_0 = arith.constant 0 : i32
    return %arg0, %c0_i32 : i32, i32
  }
  func.func @transform_1(%arg0: i32) -> (i32, i32) {
    %c0_i32 = arith.constant 0 : i32
    %c0_i32_0 = arith.constant 0 : i32
    %c0_i32_1 = arith.constant 0 : i32
    return %c0_i32, %c0_i32_0 : i32, i32
  }
  func.func @transform_2(%arg0: i32) -> (i32, i32) {
    %c0_i32 = arith.constant 0 : i32
    %c0_i32_0 = arith.constant 0 : i32
    %c0_i32_1 = arith.constant 0 : i32
    return %c0_i32, %c0_i32_0 : i32, i32
  }
  func.func @transform_3(%arg0: i32) -> (i32, i32) {
    %c0_i32 = arith.constant 0 : i32
    %c0_i32_0 = arith.constant 0 : i32
    %c0_i32_1 = arith.constant 0 : i32
    return %c0_i32, %c0_i32_0 : i32, i32
  }
  func.func @transform_4(%arg0: i32) -> (i32, i32) {
    %c0_i32 = arith.constant 0 : i32
    %c0_i32_0 = arith.constant 0 : i32
    %c0_i32_1 = arith.constant 0 : i32
    return %c0_i32, %c0_i32_0 : i32, i32
  }
  func.func @transform_5(%arg0: i32) -> (i32, i32) {
    %c0_i32 = arith.constant 0 : i32
    %c0_i32_0 = arith.constant 0 : i32
    return %arg0, %c0_i32 : i32, i32
  }
}

module attributes {stable_mosaic.version = 11 : i64} {
  func.func @_constraint_kernel(%arg0: i32, %arg1: memref<512x16xf32, #tpu.memory_space<vmem>>, %arg2: memref<512x16xf32, #tpu.memory_space<vmem>>, %arg3: memref<16x136xf32, #tpu.memory_space<vmem>>, %arg4: memref<1x136xf32, #tpu.memory_space<vmem>>, %arg5: memref<16x38xf32, #tpu.memory_space<vmem>>, %arg6: memref<1x38xf32, #tpu.memory_space<vmem>>, %arg7: memref<512x174xf32, #tpu.memory_space<vmem>>) attributes {dimension_semantics = [#tpu.dimension_semantics<parallel>], iteration_bounds = array<i64: 1>, scalar_prefetch = 0 : i64, scratch_operands = 0 : i64, tpu.core_type = #tpu.core_type<tc>, window_params = [{transform_indices = @transform_0, window_bounds = array<i64: 512, 16>}, {transform_indices = @transform_1, window_bounds = array<i64: 512, 16>}, {pipeline_mode = #tpu.pipeline_mode<synchronous>, transform_indices = @transform_2, window_bounds = array<i64: 16, 136>}, {pipeline_mode = #tpu.pipeline_mode<synchronous>, transform_indices = @transform_3, window_bounds = array<i64: 1, 136>}, {pipeline_mode = #tpu.pipeline_mode<synchronous>, transform_indices = @transform_4, window_bounds = array<i64: 16, 38>}, {pipeline_mode = #tpu.pipeline_mode<synchronous>, transform_indices = @transform_5, window_bounds = array<i64: 1, 38>}, {transform_indices = @transform_6, window_bounds = array<i64: 512, 174>}]} {
    %c0 = arith.constant 0 : index
    %c0_0 = arith.constant 0 : index
    %0 = vector.load %arg1[%c0, %c0_0] : memref<512x16xf32, #tpu.memory_space<vmem>>, vector<512x16xf32>
    %c0_1 = arith.constant 0 : index
    %c0_2 = arith.constant 0 : index
    %1 = vector.load %arg3[%c0_1, %c0_2] : memref<16x136xf32, #tpu.memory_space<vmem>>, vector<16x136xf32>
    %cst = arith.constant dense<0.000000e+00> : vector<512x136xf32>
    %2 = tpu.matmul %0, %1, %cst {dimension_numbers = #tpu.dot_dimension_numbers<[1], [0], [0], [1], [0, 0, 1, 1], [], []>} : vector<512x16xf32>, vector<16x136xf32>, vector<512x136xf32> -> vector<512x136xf32>
    %c0_3 = arith.constant 0 : index
    %c0_4 = arith.constant 0 : index
    %3 = vector.load %arg4[%c0_3, %c0_4] : memref<1x136xf32, #tpu.memory_space<vmem>>, vector<1x136xf32>
    %4 = vector.broadcast %3 : vector<1x136xf32> to vector<512x136xf32>
    %5 = arith.addf %2, %4 : vector<512x136xf32>
    %c0_5 = arith.constant 0 : index
    %c0_6 = arith.constant 0 : index
    %6 = vector.load %arg2[%c0_5, %c0_6] : memref<512x16xf32, #tpu.memory_space<vmem>>, vector<512x16xf32>
    %c0_7 = arith.constant 0 : index
    %c0_8 = arith.constant 0 : index
    %7 = vector.load %arg5[%c0_7, %c0_8] : memref<16x38xf32, #tpu.memory_space<vmem>>, vector<16x38xf32>
    %cst_9 = arith.constant dense<0.000000e+00> : vector<512x38xf32>
    %8 = tpu.matmul %6, %7, %cst_9 {dimension_numbers = #tpu.dot_dimension_numbers<[1], [0], [0], [1], [0, 0, 1, 1], [], []>} : vector<512x16xf32>, vector<16x38xf32>, vector<512x38xf32> -> vector<512x38xf32>
    %c0_10 = arith.constant 0 : index
    %c0_11 = arith.constant 0 : index
    %9 = vector.load %arg6[%c0_10, %c0_11] : memref<1x38xf32, #tpu.memory_space<vmem>>, vector<1x38xf32>
    %10 = vector.broadcast %9 : vector<1x38xf32> to vector<512x38xf32>
    %11 = arith.addf %8, %10 : vector<512x38xf32>
    %c0_12 = arith.constant 0 : index
    %c0_13 = arith.constant 0 : index
    %12 = vector.load %arg7[%c0_12, %c0_13] : memref<512x174xf32, #tpu.memory_space<vmem>>, vector<512x136xf32>
    tpu.vector_store %arg7[%c0_12, %c0_13], %5 {strides = array<i32>} : memref<512x174xf32, #tpu.memory_space<vmem>>, vector<512x136xf32>,
    %c0_14 = arith.constant 0 : index
    %c136 = arith.constant 136 : index
    %13 = vector.load %arg7[%c0_14, %c136] : memref<512x174xf32, #tpu.memory_space<vmem>>, vector<512x38xf32>
    tpu.vector_store %arg7[%c0_14, %c136], %11 {strides = array<i32>} : memref<512x174xf32, #tpu.memory_space<vmem>>, vector<512x38xf32>,
    return
  }
  func.func @transform_0(%arg0: i32) -> (i32, i32) {
    %c0_i32 = arith.constant 0 : i32
    %c0_i32_0 = arith.constant 0 : i32
    return %arg0, %c0_i32 : i32, i32
  }
  func.func @transform_1(%arg0: i32) -> (i32, i32) {
    %c0_i32 = arith.constant 0 : i32
    %c0_i32_0 = arith.constant 0 : i32
    return %arg0, %c0_i32 : i32, i32
  }
  func.func @transform_2(%arg0: i32) -> (i32, i32) {
    %c0_i32 = arith.constant 0 : i32
    %c0_i32_0 = arith.constant 0 : i32
    %c0_i32_1 = arith.constant 0 : i32
    return %c0_i32, %c0_i32_0 : i32, i32
  }
  func.func @transform_3(%arg0: i32) -> (i32, i32) {
    %c0_i32 = arith.constant 0 : i32
    %c0_i32_0 = arith.constant 0 : i32
    %c0_i32_1 = arith.constant 0 : i32
    return %c0_i32, %c0_i32_0 : i32, i32
  }
  func.func @transform_4(%arg0: i32) -> (i32, i32) {
    %c0_i32 = arith.constant 0 : i32
    %c0_i32_0 = arith.constant 0 : i32
    %c0_i32_1 = arith.constant 0 : i32
    return %c0_i32, %c0_i32_0 : i32, i32
  }
  func.func @transform_5(%arg0: i32) -> (i32, i32) {
    %c0_i32 = arith.constant 0 : i32
    %c0_i32_0 = arith.constant 0 : i32
    %c0_i32_1 = arith.constant 0 : i32
    return %c0_i32, %c0_i32_0 : i32, i32
  }
  func.func @transform_6(%arg0: i32) -> (i32, i32) {
    %c0_i32 = arith.constant 0 : i32
    %c0_i32_0 = arith.constant 0 : i32
    return %arg0, %c0_i32 : i32, i32
  }
}

</mosaic_0001>

<bundles_post_ra>
// kernel: forward.20
= control target key start
LH: loop header
LB: loop body
LE: loop exit
PB: predicated region body
PF: predicated region fallthrough
CT: control target
= control target key end

     0   :  { %vm29_vm0 = vcmask 261120   ;;  %vm127_vm1 = vcmask 130048   ;;  %s230_s1 = inlined_call_operand.vmem [shape: f32[32,16], index: 1, kind: input, shape index: {}]   ;;  %s231_s0 = inlined_call_operand.vmem [shape: f32[32,32], index: 0, kind: input, shape index: {}]   ;;  %s232_s2 = inlined_call_operand.vmem [shape: f32[1,16], index: 2, kind: input, shape index: {}]   ;;  %s233_s3 = inlined_call_operand.vmem [shape: f32[32,16], index: 3, kind: output, shape index: {}]  }
   0x1   :  { %v21_v0 = vld [vmem:[%s230_s1 + $0x18] sm:$0xff]  ;;  %v20_v1 = vld [vmem:[%s230_s1 + $0x10] sm:$0xff]  ;;  %v19_v2 = vld [vmem:[%s230_s1 + $0x8] sm:$0xff] }
   0x2   :  { %149 = vmatprep.subr.mxu0 %v21_v0  ;;  %163 = vmatprep.subr.mxu1 %v21_v0  ;;  %v18_v3 = vld [vmem:[%s230_s1] sm:$0xff]  ;;  %v16_v5 = vld [vmem:[%s231_s0 + $0x10] sm:$0xff]  ;;  %v15_v6 = vld [vmem:[%s231_s0 + $0x8] sm:$0xff] }
   0x3   :  { %150 = vmatpush3.msra.mxu0 %v21_v0  ;;  %167 = vmatpush3.msra.mxu1 %v21_v0  ;;  %v14_v4 = vld [vmem:[%s231_s0] sm:$0xff]  ;;  %v17_v7 = vld [vmem:[%s231_s0 + $0x18] sm:$0xff] }
   0x4   :  { %151 = vmatprep.subr.mxu0 %v20_v1  ;;  %164 = vmatprep.subr.mxu1 %v20_v1  ;;  %v136_v8 = vld [vmem:[%s232_s2] ss:$0 sm:$0xff] }
   0x5   :  { %152 = vmatpush3.msra.mxu0 %v20_v1  ;;  %168 = vmatpush3.msra.mxu1 %v20_v1 }
   0x6   :  { %153 = vmatprep.subr.mxu0 %v19_v2  ;;  %165 = vmatprep.subr.mxu1 %v19_v2 }
   0x7   :  { %154 = vmatpush3.msra.mxu0 %v19_v2  ;;  %169 = vmatpush3.msra.mxu1 %v19_v2 }
   0x8   :  { %155 = vmatprep.subr.mxu0 %v18_v3  ;;  %166 = vmatprep.subr.mxu1 %v18_v3 }
   0x9   :  { %156 = vmatpush3.msra.mxu0 %v18_v3  ;;  %170 = vmatpush3.msra.mxu1 %v18_v3 }
   0xa   :  { %157 = vmatprep.mubr.msk.f32.mxu0 %vm29_vm0, %v14_v4  ;;  %160 = vmatprep.mubr.msk.f32.mxu1 %vm29_vm0, %v16_v5 }
   0xb   :  { %158 = vmatmul.mubr.msk.f32.vlgmr.msra.gmra.mxu0 %vm29_vm0, %v15_v6  ;;  %161 = vmatmul.mubr.msk.f32.vlgmr.msra.gmra.mxu1 %vm29_vm0, %v17_v7 }
  0xcb   :  { %v159_v9 = vpop.f32.mrf.mxu0  ;;  %v162_v10 = vpop.f32.mrf.mxu1 }
  0xcc   :  { %v114_v11 = vadd.f32 %v159_v9, %v136_v8  ;;  %v124_v12 = vadd.f32 %v162_v10, %v136_v8 }
  0xcd   :  { %v108_v13 = vpop.f32.mrf.mxu0  ;;  %v118_v14 = vpop.f32.mrf.mxu1 }
  0xce   :  { %129 = vst.msk [vmem:[%s233_s3 + $0x8] sm:$0xff] %vm127_vm1, %v114_v11  ;;  %131 = vst.msk [vmem:[%s233_s3 + $0x18] sm:$0xff] %vm127_vm1, %v124_v12  ;;  %v109_v15 = vadd.f32 %v136_v8, %v108_v13  ;;  %v119_v16 = vadd.f32 %v136_v8, %v118_v14 }
  0xd0   :  { %128 = vst.msk [vmem:[%s233_s3] sm:$0xff] %vm127_vm1, %v109_v15  ;;  %130 = vst.msk [vmem:[%s233_s3 + $0x10] sm:$0xff] %vm127_vm1, %v119_v16 }

// kernel: forward.19
= control target key start
LH: loop header
LB: loop body
LE: loop exit
PB: predicated region body
PF: predicated region fallthrough
CT: control target
= control target key end

     0   :  { %vm39_vm0 = vcmask 1043456   ;;  %vm26_vm1 = vcmask 31744   ;;  %vm128_vm2 = vcmask 261120   ;;  %s208_s1 = inlined_call_operand.vmem [shape: f32[4,32], index: 1, kind: input, shape index: {}]   ;;  %s209_s0 = inlined_call_operand.vmem [shape: f32[32,4], index: 0, kind: input, shape index: {}]   ;;  %s210_s2 = inlined_call_operand.vmem [shape: f32[1,32], index: 2, kind: input, shape index: {}]   ;;  %s211_s3 = inlined_call_operand.vmem [shape: f32[32,32], index: 3, kind: output, shape index: {}]  }
   0x1   :  { %v18_v0 = vld [vmem:[%s208_s1] sm:$0xf]  ;;  %v16_v2 = vld [vmem:[%s209_s0 + $0x10] sm:$0xff]  ;;  %v15_v3 = vld [vmem:[%s209_s0 + $0x8] sm:$0xff] }
   0x2   :  { %v14_v1 = vld [vmem:[%s209_s0] sm:$0xff]  ;;  %148 = vmatprep.subr.msk.mxu0 %vm39_vm0, %v18_v0  ;;  %156 = vmatprep.subr.msk.mxu1 %vm39_vm0, %v18_v0  ;;  %v17_v4 = vld [vmem:[%s209_s0 + $0x18] sm:$0xff] }
   0x3   :  { %149 = vmatpush3.msk.msra.mxu0 %vm39_vm0, %v18_v0  ;;  %157 = vmatpush3.msk.msra.mxu1 %vm39_vm0, %v18_v0  ;;  %v137_v5 = vld [vmem:[%s210_s2] ss:$0 sm:$0xff] }
   0x4   :  { %150 = vmatprep.mubr.msk.f32.mxu0 %vm26_vm1, %v14_v1  ;;  %153 = vmatprep.mubr.msk.f32.mxu1 %vm26_vm1, %v16_v2 }
   0x5   :  { %151 = vmatmul.mubr.msk.f32.vlgmr.msra.gmra.mxu0 %vm26_vm1, %v15_v3  ;;  %154 = vmatmul.mubr.msk.f32.vlgmr.msra.gmra.mxu1 %vm26_vm1, %v17_v4 }
  0xc5   :  { %v152_v6 = vpop.f32.mrf.mxu0  ;;  %v155_v7 = vpop.f32.mrf.mxu1 }
  0xc6   :  { %v115_v8 = vadd.f32 %v152_v6, %v137_v5  ;;  %v125_v9 = vadd.f32 %v155_v7, %v137_v5 }
  0xc7   :  { %v109_v10 = vpop.f32.mrf.mxu0  ;;  %v119_v11 = vpop.f32.mrf.mxu1 }
  0xc8   :  { %130 = vst.msk [vmem:[%s211_s3 + $0x8] sm:$0xff] %vm128_vm2, %v115_v8  ;;  %132 = vst.msk [vmem:[%s211_s3 + $0x18] sm:$0xff] %vm128_vm2, %v125_v9  ;;  %v110_v12 = vadd.f32 %v137_v5, %v109_v10  ;;  %v120_v13 = vadd.f32 %v137_v5, %v119_v11 }
  0xca   :  { %129 = vst.msk [vmem:[%s211_s3] sm:$0xff] %vm128_vm2, %v110_v12  ;;  %131 = vst.msk [vmem:[%s211_s3 + $0x10] sm:$0xff] %vm128_vm2, %v120_v13 }

// kernel: forward.22
= control target key start
LH: loop header
LB: loop body
LE: loop exit
PB: predicated region body
PF: predicated region fallthrough
CT: control target
= control target key end

     0   :  { %vm26_vm0 = vcmask 261120   ;;  %vm208_vm1 = vcmask 785408   ;;  %s359_s0 = inlined_call_operand.vmem [shape: f32[32,32], index: 0, kind: input, shape index: {}]   ;;  %s360_s3 = inlined_call_operand.vmem [shape: f32[32,96], index: 3, kind: input, shape index: {}]   ;;  %s361_s1 = inlined_call_operand.vmem [shape: f32[1,32], index: 1, kind: input, shape index: {}]   ;;  %s362_s2 = inlined_call_operand.vmem [shape: f32[1,32], index: 2, kind: input, shape index: {}]   ;;  %s363_s4 = inlined_call_operand.vmem [shape: f32[1,96], index: 4, kind: input, shape index: {}]   ;;  %s364_s5 = inlined_call_operand.vmem [shape: f32[32,96], index: 5, kind: output, shape index: {}]  }
   0x1   :  { %v20_v0 = vld [vmem:[%s359_s0] sm:$0xff]  ;;  %v21_v1 = vld [vmem:[%s359_s0 + $0x8] sm:$0xff]  ;;  %v22_v2 = vld [vmem:[%s359_s0 + $0x10] sm:$0xff] }
   0x2   :  { %v27_v3 = vsel %vm26_vm0, %v20_v0, 0.0  ;;  %v30_v4 = vsel %vm26_vm0, %v21_v1, 0.0  ;;  %v23_v5 = vld [vmem:[%s359_s0 + $0x18] sm:$0xff]  ;;  %v33_v6 = vsel %vm26_vm0, %v22_v2, 0.0  ;;  %v102_v29 = vld [vmem:[%s360_s3 + $0x10] sm:$0xff]  ;;  %v101_v30 = vld [vmem:[%s360_s3 + $0x8] sm:$0xff] }
   0x3   :  { %28 = vadd.xlane.f32.xlu0 %v27_v3  ;;  %31 = vadd.xlane.f32.xlu1 %v30_v4  ;;  %v36_v7 = vsel %vm26_vm0, %v23_v5, 0.0  ;;  %v103_v28 = vld [vmem:[%s360_s3 + $0x18] sm:$0xff]  ;;  %v100_v31 = vld [vmem:[%s360_s3] sm:$0xff] }
   0x4   :  { %232 = vmatprep.subr.mxu0 %v103_v28  ;;  %246 = vmatprep.subr.mxu1 %v103_v28  ;;  %v217_v45 = vld [vmem:[%s361_s1] ss:$0 sm:$0xff] }
   0x5   :  { %233 = vmatpush3.msra.mxu0 %v103_v28  ;;  %250 = vmatpush3.msra.mxu1 %v103_v28  ;;  %v218_v47 = vld [vmem:[%s362_s2] ss:$0 sm:$0xff] }
   0x6   :  { %234 = vmatprep.subr.mxu0 %v102_v29  ;;  %247 = vmatprep.subr.mxu1 %v102_v29  ;;  %v219_v62 = vld [vmem:[%s363_s4] ss:$0 sm:$0xff] }
   0x7   :  { %34 = vadd.xlane.f32.xlu0 %v33_v6  ;;  %37 = vadd.xlane.f32.xlu1 %v36_v7 }
   0x8   :  { %235 = vmatpush3.msra.mxu0 %v102_v29  ;;  %251 = vmatpush3.msra.mxu1 %v102_v29 }
   0x9   :  { %236 = vmatprep.subr.mxu0 %v101_v30  ;;  %248 = vmatprep.subr.mxu1 %v101_v30 }
   0xa   :  { %237 = vmatpush3.msra.mxu0 %v101_v30  ;;  %252 = vmatpush3.msra.mxu1 %v101_v30 }
   0xb   :  { %238 = vmatprep.subr.mxu0 %v100_v31  ;;  %249 = vmatprep.subr.mxu1 %v100_v31 }
   0xc   :  { %239 = vmatpush3.msra.mxu0 %v100_v31  ;;  %253 = vmatpush3.msra.mxu1 %v100_v31 }
  0x8c   :  { %v29_v8 = vpop.xlane.xlu0 %28  ;;  %v32_v9 = vpop.xlane.xlu1 %31 }
  0x8d   :  { %v40_v10 = vmul.f32 0.03125, %v29_v8  ;;  %v41_v11 = vmul.f32 0.03125, %v32_v9 }
  0x8f   :  { %v44_v12 = vsub.f32 %v20_v0, %v40_v10  ;;  %v308_v13 = vsub.f32 %v21_v1, %v41_v11 }
  0x90   :  { %v35_v14 = vpop.xlane.xlu0 %34  ;;  %v38_v15 = vpop.xlane.xlu1 %37 }
  0x91   :  { %v42_v16 = vmul.f32 0.03125, %v35_v14  ;;  %v43_v17 = vmul.f32 0.03125, %v38_v15  ;;  %v48_v18 = vmul.f32 %v44_v12, %v44_v12  ;;  %v49_v19 = vmul.f32 %v308_v13, %v308_v13 }
  0x93   :  { %v46_v20 = vsub.f32 %v22_v2, %v42_v16  ;;  %v312_v21 = vsub.f32 %v23_v5, %v43_v17  ;;  %v52_v22 = vsel %vm26_vm0, %v48_v18, 0.0  ;;  %v55_v23 = vsel %vm26_vm0, %v49_v19, 0.0 }
  0x94   :  { %53 = vadd.xlane.f32.xlu0 %v52_v22 }
  0x95   :  { %v50_v24 = vmul.f32 %v46_v20, %v46_v20  ;;  %v51_v25 = vmul.f32 %v312_v21, %v312_v21 }
  0x97   :  { %v58_v26 = vsel %vm26_vm0, %v50_v24, 0.0  ;;  %v61_v27 = vsel %vm26_vm0, %v51_v25, 0.0 }
  0x98   :  { %56 = vadd.xlane.f32.xlu0 %v55_v23  ;;  %59 = vadd.xlane.f32.xlu1 %v58_v26 }
  0x9c   :  { %62 = vadd.xlane.f32.xlu1 %v61_v27 }
 0x11d   :  { %v54_v32 = vpop.xlane.xlu0 %53 }
 0x11e   :  { %v64_v33 = vmul.f32 0.03125, %v54_v32 }
 0x120   :  { %v68_v34 = vadd.f32 1e-05, %v64_v33 }
 0x121   :  { %v60_v35 = vpop.xlane.xlu1 %59  ;;  %v57_v36 = vpop.xlane.xlu0 %56 }
 0x122   :  { %254 = vrsqrt.f32 %v68_v34  ;;  %v66_v37 = vmul.f32 0.03125, %v60_v35  ;;  %v65_v38 = vmul.f32 0.03125, %v57_v36 }
 0x124   :  { %v70_v39 = vadd.f32 1e-05, %v66_v37  ;;  %v69_v40 = vadd.f32 1e-05, %v65_v38 }
 0x125   :  { %v63_v41 = vpop.xlane.xlu1 %62 }
 0x126   :  { %256 = vrsqrt.f32 %v70_v39  ;;  %v67_v42 = vmul.f32 0.03125, %v63_v41 }
 0x127   :  { %258 = vrsqrt.f32 %v69_v40 }
 0x128   :  { %v71_v43 = vadd.f32 1e-05, %v67_v42 }
 0x12a   :  { %260 = vrsqrt.f32 %v71_v43 }
 0x12f   :  { %v255_v44 = vpop.eup %254 }
 0x130   :  { %v76_v46 = vmul.f32 %v255_v44, %v44_v12 }
 0x132   :  { %v86_v48 = vmul.f32 %v217_v45, %v76_v46 }
 0x133   :  { %v257_v49 = vpop.eup %256 }
 0x134   :  { %v259_v50 = vpop.eup %258  ;;  %v96_v51 = vadd.f32 %v218_v47, %v86_v48  ;;  %v78_v52 = vmul.f32 %v257_v49, %v46_v20 }
 0x135   :  { %v77_v53 = vmul.f32 %v259_v50, %v308_v13 }
 0x136   :  { %240 = vmatprep.mubr.msk.f32.mxu0 %vm26_vm0, %v96_v51  ;;  %v88_v54 = vmul.f32 %v217_v45, %v78_v52 }
 0x137   :  { %v261_v55 = vpop.eup %260  ;;  %v87_v56 = vmul.f32 %v217_v45, %v77_v53 }
 0x138   :  { %v98_v57 = vadd.f32 %v218_v47, %v88_v54  ;;  %v79_v58 = vmul.f32 %v261_v55, %v312_v21 }
 0x139   :  { %v97_v59 = vadd.f32 %v218_v47, %v87_v56 }
 0x13a   :  { %243 = vmatprep.mubr.msk.f32.mxu1 %vm26_vm0, %v98_v57  ;;  %v89_v60 = vmul.f32 %v217_v45, %v79_v58 }
 0x13b   :  { %241 = vmatmul.mubr.msk.f32.vlgmr.msra.gmra.mxu0 %vm26_vm0, %v97_v59 }
 0x13c   :  { %v99_v61 = vadd.f32 %v218_v47, %v89_v60 }
 0x13e   :  { %244 = vmatmul.mubr.msk.f32.vlgmr.msra.gmra.mxu1 %vm26_vm0, %v99_v61 }
 0x1fb   :  { %v242_v63 = vpop.f32.mrf.mxu0 }
 0x1fc   :  { %v195_v0 = vadd.f32 %v242_v63, %v219_v62 }
 0x1fd   :  { %v189_v1 = vpop.f32.mrf.mxu0 }
 0x1fe   :  { %210 = vst.msk [vmem:[%s364_s5 + $0x8] sm:$0xff] %vm208_vm1, %v195_v0  ;;  %v190_v2 = vadd.f32 %v219_v62, %v189_v1  ;;  %v245_v3 = vpop.f32.mrf.mxu1 }
 0x1ff   :  { %v205_v4 = vadd.f32 %v245_v3, %v219_v62 }
 0x200   :  { %209 = vst.msk [vmem:[%s364_s5] sm:$0xff] %vm208_vm1, %v190_v2  ;;  %v199_v5 = vpop.f32.mrf.mxu1 }
 0x201   :  { %212 = vst.msk [vmem:[%s364_s5 + $0x18] sm:$0xff] %vm208_vm1, %v205_v4  ;;  %v200_v6 = vadd.f32 %v219_v62, %v199_v5 }
 0x203   :  { %211 = vst.msk [vmem:[%s364_s5 + $0x10] sm:$0xff] %vm208_vm1, %v200_v6 }

// kernel: forward.23
= control target key start
LH: loop header
LB: loop body
LE: loop exit
PB: predicated region body
PF: predicated region fallthrough
CT: control target
= control target key end

     0   :  { %vm86_vm0 = vcmask 130048   ;;  %vm1646_vm1 = vcmask 31744   ;;  %s3533_s0 = inlined_call_operand.vmem [shape: f32[512,16], index: 0, kind: input, shape index: {}]   ;;  %s3534_s3 = inlined_call_operand.vmem [shape: f32[16,4], index: 3, kind: input, shape index: {}]   ;;  %s3535_s1 = inlined_call_operand.vmem [shape: f32[1,16], index: 1, kind: input, shape index: {}]   ;;  %s3536_s2 = inlined_call_operand.vmem [shape: f32[1,16], index: 2, kind: input, shape index: {}]   ;;  %s3537_s4 = inlined_call_operand.vmem [shape: f32[1,4], index: 4, kind: input, shape index: {}]   ;;  %s3538_s5 = inlined_call_operand.vmem [shape: f32[512,4], index: 5, kind: output, shape index: {}]  }
   0x1   :  { %v2115_v0 = vld [vmem:[%s3533_s0] sm:$0xff]  ;;  %v2120_v1 = vld [vmem:[%s3533_s0 + $0x8] sm:$0xff]  ;;  %v2143_v8 = vld [vmem:[%s3533_s0 + $0x10] sm:$0xff] }
   0x2   :  { %v2125_v2 = vld [vmem:[%s3533_s0 + $0x100] sm:$0xff]  ;;  %v87_v3 = vsel %vm86_vm0, %v2115_v0, 0.0  ;;  %v90_v4 = vsel %vm86_vm0, %v2120_v1, 0.0  ;;  %v2134_v5 = vld [vmem:[%s3533_s0 + $0x108] sm:$0xff]  ;;  %v2148_v9 = vld [vmem:[%s3533_s0 + $0x110] sm:$0xff]  ;;  %v93_v10 = vsel %vm86_vm0, %v2143_v8, 0.0 }
   0x3   :  { %88 = vadd.xlane.f32.xlu0 %v87_v3  ;;  %91 = vadd.xlane.f32.xlu1 %v90_v4  ;;  %v183_v6 = vsel %vm86_vm0, %v2125_v2, 0.0  ;;  %v186_v7 = vsel %vm86_vm0, %v2134_v5, 0.0  ;;  %v189_v11 = vsel %vm86_vm0, %v2148_v9, 0.0  ;;  %v2157_v12 = vld [vmem:[%s3533_s0 + $0x18] sm:$0xff]  ;;  %v2171_v16 = vld [vmem:[%s3533_s0 + $0x20] sm:$0xff]  ;;  %v2185_v20 = vld [vmem:[%s3533_s0 + $0x28] sm:$0xff] }
   0x4   :  { %v2162_v13 = vld [vmem:[%s3533_s0 + $0x118] sm:$0xff]  ;;  %v96_v14 = vsel %vm86_vm0, %v2157_v12, 0.0  ;;  %v2176_v17 = vld [vmem:[%s3533_s0 + $0x120] sm:$0xff]  ;;  %v99_v18 = vsel %vm86_vm0, %v2171_v16, 0.0  ;;  %v2190_v21 = vld [vmem:[%s3533_s0 + $0x128] sm:$0xff]  ;;  %v102_v22 = vsel %vm86_vm0, %v2185_v20, 0.0 }
   0x5   :  { %v192_v15 = vsel %vm86_vm0, %v2162_v13, 0.0  ;;  %v195_v19 = vsel %vm86_vm0, %v2176_v17, 0.0  ;;  %v198_v23 = vsel %vm86_vm0, %v2190_v21, 0.0  ;;  %v2199_v24 = vld [vmem:[%s3533_s0 + $0x30] sm:$0xff]  ;;  %v2213_v28 = vld [vmem:[%s3533_s0 + $0x38] sm:$0xff]  ;;  %v2227_v32 = vld [vmem:[%s3533_s0 + $0x40] sm:$0xff] }
   0x6   :  { %v2204_v25 = vld [vmem:[%s3533_s0 + $0x130] sm:$0xff]  ;;  %v105_v26 = vsel %vm86_vm0, %v2199_v24, 0.0  ;;  %v2218_v29 = vld [vmem:[%s3533_s0 + $0x138] sm:$0xff]  ;;  %v108_v30 = vsel %vm86_vm0, %v2213_v28, 0.0  ;;  %v2232_v33 = vld [vmem:[%s3533_s0 + $0x140] sm:$0xff]  ;;  %v111_v34 = vsel %vm86_vm0, %v2227_v32, 0.0 }
   0x7   :  { %184 = vadd.xlane.f32.xlu0 %v183_v6  ;;  %187 = vadd.xlane.f32.xlu1 %v186_v7  ;;  %v201_v27 = vsel %vm86_vm0, %v2204_v25, 0.0  ;;  %v204_v31 = vsel %vm86_vm0, %v2218_v29, 0.0  ;;  %v207_v35 = vsel %vm86_vm0, %v2232_v33, 0.0  ;;  %v2241_v36 = vld [vmem:[%s3533_s0 + $0x48] sm:$0xff]  ;;  %v2255_v40 = vld [vmem:[%s3533_s0 + $0x50] sm:$0xff]  ;;  %v2269_v44 = vld [vmem:[%s3533_s0 + $0x58] sm:$0xff] }
   0x8   :  { %v2246_v37 = vld [vmem:[%s3533_s0 + $0x148] sm:$0xff]  ;;  %v114_v38 = vsel %vm86_vm0, %v2241_v36, 0.0  ;;  %v2260_v41 = vld [vmem:[%s3533_s0 + $0x150] sm:$0xff]  ;;  %v117_v42 = vsel %vm86_vm0, %v2255_v40, 0.0  ;;  %v2274_v45 = vld [vmem:[%s3533_s0 + $0x158] sm:$0xff]  ;;  %v120_v46 = vsel %vm86_vm0, %v2269_v44, 0.0 }
   0x9   :  { %v210_v39 = vsel %vm86_vm0, %v2246_v37, 0.0  ;;  %v213_v43 = vsel %vm86_vm0, %v2260_v41, 0.0  ;;  %v216_v47 = vsel %vm86_vm0, %v2274_v45, 0.0  ;;  %v2283_v48 = vld [vmem:[%s3533_s0 + $0x60] sm:$0xff]  ;;  %v2297_v52 = vld [vmem:[%s3533_s0 + $0x68] sm:$0xff]  ;;  %v2311_v56 = vld [vmem:[%s3533_s0 + $0x70] sm:$0xff] }
   0xa   :  { %v2288_v49 = vld [vmem:[%s3533_s0 + $0x160] sm:$0xff]  ;;  %v123_v50 = vsel %vm86_vm0, %v2283_v48, 0.0  ;;  %v2302_v53 = vld [vmem:[%s3533_s0 + $0x168] sm:$0xff]  ;;  %v126_v54 = vsel %vm86_vm0, %v2297_v52, 0.0  ;;  %v2316_v57 = vld [vmem:[%s3533_s0 + $0x170] sm:$0xff]  ;;  %v129_v58 = vsel %vm86_vm0, %v2311_v56, 0.0 }
   0xb   :  { %94 = vadd.xlane.f32.xlu0 %v93_v10  ;;  %190 = vadd.xlane.f32.xlu1 %v189_v11  ;;  %v219_v51 = vsel %vm86_vm0, %v2288_v49, 0.0  ;;  %v222_v55 = vsel %vm86_vm0, %v2302_v53, 0.0  ;;  %v225_v59 = vsel %vm86_vm0, %v2316_v57, 0.0  ;;  %v2325_v60 = vld [vmem:[%s3533_s0 + $0x78] sm:$0xff]  ;;  %v2339_v3 = vld [vmem:[%s3533_s0 + $0x80] sm:$0xff]  ;;  %v2353_v10 = vld [vmem:[%s3533_s0 + $0x88] sm:$0xff] }
   0xc   :  { %v2330_v61 = vld [vmem:[%s3533_s0 + $0x178] sm:$0xff]  ;;  %v132_v62 = vsel %vm86_vm0, %v2325_v60, 0.0  ;;  %v2344_v4 = vld [vmem:[%s3533_s0 + $0x180] sm:$0xff]  ;;  %v135_v6 = vsel %vm86_vm0, %v2339_v3, 0.0  ;;  %v2358_v11 = vld [vmem:[%s3533_s0 + $0x188] sm:$0xff] }
   0xd   :  { %v228_v63 = vsel %vm86_vm0, %v2330_v61, 0.0  ;;  %v231_v7 = vsel %vm86_vm0, %v2344_v4, 0.0 }
   0xf   :  { %97 = vadd.xlane.f32.xlu0 %v96_v14  ;;  %193 = vadd.xlane.f32.xlu1 %v192_v15  ;;  %v138_v14 = vsel %vm86_vm0, %v2353_v10, 0.0  ;;  %v234_v15 = vsel %vm86_vm0, %v2358_v11, 0.0 }
  0x13   :  { %100 = vadd.xlane.f32.xlu0 %v99_v18  ;;  %196 = vadd.xlane.f32.xlu1 %v195_v19  ;;  %v2367_v18 = vld [vmem:[%s3533_s0 + $0x90] sm:$0xff] }
  0x14   :  { %v2372_v19 = vld [vmem:[%s3533_s0 + $0x190] sm:$0xff] }
  0x17   :  { %103 = vadd.xlane.f32.xlu0 %v102_v22  ;;  %199 = vadd.xlane.f32.xlu1 %v198_v23  ;;  %v141_v22 = vsel %vm86_vm0, %v2367_v18, 0.0  ;;  %v237_v23 = vsel %vm86_vm0, %v2372_v19, 0.0 }
  0x1b   :  { %106 = vadd.xlane.f32.xlu0 %v105_v26  ;;  %202 = vadd.xlane.f32.xlu1 %v201_v27  ;;  %v2381_v26 = vld [vmem:[%s3533_s0 + $0x98] sm:$0xff] }
  0x1c   :  { %v2386_v27 = vld [vmem:[%s3533_s0 + $0x198] sm:$0xff] }
  0x1f   :  { %109 = vadd.xlane.f32.xlu0 %v108_v30  ;;  %205 = vadd.xlane.f32.xlu1 %v204_v31  ;;  %v144_v30 = vsel %vm86_vm0, %v2381_v26, 0.0  ;;  %v240_v31 = vsel %vm86_vm0, %v2386_v27, 0.0 }
  0x23   :  { %112 = vadd.xlane.f32.xlu0 %v111_v34  ;;  %208 = vadd.xlane.f32.xlu1 %v207_v35  ;;  %v2395_v34 = vld [vmem:[%s3533_s0 + $0xa0] sm:$0xff] }
  0x24   :  { %v2400_v35 = vld [vmem:[%s3533_s0 + $0x1a0] sm:$0xff] }
  0x27   :  { %115 = vadd.xlane.f32.xlu0 %v114_v38  ;;  %211 = vadd.xlane.f32.xlu1 %v210_v39  ;;  %v147_v38 = vsel %vm86_vm0, %v2395_v34, 0.0  ;;  %v243_v39 = vsel %vm86_vm0, %v2400_v35, 0.0 }
  0x2b   :  { %118 = vadd.xlane.f32.xlu0 %v117_v42  ;;  %214 = vadd.xlane.f32.xlu1 %v213_v43  ;;  %v2409_v42 = vld [vmem:[%s3533_s0 + $0xa8] sm:$0xff] }
  0x2c   :  { %v2414_v43 = vld [vmem:[%s3533_s0 + $0x1a8] sm:$0xff] }
  0x2f   :  { %121 = vadd.xlane.f32.xlu0 %v120_v46  ;;  %217 = vadd.xlane.f32.xlu1 %v216_v47  ;;  %v150_v46 = vsel %vm86_vm0, %v2409_v42, 0.0  ;;  %v246_v47 = vsel %vm86_vm0, %v2414_v43, 0.0 }
  0x33   :  { %124 = vadd.xlane.f32.xlu0 %v123_v50  ;;  %220 = vadd.xlane.f32.xlu1 %v219_v51  ;;  %v2423_v50 = vld [vmem:[%s3533_s0 + $0xb0] sm:$0xff] }
  0x34   :  { %v2428_v51 = vld [vmem:[%s3533_s0 + $0x1b0] sm:$0xff] }
  0x37   :  { %127 = vadd.xlane.f32.xlu0 %v126_v54  ;;  %223 = vadd.xlane.f32.xlu1 %v222_v55  ;;  %v153_v54 = vsel %vm86_vm0, %v2423_v50, 0.0  ;;  %v249_v55 = vsel %vm86_vm0, %v2428_v51, 0.0 }
  0x3b   :  { %130 = vadd.xlane.f32.xlu0 %v129_v58  ;;  %226 = vadd.xlane.f32.xlu1 %v225_v59  ;;  %v2437_v58 = vld [vmem:[%s3533_s0 + $0xb8] sm:$0xff] }
  0x3c   :  { %v2442_v59 = vld [vmem:[%s3533_s0 + $0x1b8] sm:$0xff] }
  0x3f   :  { %133 = vadd.xlane.f32.xlu0 %v132_v62  ;;  %229 = vadd.xlane.f32.xlu1 %v228_v63  ;;  %v156_v62 = vsel %vm86_vm0, %v2437_v58, 0.0  ;;  %v252_v63 = vsel %vm86_vm0, %v2442_v59, 0.0 }
  0x43   :  { %136 = vadd.xlane.f32.xlu0 %v135_v6  ;;  %232 = vadd.xlane.f32.xlu1 %v231_v7  ;;  %v2451_v6 = vld [vmem:[%s3533_s0 + $0xc0] sm:$0xff] }
  0x44   :  { %v2456_v7 = vld [vmem:[%s3533_s0 + $0x1c0] sm:$0xff] }
  0x47   :  { %139 = vadd.xlane.f32.xlu0 %v138_v14  ;;  %235 = vadd.xlane.f32.xlu1 %v234_v15  ;;  %v159_v14 = vsel %vm86_vm0, %v2451_v6, 0.0  ;;  %v255_v15 = vsel %vm86_vm0, %v2456_v7, 0.0 }
  0x4b   :  { %142 = vadd.xlane.f32.xlu0 %v141_v22  ;;  %238 = vadd.xlane.f32.xlu1 %v237_v23  ;;  %v2465_v22 = vld [vmem:[%s3533_s0 + $0xc8] sm:$0xff] }
  0x4c   :  { %3572 = vst [vmem:[#allocation2_spill] sm:$0xff] %v2465_v22  ;;  %v2470_v23 = vld [vmem:[%s3533_s0 + $0x1c8] sm:$0xff] }
  0x4d   :  { %3573 = vst [vmem:[#allocation3_spill] sm:$0xff] %v2470_v23 }
  0x4f   :  { %145 = vadd.xlane.f32.xlu0 %v144_v30  ;;  %241 = vadd.xlane.f32.xlu1 %v240_v31  ;;  %v162_v30 = vsel %vm86_vm0, %v2465_v22, 0.0  ;;  %v258_v31 = vsel %vm86_vm0, %v2470_v23, 0.0 }
  0x53   :  { %148 = vadd.xlane.f32.xlu0 %v147_v38  ;;  %244 = vadd.xlane.f32.xlu1 %v243_v39  ;;  %v2479_v38 = vld [vmem:[%s3533_s0 + $0xd0] sm:$0xff] }
  0x54   :  { %3574 = vst [vmem:[#allocation4_spill] sm:$0xff] %v2479_v38  ;;  %v2484_v39 = vld [vmem:[%s3533_s0 + $0x1d0] sm:$0xff] }
  0x55   :  { %3575 = vst [vmem:[#allocation5_spill] sm:$0xff] %v2484_v39 }
  0x57   :  { %151 = vadd.xlane.f32.xlu0 %v150_v46  ;;  %247 = vadd.xlane.f32.xlu1 %v246_v47  ;;  %v165_v46 = vsel %vm86_vm0, %v2479_v38, 0.0  ;;  %v261_v47 = vsel %vm86_vm0, %v2484_v39, 0.0 }
  0x5b   :  { %154 = vadd.xlane.f32.xlu0 %v153_v54  ;;  %250 = vadd.xlane.f32.xlu1 %v249_v55  ;;  %v2493_v54 = vld [vmem:[%s3533_s0 + $0xd8] sm:$0xff] }
  0x5c   :  { %3576 = vst [vmem:[#allocation6_spill] sm:$0xff] %v2493_v54  ;;  %v2498_v55 = vld [vmem:[%s3533_s0 + $0x1d8] sm:$0xff] }
  0x5d   :  { %3577 = vst [vmem:[#allocation7_spill] sm:$0xff] %v2498_v55 }
  0x5f   :  { %157 = vadd.xlane.f32.xlu0 %v156_v62  ;;  %253 = vadd.xlane.f32.xlu1 %v252_v63  ;;  %v168_v62 = vsel %vm86_vm0, %v2493_v54, 0.0  ;;  %v264_v63 = vsel %vm86_vm0, %v2498_v55, 0.0 }
  0x63   :  { %160 = vadd.xlane.f32.xlu0 %v159_v14  ;;  %256 = vadd.xlane.f32.xlu1 %v255_v15  ;;  %v2507_v14 = vld [vmem:[%s3533_s0 + $0xe0] sm:$0xff] }
  0x64   :  { %3578 = vst [vmem:[#allocation8_spill] sm:$0xff] %v2507_v14  ;;  %v2512_v15 = vld [vmem:[%s3533_s0 + $0x1e0] sm:$0xff] }
  0x65   :  { %3579 = vst [vmem:[#allocation9_spill] sm:$0xff] %v2512_v15 }
  0x67   :  { %163 = vadd.xlane.f32.xlu0 %v162_v30  ;;  %259 = vadd.xlane.f32.xlu1 %v258_v31  ;;  %v171_v30 = vsel %vm86_vm0, %v2507_v14, 0.0  ;;  %v267_v31 = vsel %vm86_vm0, %v2512_v15, 0.0  ;;  %v2535_v15 = vld [vmem:[%s3533_s0 + $0xf0] sm:$0xff] }
  0x68   :  { %3582 = vst [vmem:[#allocation12_spill] sm:$0xff] %v2535_v15  ;;  %v2540_v14 = vld [vmem:[%s3533_s0 + $0x1f0] sm:$0xff] }
  0x69   :  { %3583 = vst [vmem:[#allocation13_spill] sm:$0xff] %v2540_v14 }
  0x6b   :  { %166 = vadd.xlane.f32.xlu0 %v165_v46  ;;  %262 = vadd.xlane.f32.xlu1 %v261_v47  ;;  %v2521_v46 = vld [vmem:[%s3533_s0 + $0xe8] sm:$0xff] }
  0x6c   :  { %3580 = vst [vmem:[#allocation10_spill] sm:$0xff] %v2521_v46  ;;  %v2526_v47 = vld [vmem:[%s3533_s0 + $0x1e8] sm:$0xff] }
  0x6d   :  { %3581 = vst [vmem:[#allocation11_spill] sm:$0xff] %v2526_v47 }
  0x6f   :  { %169 = vadd.xlane.f32.xlu0 %v168_v62  ;;  %265 = vadd.xlane.f32.xlu1 %v264_v63  ;;  %v174_v62 = vsel %vm86_vm0, %v2521_v46, 0.0  ;;  %v270_v63 = vsel %vm86_vm0, %v2526_v47, 0.0  ;;  %v2549_v47 = vld [vmem:[%s3533_s0 + $0xf8] sm:$0xff] }
  0x70   :  { %3584 = vst [vmem:[#allocation14_spill] sm:$0xff] %v2549_v47  ;;  %v2554_v46 = vld [vmem:[%s3533_s0 + $0x1f8] sm:$0xff] }
  0x73   :  { %172 = vadd.xlane.f32.xlu0 %v171_v30  ;;  %268 = vadd.xlane.f32.xlu1 %v267_v31  ;;  %v177_v30 = vsel %vm86_vm0, %v2535_v15, 0.0  ;;  %v273_v31 = vsel %vm86_vm0, %v2540_v14, 0.0 }
  0x77   :  { %175 = vadd.xlane.f32.xlu0 %v174_v62  ;;  %271 = vadd.xlane.f32.xlu1 %v270_v63  ;;  %v180_v62 = vsel %vm86_vm0, %v2549_v47, 0.0  ;;  %v276_v63 = vsel %vm86_vm0, %v2554_v46, 0.0 }
  0x7b   :  { %178 = vadd.xlane.f32.xlu0 %v177_v30  ;;  %274 = vadd.xlane.f32.xlu1 %v273_v31 }
  0x7f   :  { %181 = vadd.xlane.f32.xlu0 %v180_v62  ;;  %277 = vadd.xlane.f32.xlu1 %v276_v63 }
  0x8c   :  { %v89_v14 = vpop.xlane.xlu0 %88  ;;  %v92_v15 = vpop.xlane.xlu1 %91 }
  0x8d   :  { %v280_v55 = vmul.f32 0.0625, %v89_v14  ;;  %v281_v54 = vmul.f32 0.0625, %v92_v15 }
  0x8f   :  { %v2561_v39 = vsub.f32 %v2115_v0, %v280_v55  ;;  %v2564_v38 = vsub.f32 %v2120_v1, %v281_v54 }
  0x90   :  { %v185_v30 = vpop.xlane.xlu0 %184  ;;  %v188_v31 = vpop.xlane.xlu1 %187 }
  0x91   :  { %3585 = vst [vmem:[#allocation15_spill] sm:$0xff] %v2564_v38  ;;  %v312_v23 = vmul.f32 0.0625, %v185_v30  ;;  %v313_v22 = vmul.f32 0.0625, %v188_v31  ;;  %v408_v47 = vmul.f32 %v2561_v39, %v2561_v39  ;;  %v409_v62 = vmul.f32 %v2564_v38, %v2564_v38 }
  0x93   :  { %v2571_v63 = vsub.f32 %v2125_v2, %v312_v23  ;;  %v2574_v14 = vsub.f32 %v2134_v5, %v313_v22  ;;  %v472_v0 = vsel %vm86_vm0, %v408_v47, 0.0  ;;  %v475_v55 = vsel %vm86_vm0, %v409_v62, 0.0 }
  0x94   :  { %473 = vadd.xlane.f32.xlu0 %v472_v0  ;;  %v95_v1 = vpop.xlane.xlu0 %94  ;;  %v191_v54 = vpop.xlane.xlu1 %190 }
  0x95   :  { %v282_v15 = vmul.f32 0.0625, %v95_v1  ;;  %v314_v30 = vmul.f32 0.0625, %v191_v54  ;;  %v440_v31 = vmul.f32 %v2571_v63, %v2571_v63  ;;  %v441_v38 = vmul.f32 %v2574_v14, %v2574_v14 }
  0x97   :  { %v2583_v2 = vsub.f32 %v2143_v8, %v282_v15  ;;  %v2586_v5 = vsub.f32 %v2148_v9, %v314_v30  ;;  %v568_v22 = vsel %vm86_vm0, %v440_v31, 0.0  ;;  %v571_v62 = vsel %vm86_vm0, %v441_v38, 0.0 }
  0x98   :  { %476 = vadd.xlane.f32.xlu0 %v475_v55  ;;  %569 = vadd.xlane.f32.xlu1 %v568_v22  ;;  %v98_v23 = vpop.xlane.xlu0 %97  ;;  %v194_v47 = vpop.xlane.xlu1 %193 }
  0x99   :  { %v283_v0 = vmul.f32 0.0625, %v98_v23  ;;  %v315_v1 = vmul.f32 0.0625, %v194_v47  ;;  %v410_v54 = vmul.f32 %v2583_v2, %v2583_v2  ;;  %v442_v8 = vmul.f32 %v2586_v5, %v2586_v5 }
  0x9b   :  { %v2595_v15 = vsub.f32 %v2157_v12, %v283_v0  ;;  %v2598_v9 = vsub.f32 %v2162_v13, %v315_v1  ;;  %v478_v55 = vsel %vm86_vm0, %v410_v54, 0.0  ;;  %v574_v31 = vsel %vm86_vm0, %v442_v8, 0.0 }
  0x9c   :  { %572 = vadd.xlane.f32.xlu1 %v571_v62  ;;  %479 = vadd.xlane.f32.xlu0 %v478_v55  ;;  %v101_v30 = vpop.xlane.xlu0 %100  ;;  %v197_v38 = vpop.xlane.xlu1 %196 }
  0x9d   :  { %v284_v22 = vmul.f32 0.0625, %v101_v30  ;;  %v316_v23 = vmul.f32 0.0625, %v197_v38  ;;  %v411_v47 = vmul.f32 %v2595_v15, %v2595_v15  ;;  %v443_v12 = vmul.f32 %v2598_v9, %v2598_v9 }
  0x9f   :  { %v2607_v0 = vsub.f32 %v2171_v16, %v284_v22  ;;  %v2610_v13 = vsub.f32 %v2176_v17, %v316_v23  ;;  %v481_v62 = vsel %vm86_vm0, %v411_v47, 0.0  ;;  %v577_v8 = vsel %vm86_vm0, %v443_v12, 0.0 }
  0xa0   :  { %575 = vadd.xlane.f32.xlu1 %v574_v31  ;;  %482 = vadd.xlane.f32.xlu0 %v481_v62  ;;  %v104_v1 = vpop.xlane.xlu0 %103  ;;  %v200_v54 = vpop.xlane.xlu1 %199 }
  0xa1   :  { %v285_v55 = vmul.f32 0.0625, %v104_v1  ;;  %v317_v30 = vmul.f32 0.0625, %v200_v54  ;;  %v412_v38 = vmul.f32 %v2607_v0, %v2607_v0  ;;  %v444_v16 = vmul.f32 %v2610_v13, %v2610_v13 }
  0xa3   :  { %v2619_v22 = vsub.f32 %v2185_v20, %v285_v55  ;;  %v2622_v17 = vsub.f32 %v2190_v21, %v317_v30  ;;  %v484_v31 = vsel %vm86_vm0, %v412_v38, 0.0  ;;  %v580_v12 = vsel %vm86_vm0, %v444_v16, 0.0 }
  0xa4   :  { %578 = vadd.xlane.f32.xlu1 %v577_v8  ;;  %485 = vadd.xlane.f32.xlu0 %v484_v31  ;;  %v107_v23 = vpop.xlane.xlu0 %106  ;;  %v203_v47 = vpop.xlane.xlu1 %202 }
  0xa5   :  { %v286_v62 = vmul.f32 0.0625, %v107_v23  ;;  %v318_v1 = vmul.f32 0.0625, %v203_v47  ;;  %v413_v54 = vmul.f32 %v2619_v22, %v2619_v22  ;;  %v445_v20 = vmul.f32 %v2622_v17, %v2622_v17 }
  0xa7   :  { %v2631_v55 = vsub.f32 %v2199_v24, %v286_v62  ;;  %v2634_v21 = vsub.f32 %v2204_v25, %v318_v1  ;;  %v487_v8 = vsel %vm86_vm0, %v413_v54, 0.0  ;;  %v583_v16 = vsel %vm86_vm0, %v445_v20, 0.0 }
  0xa8   :  { %581 = vadd.xlane.f32.xlu1 %v580_v12  ;;  %488 = vadd.xlane.f32.xlu0 %v487_v8  ;;  %v110_v30 = vpop.xlane.xlu0 %109  ;;  %v206_v38 = vpop.xlane.xlu1 %205 }
  0xa9   :  { %v287_v31 = vmul.f32 0.0625, %v110_v30  ;;  %v319_v23 = vmul.f32 0.0625, %v206_v38  ;;  %v414_v47 = vmul.f32 %v2631_v55, %v2631_v55  ;;  %v446_v24 = vmul.f32 %v2634_v21, %v2634_v21 }
  0xab   :  { %v2643_v62 = vsub.f32 %v2213_v28, %v287_v31  ;;  %v2646_v25 = vsub.f32 %v2218_v29, %v319_v23  ;;  %v490_v12 = vsel %vm86_vm0, %v414_v47, 0.0  ;;  %v586_v20 = vsel %vm86_vm0, %v446_v24, 0.0 }
  0xac   :  { %584 = vadd.xlane.f32.xlu1 %v583_v16  ;;  %491 = vadd.xlane.f32.xlu0 %v490_v12  ;;  %v113_v1 = vpop.xlane.xlu0 %112  ;;  %v209_v54 = vpop.xlane.xlu1 %208 }
  0xad   :  { %v288_v8 = vmul.f32 0.0625, %v113_v1  ;;  %v320_v30 = vmul.f32 0.0625, %v209_v54  ;;  %v415_v38 = vmul.f32 %v2643_v62, %v2643_v62  ;;  %v447_v28 = vmul.f32 %v2646_v25, %v2646_v25 }
  0xaf   :  { %v2655_v31 = vsub.f32 %v2227_v32, %v288_v8  ;;  %v2658_v29 = vsub.f32 %v2232_v33, %v320_v30  ;;  %v493_v16 = vsel %vm86_vm0, %v415_v38, 0.0  ;;  %v589_v24 = vsel %vm86_vm0, %v447_v28, 0.0 }
  0xb0   :  { %587 = vadd.xlane.f32.xlu1 %v586_v20  ;;  %494 = vadd.xlane.f32.xlu0 %v493_v16  ;;  %v116_v23 = vpop.xlane.xlu0 %115  ;;  %v212_v47 = vpop.xlane.xlu1 %211 }
  0xb1   :  { %v289_v12 = vmul.f32 0.0625, %v116_v23  ;;  %v321_v1 = vmul.f32 0.0625, %v212_v47  ;;  %v416_v54 = vmul.f32 %v2655_v31, %v2655_v31  ;;  %v448_v32 = vmul.f32 %v2658_v29, %v2658_v29 }
  0xb3   :  { %v2667_v8 = vsub.f32 %v2241_v36, %v289_v12  ;;  %v2670_v33 = vsub.f32 %v2246_v37, %v321_v1  ;;  %v496_v20 = vsel %vm86_vm0, %v416_v54, 0.0  ;;  %v592_v28 = vsel %vm86_vm0, %v448_v32, 0.0  ;;  %v1061_v37 = vld [vmem:[%s3534_s3 + $0x8] sm:$0xff] }
  0xb4   :  { %590 = vadd.xlane.f32.xlu1 %v589_v24  ;;  %497 = vadd.xlane.f32.xlu0 %v496_v20  ;;  %v119_v30 = vpop.xlane.xlu0 %118  ;;  %v215_v38 = vpop.xlane.xlu1 %214 }
  0xb5   :  { %v290_v16 = vmul.f32 0.0625, %v119_v30  ;;  %v322_v23 = vmul.f32 0.0625, %v215_v38  ;;  %v417_v47 = vmul.f32 %v2667_v8, %v2667_v8  ;;  %v449_v36 = vmul.f32 %v2670_v33, %v2670_v33  ;;  %1848 = vmatprep.subr.mxu0 %v1061_v37  ;;  %1948 = vmatprep.subr.mxu1 %v1061_v37  ;;  %v1060_v30 = vld [vmem:[%s3534_s3] sm:$0xff] }
  0xb6   :  { %1849 = vmatpush3.msra.mxu0 %v1061_v37  ;;  %1950 = vmatpush3.msra.mxu1 %v1061_v37 }
  0xb7   :  { %v2682_v12 = vsub.f32 %v2255_v40, %v290_v16  ;;  %v2685_v24 = vsub.f32 %v2260_v41, %v322_v23  ;;  %v499_v1 = vsel %vm86_vm0, %v417_v47, 0.0  ;;  %v595_v20 = vsel %vm86_vm0, %v449_v36, 0.0  ;;  %1850 = vmatprep.subr.mxu0 %v1060_v30  ;;  %1949 = vmatprep.subr.mxu1 %v1060_v30 }
  0xb8   :  { %593 = vadd.xlane.f32.xlu1 %v592_v28  ;;  %500 = vadd.xlane.f32.xlu0 %v499_v1  ;;  %v122_v54 = vpop.xlane.xlu0 %121  ;;  %v218_v32 = vpop.xlane.xlu1 %217 }
  0xb9   :  { %3586 = vst [vmem:[#allocation16_spill] sm:$0xff] %v2685_v24  ;;  %v291_v38 = vmul.f32 0.0625, %v122_v54  ;;  %v323_v40 = vmul.f32 0.0625, %v218_v32  ;;  %v418_v41 = vmul.f32 %v2682_v12, %v2682_v12  ;;  %v450_v16 = vmul.f32 %v2685_v24, %v2685_v24  ;;  %1851 = vmatpush3.msra.mxu0 %v1060_v30  ;;  %1951 = vmatpush3.msra.mxu1 %v1060_v30 }
  0xbb   :  { %v2697_v28 = vsub.f32 %v2269_v44, %v291_v38  ;;  %v2700_v23 = vsub.f32 %v2274_v45, %v323_v40  ;;  %v502_v47 = vsel %vm86_vm0, %v418_v41, 0.0  ;;  %v598_v54 = vsel %vm86_vm0, %v450_v16, 0.0 }
  0xbc   :  { %596 = vadd.xlane.f32.xlu1 %v595_v20  ;;  %503 = vadd.xlane.f32.xlu0 %v502_v47  ;;  %v125_v36 = vpop.xlane.xlu0 %124  ;;  %v221_v1 = vpop.xlane.xlu1 %220 }
  0xbd   :  { %v292_v32 = vmul.f32 0.0625, %v125_v36  ;;  %v324_v37 = vmul.f32 0.0625, %v221_v1  ;;  %v419_v24 = vmul.f32 %v2697_v28, %v2697_v28  ;;  %v451_v44 = vmul.f32 %v2700_v23, %v2700_v23 }
  0xbf   :  { %v2709_v45 = vsub.f32 %v2283_v48, %v292_v32  ;;  %v2712_v38 = vsub.f32 %v2288_v49, %v324_v37  ;;  %v505_v20 = vsel %vm86_vm0, %v419_v24, 0.0  ;;  %v601_v41 = vsel %vm86_vm0, %v451_v44, 0.0 }
  0xc0   :  { %599 = vadd.xlane.f32.xlu1 %v598_v54  ;;  %506 = vadd.xlane.f32.xlu0 %v505_v20  ;;  %v128_v30 = vpop.xlane.xlu0 %127  ;;  %v224_v40 = vpop.xlane.xlu1 %223 }
  0xc1   :  { %v293_v16 = vmul.f32 0.0625, %v128_v30  ;;  %v325_v47 = vmul.f32 0.0625, %v224_v40  ;;  %v420_v36 = vmul.f32 %v2709_v45, %v2709_v45  ;;  %v452_v48 = vmul.f32 %v2712_v38, %v2712_v38 }
  0xc3   :  { %v2721_v1 = vsub.f32 %v2297_v52, %v293_v16  ;;  %v2724_v49 = vsub.f32 %v2302_v53, %v325_v47  ;;  %v508_v24 = vsel %vm86_vm0, %v420_v36, 0.0  ;;  %v604_v37 = vsel %vm86_vm0, %v452_v48, 0.0 }
  0xc4   :  { %602 = vadd.xlane.f32.xlu1 %v601_v41  ;;  %509 = vadd.xlane.f32.xlu0 %v508_v24  ;;  %v131_v54 = vpop.xlane.xlu0 %130  ;;  %v227_v32 = vpop.xlane.xlu1 %226 }
  0xc5   :  { %v294_v44 = vmul.f32 0.0625, %v131_v54  ;;  %v326_v20 = vmul.f32 0.0625, %v227_v32  ;;  %v421_v30 = vmul.f32 %v2721_v1, %v2721_v1  ;;  %v453_v52 = vmul.f32 %v2724_v49, %v2724_v49 }
  0xc7   :  { %v2733_v40 = vsub.f32 %v2311_v56, %v294_v44  ;;  %v2736_v53 = vsub.f32 %v2316_v57, %v326_v20  ;;  %v511_v41 = vsel %vm86_vm0, %v421_v30, 0.0  ;;  %v607_v36 = vsel %vm86_vm0, %v453_v52, 0.0 }
  0xc8   :  { %605 = vadd.xlane.f32.xlu1 %v604_v37  ;;  %512 = vadd.xlane.f32.xlu0 %v511_v41  ;;  %v134_v16 = vpop.xlane.xlu0 %133  ;;  %v230_v47 = vpop.xlane.xlu1 %229 }
  0xc9   :  { %v295_v48 = vmul.f32 0.0625, %v134_v16  ;;  %v327_v24 = vmul.f32 0.0625, %v230_v47  ;;  %v422_v54 = vmul.f32 %v2733_v40, %v2733_v40  ;;  %v454_v56 = vmul.f32 %v2736_v53, %v2736_v53 }
  0xcb   :  { %v2745_v32 = vsub.f32 %v2325_v60, %v295_v48  ;;  %v2748_v57 = vsub.f32 %v2330_v61, %v327_v24  ;;  %v514_v37 = vsel %vm86_vm0, %v422_v54, 0.0  ;;  %v610_v30 = vsel %vm86_vm0, %v454_v56, 0.0 }
  0xcc   :  { %608 = vadd.xlane.f32.xlu1 %v607_v36  ;;  %515 = vadd.xlane.f32.xlu0 %v514_v37  ;;  %v137_v44 = vpop.xlane.xlu0 %136  ;;  %v233_v20 = vpop.xlane.xlu1 %232 }
  0xcd   :  { %v296_v52 = vmul.f32 0.0625, %v137_v44  ;;  %v328_v41 = vmul.f32 0.0625, %v233_v20  ;;  %v423_v16 = vmul.f32 %v2745_v32, %v2745_v32  ;;  %v455_v60 = vmul.f32 %v2748_v57, %v2748_v57 }
  0xcf   :  { %v2757_v47 = vsub.f32 %v2339_v3, %v296_v52  ;;  %v2760_v61 = vsub.f32 %v2344_v4, %v328_v41  ;;  %v517_v36 = vsel %vm86_vm0, %v423_v16, 0.0  ;;  %v613_v54 = vsel %vm86_vm0, %v455_v60, 0.0 }
  0xd0   :  { %611 = vadd.xlane.f32.xlu1 %v610_v30  ;;  %518 = vadd.xlane.f32.xlu0 %v517_v36  ;;  %v140_v48 = vpop.xlane.xlu0 %139  ;;  %v236_v24 = vpop.xlane.xlu1 %235 }
  0xd1   :  { %v297_v56 = vmul.f32 0.0625, %v140_v48  ;;  %v329_v37 = vmul.f32 0.0625, %v236_v24  ;;  %v424_v44 = vmul.f32 %v2757_v47, %v2757_v47  ;;  %v456_v3 = vmul.f32 %v2760_v61, %v2760_v61 }
  0xd3   :  { %v2769_v20 = vsub.f32 %v2353_v10, %v297_v56  ;;  %v2772_v4 = vsub.f32 %v2358_v11, %v329_v37  ;;  %v520_v30 = vsel %vm86_vm0, %v424_v44, 0.0  ;;  %v616_v16 = vsel %vm86_vm0, %v456_v3, 0.0 }
  0xd4   :  { %614 = vadd.xlane.f32.xlu1 %v613_v54  ;;  %521 = vadd.xlane.f32.xlu0 %v520_v30  ;;  %v143_v52 = vpop.xlane.xlu0 %142  ;;  %v239_v41 = vpop.xlane.xlu1 %238 }
  0xd5   :  { %v298_v60 = vmul.f32 0.0625, %v143_v52  ;;  %v330_v36 = vmul.f32 0.0625, %v239_v41  ;;  %v425_v48 = vmul.f32 %v2769_v20, %v2769_v20  ;;  %v457_v10 = vmul.f32 %v2772_v4, %v2772_v4 }
  0xd7   :  { %v2781_v24 = vsub.f32 %v2367_v18, %v298_v60  ;;  %v2784_v11 = vsub.f32 %v2372_v19, %v330_v36  ;;  %v523_v54 = vsel %vm86_vm0, %v425_v48, 0.0  ;;  %v619_v44 = vsel %vm86_vm0, %v457_v10, 0.0 }
  0xd8   :  { %617 = vadd.xlane.f32.xlu1 %v616_v16  ;;  %524 = vadd.xlane.f32.xlu0 %v523_v54  ;;  %v146_v56 = vpop.xlane.xlu0 %145  ;;  %v242_v37 = vpop.xlane.xlu1 %241 }
  0xd9   :  { %v299_v3 = vmul.f32 0.0625, %v146_v56  ;;  %v331_v30 = vmul.f32 0.0625, %v242_v37  ;;  %v426_v52 = vmul.f32 %v2781_v24, %v2781_v24  ;;  %v458_v18 = vmul.f32 %v2784_v11, %v2784_v11 }
  0xdb   :  { %v2793_v41 = vsub.f32 %v2381_v26, %v299_v3  ;;  %v2796_v19 = vsub.f32 %v2386_v27, %v331_v30  ;;  %v526_v16 = vsel %vm86_vm0, %v426_v52, 0.0  ;;  %v622_v48 = vsel %vm86_vm0, %v458_v18, 0.0 }
  0xdc   :  { %620 = vadd.xlane.f32.xlu1 %v619_v44  ;;  %527 = vadd.xlane.f32.xlu0 %v526_v16  ;;  %v149_v60 = vpop.xlane.xlu0 %148  ;;  %v245_v36 = vpop.xlane.xlu1 %244 }
  0xdd   :  { %v300_v10 = vmul.f32 0.0625, %v149_v60  ;;  %v332_v54 = vmul.f32 0.0625, %v245_v36  ;;  %v427_v56 = vmul.f32 %v2793_v41, %v2793_v41  ;;  %v459_v26 = vmul.f32 %v2796_v19, %v2796_v19 }
  0xdf   :  { %v2805_v37 = vsub.f32 %v2395_v34, %v300_v10  ;;  %v2808_v27 = vsub.f32 %v2400_v35, %v332_v54  ;;  %v529_v44 = vsel %vm86_vm0, %v427_v56, 0.0  ;;  %v625_v52 = vsel %vm86_vm0, %v459_v26, 0.0 }
  0xe0   :  { %623 = vadd.xlane.f32.xlu1 %v622_v48  ;;  %530 = vadd.xlane.f32.xlu0 %v529_v44  ;;  %v152_v3 = vpop.xlane.xlu0 %151  ;;  %v248_v30 = vpop.xlane.xlu1 %247 }
  0xe1   :  { %v301_v18 = vmul.f32 0.0625, %v152_v3  ;;  %v333_v16 = vmul.f32 0.0625, %v248_v30  ;;  %v428_v60 = vmul.f32 %v2805_v37, %v2805_v37  ;;  %v460_v34 = vmul.f32 %v2808_v27, %v2808_v27 }
  0xe3   :  { %v2817_v36 = vsub.f32 %v2409_v42, %v301_v18  ;;  %v2820_v35 = vsub.f32 %v2414_v43, %v333_v16  ;;  %v532_v48 = vsel %vm86_vm0, %v428_v60, 0.0  ;;  %v628_v56 = vsel %vm86_vm0, %v460_v34, 0.0 }
  0xe4   :  { %626 = vadd.xlane.f32.xlu1 %v625_v52  ;;  %533 = vadd.xlane.f32.xlu0 %v532_v48  ;;  %v155_v10 = vpop.xlane.xlu0 %154  ;;  %v251_v54 = vpop.xlane.xlu1 %250 }
  0xe5   :  { %v302_v26 = vmul.f32 0.0625, %v155_v10  ;;  %v334_v44 = vmul.f32 0.0625, %v251_v54  ;;  %v429_v3 = vmul.f32 %v2817_v36, %v2817_v36  ;;  %v461_v42 = vmul.f32 %v2820_v35, %v2820_v35 }
  0xe7   :  { %v2829_v30 = vsub.f32 %v2423_v50, %v302_v26  ;;  %v2832_v43 = vsub.f32 %v2428_v51, %v334_v44  ;;  %v535_v52 = vsel %vm86_vm0, %v429_v3, 0.0  ;;  %v631_v60 = vsel %vm86_vm0, %v461_v42, 0.0 }
  0xe8   :  { %629 = vadd.xlane.f32.xlu1 %v628_v56  ;;  %536 = vadd.xlane.f32.xlu0 %v535_v52  ;;  %v158_v18 = vpop.xlane.xlu0 %157  ;;  %v254_v16 = vpop.xlane.xlu1 %253 }
  0xe9   :  { %v303_v34 = vmul.f32 0.0625, %v158_v18  ;;  %v335_v48 = vmul.f32 0.0625, %v254_v16  ;;  %v430_v10 = vmul.f32 %v2829_v30, %v2829_v30  ;;  %v462_v50 = vmul.f32 %v2832_v43, %v2832_v43 }
  0xeb   :  { %v2841_v54 = vsub.f32 %v2437_v58, %v303_v34  ;;  %v2844_v51 = vsub.f32 %v2442_v59, %v335_v48  ;;  %v538_v56 = vsel %vm86_vm0, %v430_v10, 0.0  ;;  %v634_v3 = vsel %vm86_vm0, %v462_v50, 0.0 }
  0xec   :  { %632 = vadd.xlane.f32.xlu1 %v631_v60  ;;  %539 = vadd.xlane.f32.xlu0 %v538_v56  ;;  %v161_v26 = vpop.xlane.xlu0 %160  ;;  %v257_v44 = vpop.xlane.xlu1 %256 }
  0xed   :  { %3587 = vst [vmem:[#allocation17_spill] sm:$0xff] %v2841_v54  ;;  %3588 = vst [vmem:[#allocation18_spill] sm:$0xff] %v2844_v51  ;;  %v304_v42 = vmul.f32 0.0625, %v161_v26  ;;  %v336_v52 = vmul.f32 0.0625, %v257_v44  ;;  %v431_v18 = vmul.f32 %v2841_v54, %v2841_v54  ;;  %v463_v58 = vmul.f32 %v2844_v51, %v2844_v51  ;;  %v3591_v44 = vld [vmem:[#allocation2_spill] sm:$0xff] }
  0xef   :  { %v2853_v16 = vsub.f32 %v2451_v6, %v304_v42  ;;  %v2856_v59 = vsub.f32 %v2456_v7, %v336_v52  ;;  %v541_v60 = vsel %vm86_vm0, %v431_v18, 0.0  ;;  %v637_v10 = vsel %vm86_vm0, %v463_v58, 0.0  ;;  %v3593_v7 = vld [vmem:[#allocation3_spill] sm:$0xff] }
  0xf0   :  { %635 = vadd.xlane.f32.xlu1 %v634_v3  ;;  %542 = vadd.xlane.f32.xlu0 %v541_v60  ;;  %v164_v34 = vpop.xlane.xlu0 %163  ;;  %v260_v48 = vpop.xlane.xlu1 %259 }
  0xf1   :  { %3589 = vst [vmem:[#allocation19_spill] sm:$0xff] %v2853_v16  ;;  %3590 = vst [vmem:[#allocation20_spill] sm:$0xff] %v2856_v59  ;;  %v305_v50 = vmul.f32 0.0625, %v164_v34  ;;  %v337_v56 = vmul.f32 0.0625, %v260_v48  ;;  %v432_v26 = vmul.f32 %v2853_v16, %v2853_v16  ;;  %v464_v6 = vmul.f32 %v2856_v59, %v2856_v59 }
  0xf3   :  { %v2865_v42 = vsub.f32 %v3591_v44, %v305_v50  ;;  %v2868_v52 = vsub.f32 %v3593_v7, %v337_v56  ;;  %v544_v3 = vsel %vm86_vm0, %v432_v26, 0.0  ;;  %v640_v60 = vsel %vm86_vm0, %v464_v6, 0.0  ;;  %v3595_v44 = vld [vmem:[#allocation4_spill] sm:$0xff]  ;;  %v3597_v56 = vld [vmem:[#allocation5_spill] sm:$0xff] }
  0xf4   :  { %638 = vadd.xlane.f32.xlu1 %v637_v10  ;;  %545 = vadd.xlane.f32.xlu0 %v544_v3  ;;  %v167_v18 = vpop.xlane.xlu0 %166  ;;  %v263_v58 = vpop.xlane.xlu1 %262 }
  0xf5   :  { %3592 = vst [vmem:[#allocation2_spill] sm:$0xff] %v2865_v42  ;;  %3594 = vst [vmem:[#allocation3_spill] sm:$0xff] %v2868_v52  ;;  %v306_v34 = vmul.f32 0.0625, %v167_v18  ;;  %v338_v48 = vmul.f32 0.0625, %v263_v58  ;;  %v433_v16 = vmul.f32 %v2865_v42, %v2865_v42  ;;  %v465_v50 = vmul.f32 %v2868_v52, %v2868_v52 }
  0xf7   :  { %v2877_v59 = vsub.f32 %v3595_v44, %v306_v34  ;;  %v2880_v7 = vsub.f32 %v3597_v56, %v338_v48  ;;  %v547_v10 = vsel %vm86_vm0, %v433_v16, 0.0  ;;  %v643_v3 = vsel %vm86_vm0, %v465_v50, 0.0  ;;  %v3599_v44 = vld [vmem:[#allocation6_spill] sm:$0xff]  ;;  %v3601_v48 = vld [vmem:[#allocation7_spill] sm:$0xff] }
  0xf8   :  { %641 = vadd.xlane.f32.xlu1 %v640_v60  ;;  %548 = vadd.xlane.f32.xlu0 %v547_v10  ;;  %v170_v26 = vpop.xlane.xlu0 %169  ;;  %v266_v6 = vpop.xlane.xlu1 %265 }
  0xf9   :  { %3596 = vst [vmem:[#allocation4_spill] sm:$0xff] %v2877_v59  ;;  %3598 = vst [vmem:[#allocation5_spill] sm:$0xff] %v2880_v7  ;;  %v307_v18 = vmul.f32 0.0625, %v170_v26  ;;  %v339_v58 = vmul.f32 0.0625, %v266_v6  ;;  %v434_v42 = vmul.f32 %v2877_v59, %v2877_v59  ;;  %v466_v34 = vmul.f32 %v2880_v7, %v2880_v7 }
  0xfb   :  { %v2889_v52 = vsub.f32 %v3599_v44, %v307_v18  ;;  %v2892_v56 = vsub.f32 %v3601_v48, %v339_v58  ;;  %v550_v16 = vsel %vm86_vm0, %v434_v42, 0.0  ;;  %v646_v10 = vsel %vm86_vm0, %v466_v34, 0.0  ;;  %v3603_v44 = vld [vmem:[#allocation8_spill] sm:$0xff]  ;;  %v3605_v58 = vld [vmem:[#allocation9_spill] sm:$0xff] }
  0xfc   :  { %644 = vadd.xlane.f32.xlu1 %v643_v3  ;;  %551 = vadd.xlane.f32.xlu0 %v550_v16  ;;  %v173_v60 = vpop.xlane.xlu0 %172  ;;  %v269_v50 = vpop.xlane.xlu1 %268 }
  0xfd   :  { %3600 = vst [vmem:[#allocation6_spill] sm:$0xff] %v2889_v52  ;;  %3602 = vst [vmem:[#allocation7_spill] sm:$0xff] %v2892_v56  ;;  %v308_v26 = vmul.f32 0.0625, %v173_v60  ;;  %v340_v6 = vmul.f32 0.0625, %v269_v50  ;;  %v435_v59 = vmul.f32 %v2889_v52, %v2889_v52  ;;  %v467_v18 = vmul.f32 %v2892_v56, %v2892_v56 }
  0xff   :  { %v2901_v7 = vsub.f32 %v3603_v44, %v308_v26  ;;  %v2904_v48 = vsub.f32 %v3605_v58, %v340_v6  ;;  %v553_v42 = vsel %vm86_vm0, %v435_v59, 0.0  ;;  %v649_v16 = vsel %vm86_vm0, %v467_v18, 0.0  ;;  %v3607_v44 = vld [vmem:[#allocation10_spill] sm:$0xff]  ;;  %v3609_v6 = vld [vmem:[#allocation11_spill] sm:$0xff] }
 0x100   :  { %647 = vadd.xlane.f32.xlu1 %v646_v10  ;;  %554 = vadd.xlane.f32.xlu0 %v553_v42  ;;  %v176_v3 = vpop.xlane.xlu0 %175  ;;  %v272_v34 = vpop.xlane.xlu1 %271 }
 0x101   :  { %3604 = vst [vmem:[#allocation8_spill] sm:$0xff] %v2901_v7  ;;  %3606 = vst [vmem:[#allocation9_spill] sm:$0xff] %v2904_v48  ;;  %v309_v60 = vmul.f32 0.0625, %v176_v3  ;;  %v341_v50 = vmul.f32 0.0625, %v272_v34  ;;  %v436_v52 = vmul.f32 %v2901_v7, %v2901_v7  ;;  %v468_v26 = vmul.f32 %v2904_v48, %v2904_v48 }
 0x103   :  { %v2913_v56 = vsub.f32 %v3607_v44, %v309_v60  ;;  %v2916_v58 = vsub.f32 %v3609_v6, %v341_v50  ;;  %v556_v59 = vsel %vm86_vm0, %v436_v52, 0.0  ;;  %v652_v42 = vsel %vm86_vm0, %v468_v26, 0.0  ;;  %v3611_v44 = vld [vmem:[#allocation12_spill] sm:$0xff]  ;;  %v3613_v50 = vld [vmem:[#allocation13_spill] sm:$0xff] }
 0x104   :  { %650 = vadd.xlane.f32.xlu1 %v649_v16  ;;  %557 = vadd.xlane.f32.xlu0 %v556_v59  ;;  %v179_v10 = vpop.xlane.xlu0 %178  ;;  %v275_v18 = vpop.xlane.xlu1 %274 }
 0x105   :  { %3608 = vst [vmem:[#allocation10_spill] sm:$0xff] %v2913_v56  ;;  %3610 = vst [vmem:[#allocation11_spill] sm:$0xff] %v2916_v58  ;;  %v310_v3 = vmul.f32 0.0625, %v179_v10  ;;  %v342_v34 = vmul.f32 0.0625, %v275_v18  ;;  %v437_v7 = vmul.f32 %v2913_v56, %v2913_v56  ;;  %v469_v60 = vmul.f32 %v2916_v58, %v2916_v58 }
 0x107   :  { %v2925_v48 = vsub.f32 %v3611_v44, %v310_v3  ;;  %v2928_v6 = vsub.f32 %v3613_v50, %v342_v34  ;;  %v559_v52 = vsel %vm86_vm0, %v437_v7, 0.0  ;;  %v655_v59 = vsel %vm86_vm0, %v469_v60, 0.0  ;;  %v3615_v44 = vld [vmem:[#allocation14_spill] sm:$0xff] }
 0x108   :  { %653 = vadd.xlane.f32.xlu1 %v652_v42  ;;  %560 = vadd.xlane.f32.xlu0 %v559_v52  ;;  %v182_v16 = vpop.xlane.xlu0 %181  ;;  %v278_v26 = vpop.xlane.xlu1 %277 }
 0x109   :  { %3612 = vst [vmem:[#allocation12_spill] sm:$0xff] %v2925_v48  ;;  %3614 = vst [vmem:[#allocation13_spill] sm:$0xff] %v2928_v6  ;;  %v311_v10 = vmul.f32 0.0625, %v182_v16  ;;  %v343_v18 = vmul.f32 0.0625, %v278_v26  ;;  %v438_v56 = vmul.f32 %v2925_v48, %v2925_v48  ;;  %v470_v3 = vmul.f32 %v2928_v6, %v2928_v6 }
 0x10b   :  { %v2937_v58 = vsub.f32 %v3615_v44, %v311_v10  ;;  %v2940_v34 = vsub.f32 %v2554_v46, %v343_v18  ;;  %v562_v7 = vsel %vm86_vm0, %v438_v56, 0.0  ;;  %v658_v42 = vsel %vm86_vm0, %v470_v3, 0.0 }
 0x10c   :  { %656 = vadd.xlane.f32.xlu1 %v655_v59  ;;  %563 = vadd.xlane.f32.xlu0 %v562_v7 }
 0x10d   :  { %3616 = vst [vmem:[#allocation14_spill] sm:$0xff] %v2937_v58  ;;  %3617 = vst [vmem:[#allocation21_spill] sm:$0xff] %v2940_v34  ;;  %v439_v60 = vmul.f32 %v2937_v58, %v2937_v58  ;;  %v471_v50 = vmul.f32 %v2940_v34, %v2940_v34 }
 0x10f   :  { %v565_v52 = vsel %vm86_vm0, %v439_v60, 0.0  ;;  %v661_v16 = vsel %vm86_vm0, %v471_v50, 0.0 }
 0x110   :  { %659 = vadd.xlane.f32.xlu1 %v658_v42  ;;  %566 = vadd.xlane.f32.xlu0 %v565_v52 }
 0x114   :  { %662 = vadd.xlane.f32.xlu1 %v661_v16 }
 0x11d   :  { %v474_v46 = vpop.xlane.xlu0 %473 }
 0x11e   :  { %v664_v26 = vmul.f32 0.0625, %v474_v46 }
 0x120   :  { %v728_v56 = vadd.f32 1e-05, %v664_v26 }
 0x121   :  { %v570_v59 = vpop.xlane.xlu1 %569  ;;  %v477_v10 = vpop.xlane.xlu0 %476 }
 0x122   :  { %1952 = vrsqrt.f32 %v728_v56  ;;  %v696_v18 = vmul.f32 0.0625, %v570_v59  ;;  %v665_v3 = vmul.f32 0.0625, %v477_v10 }
 0x124   :  { %v760_v44 = vadd.f32 1e-05, %v696_v18  ;;  %v729_v7 = vadd.f32 1e-05, %v665_v3 }
 0x125   :  { %v573_v58 = vpop.xlane.xlu1 %572  ;;  %v480_v6 = vpop.xlane.xlu0 %479 }
 0x126   :  { %1954 = vrsqrt.f32 %v760_v44  ;;  %v697_v34 = vmul.f32 0.0625, %v573_v58  ;;  %v666_v60 = vmul.f32 0.0625, %v480_v6  ;;  %v2953_v58 = vld [vmem:[%s3535_s1] ss:$0 sm:$0xff] }
 0x127   :  { %1956 = vrsqrt.f32 %v729_v7 }
 0x128   :  { %v761_v42 = vadd.f32 1e-05, %v697_v34  ;;  %v730_v52 = vadd.f32 1e-05, %v666_v60 }
 0x129   :  { %v576_v50 = vpop.xlane.xlu1 %575  ;;  %v483_v16 = vpop.xlane.xlu0 %482 }
 0x12a   :  { %1958 = vrsqrt.f32 %v761_v42  ;;  %v698_v46 = vmul.f32 0.0625, %v576_v50  ;;  %v667_v26 = vmul.f32 0.0625, %v483_v16  ;;  %v2959_v42 = vld [vmem:[%s3536_s2] ss:$0 sm:$0xff] }
 0x12b   :  { %1960 = vrsqrt.f32 %v730_v52 }
 0x12c   :  { %v762_v48 = vadd.f32 1e-05, %v698_v46  ;;  %v731_v56 = vadd.f32 1e-05, %v667_v26 }
 0x12d   :  { %v579_v59 = vpop.xlane.xlu1 %578  ;;  %v486_v10 = vpop.xlane.xlu0 %485 }
 0x12e   :  { %1962 = vrsqrt.f32 %v762_v48  ;;  %v699_v18 = vmul.f32 0.0625, %v579_v59  ;;  %v668_v3 = vmul.f32 0.0625, %v486_v10 }
 0x12f   :  { %v1953_v51 = vpop.eup %1952  ;;  %1964 = vrsqrt.f32 %v731_v56 }
 0x130   :  { %v763_v6 = vadd.f32 1e-05, %v699_v18  ;;  %v732_v34 = vadd.f32 1e-05, %v668_v3  ;;  %v856_v44 = vmul.f32 %v1953_v51, %v2561_v39  ;;  %v3618_v18 = vld [vmem:[#allocation15_spill] sm:$0xff] }
 0x131   :  { %v582_v7 = vpop.xlane.xlu1 %581  ;;  %v489_v60 = vpop.xlane.xlu0 %488 }
 0x132   :  { %1966 = vrsqrt.f32 %v763_v6  ;;  %v700_v48 = vmul.f32 0.0625, %v582_v7  ;;  %v669_v52 = vmul.f32 0.0625, %v489_v60  ;;  %v926_v50 = vmul.f32 %v2953_v58, %v856_v44 }
 0x133   :  { %v1955_v16 = vpop.eup %1954  ;;  %1968 = vrsqrt.f32 %v732_v34 }
 0x134   :  { %v1957_v46 = vpop.eup %1956  ;;  %v764_v26 = vadd.f32 1e-05, %v700_v48  ;;  %v733_v56 = vadd.f32 1e-05, %v669_v52  ;;  %v996_v59 = vadd.f32 %v2959_v42, %v926_v50  ;;  %v888_v39 = vmul.f32 %v1955_v16, %v2571_v63 }
 0x135   :  { %v585_v51 = vpop.xlane.xlu1 %584  ;;  %v492_v10 = vpop.xlane.xlu0 %491  ;;  %v857_v3 = vmul.f32 %v1957_v46, %v3618_v18 }
 0x136   :  { %1970 = vrsqrt.f32 %v764_v26  ;;  %v701_v54 = vmul.f32 0.0625, %v585_v51  ;;  %v670_v6 = vmul.f32 0.0625, %v492_v10  ;;  %1852 = vmatprep.mubr.msk.f32.mxu0 %vm86_vm0, %v996_v59  ;;  %v958_v44 = vmul.f32 %v2953_v58, %v888_v39 }
 0x137   :  { %v1959_v7 = vpop.eup %1958  ;;  %1972 = vrsqrt.f32 %v733_v56  ;;  %v927_v34 = vmul.f32 %v2953_v58, %v857_v3 }
 0x138   :  { %v1961_v60 = vpop.eup %1960  ;;  %v765_v48 = vadd.f32 1e-05, %v701_v54  ;;  %v734_v52 = vadd.f32 1e-05, %v670_v6  ;;  %v1028_v63 = vadd.f32 %v2959_v42, %v958_v44  ;;  %v889_v50 = vmul.f32 %v1959_v7, %v2574_v14 }
 0x139   :  { %v588_v16 = vpop.xlane.xlu1 %587  ;;  %v495_v46 = vpop.xlane.xlu0 %494  ;;  %v997_v26 = vadd.f32 %v2959_v42, %v927_v34  ;;  %v858_v51 = vmul.f32 %v1961_v60, %v2583_v2 }
 0x13a   :  { %1974 = vrsqrt.f32 %v765_v48  ;;  %v702_v59 = vmul.f32 0.0625, %v588_v16  ;;  %v671_v39 = vmul.f32 0.0625, %v495_v46  ;;  %1900 = vmatprep.mubr.msk.f32.mxu1 %vm86_vm0, %v1028_v63  ;;  %v959_v56 = vmul.f32 %v2953_v58, %v889_v50 }
 0x13b   :  { %v1963_v10 = vpop.eup %1962  ;;  %1976 = vrsqrt.f32 %v734_v52  ;;  %1853 = vmatmul.mubr.msk.f32.vlgmr.msra.gmra.mxu0 %vm86_vm0, %v997_v26  ;;  %v928_v54 = vmul.f32 %v2953_v58, %v858_v51 }
 0x13c   :  { %v1965_v14 = vpop.eup %1964  ;;  %v766_v18 = vadd.f32 1e-05, %v702_v59  ;;  %v735_v3 = vadd.f32 1e-05, %v671_v39  ;;  %v1029_v6 = vadd.f32 %v2959_v42, %v959_v56  ;;  %v890_v2 = vmul.f32 %v1963_v10, %v2586_v5 }
 0x13d   :  { %v591_v44 = vpop.xlane.xlu1 %590  ;;  %v498_v7 = vpop.xlane.xlu0 %497  ;;  %v998_v34 = vadd.f32 %v2959_v42, %v928_v54  ;;  %v859_v60 = vmul.f32 %v1965_v14, %v2595_v15 }
 0x13e   :  { %1978 = vrsqrt.f32 %v766_v18  ;;  %v703_v48 = vmul.f32 0.0625, %v591_v44  ;;  %v672_v52 = vmul.f32 0.0625, %v498_v7  ;;  %1901 = vmatmul.mubr.msk.f32.vlgmr.msra.gmra.mxu1 %vm86_vm0, %v1029_v6  ;;  %v960_v63 = vmul.f32 %v2953_v58, %v890_v2 }
 0x13f   :  { %v1967_v50 = vpop.eup %1966  ;;  %1980 = vrsqrt.f32 %v735_v3  ;;  %1855 = vmatprep.mubr.msk.f32.mxu0 %vm86_vm0, %v998_v34  ;;  %v929_v16 = vmul.f32 %v2953_v58, %v859_v60 }
 0x140   :  { %v1969_v5 = vpop.eup %1968  ;;  %v767_v46 = vadd.f32 1e-05, %v703_v48  ;;  %v736_v26 = vadd.f32 1e-05, %v672_v52  ;;  %v1030_v51 = vadd.f32 %v2959_v42, %v960_v63  ;;  %v891_v15 = vmul.f32 %v1967_v50, %v2598_v9 }
 0x141   :  { %v594_v59 = vpop.xlane.xlu1 %593  ;;  %v501_v39 = vpop.xlane.xlu0 %500  ;;  %v999_v56 = vadd.f32 %v2959_v42, %v929_v16  ;;  %v860_v10 = vmul.f32 %v1969_v5, %v2607_v0 }
 0x142   :  { %1982 = vrsqrt.f32 %v767_v46  ;;  %v704_v54 = vmul.f32 0.0625, %v594_v59  ;;  %v673_v14 = vmul.f32 0.0625, %v501_v39  ;;  %1903 = vmatprep.mubr.msk.f32.mxu1 %vm86_vm0, %v1030_v51  ;;  %v961_v18 = vmul.f32 %v2953_v58, %v891_v15 }
 0x143   :  { %v1971_v3 = vpop.eup %1970  ;;  %1984 = vrsqrt.f32 %v736_v26  ;;  %1856 = vmatmul.mubr.msk.f32.gmra.mxu0 %vm86_vm0, %v999_v56  ;;  %v930_v6 = vmul.f32 %v2953_v58, %v860_v10 }
 0x144   :  { %v1973_v9 = vpop.eup %1972  ;;  %v768_v2 = vadd.f32 1e-05, %v704_v54  ;;  %v737_v44 = vadd.f32 1e-05, %v673_v14  ;;  %v1031_v7 = vadd.f32 %v2959_v42, %v961_v18  ;;  %v892_v0 = vmul.f32 %v1971_v3, %v2610_v13 }
 0x145   :  { %v597_v34 = vpop.xlane.xlu1 %596  ;;  %v504_v60 = vpop.xlane.xlu0 %503  ;;  %v1000_v48 = vadd.f32 %v2959_v42, %v930_v6  ;;  %v861_v52 = vmul.f32 %v1973_v9, %v2619_v22 }
 0x146   :  { %1986 = vrsqrt.f32 %v768_v2  ;;  %v705_v63 = vmul.f32 0.0625, %v597_v34  ;;  %v674_v50 = vmul.f32 0.0625, %v504_v60  ;;  %1904 = vmatmul.mubr.msk.f32.gmra.mxu1 %vm86_vm0, %v1031_v7  ;;  %v962_v16 = vmul.f32 %v2953_v58, %v892_v0 }
 0x147   :  { %v1975_v5 = vpop.eup %1974  ;;  %1988 = vrsqrt.f32 %v737_v44  ;;  %1858 = vmatprep.mubr.msk.f32.mxu0 %vm86_vm0, %v1000_v48  ;;  %v931_v46 = vmul.f32 %v2953_v58, %v861_v52 }
 0x148   :  { %v1977_v13 = vpop.eup %1976  ;;  %v769_v26 = vadd.f32 1e-05, %v705_v63  ;;  %v738_v51 = vadd.f32 1e-05, %v674_v50  ;;  %v1032_v15 = vadd.f32 %v2959_v42, %v962_v16  ;;  %v893_v22 = vmul.f32 %v1975_v5, %v2622_v17 }
 0x149   :  { %v600_v59 = vpop.xlane.xlu1 %599  ;;  %v507_v39 = vpop.xlane.xlu0 %506  ;;  %v1001_v56 = vadd.f32 %v2959_v42, %v931_v46  ;;  %v862_v10 = vmul.f32 %v1977_v13, %v2631_v55 }
 0x14a   :  { %1990 = vrsqrt.f32 %v769_v26  ;;  %v706_v54 = vmul.f32 0.0625, %v600_v59  ;;  %v675_v14 = vmul.f32 0.0625, %v507_v39  ;;  %1906 = vmatprep.mubr.msk.f32.mxu1 %vm86_vm0, %v1032_v15  ;;  %v963_v18 = vmul.f32 %v2953_v58, %v893_v22 }
 0x14b   :  { %v1979_v3 = vpop.eup %1978  ;;  %1992 = vrsqrt.f32 %v738_v51  ;;  %1859 = vmatmul.mubr.msk.f32.gmra.mxu0 %vm86_vm0, %v1001_v56  ;;  %v932_v6 = vmul.f32 %v2953_v58, %v862_v10 }
 0x14c   :  { %v1981_v17 = vpop.eup %1980  ;;  %v770_v9 = vadd.f32 1e-05, %v706_v54  ;;  %v739_v2 = vadd.f32 1e-05, %v675_v14  ;;  %v1033_v44 = vadd.f32 %v2959_v42, %v963_v18  ;;  %v894_v55 = vmul.f32 %v1979_v3, %v2634_v21 }
 0x14d   :  { %v603_v7 = vpop.xlane.xlu1 %602  ;;  %v510_v0 = vpop.xlane.xlu0 %509  ;;  %v1002_v34 = vadd.f32 %v2959_v42, %v932_v6  ;;  %v863_v60 = vmul.f32 %v1981_v17, %v2643_v62 }
 0x14e   :  { %1994 = vrsqrt.f32 %v770_v9  ;;  %v707_v48 = vmul.f32 0.0625, %v603_v7  ;;  %v676_v52 = vmul.f32 0.0625, %v510_v0  ;;  %1907 = vmatmul.mubr.msk.f32.gmra.mxu1 %vm86_vm0, %v1033_v44  ;;  %v964_v63 = vmul.f32 %v2953_v58, %v894_v55 }
 0x14f   :  { %v1983_v50 = vpop.eup %1982  ;;  %1996 = vrsqrt.f32 %v739_v2  ;;  %1861 = vmatprep.mubr.msk.f32.mxu0 %vm86_vm0, %v1002_v34  ;;  %v933_v16 = vmul.f32 %v2953_v58, %v863_v60 }
 0x150   :  { %v1985_v21 = vpop.eup %1984  ;;  %v771_v5 = vadd.f32 1e-05, %v707_v48  ;;  %v740_v46 = vadd.f32 1e-05, %v676_v52  ;;  %v1034_v13 = vadd.f32 %v2959_v42, %v964_v63  ;;  %v895_v62 = vmul.f32 %v1983_v50, %v2646_v25 }
 0x151   :  { %v606_v26 = vpop.xlane.xlu1 %605  ;;  %v513_v51 = vpop.xlane.xlu0 %512  ;;  %v1003_v15 = vadd.f32 %v2959_v42, %v933_v16  ;;  %v864_v22 = vmul.f32 %v1985_v21, %v2655_v31 }
 0x152   :  { %1998 = vrsqrt.f32 %v771_v5  ;;  %v708_v59 = vmul.f32 0.0625, %v606_v26  ;;  %v677_v39 = vmul.f32 0.0625, %v513_v51  ;;  %1909 = vmatprep.mubr.msk.f32.mxu1 %vm86_vm0, %v1034_v13  ;;  %v965_v56 = vmul.f32 %v2953_v58, %v895_v62 }
 0x153   :  { %v1987_v10 = vpop.eup %1986  ;;  %2000 = vrsqrt.f32 %v740_v46  ;;  %1862 = vmatmul.mubr.msk.f32.gmra.mxu0 %vm86_vm0, %v1003_v15  ;;  %v934_v54 = vmul.f32 %v2953_v58, %v864_v22 }
 0x154   :  { %v1989_v25 = vpop.eup %1988  ;;  %v772_v14 = vadd.f32 1e-05, %v708_v59  ;;  %v741_v18 = vadd.f32 1e-05, %v677_v39  ;;  %v1035_v3 = vadd.f32 %v2959_v42, %v965_v56  ;;  %v896_v31 = vmul.f32 %v1987_v10, %v2658_v29  ;;  %v3619_v59 = vld [vmem:[#allocation16_spill] sm:$0xff] }
 0x155   :  { %v609_v6 = vpop.xlane.xlu1 %608  ;;  %v516_v17 = vpop.xlane.xlu0 %515  ;;  %v1004_v9 = vadd.f32 %v2959_v42, %v934_v54  ;;  %v865_v2 = vmul.f32 %v1989_v25, %v2667_v8 }
 0x156   :  { %2002 = vrsqrt.f32 %v772_v14  ;;  %v709_v44 = vmul.f32 0.0625, %v609_v6  ;;  %v678_v55 = vmul.f32 0.0625, %v516_v17  ;;  %1910 = vmatmul.mubr.msk.f32.gmra.mxu1 %vm86_vm0, %v1035_v3  ;;  %v966_v7 = vmul.f32 %v2953_v58, %v896_v31 }
 0x157   :  { %v1991_v0 = vpop.eup %1990  ;;  %2004 = vrsqrt.f32 %v741_v18  ;;  %1864 = vmatprep.mubr.msk.f32.mxu0 %vm86_vm0, %v1004_v9  ;;  %v935_v34 = vmul.f32 %v2953_v58, %v865_v2 }
 0x158   :  { %v1993_v29 = vpop.eup %1992  ;;  %v773_v60 = vadd.f32 1e-05, %v709_v44  ;;  %v742_v48 = vadd.f32 1e-05, %v678_v55  ;;  %v1036_v52 = vadd.f32 %v2959_v42, %v966_v7  ;;  %v897_v8 = vmul.f32 %v1991_v0, %v2670_v33 }
 0x159   :  { %v612_v63 = vpop.xlane.xlu1 %611  ;;  %v519_v50 = vpop.xlane.xlu0 %518  ;;  %v1005_v16 = vadd.f32 %v2959_v42, %v935_v34  ;;  %v866_v21 = vmul.f32 %v1993_v29, %v2682_v12 }
 0x15a   :  { %2006 = vrsqrt.f32 %v773_v60  ;;  %v710_v5 = vmul.f32 0.0625, %v612_v63  ;;  %v679_v46 = vmul.f32 0.0625, %v519_v50  ;;  %1912 = vmatprep.mubr.msk.f32.mxu1 %vm86_vm0, %v1036_v52  ;;  %v967_v13 = vmul.f32 %v2953_v58, %v897_v8 }
 0x15b   :  { %v1995_v62 = vpop.eup %1994  ;;  %2008 = vrsqrt.f32 %v742_v48  ;;  %1865 = vmatmul.mubr.msk.f32.gmra.mxu0 %vm86_vm0, %v1005_v16  ;;  %v936_v26 = vmul.f32 %v2953_v58, %v866_v21 }
 0x15c   :  { %v1997_v33 = vpop.eup %1996  ;;  %v774_v51 = vadd.f32 1e-05, %v710_v5  ;;  %v743_v15 = vadd.f32 1e-05, %v679_v46  ;;  %v1037_v22 = vadd.f32 %v2959_v42, %v967_v13  ;;  %v898_v12 = vmul.f32 %v1995_v62, %v3619_v59 }
 0x15d   :  { %v615_v39 = vpop.xlane.xlu1 %614  ;;  %v522_v56 = vpop.xlane.xlu0 %521  ;;  %v1006_v10 = vadd.f32 %v2959_v42, %v936_v26  ;;  %v867_v54 = vmul.f32 %v1997_v33, %v2697_v28 }
 0x15e   :  { %2010 = vrsqrt.f32 %v774_v51  ;;  %v711_v25 = vmul.f32 0.0625, %v615_v39  ;;  %v680_v14 = vmul.f32 0.0625, %v522_v56  ;;  %1913 = vmatmul.mubr.msk.f32.gmra.mxu1 %vm86_vm0, %v1037_v22  ;;  %v968_v18 = vmul.f32 %v2953_v58, %v898_v12 }
 0x15f   :  { %v1999_v3 = vpop.eup %1998  ;;  %2012 = vrsqrt.f32 %v743_v15  ;;  %1867 = vmatprep.mubr.msk.f32.mxu0 %vm86_vm0, %v1006_v10  ;;  %v937_v31 = vmul.f32 %v2953_v58, %v867_v54 }
 0x160   :  { %v2001_v6 = vpop.eup %2000  ;;  %v775_v17 = vadd.f32 1e-05, %v711_v25  ;;  %v744_v9 = vadd.f32 1e-05, %v680_v14  ;;  %v1038_v2 = vadd.f32 %v2959_v42, %v968_v18  ;;  %v899_v28 = vmul.f32 %v1999_v3, %v2700_v23 }
 0x161   :  { %v618_v44 = vpop.xlane.xlu1 %617  ;;  %v525_v55 = vpop.xlane.xlu0 %524  ;;  %v1007_v7 = vadd.f32 %v2959_v42, %v937_v31  ;;  %v868_v0 = vmul.f32 %v2001_v6, %v2709_v45 }
 0x162   :  { %2014 = vrsqrt.f32 %v775_v17  ;;  %v712_v34 = vmul.f32 0.0625, %v618_v44  ;;  %v681_v29 = vmul.f32 0.0625, %v525_v55  ;;  %1915 = vmatprep.mubr.msk.f32.mxu1 %vm86_vm0, %v1038_v2  ;;  %v969_v60 = vmul.f32 %v2953_v58, %v899_v28 }
 0x163   :  { %v2003_v48 = vpop.eup %2002  ;;  %2016 = vrsqrt.f32 %v744_v9  ;;  %1868 = vmatmul.mubr.msk.f32.gmra.mxu0 %vm86_vm0, %v1007_v7  ;;  %v938_v52 = vmul.f32 %v2953_v58, %v868_v0 }
 0x164   :  { %v2005_v23 = vpop.eup %2004  ;;  %v776_v8 = vadd.f32 1e-05, %v712_v34  ;;  %v745_v63 = vadd.f32 1e-05, %v681_v29  ;;  %v1039_v50 = vadd.f32 %v2959_v42, %v969_v60  ;;  %v900_v45 = vmul.f32 %v2003_v48, %v2712_v38 }
 0x165   :  { %v621_v16 = vpop.xlane.xlu1 %620  ;;  %v528_v21 = vpop.xlane.xlu0 %527  ;;  %v1008_v5 = vadd.f32 %v2959_v42, %v938_v52  ;;  %v869_v46 = vmul.f32 %v2005_v23, %v2721_v1 }
 0x166   :  { %2018 = vrsqrt.f32 %v776_v8  ;;  %v713_v13 = vmul.f32 0.0625, %v621_v16  ;;  %v682_v62 = vmul.f32 0.0625, %v528_v21  ;;  %1916 = vmatmul.mubr.msk.f32.gmra.mxu1 %vm86_vm0, %v1039_v50  ;;  %v970_v26 = vmul.f32 %v2953_v58, %v900_v45 }
 0x167   :  { %v2007_v33 = vpop.eup %2006  ;;  %2020 = vrsqrt.f32 %v745_v63  ;;  %1870 = vmatprep.mubr.msk.f32.mxu0 %vm86_vm0, %v1008_v5  ;;  %v939_v51 = vmul.f32 %v2953_v58, %v869_v46 }
 0x168   :  { %v2009_v38 = vpop.eup %2008  ;;  %v777_v15 = vadd.f32 1e-05, %v713_v13  ;;  %v746_v22 = vadd.f32 1e-05, %v682_v62  ;;  %v1040_v59 = vadd.f32 %v2959_v42, %v970_v26  ;;  %v901_v1 = vmul.f32 %v2007_v33, %v2724_v49 }
 0x169   :  { %v624_v12 = vpop.xlane.xlu1 %623  ;;  %v531_v39 = vpop.xlane.xlu0 %530  ;;  %v1009_v56 = vadd.f32 %v2959_v42, %v939_v51  ;;  %v870_v10 = vmul.f32 %v2009_v38, %v2733_v40 }
 0x16a   :  { %2022 = vrsqrt.f32 %v777_v15  ;;  %v714_v54 = vmul.f32 0.0625, %v624_v12  ;;  %v683_v25 = vmul.f32 0.0625, %v531_v39  ;;  %1918 = vmatprep.mubr.msk.f32.mxu1 %vm86_vm0, %v1040_v59  ;;  %v971_v14 = vmul.f32 %v2953_v58, %v901_v1 }
 0x16b   :  { %v2011_v18 = vpop.eup %2010  ;;  %2024 = vrsqrt.f32 %v746_v22  ;;  %1871 = vmatmul.mubr.msk.f32.gmra.mxu0 %vm86_vm0, %v1009_v56  ;;  %v940_v3 = vmul.f32 %v2953_v58, %v870_v10 }
 0x16c   :  { %v2013_v49 = vpop.eup %2012  ;;  %v778_v31 = vadd.f32 1e-05, %v714_v54  ;;  %v747_v6 = vadd.f32 1e-05, %v683_v25  ;;  %v1041_v17 = vadd.f32 %v2959_v42, %v971_v14  ;;  %v902_v40 = vmul.f32 %v2011_v18, %v2736_v53 }
 0x16d   :  { %v627_v9 = vpop.xlane.xlu1 %626  ;;  %v534_v2 = vpop.xlane.xlu0 %533  ;;  %v1010_v28 = vadd.f32 %v2959_v42, %v940_v3  ;;  %v871_v44 = vmul.f32 %v2013_v49, %v2745_v32 }
 0x16e   :  { %2026 = vrsqrt.f32 %v778_v31  ;;  %v715_v55 = vmul.f32 0.0625, %v627_v9  ;;  %v684_v7 = vmul.f32 0.0625, %v534_v2  ;;  %1919 = vmatmul.mubr.msk.f32.gmra.mxu1 %vm86_vm0, %v1041_v17  ;;  %v972_v0 = vmul.f32 %v2953_v58, %v902_v40 }
 0x16f   :  { %v2015_v34 = vpop.eup %2014  ;;  %2028 = vrsqrt.f32 %v747_v6  ;;  %1873 = vmatprep.mubr.msk.f32.mxu0 %vm86_vm0, %v1010_v28  ;;  %v941_v29 = vmul.f32 %v2953_v58, %v871_v44 }
 0x170   :  { %v2017_v53 = vpop.eup %2016  ;;  %v779_v60 = vadd.f32 1e-05, %v715_v55  ;;  %v748_v48 = vadd.f32 1e-05, %v684_v7  ;;  %v1042_v52 = vadd.f32 %v2959_v42, %v972_v0  ;;  %v903_v32 = vmul.f32 %v2015_v34, %v2748_v57 }
 0x171   :  { %v630_v23 = vpop.xlane.xlu1 %629  ;;  %v537_v8 = vpop.xlane.xlu0 %536  ;;  %v1011_v63 = vadd.f32 %v2959_v42, %v941_v29  ;;  %v872_v50 = vmul.f32 %v2017_v53, %v2757_v47 }
 0x172   :  { %2030 = vrsqrt.f32 %v779_v60  ;;  %v716_v45 = vmul.f32 0.0625, %v630_v23  ;;  %v685_v16 = vmul.f32 0.0625, %v537_v8  ;;  %1921 = vmatprep.mubr.msk.f32.mxu1 %vm86_vm0, %v1042_v52  ;;  %v973_v21 = vmul.f32 %v2953_v58, %v903_v32 }
 0x173   :  { %v2019_v5 = vpop.eup %2018  ;;  %2032 = vrsqrt.f32 %v748_v48  ;;  %1874 = vmatmul.mubr.msk.f32.gmra.mxu0 %vm86_vm0, %v1011_v63  ;;  %v942_v46 = vmul.f32 %v2953_v58, %v872_v50 }
 0x174   :  { %v2021_v57 = vpop.eup %2020  ;;  %v780_v13 = vadd.f32 1e-05, %v716_v45  ;;  %v749_v62 = vadd.f32 1e-05, %v685_v16  ;;  %v1043_v26 = vadd.f32 %v2959_v42, %v973_v21  ;;  %v904_v47 = vmul.f32 %v2019_v5, %v2760_v61 }
 0x175   :  { %v633_v33 = vpop.xlane.xlu1 %632  ;;  %v540_v51 = vpop.xlane.xlu0 %539  ;;  %v1012_v38 = vadd.f32 %v2959_v42, %v942_v46  ;;  %v873_v15 = vmul.f32 %v2021_v57, %v2769_v20 }
 0x176   :  { %2034 = vrsqrt.f32 %v780_v13  ;;  %v717_v22 = vmul.f32 0.0625, %v633_v33  ;;  %v686_v59 = vmul.f32 0.0625, %v540_v51  ;;  %1922 = vmatmul.mubr.msk.f32.gmra.mxu1 %vm86_vm0, %v1043_v26  ;;  %v974_v1 = vmul.f32 %v2953_v58, %v904_v47 }
 0x177   :  { %v2023_v12 = vpop.eup %2022  ;;  %2036 = vrsqrt.f32 %v749_v62  ;;  %1876 = vmatprep.mubr.msk.f32.mxu0 %vm86_vm0, %v1012_v38  ;;  %v943_v39 = vmul.f32 %v2953_v58, %v873_v15 }
 0x178   :  { %v2025_v61 = vpop.eup %2024  ;;  %v781_v56 = vadd.f32 1e-05, %v717_v22  ;;  %v750_v10 = vadd.f32 1e-05, %v686_v59  ;;  %v1044_v54 = vadd.f32 %v2959_v42, %v974_v1  ;;  %v905_v20 = vmul.f32 %v2023_v12, %v2772_v4 }
 0x179   :  { %v636_v25 = vpop.xlane.xlu1 %635  ;;  %v543_v14 = vpop.xlane.xlu0 %542  ;;  %v1013_v18 = vadd.f32 %v2959_v42, %v943_v39  ;;  %v874_v3 = vmul.f32 %v2025_v61, %v2781_v24 }
 0x17a   :  { %2038 = vrsqrt.f32 %v781_v56  ;;  %v718_v49 = vmul.f32 0.0625, %v636_v25  ;;  %v687_v31 = vmul.f32 0.0625, %v543_v14  ;;  %1924 = vmatprep.mubr.msk.f32.mxu1 %vm86_vm0, %v1044_v54  ;;  %v975_v6 = vmul.f32 %v2953_v58, %v905_v20 }
 0x17b   :  { %v2027_v17 = vpop.eup %2026  ;;  %2040 = vrsqrt.f32 %v750_v10  ;;  %1877 = vmatmul.mubr.msk.f32.gmra.mxu0 %vm86_vm0, %v1013_v18  ;;  %v944_v40 = vmul.f32 %v2953_v58, %v874_v3 }
 0x17c   :  { %v2029_v4 = vpop.eup %2028  ;;  %v782_v9 = vadd.f32 1e-05, %v718_v49  ;;  %v751_v2 = vadd.f32 1e-05, %v687_v31  ;;  %v1045_v28 = vadd.f32 %v2959_v42, %v975_v6  ;;  %v906_v24 = vmul.f32 %v2027_v17, %v2784_v11 }
 0x17d   :  { %v639_v44 = vpop.xlane.xlu1 %638  ;;  %v546_v55 = vpop.xlane.xlu0 %545  ;;  %v1014_v7 = vadd.f32 %v2959_v42, %v944_v40  ;;  %v875_v0 = vmul.f32 %v2029_v4, %v2793_v41 }
 0x17e   :  { %2042 = vrsqrt.f32 %v782_v9  ;;  %v719_v34 = vmul.f32 0.0625, %v639_v44  ;;  %v688_v29 = vmul.f32 0.0625, %v546_v55  ;;  %1925 = vmatmul.mubr.msk.f32.gmra.mxu1 %vm86_vm0, %v1045_v28  ;;  %v976_v53 = vmul.f32 %v2953_v58, %v906_v24  ;;  %v3620_v28 = vld [vmem:[#allocation17_spill] sm:$0xff] }
 0x17f   :  { %v2031_v60 = vpop.eup %2030  ;;  %2044 = vrsqrt.f32 %v751_v2  ;;  %1879 = vmatprep.mubr.msk.f32.mxu0 %vm86_vm0, %v1014_v7  ;;  %v945_v48 = vmul.f32 %v2953_v58, %v875_v0 }
 0x180   :  { %v2033_v11 = vpop.eup %2032  ;;  %v783_v52 = vadd.f32 1e-05, %v719_v34  ;;  %v752_v32 = vadd.f32 1e-05, %v688_v29  ;;  %v1046_v23 = vadd.f32 %v2959_v42, %v976_v53  ;;  %v907_v41 = vmul.f32 %v2031_v60, %v2796_v19 }
 0x181   :  { %v642_v8 = vpop.xlane.xlu1 %641  ;;  %v549_v63 = vpop.xlane.xlu0 %548  ;;  %v1015_v50 = vadd.f32 %v2959_v42, %v945_v48  ;;  %v876_v45 = vmul.f32 %v2033_v11, %v2805_v37  ;;  %v3621_v48 = vld [vmem:[#allocation18_spill] sm:$0xff] }
 0x182   :  { %2046 = vrsqrt.f32 %v783_v52  ;;  %v720_v16 = vmul.f32 0.0625, %v642_v8  ;;  %v689_v21 = vmul.f32 0.0625, %v549_v63  ;;  %1927 = vmatprep.mubr.msk.f32.mxu1 %vm86_vm0, %v1046_v23  ;;  %v977_v5 = vmul.f32 %v2953_v58, %v907_v41  ;;  %v3622_v41 = vld [vmem:[#allocation19_spill] sm:$0xff] }
 0x183   :  { %v2035_v46 = vpop.eup %2034  ;;  %2048 = vrsqrt.f32 %v752_v32  ;;  %1880 = vmatmul.mubr.msk.f32.gmra.mxu0 %vm86_vm0, %v1015_v50  ;;  %v946_v57 = vmul.f32 %v2953_v58, %v876_v45 }
 0x184   :  { %v2037_v19 = vpop.eup %2036  ;;  %v784_v13 = vadd.f32 1e-05, %v720_v16  ;;  %v753_v62 = vadd.f32 1e-05, %v689_v21  ;;  %v1047_v26 = vadd.f32 %v2959_v42, %v977_v5  ;;  %v908_v37 = vmul.f32 %v2035_v46, %v2808_v27 }
 0x185   :  { %v645_v47 = vpop.xlane.xlu1 %644  ;;  %v552_v33 = vpop.xlane.xlu0 %551  ;;  %v1016_v51 = vadd.f32 %v2959_v42, %v946_v57  ;;  %v877_v38 = vmul.f32 %v2037_v19, %v2817_v36 }
 0x186   :  { %2050 = vrsqrt.f32 %v784_v13  ;;  %v721_v15 = vmul.f32 0.0625, %v645_v47  ;;  %v690_v22 = vmul.f32 0.0625, %v552_v33  ;;  %1928 = vmatmul.mubr.msk.f32.gmra.mxu1 %vm86_vm0, %v1047_v26  ;;  %v978_v59 = vmul.f32 %v2953_v58, %v908_v37  ;;  %v3623_v13 = vld [vmem:[#allocation20_spill] sm:$0xff]  ;;  %v3624_v33 = vld [vmem:[#allocation2_spill] sm:$0xff] }
 0x187   :  { %v2039_v1 = vpop.eup %2038  ;;  %2052 = vrsqrt.f32 %v753_v62  ;;  %1882 = vmatprep.mubr.msk.f32.mxu0 %vm86_vm0, %v1016_v51  ;;  %v947_v12 = vmul.f32 %v2953_v58, %v877_v38 }
 0x188   :  { %v2041_v27 = vpop.eup %2040  ;;  %v785_v39 = vadd.f32 1e-05, %v721_v15  ;;  %v754_v61 = vadd.f32 1e-05, %v690_v22  ;;  %v1048_v56 = vadd.f32 %v2959_v42, %v978_v59  ;;  %v909_v36 = vmul.f32 %v2039_v1, %v2820_v35 }
 0x189   :  { %v648_v10 = vpop.xlane.xlu1 %647  ;;  %v555_v54 = vpop.xlane.xlu0 %554  ;;  %v1017_v20 = vadd.f32 %v2959_v42, %v947_v12  ;;  %v878_v25 = vmul.f32 %v2041_v27, %v2829_v30 }
 0x18a   :  { %2054 = vrsqrt.f32 %v785_v39  ;;  %v722_v14 = vmul.f32 0.0625, %v648_v10  ;;  %v691_v18 = vmul.f32 0.0625, %v555_v54  ;;  %1930 = vmatprep.mubr.msk.f32.mxu1 %vm86_vm0, %v1048_v56  ;;  %v979_v3 = vmul.f32 %v2953_v58, %v909_v36  ;;  %v3625_v56 = vld [vmem:[#allocation3_spill] sm:$0xff] }
 0x18b   :  { %v2043_v49 = vpop.eup %2042  ;;  %2056 = vrsqrt.f32 %v754_v61  ;;  %1883 = vmatmul.mubr.msk.f32.gmra.mxu0 %vm86_vm0, %v1017_v20  ;;  %v948_v31 = vmul.f32 %v2953_v58, %v878_v25  ;;  %v3626_v25 = vld [vmem:[#allocation4_spill] sm:$0xff] }
 0x18c   :  { %v2045_v35 = vpop.eup %2044  ;;  %v786_v6 = vadd.f32 1e-05, %v722_v14  ;;  %v755_v17 = vadd.f32 1e-05, %v691_v18  ;;  %v1049_v40 = vadd.f32 %v2959_v42, %v979_v3  ;;  %v910_v30 = vmul.f32 %v2043_v49, %v2832_v43 }
 0x18d   :  { %v651_v4 = vpop.xlane.xlu1 %650  ;;  %v558_v9 = vpop.xlane.xlu0 %557  ;;  %v1018_v2 = vadd.f32 %v2959_v42, %v948_v31  ;;  %v879_v24 = vmul.f32 %v2045_v35, %v3620_v28 }
 0x18e   :  { %2058 = vrsqrt.f32 %v786_v6  ;;  %v723_v44 = vmul.f32 0.0625, %v651_v4  ;;  %v692_v55 = vmul.f32 0.0625, %v558_v9  ;;  %1931 = vmatmul.mubr.msk.f32.gmra.mxu1 %vm86_vm0, %v1049_v40  ;;  %v980_v7 = vmul.f32 %v2953_v58, %v910_v30  ;;  %v3627_v4 = vld [vmem:[#allocation5_spill] sm:$0xff] }
 0x18f   :  { %v2047_v0 = vpop.eup %2046  ;;  %2060 = vrsqrt.f32 %v755_v17  ;;  %1885 = vmatprep.mubr.msk.f32.mxu0 %vm86_vm0, %v1018_v2  ;;  %v949_v34 = vmul.f32 %v2953_v58, %v879_v24  ;;  %v3628_v24 = vld [vmem:[#allocation6_spill] sm:$0xff] }
 0x190   :  { %v2049_v43 = vpop.eup %2048  ;;  %v787_v29 = vadd.f32 1e-05, %v723_v44  ;;  %v756_v53 = vadd.f32 1e-05, %v692_v55  ;;  %v1050_v60 = vadd.f32 %v2959_v42, %v980_v7  ;;  %v911_v11 = vmul.f32 %v2047_v0, %v3621_v48 }
 0x191   :  { %v654_v52 = vpop.xlane.xlu1 %653  ;;  %v561_v32 = vpop.xlane.xlu0 %560  ;;  %v1019_v23 = vadd.f32 %v2959_v42, %v949_v34  ;;  %v880_v8 = vmul.f32 %v2049_v43, %v3622_v41 }
 0x192   :  { %2062 = vrsqrt.f32 %v787_v29  ;;  %v724_v63 = vmul.f32 0.0625, %v654_v52  ;;  %v693_v50 = vmul.f32 0.0625, %v561_v32  ;;  %1933 = vmatprep.mubr.msk.f32.mxu1 %vm86_vm0, %v1050_v60  ;;  %v981_v45 = vmul.f32 %v2953_v58, %v911_v11  ;;  %v3629_v60 = vld [vmem:[#allocation7_spill] sm:$0xff]  ;;  %v3630_v52 = vld [vmem:[#allocation8_spill] sm:$0xff] }
 0x193   :  { %v2051_v16 = vpop.eup %2050  ;;  %2064 = vrsqrt.f32 %v756_v53  ;;  %1886 = vmatmul.mubr.msk.f32.gmra.mxu0 %vm86_vm0, %v1019_v23  ;;  %v950_v21 = vmul.f32 %v2953_v58, %v880_v8 }
 0x194   :  { %v2053_v5 = vpop.eup %2052  ;;  %v788_v46 = vadd.f32 1e-05, %v724_v63  ;;  %v757_v57 = vadd.f32 1e-05, %v693_v50  ;;  %v1051_v19 = vadd.f32 %v2959_v42, %v981_v45  ;;  %v912_v62 = vmul.f32 %v2051_v16, %v3623_v13  ;;  %v3631_v45 = vld [vmem:[#allocation9_spill] sm:$0xff] }
 0x195   :  { %v657_v26 = vpop.xlane.xlu1 %656  ;;  %v564_v37 = vpop.xlane.xlu0 %563  ;;  %v1020_v47 = vadd.f32 %v2959_v42, %v950_v21  ;;  %v881_v51 = vmul.f32 %v2053_v5, %v3624_v33  ;;  %v3632_v5 = vld [vmem:[#allocation10_spill] sm:$0xff] }
 0x196   :  { %2066 = vrsqrt.f32 %v788_v46  ;;  %v725_v38 = vmul.f32 0.0625, %v657_v26  ;;  %v694_v15 = vmul.f32 0.0625, %v564_v37  ;;  %1934 = vmatmul.mubr.msk.f32.gmra.mxu1 %vm86_vm0, %v1051_v19  ;;  %v982_v22 = vmul.f32 %v2953_v58, %v912_v62  ;;  %v2081_v26 = vld [vmem:[%s3536_s2] ss:$0 sm:$0xff] }
 0x197   :  { %v2055_v59 = vpop.eup %2054  ;;  %2068 = vrsqrt.f32 %v757_v57  ;;  %1888 = vmatprep.mubr.msk.f32.mxu0 %vm86_vm0, %v1020_v47  ;;  %v951_v1 = vmul.f32 %v2953_v58, %v881_v51  ;;  %v2080_v57 = vld [vmem:[%s3535_s1] ss:$0 sm:$0xff]  ;;  %v3634_v51 = vld [vmem:[#allocation12_spill] sm:$0xff] }
 0x198   :  { %v2057_v12 = vpop.eup %2056  ;;  %v789_v27 = vadd.f32 1e-05, %v725_v38  ;;  %v758_v39 = vadd.f32 1e-05, %v694_v15  ;;  %v1052_v61 = vadd.f32 %v2959_v42, %v982_v22  ;;  %v913_v36 = vmul.f32 %v2055_v59, %v3625_v56  ;;  %v3636_v56 = vld [vmem:[#allocation14_spill] sm:$0xff] }
 0x199   :  { %v660_v10 = vpop.xlane.xlu1 %659  ;;  %v567_v54 = vpop.xlane.xlu0 %566  ;;  %v1021_v20 = vadd.f32 %v2959_v42, %v951_v1  ;;  %v882_v14 = vmul.f32 %v2057_v12, %v3626_v25 }
 0x19a   :  { %2070 = vrsqrt.f32 %v789_v27  ;;  %v726_v18 = vmul.f32 0.0625, %v660_v10  ;;  %v695_v3 = vmul.f32 0.0625, %v567_v54  ;;  %1936 = vmatprep.mubr.msk.f32.mxu1 %vm86_vm0, %v1052_v61  ;;  %v983_v49 = vmul.f32 %v2953_v58, %v913_v36  ;;  %v3635_v27 = vld [vmem:[#allocation13_spill] sm:$0xff] }
 0x19b   :  { %v2059_v31 = vpop.eup %2058  ;;  %2072 = vrsqrt.f32 %v758_v39  ;;  %1889 = vmatmul.mubr.msk.f32.gmra.mxu0 %vm86_vm0, %v1021_v20  ;;  %v952_v35 = vmul.f32 %v2953_v58, %v882_v14  ;;  %v3637_v14 = vld [vmem:[#allocation21_spill] sm:$0xff] }
 0x19c   :  { %v2061_v6 = vpop.eup %2060  ;;  %v790_v17 = vadd.f32 1e-05, %v726_v18  ;;  %v759_v40 = vadd.f32 1e-05, %v695_v3  ;;  %v1053_v30 = vadd.f32 %v2959_v42, %v983_v49  ;;  %v914_v9 = vmul.f32 %v2059_v31, %v3627_v4 }
 0x19d   :  { %v663_v2 = vpop.xlane.xlu1 %662  ;;  %v1022_v28 = vadd.f32 %v2959_v42, %v952_v35  ;;  %v883_v44 = vmul.f32 %v2061_v6, %v3628_v24  ;;  %v3211_v35 = vld [vmem:[%s3537_s4] ss:$0 sm:$0xff] }
 0x19e   :  { %2074 = vrsqrt.f32 %v790_v17  ;;  %v727_v55 = vmul.f32 0.0625, %v663_v2  ;;  %1937 = vmatmul.mubr.msk.f32.gmra.mxu1 %vm86_vm0, %v1053_v30  ;;  %v984_v7 = vmul.f32 %v2953_v58, %v914_v9 }
 0x19f   :  { %v2063_v0 = vpop.eup %2062  ;;  %2076 = vrsqrt.f32 %v759_v40  ;;  %1891 = vmatprep.mubr.msk.f32.mxu0 %vm86_vm0, %v1022_v28  ;;  %v953_v34 = vmul.f32 %v2953_v58, %v883_v44 }
 0x1a0   :  { %v2065_v43 = vpop.eup %2064  ;;  %v791_v29 = vadd.f32 1e-05, %v727_v55  ;;  %v1054_v53 = vadd.f32 %v2959_v42, %v984_v7  ;;  %v915_v48 = vmul.f32 %v2063_v0, %v3629_v60 }
 0x1a1   :  { %v1023_v11 = vadd.f32 %v2959_v42, %v953_v34  ;;  %v884_v32 = vmul.f32 %v2065_v43, %v3630_v52 }
 0x1a2   :  { %2078 = vrsqrt.f32 %v791_v29  ;;  %1939 = vmatprep.mubr.msk.f32.mxu1 %vm86_vm0, %v1054_v53  ;;  %v985_v23 = vmul.f32 %v2953_v58, %v915_v48 }
 0x1a3   :  { %v2067_v41 = vpop.eup %2066  ;;  %1892 = vmatmul.mubr.msk.f32.gmra.mxu0 %vm86_vm0, %v1023_v11  ;;  %v954_v8 = vmul.f32 %v2953_v58, %v884_v32 }
 0x1a4   :  { %v2069_v63 = vpop.eup %2068  ;;  %v1055_v50 = vadd.f32 %v2959_v42, %v985_v23  ;;  %v916_v16 = vmul.f32 %v2067_v41, %v3631_v45 }
 0x1a5   :  { %v1024_v21 = vadd.f32 %v2959_v42, %v954_v8  ;;  %v885_v46 = vmul.f32 %v2069_v63, %v3632_v5  ;;  %v3633_v42 = vld [vmem:[#allocation11_spill] sm:$0xff] }
 0x1a6   :  { %1940 = vmatmul.mubr.msk.f32.gmra.mxu1 %vm86_vm0, %v1055_v50  ;;  %v986_v19 = vmul.f32 %v2080_v57, %v916_v16 }
 0x1a7   :  { %v2071_v13 = vpop.eup %2070  ;;  %1894 = vmatprep.mubr.msk.f32.mxu0 %vm86_vm0, %v1024_v21  ;;  %v955_v58 = vmul.f32 %v2080_v57, %v885_v46 }
 0x1a8   :  { %v2073_v62 = vpop.eup %2072  ;;  %v1056_v37 = vadd.f32 %v2081_v26, %v986_v19  ;;  %v917_v47 = vmul.f32 %v2071_v13, %v3633_v42 }
 0x1a9   :  { %v1025_v33 = vadd.f32 %v2081_v26, %v955_v58  ;;  %v886_v38 = vmul.f32 %v2073_v62, %v3634_v51 }
 0x1aa   :  { %1942 = vmatprep.mubr.msk.f32.mxu1 %vm86_vm0, %v1056_v37  ;;  %v987_v15 = vmul.f32 %v2080_v57, %v917_v47 }
 0x1ab   :  { %v2075_v22 = vpop.eup %2074  ;;  %1895 = vmatmul.mubr.msk.f32.gmra.mxu0 %vm86_vm0, %v1025_v33  ;;  %v956_v59 = vmul.f32 %v2080_v57, %v886_v38 }
 0x1ac   :  { %v2077_v1 = vpop.eup %2076  ;;  %v1057_v12 = vadd.f32 %v2081_v26, %v987_v15  ;;  %v918_v39 = vmul.f32 %v2075_v22, %v3635_v27 }
 0x1ad   :  { %v1026_v61 = vadd.f32 %v2081_v26, %v956_v59  ;;  %v887_v36 = vmul.f32 %v2077_v1, %v3636_v56 }
 0x1ae   :  { %1943 = vmatmul.mubr.msk.f32.gmra.mxu1 %vm86_vm0, %v1057_v12  ;;  %v988_v10 = vmul.f32 %v2080_v57, %v918_v39 }
 0x1af   :  { %v2079_v54 = vpop.eup %2078  ;;  %1897 = vmatprep.mubr.msk.f32.mxu0 %vm86_vm0, %v1026_v61  ;;  %v957_v20 = vmul.f32 %v2080_v57, %v887_v36 }
 0x1b0   :  { %v1058_v25 = vadd.f32 %v2081_v26, %v988_v10  ;;  %v919_v18 = vmul.f32 %v2079_v54, %v3637_v14 }
 0x1b1   :  { %v1027_v3 = vadd.f32 %v2081_v26, %v957_v20 }
 0x1b2   :  { %1945 = vmatprep.mubr.msk.f32.mxu1 %vm86_vm0, %v1058_v25  ;;  %v989_v49 = vmul.f32 %v2080_v57, %v919_v18 }
 0x1b3   :  { %1898 = vmatmul.mubr.msk.f32.gmra.mxu0 %vm86_vm0, %v1027_v3 }
 0x1b4   :  { %v1059_v31 = vadd.f32 %v2081_v26, %v989_v49 }
 0x1b6   :  { %1946 = vmatmul.mubr.msk.f32.gmra.mxu1 %vm86_vm0, %v1059_v31 }
 0x1fb   :  { %v1854_v6 = vpop.f32.mrf.mxu0 }
 0x1fc   :  { %v1333_v17 = vadd.f32 %v1854_v6, %v3211_v35 }
 0x1fd   :  { %v1327_v40 = vpop.f32.mrf.mxu0 }
 0x1fe   :  { %1648 = vst.msk [vmem:[%s3538_s5 + $0x8] sm:$0xff] %vm1646_vm1, %v1333_v17  ;;  %v1328_v30 = vadd.f32 %v3211_v35, %v1327_v40  ;;  %v1902_v4 = vpop.f32.mrf.mxu1 }
 0x1ff   :  { %v1493_v9 = vadd.f32 %v1902_v4, %v3211_v35 }
 0x200   :  { %1647 = vst.msk [vmem:[%s3538_s5] sm:$0xff] %vm1646_vm1, %v1328_v30  ;;  %v1487_v2 = vpop.f32.mrf.mxu1 }
 0x201   :  { %1680 = vst.msk [vmem:[%s3538_s5 + $0x108] sm:$0xff] %vm1646_vm1, %v1493_v9  ;;  %v1488_v28 = vadd.f32 %v3211_v35, %v1487_v2 }
 0x203   :  { %1679 = vst.msk [vmem:[%s3538_s5 + $0x100] sm:$0xff] %vm1646_vm1, %v1488_v28  ;;  %v1857_v24 = vpop.f32.mrf.mxu0 }
 0x204   :  { %v1343_v44 = vadd.f32 %v1857_v24, %v3211_v35 }
 0x205   :  { %v1337_v55 = vpop.f32.mrf.mxu0 }
 0x206   :  { %1650 = vst.msk [vmem:[%s3538_s5 + $0x18] sm:$0xff] %vm1646_vm1, %v1343_v44  ;;  %v1338_v7 = vadd.f32 %v3211_v35, %v1337_v55  ;;  %v1905_v0 = vpop.f32.mrf.mxu1 }
 0x207   :  { %v1503_v34 = vadd.f32 %v1905_v0, %v3211_v35 }
 0x208   :  { %1649 = vst.msk [vmem:[%s3538_s5 + $0x10] sm:$0xff] %vm1646_vm1, %v1338_v7  ;;  %v1497_v43 = vpop.f32.mrf.mxu1 }
 0x209   :  { %1682 = vst.msk [vmem:[%s3538_s5 + $0x118] sm:$0xff] %vm1646_vm1, %v1503_v34  ;;  %v1498_v29 = vadd.f32 %v3211_v35, %v1497_v43 }
 0x20b   :  { %1681 = vst.msk [vmem:[%s3538_s5 + $0x110] sm:$0xff] %vm1646_vm1, %v1498_v29  ;;  %v1860_v53 = vpop.f32.mrf.mxu0 }
 0x20c   :  { %v1353_v60 = vadd.f32 %v1860_v53, %v3211_v35 }
 0x20d   :  { %v1347_v48 = vpop.f32.mrf.mxu0 }
 0x20e   :  { %1652 = vst.msk [vmem:[%s3538_s5 + $0x28] sm:$0xff] %vm1646_vm1, %v1353_v60  ;;  %v1348_v11 = vadd.f32 %v3211_v35, %v1347_v48  ;;  %v1908_v52 = vpop.f32.mrf.mxu1 }
 0x20f   :  { %v1513_v32 = vadd.f32 %v1908_v52, %v3211_v35 }
 0x210   :  { %1651 = vst.msk [vmem:[%s3538_s5 + $0x20] sm:$0xff] %vm1646_vm1, %v1348_v11  ;;  %v1507_v23 = vpop.f32.mrf.mxu1 }
 0x211   :  { %1684 = vst.msk [vmem:[%s3538_s5 + $0x128] sm:$0xff] %vm1646_vm1, %v1513_v32  ;;  %v1508_v41 = vadd.f32 %v3211_v35, %v1507_v23 }
 0x213   :  { %1683 = vst.msk [vmem:[%s3538_s5 + $0x120] sm:$0xff] %vm1646_vm1, %v1508_v41  ;;  %v1863_v8 = vpop.f32.mrf.mxu0 }
 0x214   :  { %v1363_v63 = vadd.f32 %v1863_v8, %v3211_v35 }
 0x215   :  { %v1357_v50 = vpop.f32.mrf.mxu0 }
 0x216   :  { %1654 = vst.msk [vmem:[%s3538_s5 + $0x38] sm:$0xff] %vm1646_vm1, %v1363_v63  ;;  %v1358_v45 = vadd.f32 %v3211_v35, %v1357_v50  ;;  %v1911_v16 = vpop.f32.mrf.mxu1 }
 0x217   :  { %v1523_v21 = vadd.f32 %v1911_v16, %v3211_v35 }
 0x218   :  { %1653 = vst.msk [vmem:[%s3538_s5 + $0x30] sm:$0xff] %vm1646_vm1, %v1358_v45  ;;  %v1517_v5 = vpop.f32.mrf.mxu1 }
 0x219   :  { %1686 = vst.msk [vmem:[%s3538_s5 + $0x138] sm:$0xff] %vm1646_vm1, %v1523_v21  ;;  %v1518_v46 = vadd.f32 %v3211_v35, %v1517_v5 }
 0x21b   :  { %1685 = vst.msk [vmem:[%s3538_s5 + $0x130] sm:$0xff] %vm1646_vm1, %v1518_v46  ;;  %v1866_v57 = vpop.f32.mrf.mxu0 }
 0x21c   :  { %v1373_v19 = vadd.f32 %v1866_v57, %v3211_v35 }
 0x21d   :  { %v1367_v13 = vpop.f32.mrf.mxu0 }
 0x21e   :  { %1656 = vst.msk [vmem:[%s3538_s5 + $0x48] sm:$0xff] %vm1646_vm1, %v1373_v19  ;;  %v1368_v58 = vadd.f32 %v3211_v35, %v1367_v13  ;;  %v1914_v62 = vpop.f32.mrf.mxu1 }
 0x21f   :  { %v1533_v26 = vadd.f32 %v1914_v62, %v3211_v35 }
 0x220   :  { %1655 = vst.msk [vmem:[%s3538_s5 + $0x40] sm:$0xff] %vm1646_vm1, %v1368_v58  ;;  %v1527_v37 = vpop.f32.mrf.mxu1 }
 0x221   :  { %1688 = vst.msk [vmem:[%s3538_s5 + $0x148] sm:$0xff] %vm1646_vm1, %v1533_v26  ;;  %v1528_v42 = vadd.f32 %v3211_v35, %v1527_v37 }
 0x223   :  { %1687 = vst.msk [vmem:[%s3538_s5 + $0x140] sm:$0xff] %vm1646_vm1, %v1528_v42  ;;  %v1869_v47 = vpop.f32.mrf.mxu0 }
 0x224   :  { %v1383_v33 = vadd.f32 %v1869_v47, %v3211_v35 }
 0x225   :  { %v1377_v51 = vpop.f32.mrf.mxu0 }
 0x226   :  { %1658 = vst.msk [vmem:[%s3538_s5 + $0x58] sm:$0xff] %vm1646_vm1, %v1383_v33  ;;  %v1378_v38 = vadd.f32 %v3211_v35, %v1377_v51  ;;  %v1917_v15 = vpop.f32.mrf.mxu1 }
 0x227   :  { %v1543_v22 = vadd.f32 %v1917_v15, %v3211_v35 }
 0x228   :  { %1657 = vst.msk [vmem:[%s3538_s5 + $0x50] sm:$0xff] %vm1646_vm1, %v1378_v38  ;;  %v1537_v59 = vpop.f32.mrf.mxu1 }
 0x229   :  { %1690 = vst.msk [vmem:[%s3538_s5 + $0x158] sm:$0xff] %vm1646_vm1, %v1543_v22  ;;  %v1538_v1 = vadd.f32 %v3211_v35, %v1537_v59 }
 0x22b   :  { %1689 = vst.msk [vmem:[%s3538_s5 + $0x150] sm:$0xff] %vm1646_vm1, %v1538_v1  ;;  %v1872_v12 = vpop.f32.mrf.mxu0 }
 0x22c   :  { %v1393_v27 = vadd.f32 %v1872_v12, %v3211_v35 }
 0x22d   :  { %v1387_v39 = vpop.f32.mrf.mxu0 }
 0x22e   :  { %1660 = vst.msk [vmem:[%s3538_s5 + $0x68] sm:$0xff] %vm1646_vm1, %v1393_v27  ;;  %v1388_v61 = vadd.f32 %v3211_v35, %v1387_v39  ;;  %v1920_v56 = vpop.f32.mrf.mxu1 }
 0x22f   :  { %v1553_v36 = vadd.f32 %v1920_v56, %v3211_v35 }
 0x230   :  { %1659 = vst.msk [vmem:[%s3538_s5 + $0x60] sm:$0xff] %vm1646_vm1, %v1388_v61  ;;  %v1547_v10 = vpop.f32.mrf.mxu1 }
 0x231   :  { %1692 = vst.msk [vmem:[%s3538_s5 + $0x168] sm:$0xff] %vm1646_vm1, %v1553_v36  ;;  %v1548_v54 = vadd.f32 %v3211_v35, %v1547_v10 }
 0x233   :  { %1691 = vst.msk [vmem:[%s3538_s5 + $0x160] sm:$0xff] %vm1646_vm1, %v1548_v54  ;;  %v1875_v20 = vpop.f32.mrf.mxu0 }
 0x234   :  { %v1403_v25 = vadd.f32 %v1875_v20, %v3211_v35 }
 0x235   :  { %v1397_v14 = vpop.f32.mrf.mxu0 }
 0x236   :  { %1662 = vst.msk [vmem:[%s3538_s5 + $0x78] sm:$0xff] %vm1646_vm1, %v1403_v25  ;;  %v1398_v18 = vadd.f32 %v3211_v35, %v1397_v14  ;;  %v1923_v3 = vpop.f32.mrf.mxu1 }
 0x237   :  { %v1563_v49 = vadd.f32 %v1923_v3, %v3211_v35 }
 0x238   :  { %1661 = vst.msk [vmem:[%s3538_s5 + $0x70] sm:$0xff] %vm1646_vm1, %v1398_v18  ;;  %v1557_v31 = vpop.f32.mrf.mxu1 }
 0x239   :  { %1694 = vst.msk [vmem:[%s3538_s5 + $0x178] sm:$0xff] %vm1646_vm1, %v1563_v49  ;;  %v1558_v6 = vadd.f32 %v3211_v35, %v1557_v31 }
 0x23b   :  { %1693 = vst.msk [vmem:[%s3538_s5 + $0x170] sm:$0xff] %vm1646_vm1, %v1558_v6  ;;  %v1878_v17 = vpop.f32.mrf.mxu0 }
 0x23c   :  { %v1413_v40 = vadd.f32 %v1878_v17, %v3211_v35 }
 0x23d   :  { %v1407_v30 = vpop.f32.mrf.mxu0 }
 0x23e   :  { %1664 = vst.msk [vmem:[%s3538_s5 + $0x88] sm:$0xff] %vm1646_vm1, %v1413_v40  ;;  %v1408_v4 = vadd.f32 %v3211_v35, %v1407_v30  ;;  %v1926_v9 = vpop.f32.mrf.mxu1 }
 0x23f   :  { %v1573_v2 = vadd.f32 %v1926_v9, %v3211_v35 }
 0x240   :  { %1663 = vst.msk [vmem:[%s3538_s5 + $0x80] sm:$0xff] %vm1646_vm1, %v1408_v4  ;;  %v1567_v28 = vpop.f32.mrf.mxu1 }
 0x241   :  { %1696 = vst.msk [vmem:[%s3538_s5 + $0x188] sm:$0xff] %vm1646_vm1, %v1573_v2  ;;  %v1568_v24 = vadd.f32 %v3211_v35, %v1567_v28 }
 0x243   :  { %1695 = vst.msk [vmem:[%s3538_s5 + $0x180] sm:$0xff] %vm1646_vm1, %v1568_v24  ;;  %v1881_v44 = vpop.f32.mrf.mxu0 }
 0x244   :  { %v1423_v55 = vadd.f32 %v1881_v44, %v3211_v35 }
 0x245   :  { %v1417_v7 = vpop.f32.mrf.mxu0 }
 0x246   :  { %1666 = vst.msk [vmem:[%s3538_s5 + $0x98] sm:$0xff] %vm1646_vm1, %v1423_v55  ;;  %v1418_v0 = vadd.f32 %v3211_v35, %v1417_v7  ;;  %v1929_v34 = vpop.f32.mrf.mxu1 }
 0x247   :  { %v1583_v43 = vadd.f32 %v1929_v34, %v3211_v35 }
 0x248   :  { %1665 = vst.msk [vmem:[%s3538_s5 + $0x90] sm:$0xff] %vm1646_vm1, %v1418_v0  ;;  %v1577_v29 = vpop.f32.mrf.mxu1 }
 0x249   :  { %1698 = vst.msk [vmem:[%s3538_s5 + $0x198] sm:$0xff] %vm1646_vm1, %v1583_v43  ;;  %v1578_v53 = vadd.f32 %v3211_v35, %v1577_v29 }
 0x24b   :  { %1697 = vst.msk [vmem:[%s3538_s5 + $0x190] sm:$0xff] %vm1646_vm1, %v1578_v53  ;;  %v1884_v60 = vpop.f32.mrf.mxu0 }
 0x24c   :  { %v1433_v48 = vadd.f32 %v1884_v60, %v3211_v35 }
 0x24d   :  { %v1427_v11 = vpop.f32.mrf.mxu0 }
 0x24e   :  { %1668 = vst.msk [vmem:[%s3538_s5 + $0xa8] sm:$0xff] %vm1646_vm1, %v1433_v48  ;;  %v1428_v52 = vadd.f32 %v3211_v35, %v1427_v11  ;;  %v1932_v32 = vpop.f32.mrf.mxu1 }
 0x24f   :  { %v1593_v23 = vadd.f32 %v1932_v32, %v3211_v35 }
 0x250   :  { %1667 = vst.msk [vmem:[%s3538_s5 + $0xa0] sm:$0xff] %vm1646_vm1, %v1428_v52  ;;  %v1587_v41 = vpop.f32.mrf.mxu1 }
 0x251   :  { %1700 = vst.msk [vmem:[%s3538_s5 + $0x1a8] sm:$0xff] %vm1646_vm1, %v1593_v23  ;;  %v1588_v8 = vadd.f32 %v3211_v35, %v1587_v41 }
 0x253   :  { %1699 = vst.msk [vmem:[%s3538_s5 + $0x1a0] sm:$0xff] %vm1646_vm1, %v1588_v8  ;;  %v1887_v63 = vpop.f32.mrf.mxu0 }
 0x254   :  { %v1443_v50 = vadd.f32 %v1887_v63, %v3211_v35 }
 0x255   :  { %v1437_v45 = vpop.f32.mrf.mxu0 }
 0x256   :  { %1670 = vst.msk [vmem:[%s3538_s5 + $0xb8] sm:$0xff] %vm1646_vm1, %v1443_v50  ;;  %v1438_v16 = vadd.f32 %v3211_v35, %v1437_v45  ;;  %v1935_v21 = vpop.f32.mrf.mxu1 }
 0x257   :  { %v1603_v5 = vadd.f32 %v1935_v21, %v3211_v35 }
 0x258   :  { %1669 = vst.msk [vmem:[%s3538_s5 + $0xb0] sm:$0xff] %vm1646_vm1, %v1438_v16  ;;  %v1597_v46 = vpop.f32.mrf.mxu1 }
 0x259   :  { %1702 = vst.msk [vmem:[%s3538_s5 + $0x1b8] sm:$0xff] %vm1646_vm1, %v1603_v5  ;;  %v1598_v57 = vadd.f32 %v3211_v35, %v1597_v46 }
 0x25b   :  { %1701 = vst.msk [vmem:[%s3538_s5 + $0x1b0] sm:$0xff] %vm1646_vm1, %v1598_v57  ;;  %v1890_v19 = vpop.f32.mrf.mxu0 }
 0x25c   :  { %v1453_v13 = vadd.f32 %v1890_v19, %v3211_v35 }
 0x25d   :  { %v1447_v58 = vpop.f32.mrf.mxu0 }
 0x25e   :  { %1672 = vst.msk [vmem:[%s3538_s5 + $0xc8] sm:$0xff] %vm1646_vm1, %v1453_v13  ;;  %v1448_v62 = vadd.f32 %v3211_v35, %v1447_v58  ;;  %v1938_v26 = vpop.f32.mrf.mxu1 }
 0x25f   :  { %v1613_v37 = vadd.f32 %v1938_v26, %v3211_v35 }
 0x260   :  { %1671 = vst.msk [vmem:[%s3538_s5 + $0xc0] sm:$0xff] %vm1646_vm1, %v1448_v62  ;;  %v1607_v42 = vpop.f32.mrf.mxu1 }
 0x261   :  { %1704 = vst.msk [vmem:[%s3538_s5 + $0x1c8] sm:$0xff] %vm1646_vm1, %v1613_v37  ;;  %v1608_v47 = vadd.f32 %v3211_v35, %v1607_v42 }
 0x263   :  { %1703 = vst.msk [vmem:[%s3538_s5 + $0x1c0] sm:$0xff] %vm1646_vm1, %v1608_v47  ;;  %v1893_v33 = vpop.f32.mrf.mxu0 }
 0x264   :  { %v1463_v51 = vadd.f32 %v1893_v33, %v3211_v35 }
 0x265   :  { %v1457_v38 = vpop.f32.mrf.mxu0 }
 0x266   :  { %1674 = vst.msk [vmem:[%s3538_s5 + $0xd8] sm:$0xff] %vm1646_vm1, %v1463_v51  ;;  %v1458_v15 = vadd.f32 %v3211_v35, %v1457_v38  ;;  %v1941_v22 = vpop.f32.mrf.mxu1 }
 0x267   :  { %v1623_v59 = vadd.f32 %v1941_v22, %v3211_v35 }
 0x268   :  { %1673 = vst.msk [vmem:[%s3538_s5 + $0xd0] sm:$0xff] %vm1646_vm1, %v1458_v15  ;;  %v1617_v1 = vpop.f32.mrf.mxu1 }
 0x269   :  { %1706 = vst.msk [vmem:[%s3538_s5 + $0x1d8] sm:$0xff] %vm1646_vm1, %v1623_v59  ;;  %v1618_v12 = vadd.f32 %v3211_v35, %v1617_v1 }
 0x26b   :  { %1705 = vst.msk [vmem:[%s3538_s5 + $0x1d0] sm:$0xff] %vm1646_vm1, %v1618_v12  ;;  %v1896_v27 = vpop.f32.mrf.mxu0 }
 0x26c   :  { %v1473_v39 = vadd.f32 %v1896_v27, %v3211_v35 }
 0x26d   :  { %v1467_v61 = vpop.f32.mrf.mxu0 }
 0x26e   :  { %1676 = vst.msk [vmem:[%s3538_s5 + $0xe8] sm:$0xff] %vm1646_vm1, %v1473_v39  ;;  %v1468_v56 = vadd.f32 %v3211_v35, %v1467_v61  ;;  %v1944_v36 = vpop.f32.mrf.mxu1 }
 0x26f   :  { %v1633_v10 = vadd.f32 %v1944_v36, %v3211_v35 }
 0x270   :  { %1675 = vst.msk [vmem:[%s3538_s5 + $0xe0] sm:$0xff] %vm1646_vm1, %v1468_v56  ;;  %v1627_v54 = vpop.f32.mrf.mxu1 }
 0x271   :  { %1708 = vst.msk [vmem:[%s3538_s5 + $0x1e8] sm:$0xff] %vm1646_vm1, %v1633_v10  ;;  %v1628_v20 = vadd.f32 %v3211_v35, %v1627_v54 }
 0x273   :  { %1707 = vst.msk [vmem:[%s3538_s5 + $0x1e0] sm:$0xff] %vm1646_vm1, %v1628_v20  ;;  %v1899_v25 = vpop.f32.mrf.mxu0 }
 0x274   :  { %v1483_v14 = vadd.f32 %v1899_v25, %v3211_v35 }
 0x275   :  { %v1477_v18 = vpop.f32.mrf.mxu0 }
 0x276   :  { %1678 = vst.msk [vmem:[%s3538_s5 + $0xf8] sm:$0xff] %vm1646_vm1, %v1483_v14  ;;  %v1478_v3 = vadd.f32 %v3211_v35, %v1477_v18  ;;  %v1947_v49 = vpop.f32.mrf.mxu1 }
 0x277   :  { %v1643_v31 = vadd.f32 %v1947_v49, %v3211_v35 }
 0x278   :  { %1677 = vst.msk [vmem:[%s3538_s5 + $0xf0] sm:$0xff] %vm1646_vm1, %v1478_v3  ;;  %v1637_v6 = vpop.f32.mrf.mxu1 }
 0x279   :  { %1710 = vst.msk [vmem:[%s3538_s5 + $0x1f8] sm:$0xff] %vm1646_vm1, %v1643_v31  ;;  %v1638_v17 = vadd.f32 %v3211_v35, %v1637_v6 }
 0x27b   :  { %1709 = vst.msk [vmem:[%s3538_s5 + $0x1f0] sm:$0xff] %vm1646_vm1, %v1638_v17 }

// kernel: forward.25
= control target key start
LH: loop header
LB: loop body
LE: loop exit
PB: predicated region body
PF: predicated region fallthrough
CT: control target
= control target key end

     0   :  { %vm32_vm0 = vcmask 261120   ;;  %vm233_vm1 = vcmask 523264   ;;  %s587_s0 = inlined_call_operand.vmem [shape: f32[32,32], index: 0, kind: input, shape index: {}]   ;;  %s588_s3 = inlined_call_operand.vmem [shape: f32[32,64], index: 3, kind: input, shape index: {}]   ;;  %s589_s5 = inlined_call_operand.vmem [shape: f32[64,32], index: 5, kind: input, shape index: {}]   ;;  %s590_s1 = inlined_call_operand.vmem [shape: f32[1,32], index: 1, kind: input, shape index: {}]   ;;  %s591_s2 = inlined_call_operand.vmem [shape: f32[1,32], index: 2, kind: input, shape index: {}]   ;;  %s592_s4 = inlined_call_operand.vmem [shape: f32[1,64], index: 4, kind: input, shape index: {}]   ;;  %s593_s6 = inlined_call_operand.vmem [shape: f32[1,32], index: 6, kind: input, shape index: {}]   ;;  %s594_s7 = inlined_call_operand.vmem [shape: f32[32,32], index: 7, kind: output, shape index: {}]  }
   0x1   :  { %v462_v0 = vld [vmem:[%s587_s0] sm:$0xff]  ;;  %v467_v1 = vld [vmem:[%s587_s0 + $0x10] sm:$0xff]  ;;  %v472_v2 = vld [vmem:[%s587_s0 + $0x8] sm:$0xff] }
   0x2   :  { %v33_v3 = vsel %vm32_vm0, %v462_v0, 0.0  ;;  %v39_v4 = vsel %vm32_vm0, %v467_v1, 0.0  ;;  %v481_v5 = vld [vmem:[%s587_s0 + $0x18] sm:$0xff]  ;;  %v36_v6 = vsel %vm32_vm0, %v472_v2, 0.0  ;;  %v108_v29 = vld [vmem:[%s588_s3 + $0x10] sm:$0xff]  ;;  %v107_v30 = vld [vmem:[%s588_s3 + $0x8] sm:$0xff] }
   0x3   :  { %34 = vadd.xlane.f32.xlu0 %v33_v3  ;;  %40 = vadd.xlane.f32.xlu1 %v39_v4  ;;  %v42_v7 = vsel %vm32_vm0, %v481_v5, 0.0  ;;  %v109_v28 = vld [vmem:[%s588_s3 + $0x18] sm:$0xff]  ;;  %v106_v31 = vld [vmem:[%s588_s3] sm:$0xff]  ;;  %v224_v33 = vld [vmem:[%s589_s5 + $0x30] sm:$0xff] }
   0x4   :  { %375 = vmatprep.subr.mxu0 %v109_v28  ;;  %v225_v32 = vld [vmem:[%s589_s5 + $0x38] sm:$0xff]  ;;  %v223_v34 = vld [vmem:[%s589_s5 + $0x28] sm:$0xff]  ;;  %v222_v35 = vld [vmem:[%s589_s5 + $0x20] sm:$0xff] }
   0x5   :  { %376 = vmatpush3.msra.mxu0 %v109_v28  ;;  %389 = vmatprep.subr.mxu1 %v225_v32  ;;  %v343_v49 = vld [vmem:[%s590_s1] ss:$0 sm:$0xff] }
   0x6   :  { %377 = vmatprep.subr.mxu0 %v108_v29  ;;  %390 = vmatpush3.msra.mxu1 %v225_v32  ;;  %v344_v51 = vld [vmem:[%s591_s2] ss:$0 sm:$0xff] }
   0x7   :  { %37 = vadd.xlane.f32.xlu0 %v36_v6  ;;  %43 = vadd.xlane.f32.xlu1 %v42_v7  ;;  %v221_v6 = vld [vmem:[%s589_s5 + $0x18] sm:$0xff]  ;;  %v220_v7 = vld [vmem:[%s589_s5 + $0x10] sm:$0xff] }
   0x8   :  { %378 = vmatpush3.msra.mxu0 %v108_v29  ;;  %391 = vmatprep.subr.mxu1 %v224_v33 }
   0x9   :  { %379 = vmatprep.subr.mxu0 %v107_v30  ;;  %392 = vmatpush3.msra.mxu1 %v224_v33 }
   0xa   :  { %380 = vmatpush3.msra.mxu0 %v107_v30  ;;  %393 = vmatprep.subr.mxu1 %v223_v34 }
   0xb   :  { %381 = vmatprep.subr.mxu0 %v106_v31  ;;  %394 = vmatpush3.msra.mxu1 %v223_v34 }
   0xc   :  { %382 = vmatpush3.msra.mxu0 %v106_v31  ;;  %395 = vmatprep.subr.mxu1 %v222_v35 }
   0xd   :  { %396 = vmatpush3.msra.mxu1 %v222_v35 }
   0xe   :  { %397 = vmatprep.subr.mxu1 %v221_v6 }
   0xf   :  { %398 = vmatpush3.msra.mxu1 %v221_v6 }
  0x10   :  { %399 = vmatprep.subr.mxu1 %v220_v7 }
  0x11   :  { %400 = vmatpush3.msra.mxu1 %v220_v7 }
  0x8c   :  { %v35_v8 = vpop.xlane.xlu0 %34  ;;  %v41_v9 = vpop.xlane.xlu1 %40 }
  0x8d   :  { %v46_v10 = vmul.f32 0.03125, %v35_v8  ;;  %v48_v11 = vmul.f32 0.03125, %v41_v9  ;;  %v219_v8 = vld [vmem:[%s589_s5 + $0x8] sm:$0xff]  ;;  %v218_v9 = vld [vmem:[%s589_s5] sm:$0xff] }
  0x8e   :  { %401 = vmatprep.subr.mxu1 %v219_v8 }
  0x8f   :  { %v488_v12 = vsub.f32 %v462_v0, %v46_v10  ;;  %v491_v13 = vsub.f32 %v467_v1, %v48_v11  ;;  %402 = vmatpush3.msra.mxu1 %v219_v8  ;;  %v345_v10 = vld [vmem:[%s592_s4] ss:$0 sm:$0xff] }
  0x90   :  { %v38_v14 = vpop.xlane.xlu0 %37  ;;  %v44_v15 = vpop.xlane.xlu1 %43  ;;  %403 = vmatprep.subr.mxu1 %v218_v9 }
  0x91   :  { %v47_v16 = vmul.f32 0.03125, %v38_v14  ;;  %v49_v17 = vmul.f32 0.03125, %v44_v15  ;;  %v54_v18 = vmul.f32 %v488_v12, %v488_v12  ;;  %v56_v19 = vmul.f32 %v491_v13, %v491_v13  ;;  %404 = vmatpush3.msra.mxu1 %v218_v9 }
  0x93   :  { %v498_v20 = vsub.f32 %v472_v2, %v47_v16  ;;  %v501_v21 = vsub.f32 %v481_v5, %v49_v17  ;;  %v58_v22 = vsel %vm32_vm0, %v54_v18, 0.0  ;;  %v64_v23 = vsel %vm32_vm0, %v56_v19, 0.0 }
  0x94   :  { %59 = vadd.xlane.f32.xlu0 %v58_v22 }
  0x95   :  { %v55_v24 = vmul.f32 %v498_v20, %v498_v20  ;;  %v57_v25 = vmul.f32 %v501_v21, %v501_v21 }
  0x97   :  { %v61_v26 = vsel %vm32_vm0, %v55_v24, 0.0  ;;  %v67_v27 = vsel %vm32_vm0, %v57_v25, 0.0 }
  0x98   :  { %65 = vadd.xlane.f32.xlu0 %v64_v23  ;;  %62 = vadd.xlane.f32.xlu1 %v61_v26  ;;  %v350_v23 = vld [vmem:[%s593_s6] ss:$0 sm:$0xff] }
  0x9c   :  { %68 = vadd.xlane.f32.xlu1 %v67_v27 }
 0x11d   :  { %v60_v36 = vpop.xlane.xlu0 %59 }
 0x11e   :  { %v70_v37 = vmul.f32 0.03125, %v60_v36 }
 0x120   :  { %v74_v38 = vadd.f32 1e-05, %v70_v37 }
 0x121   :  { %v63_v39 = vpop.xlane.xlu1 %62  ;;  %v66_v40 = vpop.xlane.xlu0 %65 }
 0x122   :  { %411 = vrsqrt.f32 %v74_v38  ;;  %v71_v41 = vmul.f32 0.03125, %v63_v39  ;;  %v72_v42 = vmul.f32 0.03125, %v66_v40 }
 0x124   :  { %v75_v43 = vadd.f32 1e-05, %v71_v41  ;;  %v76_v44 = vadd.f32 1e-05, %v72_v42 }
 0x125   :  { %v69_v45 = vpop.xlane.xlu1 %68 }
 0x126   :  { %413 = vrsqrt.f32 %v75_v43  ;;  %v73_v46 = vmul.f32 0.03125, %v69_v45 }
 0x127   :  { %415 = vrsqrt.f32 %v76_v44 }
 0x128   :  { %v77_v47 = vadd.f32 1e-05, %v73_v46 }
 0x12a   :  { %417 = vrsqrt.f32 %v77_v47 }
 0x12f   :  { %v412_v48 = vpop.eup %411 }
 0x130   :  { %v82_v50 = vmul.f32 %v412_v48, %v488_v12 }
 0x132   :  { %v92_v52 = vmul.f32 %v343_v49, %v82_v50 }
 0x133   :  { %v414_v53 = vpop.eup %413 }
 0x134   :  { %v416_v54 = vpop.eup %415  ;;  %v102_v55 = vadd.f32 %v344_v51, %v92_v52  ;;  %v83_v56 = vmul.f32 %v414_v53, %v498_v20 }
 0x135   :  { %v84_v57 = vmul.f32 %v416_v54, %v491_v13 }
 0x136   :  { %383 = vmatprep.mubr.msk.f32.mxu0 %vm32_vm0, %v102_v55  ;;  %v93_v58 = vmul.f32 %v343_v49, %v83_v56 }
 0x137   :  { %v418_v59 = vpop.eup %417  ;;  %v94_v60 = vmul.f32 %v343_v49, %v84_v57 }
 0x138   :  { %v103_v61 = vadd.f32 %v344_v51, %v93_v58  ;;  %v85_v62 = vmul.f32 %v418_v59, %v501_v21 }
 0x139   :  { %v104_v63 = vadd.f32 %v344_v51, %v94_v60 }
 0x13a   :  { %384 = vmatmul.mubr.msk.f32.vlgmr.msra.gmra.mxu0 %vm32_vm0, %v103_v61  ;;  %v95_v3 = vmul.f32 %v343_v49, %v85_v62 }
 0x13b   :  { %386 = vmatprep.mubr.msk.f32.mxu0 %vm32_vm0, %v104_v63 }
 0x13c   :  { %v105_v4 = vadd.f32 %v344_v51, %v95_v3 }
 0x13e   :  { %387 = vmatmul.mubr.msk.f32.gmra.mxu0 %vm32_vm0, %v105_v4 }
 0x1fa   :  { %v385_v11 = vpop.f32.mrf.mxu0 }
 0x1fb   :  { %v201_v12 = vadd.f32 %v385_v11, %v345_v10 }
 0x1fc   :  { %v195_v13 = vpop.f32.mrf.mxu0 }
 0x1fd   :  { %v196_v14 = vadd.f32 %v345_v10, %v195_v13  ;;  %v215_v17 = vmax.f32 %v201_v12, 0.0 }
 0x1fe   :  { %v388_v15 = vpop.f32.mrf.mxu0 }
 0x1ff   :  { %v214_v16 = vmax.f32 %v196_v14, 0.0  ;;  %v211_v18 = vadd.f32 %v388_v15, %v345_v10 }
 0x200   :  { %v205_v19 = vpop.f32.mrf.mxu0 }
 0x201   :  { %v206_v20 = vadd.f32 %v345_v10, %v205_v19  ;;  %405 = vmatprep.mubr.msk.f32.mxu1 %vm233_vm1, %v214_v16  ;;  %v217_v22 = vmax.f32 %v211_v18, 0.0 }
 0x202   :  { %406 = vmatmul.mubr.msk.f32.vlgmr.msra.gmra.mxu1 %vm233_vm1, %v215_v17 }
 0x203   :  { %v216_v21 = vmax.f32 %v206_v20, 0.0 }
 0x205   :  { %408 = vmatprep.mubr.msk.f32.mxu1 %vm233_vm1, %v216_v21 }
 0x206   :  { %409 = vmatmul.mubr.msk.f32.gmra.mxu1 %vm233_vm1, %v217_v22 }
 0x2c2   :  { %v407_v24 = vpop.f32.mrf.mxu1 }
 0x2c3   :  { %v318_v25 = vadd.f32 %v407_v24, %v350_v23 }
 0x2c4   :  { %v312_v26 = vpop.f32.mrf.mxu1 }
 0x2c5   :  { %v332_v27 = vadd.f32 %v318_v25, %v472_v2  ;;  %v313_v28 = vadd.f32 %v350_v23, %v312_v26 }
 0x2c6   :  { %v410_v29 = vpop.f32.mrf.mxu1 }
 0x2c7   :  { %336 = vst.msk [vmem:[%s594_s7 + $0x8] sm:$0xff] %vm32_vm0, %v332_v27  ;;  %v331_v30 = vadd.f32 %v313_v28, %v462_v0  ;;  %v328_v31 = vadd.f32 %v410_v29, %v350_v23 }
 0x2c8   :  { %v322_v32 = vpop.f32.mrf.mxu1 }
 0x2c9   :  { %335 = vst.msk [vmem:[%s594_s7] sm:$0xff] %vm32_vm0, %v331_v30  ;;  %v334_v33 = vadd.f32 %v328_v31, %v481_v5  ;;  %v323_v34 = vadd.f32 %v350_v23, %v322_v32 }
 0x2cb   :  { %338 = vst.msk [vmem:[%s594_s7 + $0x18] sm:$0xff] %vm32_vm0, %v334_v33  ;;  %v333_v2 = vadd.f32 %v323_v34, %v467_v1 }
 0x2cd   :  { %337 = vst.msk [vmem:[%s594_s7 + $0x10] sm:$0xff] %vm32_vm0, %v333_v2 }

// kernel: forward.24
= control target key start
LH: loop header
LB: loop body
LE: loop exit
PB: predicated region body
PF: predicated region fallthrough
CT: control target
= control target key end

     0   :  { %s1787_s18 = smov 0   ;;  %s1936_s0 = inlined_call_operand.vmem [shape: f32[2,16,96], index: 0, kind: input, shape index: {}]   ;;  %s1937_s1 = inlined_call_operand.vmem [shape: f32[2,4,16,16], index: 1, kind: input, shape index: {}]   ;;  %s1938_s2 = inlined_call_operand.vmem [shape: f32[2,16,32], index: 2, kind: input, shape index: {}]   ;;  %s1939_s3 = inlined_call_operand.vmem [shape: f32[32,32], index: 3, kind: input, shape index: {}]   ;;  %s1940_s4 = inlined_call_operand.vmem [shape: f32[1,32], index: 4, kind: input, shape index: {}]   ;;  %s1941_s5 = inlined_call_operand.vmem [shape: f32[2,16,32], index: 5, kind: output, shape index: {}]  }
   0x1 LB: > { %s1509_s19 = sadd.s32 4294967295, %s1744_s18   ;;  %p1513_p0 = scmp.ge.s32.totalorder %s1744_s18, 1  ;;  %s1744_s18 = sphi %s1787_s18, %s15_s18  }
   0x2   : > { %p207_p1 = scmp.lt.s32.totalorder %s1744_s18, 3 }
   0x4   : > { %p208_p2 = pnand %p1513_p0, %p207_p1 }
   0x5   : > { %p245_p3 = scmp.lt.s32.totalorder (!%p208_p2), %s1509_s19, 1  ;;  %s1746_s24 = smov (!%p208_p2), 96  }
   0x6   : > { %211 = sbr.rel (%p208_p2) target bundleno = 2494 (0x9be), region = 40  ;;  %s1747_s29 = smov (!%p208_p2), 64  }
   0x7   : > { %s1748_s30 = smov (!%p208_p2), 120   ;;  %s1749_s6 = smov (!%p208_p2), 88  }
   0x8   : > { %s1750_s9 = smov (!%p208_p2), 56   ;;  %s1751_s10 = smov (!%p208_p2), 80  }
   0x9   : > { %s1752_s11 = smov (!%p208_p2), 112   ;;  %s1753_s12 = smov (!%p208_p2), 72  }
   0xa   : > { %s1754_s13 = smov (!%p208_p2), 104   ;;  %s1755_s16 = smov (!%p208_p2), 48  }
   0xb   : > { %s1943_s19 = smov (!%p245_p3, %s1509_s19), 1  ;;  %vm277_vm0 = vcmask 64512   ;;  %vm363_vm1 = vcmask 130048   ;;  %v473_v36 = vld [vmem:[%s1939_s3] sm:$0xff]  ;;  %v677_v61 = vld [vmem:[%s1939_s3 + $0x8] sm:$0xff]  ;;  %s1756_s17 = smov 40  }
   0xc   : > { %s1795_s20 = sshll.u32 %s1943_s19, 4  ;;  %s1564_s25 = sshll.u32 %s1943_s19, 6  ;;  %vm1427_vm2 = vcmask 261120  }
   0xd   : > { %s249_s23 = scalar_lea.vmem %s1936_s0, %s1795_s20  ;;  %s1824_s28 = scalar_lea.vmem %s1937_s1, %s1564_s25 }
   0xe   : > { %v1801_v0 = vld [vmem:[%s249_s23 + $0x8] sm:$0xff]  ;;  %v1803_v1 = vld [vmem:[%s249_s23] sm:$0xff]  ;;  %v1529_v39 = vld [vmem:[%s1824_s28 + $0x18] sm:$0xff]  ;;  %s259_s26 = scalar_lea.vmem %s1938_s2, %s1795_s20 }
   0xf   : > { %275 = vrot.lane.b32.xlu0 %v1801_v0, %s1746_s24  ;;  %v1807_v2 = vmul.f32 0.35355338, %v1803_v1  ;;  %v1816_v5 = vmul.f32 0.35355338, %v1801_v0  ;;  %v269_v7 = vld [vmem:[%s1824_s28] sm:$0xff]  ;;  %v270_v8 = vld [vmem:[%s1824_s28 + $0x8] sm:$0xff] }
  0x10   : > { %v1528_v41 = vld [vmem:[%s1824_s28 + $0x10] sm:$0xff] }
  0x11   : > { %1615 = vmatprep.mubr.msk.f32.mxu0 %vm277_vm0, %v1807_v2 }
  0x13   : > { %273 = vrot.lane.b32.xlu0 %v1803_v1, %s1746_s24 }
  0x81   : > { %v276_v3 = vpop.permute.xlu0 %275 }
  0x82   : > { %1611 = vmatprep.subr.msk.mxu0 %vm277_vm0, %v276_v3 }
  0x83   : > { %1612 = vmatpush3.xpose.msk.msra.mxu0 %vm277_vm0, %v276_v3 }
  0x85   : > { %v274_v4 = vpop.permute.xlu0 %273 }
  0x86   : > { %1613 = vmatprep.subr.msk.mxu0 %vm277_vm0, %v274_v4 }
  0x87   : > { %1614 = vmatpush3.xpose.msk.msra.mxu0 %vm277_vm0, %v274_v4 }
  0x8a   : > { %1616 = vmatmul.mubr.msk.f32.vlgmr.msra.gmra.mxu0 %vm277_vm0, %v1816_v5 }
 0x14a   : > { %v1617_v6 = vpop.f32.mrf.mxu0 }
 0x14b   : > { %v360_v11 = vadd.f32 %v1617_v6, %v270_v8 }
 0x14c   : > { %v354_v9 = vpop.f32.mrf.mxu0 }
 0x14d   : > { %v355_v10 = vadd.f32 %v354_v9, %v269_v7  ;;  %v367_v13 = vsel %vm363_vm1, %v360_v11, -inf }
 0x14f   : > { %v364_v12 = vsel %vm363_vm1, %v355_v10, -inf }
 0x150   : > { %365 = vmax.xlane.f32.xlu1 %v364_v12 }
 0x154   : > { %368 = vmax.xlane.f32.xlu1 %v367_v13 }
 0x1d9   : > { %v366_v14 = vpop.xlane.xlu1 %365 }
 0x1da   : > { %v370_v15 = vsub.f32 %v355_v10, %v366_v14 }
 0x1dc   : > { %v372_v16 = vmul.f32 1.442695, %v370_v15 }
 0x1dd   : > { %v369_v17 = vpop.xlane.xlu1 %368 }
 0x1de   : > { %1706 = vpow2.f32 %v372_v16  ;;  %v371_v18 = vsub.f32 %v360_v11, %v369_v17  ;;  %v1541_v16 = vld [vmem:[%s1824_s28 + $0x28] sm:$0xff] }
 0x1e0   : > { %v374_v19 = vmul.f32 1.442695, %v371_v18  ;;  %v1540_v18 = vld [vmem:[%s1824_s28 + $0x20] sm:$0xff] }
 0x1e2   : > { %1708 = vpow2.f32 %v374_v19 }
 0x1eb   : > { %v1707_v20 = vpop.eup %1706 }
 0x1ec   : > { %v376_v21 = vsel %vm363_vm1, %v1707_v20, 0.0 }
 0x1ed   : > { %377 = vadd.xlane.f32.xlu0 %v376_v21 }
 0x1ef   : > { %v1709_v22 = vpop.eup %1708 }
 0x1f0   : > { %v379_v23 = vsel %vm363_vm1, %v1709_v22, 0.0 }
 0x1f1   : > { %380 = vadd.xlane.f32.xlu1 %v379_v23 }
 0x202   : > { %388 = vrot.lane.b32.xlu1 %v1801_v0, %s1747_s29 }
 0x203   : > { %477 = vrot.lane.b32.xlu0 %v1807_v2, %s1748_s30 }
 0x206   : > { %386 = vrot.lane.b32.xlu1 %v1803_v1, %s1747_s29 }
 0x20a   : > { %483 = vrot.lane.b32.xlu1 %v1801_v0, %s1749_s6 }
 0x20e   : > { %481 = vrot.lane.b32.xlu1 %v1803_v1, %s1749_s6  ;;  %s264_s6 = scalar_lea.vmem %s1941_s5, %s1795_s20 }
 0x212   : > { %479 = vrot.lane.b32.xlu1 %v1816_v5, %s1748_s30 }
 0x276   : > { %v378_v24 = vpop.xlane.xlu0 %377 }
 0x277   : > { %1710 = vrcp.f32 %v378_v24 }
 0x27a   : > { %v381_v25 = vpop.xlane.xlu1 %380  ;;  %v478_v33 = vpop.permute.xlu0 %477 }
 0x27b   : > { %1712 = vrcp.f32 %v381_v25 }
 0x27e   : > { %v389_v26 = vpop.permute.xlu1 %388 }
 0x27f   : > { %1618 = vmatprep.subr.mxu1 %v389_v26 }
 0x280   : > { %1619 = vmatpush3.msra.mxu1 %v389_v26  ;;  %v1550_v26 = vld [vmem:[%s1824_s28 + $0x30] sm:$0xff] }
 0x282   : > { %v387_v27 = vpop.permute.xlu1 %386 }
 0x283   : > { %1620 = vmatprep.subr.mxu1 %v387_v27 }
 0x284   : > { %v1711_v28 = vpop.eup %1710  ;;  %1621 = vmatpush3.msra.mxu1 %v387_v27 }
 0x285   : > { %v384_v29 = vmul.f32 %v1711_v28, %v1707_v20 }
 0x286   : > { %v484_v30 = vpop.permute.xlu1 %483 }
 0x287   : > { %1622 = vmatprep.mubr.msk.f32.mxu1 %vm363_vm1, %v384_v29  ;;  %1625 = vmatprep.subr.msk.mxu1 %vm277_vm0, %v484_v30 }
 0x288   : > { %v1713_v31 = vpop.eup %1712 }
 0x289   : > { %v385_v32 = vmul.f32 %v1713_v31, %v1709_v22 }
 0x28a   : > { %v482_v34 = vpop.permute.xlu1 %481 }
 0x28b   : > { %1623 = vmatmul.mubr.msk.f32.vlgmr.msra.gmra.mxu1 %vm363_vm1, %v385_v32 }
 0x28c   : > { %1626 = vmatpush3.xpose.msk.msra.mxu1 %vm277_vm0, %v484_v30  ;;  %1629 = vmatprep.mubr.msk.f32.mxu1 %vm277_vm0, %v478_v33 }
 0x28d   : > { %1627 = vmatprep.subr.msk.mxu1 %vm277_vm0, %v482_v34 }
 0x28e   : > { %v480_v35 = vpop.permute.xlu1 %479 }
 0x290   : > { %1628 = vmatpush3.xpose.msk.msra.mxu1 %vm277_vm0, %v482_v34 }
 0x291   : > { %1644 = vmatprep.subr.mxu1 %v473_v36 }
 0x293   : > { %1630 = vmatmul.mubr.msk.f32.vlgmr.msra.gmra.mxu1 %vm277_vm0, %v480_v35 }
 0x294   : > { %1645 = vmatpush3.msra.mxu1 %v473_v36 }
 0x34b   : > { %v1624_v37 = vpop.f32.mrf.mxu1 }
 0x34d   : > { %v464_v38 = vpop.f32.mrf.mxu1 }
 0x34e   : > { %1646 = vmatprep.mubr.msk.f32.mxu1 %vm277_vm0, %v464_v38 }
 0x34f   : > { %1647 = vmatmul.mubr.msk.f32.vlgmr.msra.gmra.mxu1 %vm277_vm0, %v1624_v37 }
 0x353   : > { %v1631_v40 = vpop.f32.mrf.mxu1 }
 0x354   : > { %v565_v42 = vadd.f32 %v1631_v40, %v1529_v39 }
 0x355   : > { %v559_v43 = vpop.f32.mrf.mxu1 }
 0x356   : > { %v560_v44 = vadd.f32 %v1528_v41, %v559_v43  ;;  %v571_v45 = vsel %vm363_vm1, %v565_v42, -inf  ;;  %v1551_v43 = vld [vmem:[%s1824_s28 + $0x38] sm:$0xff] }
 0x357   : > { %572 = vmax.xlane.f32.xlu0 %v571_v45 }
 0x358   : > { %v568_v46 = vsel %vm363_vm1, %v560_v44, -inf }
 0x359   : > { %569 = vmax.xlane.f32.xlu1 %v568_v46 }
 0x36d   : > { %590 = vrot.lane.b32.xlu0 %v1803_v1, %s1750_s9 }
 0x371   : > { %843 = vrot.lane.b32.xlu0 %v1807_v2, %s1752_s11 }
 0x375   : > { %1136 = vrot.lane.b32.xlu0 %v1801_v0, %s1753_s12 }
 0x379   : > { %1130 = vrot.lane.b32.xlu0 %v1807_v2, %s1754_s13 }
 0x3e0   : > { %v573_v47 = vpop.xlane.xlu0 %572 }
 0x3e1   : > { %v575_v48 = vsub.f32 %v565_v42, %v573_v47 }
 0x3e2   : > { %v570_v49 = vpop.xlane.xlu1 %569 }
 0x3e3   : > { %v578_v50 = vmul.f32 1.442695, %v575_v48  ;;  %v574_v51 = vsub.f32 %v560_v44, %v570_v49 }
 0x3e4   : > { %v591_v60 = vpop.permute.xlu0 %590 }
 0x3e5   : > { %1714 = vpow2.f32 %v578_v50  ;;  %v576_v52 = vmul.f32 1.442695, %v574_v51 }
 0x3e7   : > { %1716 = vpow2.f32 %v576_v52 }
 0x3e8   : > { %v844_v8 = vpop.permute.xlu0 %843 }
 0x3ec   : > { %v1137_v9 = vpop.permute.xlu0 %1136 }
 0x3f0   : > { %v1131_v11 = vpop.permute.xlu0 %1130 }
 0x3f2   : > { %v1715_v53 = vpop.eup %1714 }
 0x3f3   : > { %v583_v54 = vsel %vm363_vm1, %v1715_v53, 0.0 }
 0x3f4   : > { %v1717_v55 = vpop.eup %1716  ;;  %584 = vadd.xlane.f32.xlu1 %v583_v54 }
 0x3f5   : > { %v580_v56 = vsel %vm363_vm1, %v1717_v55, 0.0 }
 0x3f8   : > { %581 = vadd.xlane.f32.xlu1 %v580_v56 }
 0x409   : > { %592 = vrot.lane.b32.xlu1 %v1801_v0, %s1750_s9 }
 0x40d   : > { %849 = vrot.lane.b32.xlu1 %v1801_v0, %s1751_s10 }
 0x411   : > { %847 = vrot.lane.b32.xlu1 %v1803_v1, %s1751_s10 }
 0x415   : > { %845 = vrot.lane.b32.xlu1 %v1816_v5, %s1752_s11 }
 0x419   : > { %1134 = vrot.lane.b32.xlu1 %v1803_v1, %s1753_s12 }
 0x41d   : > { %1132 = vrot.lane.b32.xlu1 %v1816_v5, %s1754_s13 }
 0x47d   : > { %v585_v57 = vpop.xlane.xlu1 %584 }
 0x47e   : > { %1718 = vrcp.f32 %v585_v57 }
 0x481   : > { %v582_v58 = vpop.xlane.xlu1 %581 }
 0x482   : > { %1720 = vrcp.f32 %v582_v58 }
 0x485   : > { %v593_v59 = vpop.permute.xlu1 %592 }
 0x486   : > { %1632 = vmatprep.subr.mxu0 %v593_v59 }
 0x487   : > { %1633 = vmatpush3.msra.mxu0 %v593_v59 }
 0x488   : > { %1634 = vmatprep.subr.mxu0 %v591_v60 }
 0x489   : > { %1635 = vmatpush3.msra.mxu0 %v591_v60  ;;  %v850_v4 = vpop.permute.xlu1 %849  ;;  %v1043_v60 = vld [vmem:[%s1939_s3 + $0x10] sm:$0xff] }
 0x48a   : > { %1639 = vmatprep.subr.mxu0 %v677_v61 }
 0x48b   : > { %v1719_v62 = vpop.eup %1718 }
 0x48c   : > { %v589_v3 = vmul.f32 %v1719_v62, %v1715_v53  ;;  %v1648_v62 = vpop.f32.mrf.mxu1 }
 0x48d   : > { %v848_v6 = vpop.permute.xlu1 %847 }
 0x48f   : > { %v1721_v63 = vpop.eup %1720 }
 0x490   : > { %v588_v2 = vmul.f32 %v1721_v63, %v1717_v55  ;;  %v831_v63 = vpop.f32.mrf.mxu1 }
 0x491   : > { %v846_v10 = vpop.permute.xlu1 %845 }
 0x492   : > { %1636 = vmatprep.mubr.msk.f32.mxu0 %vm363_vm1, %v588_v2 }
 0x493   : > { %1637 = vmatmul.mubr.msk.f32.vlgmr.msra.gmra.mxu0 %vm363_vm1, %v589_v3 }
 0x494   : > { %1640 = vmatpush3.msra.mxu0 %v677_v61 }
 0x495   : > { %1649 = vmatprep.subr.msk.mxu0 %vm277_vm0, %v850_v4  ;;  %v1135_v12 = vpop.permute.xlu1 %1134 }
 0x499   : > { %v1133_v13 = vpop.permute.xlu1 %1132 }
 0x553   : > { %v1638_v5 = vpop.f32.mrf.mxu0 }
 0x555   : > { %v668_v7 = vpop.f32.mrf.mxu0 }
 0x556   : > { %1641 = vmatprep.mubr.msk.f32.mxu0 %vm277_vm0, %v668_v7 }
 0x557   : > { %1642 = vmatmul.mubr.msk.f32.vlgmr.msra.gmra.mxu0 %vm277_vm0, %v1638_v5 }
 0x558   : > { %1650 = vmatpush3.xpose.msk.msra.mxu0 %vm277_vm0, %v850_v4  ;;  %1653 = vmatprep.mubr.msk.f32.mxu0 %vm277_vm0, %v844_v8 }
 0x559   : > { %1651 = vmatprep.subr.msk.mxu0 %vm277_vm0, %v848_v6 }
 0x55c   : > { %1652 = vmatpush3.xpose.msk.msra.mxu0 %vm277_vm0, %v848_v6 }
 0x55d   : > { %1668 = vmatprep.subr.msk.mxu0 %vm277_vm0, %v1137_v9 }
 0x55f   : > { %1654 = vmatmul.mubr.msk.f32.vlgmr.msra.gmra.mxu0 %vm277_vm0, %v846_v10 }
 0x560   : > { %1669 = vmatpush3.xpose.msk.msra.mxu0 %vm277_vm0, %v1137_v9  ;;  %1672 = vmatprep.mubr.msk.f32.mxu0 %vm277_vm0, %v1131_v11  ;;  %v1330_v9 = vld [vmem:[%s1939_s3 + $0x18] sm:$0xff] }
 0x561   : > { %1670 = vmatprep.subr.msk.mxu0 %vm277_vm0, %v1135_v12 }
 0x564   : > { %1671 = vmatpush3.xpose.msk.msra.mxu0 %vm277_vm0, %v1135_v12 }
 0x567   : > { %1673 = vmatmul.mubr.msk.f32.vlgmr.msra.gmra.mxu0 %vm277_vm0, %v1133_v13 }
 0x617   : > { %v1886_v14 = vpop.f32.mrf.mxu0 }
 0x618   : > { %v837_v10 = vadd.f32 %v1648_v62, %v1886_v14 }
 0x619   : > { %v1888_v15 = vpop.f32.mrf.mxu0 }
 0x61a   : > { %v832_v12 = vadd.f32 %v831_v63, %v1888_v15  ;;  %v1560_v15 = vld [vmem:[%s1940_s4] ss:$0 sm:$0xff] }
 0x61f   : > { %v1655_v17 = vpop.f32.mrf.mxu0 }
 0x620   : > { %v931_v19 = vadd.f32 %v1655_v17, %v1541_v16 }
 0x621   : > { %v925_v20 = vpop.f32.mrf.mxu0 }
 0x622   : > { %v926_v21 = vadd.f32 %v1540_v18, %v925_v20  ;;  %v937_v22 = vsel %vm363_vm1, %v931_v19, -inf }
 0x623   : > { %938 = vmax.xlane.f32.xlu1 %v937_v22 }
 0x624   : > { %v934_v23 = vsel %vm363_vm1, %v926_v21, -inf }
 0x625   : > { %935 = vmax.xlane.f32.xlu0 %v934_v23  ;;  %v1414_v23 = vld [vmem:[%s259_s26] sm:$0xff] }
 0x627   : > { %v1674_v24 = vpop.f32.mrf.mxu0 }
 0x628   : > { %v1218_v45 = vadd.f32 %v1674_v24, %v1551_v43 }
 0x629   : > { %v1212_v25 = vpop.f32.mrf.mxu0 }
 0x62a   : > { %v1213_v27 = vadd.f32 %v1550_v26, %v1212_v25  ;;  %v1224_v47 = vsel %vm363_vm1, %v1218_v45, -inf }
 0x62c   : > { %v1221_v28 = vsel %vm363_vm1, %v1213_v27, -inf }
 0x634   : > { %958 = vrot.lane.b32.xlu1 %v1801_v0, %s1755_s16 }
 0x658   : > { %1222 = vmax.xlane.f32.xlu1 %v1221_v28 }
 0x6ac   : > { %v939_v29 = vpop.xlane.xlu1 %938 }
 0x6ad   : > { %v941_v30 = vsub.f32 %v931_v19, %v939_v29 }
 0x6ae   : > { %v936_v31 = vpop.xlane.xlu0 %935 }
 0x6af   : > { %v944_v32 = vmul.f32 1.442695, %v941_v30  ;;  %v940_v33 = vsub.f32 %v926_v21, %v936_v31  ;;  %v1415_v21 = vld [vmem:[%s259_s26 + $0x8] sm:$0xff] }
 0x6b0   : > { %v959_v34 = vpop.permute.xlu1 %958 }
 0x6b1   : > { %1722 = vpow2.f32 %v944_v32  ;;  %v942_v35 = vmul.f32 1.442695, %v940_v33  ;;  %1656 = vmatprep.subr.mxu1 %v959_v34 }
 0x6b2   : > { %1657 = vmatpush3.msra.mxu1 %v959_v34 }
 0x6b3   : > { %1724 = vpow2.f32 %v942_v35 }
 0x6be   : > { %v1723_v36 = vpop.eup %1722 }
 0x6bf   : > { %v949_v37 = vsel %vm363_vm1, %v1723_v36, 0.0 }
 0x6c0   : > { %v1725_v38 = vpop.eup %1724  ;;  %950 = vadd.xlane.f32.xlu0 %v949_v37 }
 0x6c1   : > { %v946_v39 = vsel %vm363_vm1, %v1725_v38, 0.0 }
 0x6c4   : > { %947 = vadd.xlane.f32.xlu0 %v946_v39 }
 0x6da   : > { %956 = vrot.lane.b32.xlu0 %v1803_v1, %s1755_s16 }
 0x6e1   : > { %v1223_v40 = vpop.xlane.xlu1 %1222 }
 0x6e2   : > { %v1227_v41 = vsub.f32 %v1213_v27, %v1223_v40 }
 0x6e4   : > { %v1229_v42 = vmul.f32 1.442695, %v1227_v41 }
 0x6e6   : > { %1726 = vpow2.f32 %v1229_v42 }
 0x6f3   : > { %v1727_v44 = vpop.eup %1726 }
 0x6f4   : > { %v1233_v46 = vsel %vm363_vm1, %v1727_v44, 0.0 }
 0x6f5   : > { %1234 = vadd.xlane.f32.xlu1 %v1233_v46 }
 0x6f9   : > { %1225 = vmax.xlane.f32.xlu0 %v1224_v47 }
 0x706   : > { %1245 = vrot.lane.b32.xlu1 %v1801_v0, %s1756_s17 }
 0x749   : > { %v951_v48 = vpop.xlane.xlu0 %950 }
 0x74a   : > { %1728 = vrcp.f32 %v951_v48 }
 0x74d   : > { %v948_v49 = vpop.xlane.xlu0 %947 }
 0x74e   : > { %1730 = vrcp.f32 %v948_v49 }
 0x751   : > { %v957_v50 = vpop.permute.xlu0 %956 }
 0x752   : > { %1658 = vmatprep.subr.mxu1 %v957_v50 }
 0x753   : > { %1659 = vmatpush3.msra.mxu1 %v957_v50 }
 0x754   : > { %1663 = vmatprep.subr.mxu1 %v1043_v60 }
 0x757   : > { %v1729_v51 = vpop.eup %1728 }
 0x758   : > { %v955_v54 = vmul.f32 %v1729_v51, %v1723_v36 }
 0x75b   : > { %v1731_v52 = vpop.eup %1730 }
 0x75c   : > { %v954_v53 = vmul.f32 %v1731_v52, %v1725_v38 }
 0x75e   : > { %1660 = vmatprep.mubr.msk.f32.mxu1 %vm363_vm1, %v954_v53 }
 0x75f   : > { %1661 = vmatmul.mubr.msk.f32.vlgmr.msra.gmra.mxu1 %vm363_vm1, %v955_v54 }
 0x760   : > { %1664 = vmatpush3.msra.mxu1 %v1043_v60 }
 0x77e   : > { %v1235_v59 = vpop.xlane.xlu1 %1234 }
 0x782   : > { %v1226_v55 = vpop.xlane.xlu0 %1225  ;;  %v1246_v61 = vpop.permute.xlu1 %1245 }
 0x783   : > { %v1228_v56 = vsub.f32 %v1218_v45, %v1226_v55  ;;  %1675 = vmatprep.subr.mxu1 %v1246_v61 }
 0x785   : > { %v1231_v57 = vmul.f32 1.442695, %v1228_v56 }
 0x787   : > { %1732 = vpow2.f32 %v1231_v57 }
 0x788   : > { %1734 = vrcp.f32 %v1235_v59 }
 0x794   : > { %v1733_v0 = vpop.eup %1732 }
 0x795   : > { %v1236_v58 = vsel %vm363_vm1, %v1733_v0, 0.0  ;;  %v1735_v2 = vpop.eup %1734 }
 0x796   : > { %1237 = vadd.xlane.f32.xlu0 %v1236_v58  ;;  %v1241_v6 = vmul.f32 %v1735_v2, %v1727_v44 }
 0x7ac   : > { %1243 = vrot.lane.b32.xlu0 %v1803_v1, %s1756_s17 }
 0x81f   : > { %v1238_v3 = vpop.xlane.xlu0 %1237  ;;  %v1662_v4 = vpop.f32.mrf.mxu1 }
 0x820   : > { %1736 = vrcp.f32 %v1238_v3 }
 0x821   : > { %v1034_v5 = vpop.f32.mrf.mxu1 }
 0x822   : > { %1665 = vmatprep.mubr.msk.f32.mxu1 %vm277_vm0, %v1034_v5 }
 0x823   : > { %1666 = vmatmul.mubr.msk.f32.vlgmr.msra.gmra.mxu1 %vm277_vm0, %v1662_v4  ;;  %v1244_v7 = vpop.permute.xlu0 %1243 }
 0x824   : > { %1679 = vmatprep.mubr.msk.f32.mxu1 %vm363_vm1, %v1241_v6  ;;  %1676 = vmatpush3.msra.mxu1 %v1246_v61 }
 0x825   : > { %1677 = vmatprep.subr.mxu1 %v1244_v7 }
 0x826   : > { %1678 = vmatpush3.msra.mxu1 %v1244_v7 }
 0x827   : > { %1682 = vmatprep.subr.mxu1 %v1330_v9 }
 0x82d   : > { %v1737_v1 = vpop.eup %1736 }
 0x82e   : > { %v1242_v8 = vmul.f32 %v1737_v1, %v1733_v0 }
 0x830   : > { %1680 = vmatmul.mubr.msk.f32.vlgmr.msra.gmra.mxu1 %vm363_vm1, %v1242_v8 }
 0x831   : > { %1683 = vmatpush3.msra.mxu1 %v1330_v9 }
 0x8e3   : > { %v1667_v11 = vpop.f32.mrf.mxu1 }
 0x8e4   : > { %v1126_v13 = vadd.f32 %v1667_v11, %v837_v10 }
 0x8e5   : > { %v1116_v16 = vpop.f32.mrf.mxu1 }
 0x8e6   : > { %v1125_v17 = vadd.f32 %v1116_v16, %v832_v12 }
 0x8f0   : > { %v1681_v18 = vpop.f32.mrf.mxu1 }
 0x8f2   : > { %v1321_v19 = vpop.f32.mrf.mxu1 }
 0x8f3   : > { %1684 = vmatprep.mubr.msk.f32.mxu1 %vm277_vm0, %v1321_v19 }
 0x8f4   : > { %1685 = vmatmul.mubr.msk.f32.vlgmr.msra.gmra.mxu1 %vm277_vm0, %v1681_v18 }
 0x9b4   : > { %v1686_v20 = vpop.f32.mrf.mxu1 }
 0x9b5   : > { %v1413_v14 = vadd.f32 %v1686_v20, %v1126_v13 }
 0x9b6   : > { %v1403_v22 = vpop.f32.mrf.mxu1 }
 0x9b7   : > { %v1417_v24 = vadd.f32 %v1415_v21, %v1413_v14  ;;  %v1412_v25 = vadd.f32 %v1403_v22, %v1125_v17 }
 0x9b9   : > { %v1426_v26 = vadd.f32 %v1560_v15, %v1417_v24  ;;  %v1416_v27 = vadd.f32 %v1414_v23, %v1412_v25 }
 0x9bb   : > { %1429 = vst.msk [vmem:[%s264_s6 + $0x8] sm:$0xff] %vm1427_vm2, %v1426_v26  ;;  %v1425_v28 = vadd.f32 %v1560_v15, %v1416_v27 }
 0x9bd   : > { %1428 = vst.msk [vmem:[%s264_s6] sm:$0xff] %vm1427_vm2, %v1425_v28 }
 0x9be PF: > { %s15_s18 = sadd.s32 1, %s1744_s18  }
 0x9bf   : > { %p12_p4 = scmp.ge.s32.totalorder %s15_s18, 4  }
 0x9c1   :  { %14 = sbr.rel (!%p12_p4) target bundleno = 1 (0x1), region = 79 }

// kernel: forward.31
= control target key start
LH: loop header
LB: loop body
LE: loop exit
PB: predicated region body
PF: predicated region fallthrough
CT: control target
= control target key end

     0   :  { %s1703_s15 = smov 0   ;;  %s1839_s0 = inlined_call_operand.vmem [shape: f32[2,16,96], index: 0, kind: input, shape index: {}]   ;;  %s1840_s1 = inlined_call_operand.vmem [shape: f32[2,16,32], index: 1, kind: input, shape index: {}]   ;;  %s1841_s2 = inlined_call_operand.vmem [shape: f32[32,32], index: 2, kind: input, shape index: {}]   ;;  %s1842_s3 = inlined_call_operand.vmem [shape: f32[1,32], index: 3, kind: input, shape index: {}]   ;;  %s1843_s4 = inlined_call_operand.vmem [shape: f32[2,16,32], index: 4, kind: output, shape index: {}]  }
   0x1 LB: > { %s1439_s16 = sadd.s32 4294967295, %s1665_s15   ;;  %p1443_p0 = scmp.ge.s32.totalorder %s1665_s15, 1  ;;  %s1665_s15 = sphi %s1703_s15, %s14_s15  }
   0x2   : > { %p172_p1 = scmp.lt.s32.totalorder %s1665_s15, 3 }
   0x4   : > { %p173_p2 = pnand %p1443_p0, %p172_p1 }
   0x5   : > { %p203_p3 = scmp.lt.s32.totalorder (!%p173_p2), %s1439_s16, 1  ;;  %s1667_s21 = smov (!%p173_p2), 96  }
   0x6   : > { %176 = sbr.rel (%p173_p2) target bundleno = 2488 (0x9b8), region = 36  ;;  %s1668_s22 = smov (!%p173_p2), 64  }
   0x7   : > { %s1669_s23 = smov (!%p173_p2), 120   ;;  %s1670_s24 = smov (!%p173_p2), 88  }
   0x8   : > { %s1671_s27 = smov (!%p173_p2), 56   ;;  %s1672_s28 = smov (!%p173_p2), 80  }
   0x9   : > { %s1673_s29 = smov (!%p173_p2), 112   ;;  %s1674_s30 = smov (!%p173_p2), 72  }
   0xa   : > { %s1675_s5 = smov (!%p173_p2), 104   ;;  %s1676_s8 = smov (!%p173_p2), 48  }
   0xb   : > { %s1845_s16 = smov (!%p203_p3, %s1439_s16), 1  ;;  %vm228_vm0 = vcmask 64512   ;;  %vm314_vm1 = vcmask 130048   ;;  %v424_v32 = vld [vmem:[%s1841_s2] sm:$0xff]  ;;  %v625_v53 = vld [vmem:[%s1841_s2 + $0x8] sm:$0xff]  ;;  %s1677_s9 = smov 40  }
   0xc   : > { %s1711_s17 = sshll.u32 %s1845_s16, 4  ;;  %vm1369_vm2 = vcmask 261120  }
   0xd   : > { %s207_s20 = scalar_lea.vmem %s1839_s0, %s1711_s17  ;;  %s212_s18 = scalar_lea.vmem %s1840_s1, %s1711_s17 }
   0xe   : > { %v1717_v0 = vld [vmem:[%s207_s20 + $0x8] sm:$0xff]  ;;  %v1719_v1 = vld [vmem:[%s207_s20] sm:$0xff] }
   0xf   : > { %226 = vrot.lane.b32.xlu0 %v1717_v0, %s1667_s21  ;;  %v1723_v2 = vmul.f32 0.35355338, %v1719_v1  ;;  %v1732_v5 = vmul.f32 0.35355338, %v1717_v0 }
  0x11   : > { %1536 = vmatprep.mubr.msk.f32.mxu0 %vm228_vm0, %v1723_v2 }
  0x13   : > { %224 = vrot.lane.b32.xlu0 %v1719_v1, %s1667_s21 }
  0x81   : > { %v227_v3 = vpop.permute.xlu0 %226 }
  0x82   : > { %1532 = vmatprep.subr.msk.mxu0 %vm228_vm0, %v227_v3 }
  0x83   : > { %1533 = vmatpush3.xpose.msk.msra.mxu0 %vm228_vm0, %v227_v3 }
  0x85   : > { %v225_v4 = vpop.permute.xlu0 %224 }
  0x86   : > { %1534 = vmatprep.subr.msk.mxu0 %vm228_vm0, %v225_v4 }
  0x87   : > { %1535 = vmatpush3.xpose.msk.msra.mxu0 %vm228_vm0, %v225_v4 }
  0x8a   : > { %1537 = vmatmul.mubr.msk.f32.vlgmr.msra.gmra.mxu0 %vm228_vm0, %v1732_v5 }
 0x14a   : > { %v1538_v6 = vpop.f32.mrf.mxu0 }
 0x14b   : > { %v318_v9 = vsel %vm314_vm1, %v1538_v6, -inf }
 0x14c   : > { %v305_v7 = vpop.f32.mrf.mxu0 }
 0x14d   : > { %v315_v8 = vsel %vm314_vm1, %v305_v7, -inf }
 0x14e   : > { %316 = vmax.xlane.f32.xlu1 %v315_v8 }
 0x152   : > { %319 = vmax.xlane.f32.xlu1 %v318_v9 }
 0x1d7   : > { %v317_v10 = vpop.xlane.xlu1 %316 }
 0x1d8   : > { %v321_v11 = vsub.f32 %v305_v7, %v317_v10 }
 0x1da   : > { %v323_v12 = vmul.f32 1.442695, %v321_v11 }
 0x1db   : > { %v320_v13 = vpop.xlane.xlu1 %319 }
 0x1dc   : > { %1627 = vpow2.f32 %v323_v12  ;;  %v322_v14 = vsub.f32 %v1538_v6, %v320_v13 }
 0x1de   : > { %v325_v15 = vmul.f32 1.442695, %v322_v14 }
 0x1e0   : > { %1629 = vpow2.f32 %v325_v15 }
 0x1e9   : > { %v1628_v16 = vpop.eup %1627 }
 0x1ea   : > { %v327_v17 = vsel %vm314_vm1, %v1628_v16, 0.0 }
 0x1eb   : > { %328 = vadd.xlane.f32.xlu0 %v327_v17 }
 0x1ed   : > { %v1630_v18 = vpop.eup %1629 }
 0x1ee   : > { %v330_v19 = vsel %vm314_vm1, %v1630_v18, 0.0 }
 0x1ef   : > { %331 = vadd.xlane.f32.xlu1 %v330_v19 }
 0x200   : > { %339 = vrot.lane.b32.xlu1 %v1717_v0, %s1668_s22 }
 0x201   : > { %425 = vrot.lane.b32.xlu0 %v1723_v2, %s1669_s23 }
 0x204   : > { %337 = vrot.lane.b32.xlu1 %v1719_v1, %s1668_s22 }
 0x208   : > { %431 = vrot.lane.b32.xlu1 %v1717_v0, %s1670_s24 }
 0x20c   : > { %429 = vrot.lane.b32.xlu1 %v1719_v1, %s1670_s24 }
 0x210   : > { %427 = vrot.lane.b32.xlu1 %v1732_v5, %s1669_s23  ;;  %s217_s23 = scalar_lea.vmem %s1843_s4, %s1711_s17 }
 0x274   : > { %v329_v20 = vpop.xlane.xlu0 %328 }
 0x275   : > { %1631 = vrcp.f32 %v329_v20 }
 0x278   : > { %v332_v21 = vpop.xlane.xlu1 %331  ;;  %v426_v29 = vpop.permute.xlu0 %425 }
 0x279   : > { %1633 = vrcp.f32 %v332_v21 }
 0x27c   : > { %v340_v22 = vpop.permute.xlu1 %339 }
 0x27d   : > { %1539 = vmatprep.subr.mxu1 %v340_v22 }
 0x27e   : > { %1540 = vmatpush3.msra.mxu1 %v340_v22 }
 0x280   : > { %v338_v23 = vpop.permute.xlu1 %337 }
 0x281   : > { %1541 = vmatprep.subr.mxu1 %v338_v23 }
 0x282   : > { %v1632_v24 = vpop.eup %1631  ;;  %1542 = vmatpush3.msra.mxu1 %v338_v23 }
 0x283   : > { %v335_v25 = vmul.f32 %v1632_v24, %v1628_v16 }
 0x284   : > { %v432_v26 = vpop.permute.xlu1 %431 }
 0x285   : > { %1543 = vmatprep.mubr.msk.f32.mxu1 %vm314_vm1, %v335_v25  ;;  %1546 = vmatprep.subr.msk.mxu1 %vm228_vm0, %v432_v26 }
 0x286   : > { %v1634_v27 = vpop.eup %1633 }
 0x287   : > { %v336_v28 = vmul.f32 %v1634_v27, %v1630_v18 }
 0x288   : > { %v430_v30 = vpop.permute.xlu1 %429 }
 0x289   : > { %1544 = vmatmul.mubr.msk.f32.vlgmr.msra.gmra.mxu1 %vm314_vm1, %v336_v28 }
 0x28a   : > { %1547 = vmatpush3.xpose.msk.msra.mxu1 %vm228_vm0, %v432_v26  ;;  %1550 = vmatprep.mubr.msk.f32.mxu1 %vm228_vm0, %v426_v29 }
 0x28b   : > { %1548 = vmatprep.subr.msk.mxu1 %vm228_vm0, %v430_v30 }
 0x28c   : > { %v428_v31 = vpop.permute.xlu1 %427 }
 0x28e   : > { %1549 = vmatpush3.xpose.msk.msra.mxu1 %vm228_vm0, %v430_v30 }
 0x28f   : > { %1565 = vmatprep.subr.mxu1 %v424_v32 }
 0x291   : > { %1551 = vmatmul.mubr.msk.f32.vlgmr.msra.gmra.mxu1 %vm228_vm0, %v428_v31 }
 0x292   : > { %1566 = vmatpush3.msra.mxu1 %v424_v32 }
 0x349   : > { %v1545_v33 = vpop.f32.mrf.mxu1 }
 0x34b   : > { %v415_v34 = vpop.f32.mrf.mxu1 }
 0x34c   : > { %1567 = vmatprep.mubr.msk.f32.mxu1 %vm228_vm0, %v415_v34 }
 0x34d   : > { %1568 = vmatmul.mubr.msk.f32.vlgmr.msra.gmra.mxu1 %vm228_vm0, %v1545_v33 }
 0x351   : > { %v1552_v35 = vpop.f32.mrf.mxu1 }
 0x352   : > { %v519_v36 = vsel %vm314_vm1, %v1552_v35, -inf }
 0x353   : > { %520 = vmax.xlane.f32.xlu0 %v519_v36  ;;  %v507_v37 = vpop.f32.mrf.mxu1 }
 0x354   : > { %v516_v38 = vsel %vm314_vm1, %v507_v37, -inf }
 0x355   : > { %517 = vmax.xlane.f32.xlu1 %v516_v38 }
 0x369   : > { %538 = vrot.lane.b32.xlu0 %v1719_v1, %s1671_s27 }
 0x36d   : > { %788 = vrot.lane.b32.xlu0 %v1723_v2, %s1673_s29 }
 0x371   : > { %1078 = vrot.lane.b32.xlu0 %v1717_v0, %s1674_s30 }
 0x375   : > { %1072 = vrot.lane.b32.xlu0 %v1723_v2, %s1675_s5 }
 0x3dc   : > { %v521_v39 = vpop.xlane.xlu0 %520 }
 0x3dd   : > { %v523_v40 = vsub.f32 %v1552_v35, %v521_v39 }
 0x3de   : > { %v518_v41 = vpop.xlane.xlu1 %517 }
 0x3df   : > { %v526_v42 = vmul.f32 1.442695, %v523_v40  ;;  %v522_v43 = vsub.f32 %v507_v37, %v518_v41 }
 0x3e0   : > { %v539_v52 = vpop.permute.xlu0 %538 }
 0x3e1   : > { %1635 = vpow2.f32 %v526_v42  ;;  %v524_v44 = vmul.f32 1.442695, %v522_v43 }
 0x3e3   : > { %1637 = vpow2.f32 %v524_v44  ;;  %v988_v44 = vld [vmem:[%s1841_s2 + $0x10] sm:$0xff] }
 0x3e4   : > { %v789_v62 = vpop.permute.xlu0 %788 }
 0x3e8   : > { %v1079_v63 = vpop.permute.xlu0 %1078 }
 0x3ec   : > { %v1073_v3 = vpop.permute.xlu0 %1072 }
 0x3ee   : > { %v1636_v45 = vpop.eup %1635 }
 0x3ef   : > { %v531_v46 = vsel %vm314_vm1, %v1636_v45, 0.0 }
 0x3f0   : > { %v1638_v47 = vpop.eup %1637  ;;  %532 = vadd.xlane.f32.xlu1 %v531_v46 }
 0x3f1   : > { %v528_v48 = vsel %vm314_vm1, %v1638_v47, 0.0 }
 0x3f4   : > { %529 = vadd.xlane.f32.xlu1 %v528_v48 }
 0x405   : > { %540 = vrot.lane.b32.xlu1 %v1717_v0, %s1671_s27 }
 0x409   : > { %794 = vrot.lane.b32.xlu1 %v1717_v0, %s1672_s28 }
 0x40d   : > { %792 = vrot.lane.b32.xlu1 %v1719_v1, %s1672_s28  ;;  %v1569_v46 = vpop.f32.mrf.mxu1 }
 0x411   : > { %790 = vrot.lane.b32.xlu1 %v1732_v5, %s1673_s29 }
 0x415   : > { %1076 = vrot.lane.b32.xlu1 %v1719_v1, %s1674_s30 }
 0x419   : > { %1074 = vrot.lane.b32.xlu1 %v1732_v5, %s1675_s5 }
 0x479   : > { %v533_v49 = vpop.xlane.xlu1 %532 }
 0x47a   : > { %1639 = vrcp.f32 %v533_v49 }
 0x47d   : > { %v530_v50 = vpop.xlane.xlu1 %529 }
 0x47e   : > { %1641 = vrcp.f32 %v530_v50 }
 0x481   : > { %v541_v51 = vpop.permute.xlu1 %540 }
 0x482   : > { %1553 = vmatprep.subr.mxu0 %v541_v51 }
 0x483   : > { %1554 = vmatpush3.msra.mxu0 %v541_v51 }
 0x484   : > { %1555 = vmatprep.subr.mxu0 %v539_v52 }
 0x485   : > { %1556 = vmatpush3.msra.mxu0 %v539_v52  ;;  %v795_v58 = vpop.permute.xlu1 %794 }
 0x486   : > { %1560 = vmatprep.subr.mxu0 %v625_v53 }
 0x487   : > { %v1640_v54 = vpop.eup %1639 }
 0x488   : > { %v537_v57 = vmul.f32 %v1640_v54, %v1636_v45 }
 0x489   : > { %v793_v60 = vpop.permute.xlu1 %792 }
 0x48b   : > { %v1642_v55 = vpop.eup %1641 }
 0x48c   : > { %v536_v56 = vmul.f32 %v1642_v55, %v1638_v47  ;;  %v779_v47 = vpop.f32.mrf.mxu1  ;;  %v1272_v55 = vld [vmem:[%s1841_s2 + $0x18] sm:$0xff] }
 0x48d   : > { %v791_v2 = vpop.permute.xlu1 %790 }
 0x48e   : > { %1557 = vmatprep.mubr.msk.f32.mxu0 %vm314_vm1, %v536_v56 }
 0x48f   : > { %1558 = vmatmul.mubr.msk.f32.vlgmr.msra.gmra.mxu0 %vm314_vm1, %v537_v57 }
 0x490   : > { %1561 = vmatpush3.msra.mxu0 %v625_v53 }
 0x491   : > { %1570 = vmatprep.subr.msk.mxu0 %vm228_vm0, %v795_v58  ;;  %v1077_v4 = vpop.permute.xlu1 %1076 }
 0x495   : > { %v1075_v5 = vpop.permute.xlu1 %1074 }
 0x54f   : > { %v1559_v59 = vpop.f32.mrf.mxu0 }
 0x551   : > { %v616_v61 = vpop.f32.mrf.mxu0 }
 0x552   : > { %1562 = vmatprep.mubr.msk.f32.mxu0 %vm228_vm0, %v616_v61 }
 0x553   : > { %1563 = vmatmul.mubr.msk.f32.vlgmr.msra.gmra.mxu0 %vm228_vm0, %v1559_v59 }
 0x554   : > { %1571 = vmatpush3.xpose.msk.msra.mxu0 %vm228_vm0, %v795_v58  ;;  %1574 = vmatprep.mubr.msk.f32.mxu0 %vm228_vm0, %v789_v62 }
 0x555   : > { %1572 = vmatprep.subr.msk.mxu0 %vm228_vm0, %v793_v60 }
 0x558   : > { %1573 = vmatpush3.xpose.msk.msra.mxu0 %vm228_vm0, %v793_v60 }
 0x559   : > { %1589 = vmatprep.subr.msk.mxu0 %vm228_vm0, %v1079_v63 }
 0x55b   : > { %1575 = vmatmul.mubr.msk.f32.vlgmr.msra.gmra.mxu0 %vm228_vm0, %v791_v2 }
 0x55c   : > { %1590 = vmatpush3.xpose.msk.msra.mxu0 %vm228_vm0, %v1079_v63  ;;  %1593 = vmatprep.mubr.msk.f32.mxu0 %vm228_vm0, %v1073_v3  ;;  %v1357_v3 = vld [vmem:[%s212_s18 + $0x8] sm:$0xff] }
 0x55d   : > { %1591 = vmatprep.subr.msk.mxu0 %vm228_vm0, %v1077_v4 }
 0x560   : > { %1592 = vmatpush3.xpose.msk.msra.mxu0 %vm228_vm0, %v1077_v4 }
 0x563   : > { %1594 = vmatmul.mubr.msk.f32.vlgmr.msra.gmra.mxu0 %vm228_vm0, %v1075_v5  ;;  %v1482_v5 = vld [vmem:[%s1842_s3] ss:$0 sm:$0xff] }
 0x613   : > { %v1793_v6 = vpop.f32.mrf.mxu0 }
 0x614   : > { %v785_v56 = vadd.f32 %v1569_v46, %v1793_v6 }
 0x615   : > { %v1795_v7 = vpop.f32.mrf.mxu0 }
 0x616   : > { %v780_v58 = vadd.f32 %v779_v47, %v1795_v7  ;;  %v1356_v7 = vld [vmem:[%s212_s18] sm:$0xff] }
 0x61b   : > { %v1576_v8 = vpop.f32.mrf.mxu0 }
 0x61c   : > { %v882_v9 = vsel %vm314_vm1, %v1576_v8, -inf }
 0x61d   : > { %883 = vmax.xlane.f32.xlu1 %v882_v9  ;;  %v870_v10 = vpop.f32.mrf.mxu0 }
 0x61e   : > { %v879_v11 = vsel %vm314_vm1, %v870_v10, -inf }
 0x61f   : > { %880 = vmax.xlane.f32.xlu0 %v879_v11 }
 0x623   : > { %v1595_v12 = vpop.f32.mrf.mxu0 }
 0x624   : > { %v1166_v31 = vsel %vm314_vm1, %v1595_v12, -inf }
 0x625   : > { %v1154_v13 = vpop.f32.mrf.mxu0 }
 0x626   : > { %v1163_v14 = vsel %vm314_vm1, %v1154_v13, -inf }
 0x62e   : > { %903 = vrot.lane.b32.xlu1 %v1717_v0, %s1676_s8 }
 0x652   : > { %1164 = vmax.xlane.f32.xlu1 %v1163_v14 }
 0x6a6   : > { %v884_v15 = vpop.xlane.xlu1 %883 }
 0x6a7   : > { %v886_v16 = vsub.f32 %v1576_v8, %v884_v15 }
 0x6a8   : > { %v881_v17 = vpop.xlane.xlu0 %880 }
 0x6a9   : > { %v889_v18 = vmul.f32 1.442695, %v886_v16  ;;  %v885_v19 = vsub.f32 %v870_v10, %v881_v17 }
 0x6aa   : > { %v904_v20 = vpop.permute.xlu1 %903 }
 0x6ab   : > { %1643 = vpow2.f32 %v889_v18  ;;  %v887_v21 = vmul.f32 1.442695, %v885_v19  ;;  %1577 = vmatprep.subr.mxu1 %v904_v20 }
 0x6ac   : > { %1578 = vmatpush3.msra.mxu1 %v904_v20 }
 0x6ad   : > { %1645 = vpow2.f32 %v887_v21 }
 0x6b8   : > { %v1644_v22 = vpop.eup %1643 }
 0x6b9   : > { %v894_v23 = vsel %vm314_vm1, %v1644_v22, 0.0 }
 0x6ba   : > { %v1646_v24 = vpop.eup %1645  ;;  %895 = vadd.xlane.f32.xlu0 %v894_v23 }
 0x6bb   : > { %v891_v25 = vsel %vm314_vm1, %v1646_v24, 0.0 }
 0x6be   : > { %892 = vadd.xlane.f32.xlu0 %v891_v25 }
 0x6d4   : > { %901 = vrot.lane.b32.xlu0 %v1719_v1, %s1676_s8 }
 0x6db   : > { %v1165_v26 = vpop.xlane.xlu1 %1164 }
 0x6dc   : > { %v1169_v27 = vsub.f32 %v1154_v13, %v1165_v26 }
 0x6de   : > { %v1171_v28 = vmul.f32 1.442695, %v1169_v27 }
 0x6e0   : > { %1647 = vpow2.f32 %v1171_v28 }
 0x6ed   : > { %v1648_v29 = vpop.eup %1647 }
 0x6ee   : > { %v1175_v30 = vsel %vm314_vm1, %v1648_v29, 0.0 }
 0x6ef   : > { %1176 = vadd.xlane.f32.xlu1 %v1175_v30 }
 0x6f3   : > { %1167 = vmax.xlane.f32.xlu0 %v1166_v31 }
 0x700   : > { %1187 = vrot.lane.b32.xlu1 %v1717_v0, %s1677_s9 }
 0x743   : > { %v896_v32 = vpop.xlane.xlu0 %895 }
 0x744   : > { %1649 = vrcp.f32 %v896_v32 }
 0x747   : > { %v893_v33 = vpop.xlane.xlu0 %892 }
 0x748   : > { %1651 = vrcp.f32 %v893_v33 }
 0x74b   : > { %v902_v34 = vpop.permute.xlu0 %901 }
 0x74c   : > { %1579 = vmatprep.subr.mxu1 %v902_v34 }
 0x74d   : > { %1580 = vmatpush3.msra.mxu1 %v902_v34 }
 0x74e   : > { %1584 = vmatprep.subr.mxu1 %v988_v44 }
 0x751   : > { %v1650_v35 = vpop.eup %1649 }
 0x752   : > { %v900_v38 = vmul.f32 %v1650_v35, %v1644_v22 }
 0x755   : > { %v1652_v36 = vpop.eup %1651 }
 0x756   : > { %v899_v37 = vmul.f32 %v1652_v36, %v1646_v24 }
 0x758   : > { %1581 = vmatprep.mubr.msk.f32.mxu1 %vm314_vm1, %v899_v37 }
 0x759   : > { %1582 = vmatmul.mubr.msk.f32.vlgmr.msra.gmra.mxu1 %vm314_vm1, %v900_v38 }
 0x75a   : > { %1585 = vmatpush3.msra.mxu1 %v988_v44 }
 0x778   : > { %v1177_v43 = vpop.xlane.xlu1 %1176 }
 0x77c   : > { %v1168_v39 = vpop.xlane.xlu0 %1167  ;;  %v1188_v45 = vpop.permute.xlu1 %1187 }
 0x77d   : > { %v1170_v40 = vsub.f32 %v1595_v12, %v1168_v39  ;;  %1596 = vmatprep.subr.mxu1 %v1188_v45 }
 0x77f   : > { %v1173_v41 = vmul.f32 1.442695, %v1170_v40 }
 0x781   : > { %1653 = vpow2.f32 %v1173_v41 }
 0x782   : > { %1655 = vrcp.f32 %v1177_v43 }
 0x78e   : > { %v1654_v0 = vpop.eup %1653 }
 0x78f   : > { %v1178_v42 = vsel %vm314_vm1, %v1654_v0, 0.0  ;;  %v1656_v48 = vpop.eup %1655 }
 0x790   : > { %1179 = vadd.xlane.f32.xlu0 %v1178_v42  ;;  %v1183_v52 = vmul.f32 %v1656_v48, %v1648_v29 }
 0x7a6   : > { %1185 = vrot.lane.b32.xlu0 %v1719_v1, %s1677_s9 }
 0x819   : > { %v1180_v49 = vpop.xlane.xlu0 %1179  ;;  %v1583_v50 = vpop.f32.mrf.mxu1 }
 0x81a   : > { %1657 = vrcp.f32 %v1180_v49 }
 0x81b   : > { %v979_v51 = vpop.f32.mrf.mxu1 }
 0x81c   : > { %1586 = vmatprep.mubr.msk.f32.mxu1 %vm228_vm0, %v979_v51 }
 0x81d   : > { %1587 = vmatmul.mubr.msk.f32.vlgmr.msra.gmra.mxu1 %vm228_vm0, %v1583_v50  ;;  %v1186_v53 = vpop.permute.xlu0 %1185 }
 0x81e   : > { %1600 = vmatprep.mubr.msk.f32.mxu1 %vm314_vm1, %v1183_v52  ;;  %1597 = vmatpush3.msra.mxu1 %v1188_v45 }
 0x81f   : > { %1598 = vmatprep.subr.mxu1 %v1186_v53 }
 0x820   : > { %1599 = vmatpush3.msra.mxu1 %v1186_v53 }
 0x821   : > { %1603 = vmatprep.subr.mxu1 %v1272_v55 }
 0x827   : > { %v1658_v1 = vpop.eup %1657 }
 0x828   : > { %v1184_v54 = vmul.f32 %v1658_v1, %v1654_v0 }
 0x82a   : > { %1601 = vmatmul.mubr.msk.f32.vlgmr.msra.gmra.mxu1 %vm314_vm1, %v1184_v54 }
 0x82b   : > { %1604 = vmatpush3.msra.mxu1 %v1272_v55 }
 0x8dd   : > { %v1588_v57 = vpop.f32.mrf.mxu1 }
 0x8de   : > { %v1071_v59 = vadd.f32 %v1588_v57, %v785_v56 }
 0x8df   : > { %v1061_v60 = vpop.f32.mrf.mxu1 }
 0x8e0   : > { %v1070_v61 = vadd.f32 %v1061_v60, %v780_v58 }
 0x8ea   : > { %v1602_v62 = vpop.f32.mrf.mxu1 }
 0x8ec   : > { %v1263_v63 = vpop.f32.mrf.mxu1 }
 0x8ed   : > { %1605 = vmatprep.mubr.msk.f32.mxu1 %vm228_vm0, %v1263_v63 }
 0x8ee   : > { %1606 = vmatmul.mubr.msk.f32.vlgmr.msra.gmra.mxu1 %vm228_vm0, %v1602_v62 }
 0x9ae   : > { %v1607_v2 = vpop.f32.mrf.mxu1 }
 0x9af   : > { %v1355_v4 = vadd.f32 %v1607_v2, %v1071_v59 }
 0x9b0   : > { %v1345_v6 = vpop.f32.mrf.mxu1 }
 0x9b1   : > { %v1359_v8 = vadd.f32 %v1357_v3, %v1355_v4  ;;  %v1354_v9 = vadd.f32 %v1345_v6, %v1070_v61 }
 0x9b3   : > { %v1368_v10 = vadd.f32 %v1482_v5, %v1359_v8  ;;  %v1358_v11 = vadd.f32 %v1356_v7, %v1354_v9 }
 0x9b5   : > { %1371 = vst.msk [vmem:[%s217_s23 + $0x8] sm:$0xff] %vm1369_vm2, %v1368_v10  ;;  %v1367_v12 = vadd.f32 %v1482_v5, %v1358_v11 }
 0x9b7   : > { %1370 = vst.msk [vmem:[%s217_s23] sm:$0xff] %vm1369_vm2, %v1367_v12 }
 0x9b8 PF: > { %s14_s15 = sadd.s32 1, %s1665_s15  }
 0x9b9   : > { %p11_p4 = scmp.ge.s32.totalorder %s14_s15, 4  }
 0x9bb   :  { %13 = sbr.rel (!%p11_p4) target bundleno = 1 (0x1), region = 69 }

// kernel: forward.36
= control target key start
LH: loop header
LB: loop body
LE: loop exit
PB: predicated region body
PF: predicated region fallthrough
CT: control target
= control target key end

     0   :  { %vm35_vm0 = vcmask 261120   ;;  %vm194_vm1 = vcmask 1043456   ;;  %vm181_vm2 = vcmask 293888   ;;  %vm283_vm3 = vcmask 72704   ;;  %s449_s1 = inlined_call_operand.vmem [shape: f32[32,36], index: 1, kind: input, shape index: {}]   ;;  %s450_s0 = inlined_call_operand.vmem [shape: f32[32,32], index: 0, kind: input, shape index: {}]   ;;  %s451_s3 = inlined_call_operand.vmem [shape: f32[36,9], index: 3, kind: input, shape index: {}]   ;;  %s452_s2 = inlined_call_operand.vmem [shape: f32[1,36], index: 2, kind: input, shape index: {}]   ;;  %s453_s4 = inlined_call_operand.vmem [shape: f32[1,9], index: 4, kind: input, shape index: {}]   ;;  %s454_s5 = inlined_call_operand.vmem [shape: f32[32,9], index: 5, kind: output, shape index: {}]  }
   0x1   :  { %v27_v0 = vld [vmem:[%s449_s1 + $0x18] sm:$0xff]  ;;  %v26_v1 = vld [vmem:[%s449_s1 + $0x10] sm:$0xff]  ;;  %v20_v2 = vld [vmem:[%s450_s0] sm:$0xff] }
   0x2   :  { %320 = vmatprep.subr.mxu0 %v27_v0  ;;  %v25_v3 = vld [vmem:[%s449_s1 + $0x8] sm:$0xff]  ;;  %328 = vmatprep.mubr.msk.f32.mxu0 %vm35_vm0, %v20_v2  ;;  %v24_v4 = vld [vmem:[%s449_s1] sm:$0xff]  ;;  %v22_v6 = vld [vmem:[%s450_s0 + $0x10] sm:$0xff] }
   0x3   :  { %321 = vmatpush3.msra.mxu0 %v27_v0  ;;  %v21_v5 = vld [vmem:[%s450_s0 + $0x8] sm:$0xff]  ;;  %v23_v7 = vld [vmem:[%s450_s0 + $0x18] sm:$0xff]  ;;  %v173_v8 = vld [vmem:[%s451_s3 + $0x20] sm:$0xf] }
   0x4   :  { %322 = vmatprep.subr.mxu0 %v26_v1  ;;  %v172_v9 = vld [vmem:[%s451_s3 + $0x18] sm:$0xff]  ;;  %334 = vmatprep.subr.msk.mxu1 %vm194_vm1, %v173_v8  ;;  %v171_v10 = vld [vmem:[%s451_s3 + $0x10] sm:$0xff]  ;;  %v170_v11 = vld [vmem:[%s451_s3 + $0x8] sm:$0xff] }
   0x5   :  { %323 = vmatpush3.msra.mxu0 %v26_v1  ;;  %335 = vmatpush3.msk.msra.mxu1 %vm194_vm1, %v173_v8  ;;  %v169_v12 = vld [vmem:[%s451_s3] sm:$0xff] }
   0x6   :  { %324 = vmatprep.subr.mxu0 %v25_v3  ;;  %336 = vmatprep.subr.mxu1 %v172_v9  ;;  %v292_v13 = vld [vmem:[%s452_s2] ss:$0 sm:$0xff] }
   0x7   :  { %325 = vmatpush3.msra.mxu0 %v25_v3  ;;  %337 = vmatpush3.msra.mxu1 %v172_v9  ;;  %v297_v58 = vld [vmem:[%s453_s4] ss:$0 sm:$0xff] }
   0x8   :  { %326 = vmatprep.subr.mxu0 %v24_v4  ;;  %338 = vmatprep.subr.mxu1 %v171_v10 }
   0x9   :  { %327 = vmatpush3.msra.mxu0 %v24_v4  ;;  %339 = vmatpush3.msra.mxu1 %v171_v10 }
   0xa   :  { %329 = vmatmul.mubr.msk.f32.vlgmr.msra.gmra.mxu0 %vm35_vm0, %v21_v5  ;;  %340 = vmatprep.subr.mxu1 %v170_v11 }
   0xb   :  { %331 = vmatprep.mubr.msk.f32.mxu0 %vm35_vm0, %v22_v6  ;;  %341 = vmatpush3.msra.mxu1 %v170_v11 }
   0xc   :  { %342 = vmatprep.subr.mxu1 %v169_v12 }
   0xd   :  { %343 = vmatpush3.msra.mxu1 %v169_v12 }
   0xe   :  { %332 = vmatmul.mubr.msk.f32.gmra.mxu0 %vm35_vm0, %v23_v7 }
  0xca   :  { %v330_v14 = vpop.f32.mrf.mxu0 }
  0xcb   :  { %v120_v15 = vadd.f32 %v330_v14, %v292_v13 }
  0xcc   :  { %v114_v16 = vpop.f32.mrf.mxu0 }
  0xcd   :  { %v138_v17 = vmul.f32 0.044715, %v120_v15  ;;  %v115_v18 = vadd.f32 %v292_v13, %v114_v16  ;;  %v134_v48 = vmul.f32 0.5, %v120_v15 }
  0xce   :  { %v333_v19 = vpop.f32.mrf.mxu0 }
  0xcf   :  { %v142_v20 = vmul.f32 %v138_v17, %v120_v15  ;;  %v137_v21 = vmul.f32 0.044715, %v115_v18  ;;  %v130_v22 = vadd.f32 %v333_v19, %v292_v13  ;;  %v133_v45 = vmul.f32 0.5, %v115_v18 }
  0xd0   :  { %v124_v23 = vpop.f32.mrf.mxu0 }
  0xd1   :  { %v146_v24 = vmul.f32 %v142_v20, %v120_v15  ;;  %v140_v25 = vmul.f32 0.044715, %v130_v22  ;;  %v125_v26 = vadd.f32 %v292_v13, %v124_v23  ;;  %v141_v27 = vmul.f32 %v137_v21, %v115_v18 }
  0xd2   :  { %v136_v55 = vmul.f32 0.5, %v130_v22 }
  0xd3   :  { %v150_v28 = vadd.f32 %v146_v24, %v120_v15  ;;  %v144_v29 = vmul.f32 %v140_v25, %v130_v22  ;;  %v139_v30 = vmul.f32 0.044715, %v125_v26  ;;  %v145_v31 = vmul.f32 %v141_v27, %v115_v18 }
  0xd4   :  { %v135_v53 = vmul.f32 0.5, %v125_v26 }
  0xd5   :  { %v148_v32 = vmul.f32 %v144_v29, %v130_v22  ;;  %v143_v33 = vmul.f32 %v139_v30, %v125_v26  ;;  %v149_v34 = vadd.f32 %v145_v31, %v115_v18  ;;  %v154_v35 = vmul.f32 0.7978846, %v150_v28 }
  0xd7   :  { %v152_v36 = vadd.f32 %v148_v32, %v130_v22  ;;  %v147_v37 = vmul.f32 %v143_v33, %v125_v26  ;;  %v153_v38 = vmul.f32 0.7978846, %v149_v34  ;;  %350 = vtanh.f32 %v154_v35 }
  0xd9   :  { %v151_v39 = vadd.f32 %v147_v37, %v125_v26  ;;  %352 = vtanh.f32 %v153_v38  ;;  %v156_v40 = vmul.f32 0.7978846, %v152_v36 }
  0xdb   :  { %v155_v41 = vmul.f32 0.7978846, %v151_v39  ;;  %354 = vtanh.f32 %v156_v40 }
  0xdd   :  { %356 = vtanh.f32 %v155_v41 }
  0xe4   :  { %v351_v42 = vpop.eup %350 }
  0xe5   :  { %v162_v44 = vadd.f32 1.0, %v351_v42 }
  0xe6   :  { %v353_v43 = vpop.eup %352 }
  0xe7   :  { %v161_v46 = vadd.f32 1.0, %v353_v43  ;;  %v166_v51 = vmul.f32 %v162_v44, %v134_v48 }
  0xe8   :  { %v355_v47 = vpop.eup %354 }
  0xe9   :  { %v165_v49 = vmul.f32 %v161_v46, %v133_v45  ;;  %v164_v52 = vadd.f32 1.0, %v355_v47 }
  0xea   :  { %v357_v50 = vpop.eup %356 }
  0xeb   :  { %344 = vmatprep.mubr.msk.f32.mxu1 %vm181_vm2, %v165_v49  ;;  %v163_v54 = vadd.f32 1.0, %v357_v50  ;;  %v168_v57 = vmul.f32 %v164_v52, %v136_v55 }
  0xec   :  { %345 = vmatmul.mubr.msk.f32.vlgmr.msra.gmra.mxu1 %vm181_vm2, %v166_v51 }
  0xed   :  { %v167_v56 = vmul.f32 %v163_v54, %v135_v53 }
  0xef   :  { %347 = vmatprep.mubr.msk.f32.mxu1 %vm181_vm2, %v167_v56 }
  0xf0   :  { %348 = vmatmul.mubr.msk.f32.gmra.mxu1 %vm181_vm2, %v168_v57 }
 0x1ac   :  { %v346_v59 = vpop.f32.mrf.mxu1 }
 0x1ad   :  { %v270_v60 = vadd.f32 %v346_v59, %v297_v58 }
 0x1ae   :  { %v264_v61 = vpop.f32.mrf.mxu1 }
 0x1af   :  { %285 = vst.msk [vmem:[%s454_s5 + $0x8] sm:$0xff] %vm283_vm3, %v270_v60  ;;  %v265_v62 = vadd.f32 %v297_v58, %v264_v61 }
 0x1b0   :  { %v349_v63 = vpop.f32.mrf.mxu1 }
 0x1b1   :  { %284 = vst.msk [vmem:[%s454_s5] sm:$0xff] %vm283_vm3, %v265_v62  ;;  %v280_v0 = vadd.f32 %v349_v63, %v297_v58 }
 0x1b2   :  { %v274_v1 = vpop.f32.mrf.mxu1 }
 0x1b3   :  { %287 = vst.msk [vmem:[%s454_s5 + $0x18] sm:$0xff] %vm283_vm3, %v280_v0  ;;  %v275_v2 = vadd.f32 %v297_v58, %v274_v1 }
 0x1b5   :  { %286 = vst.msk [vmem:[%s454_s5 + $0x10] sm:$0xff] %vm283_vm3, %v275_v2 }

// kernel: forward.37
= control target key start
LH: loop header
LB: loop body
LE: loop exit
PB: predicated region body
PF: predicated region fallthrough
CT: control target
= control target key end

     0   :  { %v2150_v3 = vmov 0.0   ;;  %vm103_vm0 = vcmask 130048   ;;  %vm1396_vm1 = vcmask 64512   ;;  %vm1780_vm2 = vcmask 375872   ;;  %s3753_s2 = inlined_call_operand.vmem [shape: f32[16,136], index: 2, kind: input, shape index: {}]   ;;  %s3754_s0 = inlined_call_operand.vmem [shape: f32[512,16], index: 0, kind: input, shape index: {}]   ;;  %s3755_s4 = inlined_call_operand.vmem [shape: f32[16,38], index: 4, kind: input, shape index: {}]   ;;  %s3756_s1 = inlined_call_operand.vmem [shape: f32[512,16], index: 1, kind: input, shape index: {}]   ;;  %s3757_s3 = inlined_call_operand.vmem [shape: f32[1,136], index: 3, kind: input, shape index: {}]   ;;  %s3758_s6 = inlined_call_operand.vmem [shape: f32[512,174], index: 6, kind: output, shape index: {}]   ;;  %s3759_s5 = inlined_call_operand.vmem [shape: f32[1,38], index: 5, kind: input, shape index: {}]  }
   0x1   :  { %v90_v0 = vld [vmem:[%s3753_s2 + $0x18] sm:$0xff]  ;;  %v89_v1 = vld [vmem:[%s3753_s2 + $0x10] sm:$0xff]  ;;  %v88_v2 = vld [vmem:[%s3753_s2 + $0x8] sm:$0xff]  ;;  %648 = vmatprep.mubr.f32.mxu1 %v2150_v3  ;;  %360 = vmatprep.mubr.f32.mxu0 %v2150_v3 }
   0x2   :  { %2144 = vmatprep.subr.mxu1 %v90_v0  ;;  %v87_v4 = vld [vmem:[%s3753_s2] sm:$0xff]  ;;  %324 = vmatprep.subr.mxu0 %v90_v0  ;;  %v810_v6 = vld [vmem:[%s3755_s4 + $0x8] sm:$0xff]  ;;  %v73_v9 = vld [vmem:[%s3754_s0 + $0x190] sm:$0xff]  ;;  %s2151_s2 = smov 8  }
   0x3   :  { %2146 = vmatpush1.msra.mxu1 %v89_v1  ;;  %v71_v5 = vld [vmem:[%s3754_s0 + $0x180] sm:$0xff]  ;;  %325 = vmatpush1.msra.mxu0 %v89_v1  ;;  %v72_v8 = vld [vmem:[%s3754_s0 + $0x188] sm:$0xff]  ;;  %v74_v12 = vld [vmem:[%s3754_s0 + $0x198] sm:$0xff] }
   0x4   :  { %2145 = vmatprep.subr.mxu1 %v88_v2  ;;  %326 = vmatprep.subr.mxu0 %v88_v2  ;;  %v809_v7 = vld [vmem:[%s3755_s4] sm:$0xff]  ;;  %v24_v11 = vld [vmem:[%s3754_s0 + $0x8] sm:$0xff]  ;;  %v25_v13 = vld [vmem:[%s3754_s0 + $0x10] sm:$0xff] }
   0x5   :  { %2147 = vmatpush1.msra.mxu1 %v87_v4  ;;  %327 = vmatpush1.msra.mxu0 %v87_v4  ;;  %v23_v10 = vld [vmem:[%s3754_s0] sm:$0xff]  ;;  %v26_v15 = vld [vmem:[%s3754_s0 + $0x18] sm:$0xff]  ;;  %v76_v16 = vld [vmem:[%s3754_s0 + $0x1a8] sm:$0xff] }
   0x6   :  { %1897 = vmatmul.mubr.msk.f32.vlgmr.msra.gmra.mxu1 %vm103_vm0, %v71_v5  ;;  %2044 = vmatprep.subr.mxu1 %v810_v6  ;;  %v75_v14 = vld [vmem:[%s3754_s0 + $0x1a0] sm:$0xff]  ;;  %v77_v18 = vld [vmem:[%s3754_s0 + $0x1b0] sm:$0xff]  ;;  %v28_v19 = vld [vmem:[%s3754_s0 + $0x28] sm:$0xff] }
   0x7   :  { %2045 = vmatpush3.msra.mxu1 %v810_v6  ;;  %654 = vmatprep.mubr.f32.mxu1 %v2150_v3  ;;  %v27_v17 = vld [vmem:[%s3754_s0 + $0x20] sm:$0xff]  ;;  %v78_v20 = vld [vmem:[%s3754_s0 + $0x1b8] sm:$0xff]  ;;  %v29_v21 = vld [vmem:[%s3754_s0 + $0x30] sm:$0xff] }
   0x8   :  { %2046 = vmatprep.subr.mxu1 %v809_v7  ;;  %1849 = vmatmul.mubr.msk.f32.vlgmr.msra.gmra.mxu0 %vm103_vm0, %v23_v10  ;;  %v79_v22 = vld [vmem:[%s3754_s0 + $0x1c0] sm:$0xff]  ;;  %v30_v23 = vld [vmem:[%s3754_s0 + $0x38] sm:$0xff]  ;;  %v80_v24 = vld [vmem:[%s3754_s0 + $0x1c8] sm:$0xff] }
   0x9   :  { %2047 = vmatpush3.msra.mxu1 %v809_v7  ;;  %366 = vmatprep.mubr.f32.mxu0 %v2150_v3  ;;  %v31_v25 = vld [vmem:[%s3754_s0 + $0x40] sm:$0xff]  ;;  %v81_v26 = vld [vmem:[%s3754_s0 + $0x1d0] sm:$0xff]  ;;  %v32_v27 = vld [vmem:[%s3754_s0 + $0x48] sm:$0xff] }
   0xa   :  { %1898 = vmatmul.mubr.msk.f32.gmra.mxu1 %vm103_vm0, %v72_v8  ;;  %v82_v28 = vld [vmem:[%s3754_s0 + $0x1d8] sm:$0xff]  ;;  %v33_v29 = vld [vmem:[%s3754_s0 + $0x50] sm:$0xff]  ;;  %v83_v30 = vld [vmem:[%s3754_s0 + $0x1e0] sm:$0xff] }
   0xb   :  { %660 = vmatprep.mubr.f32.mxu1 %v2150_v3  ;;  %v34_v31 = vld [vmem:[%s3754_s0 + $0x58] sm:$0xff]  ;;  %v84_v32 = vld [vmem:[%s3754_s0 + $0x1e8] sm:$0xff]  ;;  %v35_v33 = vld [vmem:[%s3754_s0 + $0x60] sm:$0xff] }
   0xc   :  { %1850 = vmatmul.mubr.msk.f32.gmra.mxu0 %vm103_vm0, %v24_v11  ;;  %v85_v34 = vld [vmem:[%s3754_s0 + $0x1f0] sm:$0xff]  ;;  %v36_v35 = vld [vmem:[%s3754_s0 + $0x68] sm:$0xff]  ;;  %v86_v36 = vld [vmem:[%s3754_s0 + $0x1f8] sm:$0xff] }
   0xd   :  { %372 = vmatprep.mubr.f32.mxu0 %v2150_v3  ;;  %v745_v37 = vld [vmem:[%s3756_s1] sm:$0xff]  ;;  %v37_v38 = vld [vmem:[%s3754_s0 + $0x70] sm:$0xff]  ;;  %v746_v39 = vld [vmem:[%s3756_s1 + $0x8] sm:$0xff] }
   0xe   :  { %1899 = vmatmul.mubr.msk.f32.gmra.mxu1 %vm103_vm0, %v73_v9  ;;  %v747_v40 = vld [vmem:[%s3756_s1 + $0x10] sm:$0xff]  ;;  %v38_v41 = vld [vmem:[%s3754_s0 + $0x78] sm:$0xff]  ;;  %v749_v43 = vld [vmem:[%s3756_s1 + $0x20] sm:$0xff] }
   0xf   :  { %666 = vmatprep.mubr.f32.mxu1 %v2150_v3  ;;  %v748_v42 = vld [vmem:[%s3756_s1 + $0x18] sm:$0xff]  ;;  %v39_v44 = vld [vmem:[%s3754_s0 + $0x80] sm:$0xff]  ;;  %v750_v45 = vld [vmem:[%s3756_s1 + $0x28] sm:$0xff] }
  0x10   :  { %1851 = vmatmul.mubr.msk.f32.gmra.mxu0 %vm103_vm0, %v25_v13  ;;  %v751_v46 = vld [vmem:[%s3756_s1 + $0x30] sm:$0xff]  ;;  %v40_v47 = vld [vmem:[%s3754_s0 + $0x88] sm:$0xff]  ;;  %v752_v48 = vld [vmem:[%s3756_s1 + $0x38] sm:$0xff] }
  0x11   :  { %378 = vmatprep.mubr.f32.mxu0 %v2150_v3  ;;  %v753_v49 = vld [vmem:[%s3756_s1 + $0x40] sm:$0xff]  ;;  %v41_v50 = vld [vmem:[%s3754_s0 + $0x90] sm:$0xff]  ;;  %v754_v51 = vld [vmem:[%s3756_s1 + $0x48] sm:$0xff] }
  0x12   :  { %1900 = vmatmul.mubr.msk.f32.gmra.mxu1 %vm103_vm0, %v74_v12  ;;  %v755_v52 = vld [vmem:[%s3756_s1 + $0x50] sm:$0xff]  ;;  %v42_v53 = vld [vmem:[%s3754_s0 + $0x98] sm:$0xff]  ;;  %v757_v55 = vld [vmem:[%s3756_s1 + $0x60] sm:$0xff] }
  0x13   :  { %672 = vmatprep.mubr.f32.mxu1 %v2150_v3  ;;  %v756_v54 = vld [vmem:[%s3756_s1 + $0x58] sm:$0xff]  ;;  %v43_v56 = vld [vmem:[%s3754_s0 + $0xa0] sm:$0xff]  ;;  %v758_v57 = vld [vmem:[%s3756_s1 + $0x68] sm:$0xff] }
  0x14   :  { %1852 = vmatmul.mubr.msk.f32.gmra.mxu0 %vm103_vm0, %v26_v15  ;;  %v759_v58 = vld [vmem:[%s3756_s1 + $0x70] sm:$0xff]  ;;  %v44_v59 = vld [vmem:[%s3754_s0 + $0xa8] sm:$0xff]  ;;  %v760_v60 = vld [vmem:[%s3756_s1 + $0x78] sm:$0xff] }
  0x15   :  { %384 = vmatprep.mubr.f32.mxu0 %v2150_v3  ;;  %v761_v61 = vld [vmem:[%s3756_s1 + $0x80] sm:$0xff]  ;;  %v45_v62 = vld [vmem:[%s3754_s0 + $0xb0] sm:$0xff]  ;;  %v762_v63 = vld [vmem:[%s3756_s1 + $0x88] sm:$0xff] }
  0x16   :  { %1901 = vmatmul.mubr.msk.f32.gmra.mxu1 %vm103_vm0, %v75_v14  ;;  %v763_v0 = vld [vmem:[%s3756_s1 + $0x90] sm:$0xff]  ;;  %v46_v1 = vld [vmem:[%s3754_s0 + $0xb8] sm:$0xff]  ;;  %v765_v4 = vld [vmem:[%s3756_s1 + $0xa0] sm:$0xff] }
  0x17   :  { %678 = vmatprep.mubr.f32.mxu1 %v2150_v3  ;;  %v764_v2 = vld [vmem:[%s3756_s1 + $0x98] sm:$0xff]  ;;  %v47_v5 = vld [vmem:[%s3754_s0 + $0xc0] sm:$0xff]  ;;  %v766_v6 = vld [vmem:[%s3756_s1 + $0xa8] sm:$0xff] }
  0x18   :  { %1853 = vmatmul.mubr.msk.f32.gmra.mxu0 %vm103_vm0, %v27_v17  ;;  %v767_v7 = vld [vmem:[%s3756_s1 + $0xb0] sm:$0xff]  ;;  %v48_v8 = vld [vmem:[%s3754_s0 + $0xc8] sm:$0xff]  ;;  %v768_v9 = vld [vmem:[%s3756_s1 + $0xb8] sm:$0xff] }
  0x19   :  { %390 = vmatprep.mubr.f32.mxu0 %v2150_v3  ;;  %v769_v10 = vld [vmem:[%s3756_s1 + $0xc0] sm:$0xff]  ;;  %v49_v11 = vld [vmem:[%s3754_s0 + $0xd0] sm:$0xff]  ;;  %v770_v12 = vld [vmem:[%s3756_s1 + $0xc8] sm:$0xff] }
  0x1a   :  { %1902 = vmatmul.mubr.msk.f32.gmra.mxu1 %vm103_vm0, %v76_v16  ;;  %v771_v13 = vld [vmem:[%s3756_s1 + $0xd0] sm:$0xff]  ;;  %v50_v14 = vld [vmem:[%s3754_s0 + $0xd8] sm:$0xff]  ;;  %v773_v16 = vld [vmem:[%s3756_s1 + $0xe0] sm:$0xff] }
  0x1b   :  { %684 = vmatprep.mubr.f32.mxu1 %v2150_v3  ;;  %v772_v15 = vld [vmem:[%s3756_s1 + $0xd8] sm:$0xff]  ;;  %v51_v17 = vld [vmem:[%s3754_s0 + $0xe0] sm:$0xff] }
  0x1c   :  { %1854 = vmatmul.mubr.msk.f32.gmra.mxu0 %vm103_vm0, %v28_v19  ;;  %v775_v19 = vld [vmem:[%s3756_s1 + $0xf0] sm:$0xff] }
  0x1d   :  { %396 = vmatprep.mubr.f32.mxu0 %v2150_v3 }
  0x1e   :  { %1903 = vmatmul.mubr.msk.f32.gmra.mxu1 %vm103_vm0, %v77_v18  ;;  %v774_v18 = vld [vmem:[%s3756_s1 + $0xe8] sm:$0xff] }
  0x1f   :  { %690 = vmatprep.mubr.f32.mxu1 %v2150_v3 }
  0x20   :  { %1855 = vmatmul.mubr.msk.f32.gmra.mxu0 %vm103_vm0, %v29_v21  ;;  %v776_v21 = vld [vmem:[%s3756_s1 + $0xf8] sm:$0xff] }
  0x21   :  { %402 = vmatprep.mubr.f32.mxu0 %v2150_v3 }
  0x22   :  { %1904 = vmatmul.mubr.msk.f32.gmra.mxu1 %vm103_vm0, %v78_v20  ;;  %v52_v20 = vld [vmem:[%s3754_s0 + $0xe8] sm:$0xff] }
  0x23   :  { %696 = vmatprep.mubr.f32.mxu1 %v2150_v3 }
  0x24   :  { %1856 = vmatmul.mubr.msk.f32.gmra.mxu0 %vm103_vm0, %v30_v23  ;;  %v53_v23 = vld [vmem:[%s3754_s0 + $0xf0] sm:$0xff] }
  0x25   :  { %408 = vmatprep.mubr.f32.mxu0 %v2150_v3 }
  0x26   :  { %1905 = vmatmul.mubr.msk.f32.gmra.mxu1 %vm103_vm0, %v79_v22  ;;  %v777_v22 = vld [vmem:[%s3756_s1 + $0x100] sm:$0xff] }
  0x27   :  { %702 = vmatprep.mubr.f32.mxu1 %v2150_v3 }
  0x28   :  { %1857 = vmatmul.mubr.msk.f32.gmra.mxu0 %vm103_vm0, %v31_v25  ;;  %v779_v25 = vld [vmem:[%s3756_s1 + $0x110] sm:$0xff] }
  0x29   :  { %414 = vmatprep.mubr.f32.mxu0 %v2150_v3 }
  0x2a   :  { %1906 = vmatmul.mubr.msk.f32.gmra.mxu1 %vm103_vm0, %v80_v24  ;;  %v778_v24 = vld [vmem:[%s3756_s1 + $0x108] sm:$0xff] }
  0x2b   :  { %708 = vmatprep.mubr.f32.mxu1 %v2150_v3 }
  0x2c   :  { %1858 = vmatmul.mubr.msk.f32.gmra.mxu0 %vm103_vm0, %v32_v27  ;;  %v780_v27 = vld [vmem:[%s3756_s1 + $0x118] sm:$0xff] }
  0x2d   :  { %420 = vmatprep.mubr.f32.mxu0 %v2150_v3 }
  0x2e   :  { %1907 = vmatmul.mubr.msk.f32.gmra.mxu1 %vm103_vm0, %v81_v26  ;;  %v54_v26 = vld [vmem:[%s3754_s0 + $0xf8] sm:$0xff] }
  0x2f   :  { %714 = vmatprep.mubr.f32.mxu1 %v2150_v3 }
  0x30   :  { %1859 = vmatmul.mubr.msk.f32.gmra.mxu0 %vm103_vm0, %v33_v29  ;;  %v55_v29 = vld [vmem:[%s3754_s0 + $0x100] sm:$0xff] }
  0x31   :  { %426 = vmatprep.mubr.f32.mxu0 %v2150_v3 }
  0x32   :  { %1908 = vmatmul.mubr.msk.f32.gmra.mxu1 %vm103_vm0, %v82_v28  ;;  %v781_v28 = vld [vmem:[%s3756_s1 + $0x120] sm:$0xff] }
  0x33   :  { %720 = vmatprep.mubr.f32.mxu1 %v2150_v3 }
  0x34   :  { %1860 = vmatmul.mubr.msk.f32.gmra.mxu0 %vm103_vm0, %v34_v31  ;;  %v783_v31 = vld [vmem:[%s3756_s1 + $0x130] sm:$0xff] }
  0x35   :  { %432 = vmatprep.mubr.f32.mxu0 %v2150_v3 }
  0x36   :  { %1909 = vmatmul.mubr.msk.f32.gmra.mxu1 %vm103_vm0, %v83_v30  ;;  %v782_v30 = vld [vmem:[%s3756_s1 + $0x128] sm:$0xff] }
  0x37   :  { %726 = vmatprep.mubr.f32.mxu1 %v2150_v3 }
  0x38   :  { %1861 = vmatmul.mubr.msk.f32.gmra.mxu0 %vm103_vm0, %v35_v33  ;;  %v784_v33 = vld [vmem:[%s3756_s1 + $0x138] sm:$0xff] }
  0x39   :  { %438 = vmatprep.mubr.f32.mxu0 %v2150_v3 }
  0x3a   :  { %1910 = vmatmul.mubr.msk.f32.gmra.mxu1 %vm103_vm0, %v84_v32  ;;  %v56_v32 = vld [vmem:[%s3754_s0 + $0x108] sm:$0xff] }
  0x3b   :  { %732 = vmatprep.mubr.f32.mxu1 %v2150_v3 }
  0x3c   :  { %1862 = vmatmul.mubr.msk.f32.gmra.mxu0 %vm103_vm0, %v36_v35  ;;  %v57_v35 = vld [vmem:[%s3754_s0 + $0x110] sm:$0xff] }
  0x3d   :  { %444 = vmatprep.mubr.f32.mxu0 %v2150_v3 }
  0x3e   :  { %1911 = vmatmul.mubr.msk.f32.gmra.mxu1 %vm103_vm0, %v85_v34  ;;  %v785_v34 = vld [vmem:[%s3756_s1 + $0x140] sm:$0xff] }
  0x3f   :  { %738 = vmatprep.mubr.f32.mxu1 %v2150_v3 }
  0x40   :  { %1863 = vmatmul.mubr.msk.f32.gmra.mxu0 %vm103_vm0, %v37_v38  ;;  %v58_v38 = vld [vmem:[%s3754_s0 + $0x118] sm:$0xff] }
  0x41   :  { %450 = vmatprep.mubr.f32.mxu0 %v2150_v3 }
  0x42   :  { %1912 = vmatmul.mubr.msk.f32.gmra.mxu1 %vm103_vm0, %v86_v36  ;;  %v786_v36 = vld [vmem:[%s3756_s1 + $0x148] sm:$0xff] }
  0x43   :  { %2048 = vmatprep.mubr.msk.f32.mxu1 %vm103_vm0, %v745_v37  ;;  %v787_v37 = vld [vmem:[%s3756_s1 + $0x150] sm:$0xff] }
  0x44   :  { %1864 = vmatmul.mubr.msk.f32.gmra.mxu0 %vm103_vm0, %v38_v41  ;;  %v59_v41 = vld [vmem:[%s3754_s0 + $0x120] sm:$0xff] }
  0x45   :  { %456 = vmatprep.mubr.f32.mxu0 %v2150_v3 }
  0x46   :  { %2049 = vmatmul.mubr.msk.f32.vlgmr.msra.gmra.mxu1 %vm103_vm0, %v746_v39  ;;  %v788_v39 = vld [vmem:[%s3756_s1 + $0x158] sm:$0xff] }
  0x47   :  { %2051 = vmatprep.mubr.msk.f32.mxu1 %vm103_vm0, %v747_v40  ;;  %v789_v40 = vld [vmem:[%s3756_s1 + $0x160] sm:$0xff] }
  0x48   :  { %1865 = vmatmul.mubr.msk.f32.gmra.mxu0 %vm103_vm0, %v39_v44  ;;  %v60_v44 = vld [vmem:[%s3754_s0 + $0x128] sm:$0xff] }
  0x49   :  { %462 = vmatprep.mubr.f32.mxu0 %v2150_v3 }
  0x4a   :  { %2052 = vmatmul.mubr.msk.f32.gmra.mxu1 %vm103_vm0, %v748_v42  ;;  %v790_v42 = vld [vmem:[%s3756_s1 + $0x168] sm:$0xff] }
  0x4b   :  { %2054 = vmatprep.mubr.msk.f32.mxu1 %vm103_vm0, %v749_v43  ;;  %v791_v43 = vld [vmem:[%s3756_s1 + $0x170] sm:$0xff] }
  0x4c   :  { %1866 = vmatmul.mubr.msk.f32.gmra.mxu0 %vm103_vm0, %v40_v47  ;;  %v61_v47 = vld [vmem:[%s3754_s0 + $0x130] sm:$0xff] }
  0x4d   :  { %468 = vmatprep.mubr.f32.mxu0 %v2150_v3 }
  0x4e   :  { %2055 = vmatmul.mubr.msk.f32.gmra.mxu1 %vm103_vm0, %v750_v45  ;;  %v792_v45 = vld [vmem:[%s3756_s1 + $0x178] sm:$0xff] }
  0x4f   :  { %2057 = vmatprep.mubr.msk.f32.mxu1 %vm103_vm0, %v751_v46  ;;  %v793_v46 = vld [vmem:[%s3756_s1 + $0x180] sm:$0xff] }
  0x50   :  { %1867 = vmatmul.mubr.msk.f32.gmra.mxu0 %vm103_vm0, %v41_v50  ;;  %v62_v50 = vld [vmem:[%s3754_s0 + $0x138] sm:$0xff] }
  0x51   :  { %474 = vmatprep.mubr.f32.mxu0 %v2150_v3 }
  0x52   :  { %2058 = vmatmul.mubr.msk.f32.gmra.mxu1 %vm103_vm0, %v752_v48  ;;  %v794_v48 = vld [vmem:[%s3756_s1 + $0x188] sm:$0xff] }
  0x53   :  { %2060 = vmatprep.mubr.msk.f32.mxu1 %vm103_vm0, %v753_v49  ;;  %v795_v49 = vld [vmem:[%s3756_s1 + $0x190] sm:$0xff] }
  0x54   :  { %1868 = vmatmul.mubr.msk.f32.gmra.mxu0 %vm103_vm0, %v42_v53  ;;  %v63_v53 = vld [vmem:[%s3754_s0 + $0x140] sm:$0xff] }
  0x55   :  { %480 = vmatprep.mubr.f32.mxu0 %v2150_v3 }
  0x56   :  { %2061 = vmatmul.mubr.msk.f32.gmra.mxu1 %vm103_vm0, %v754_v51  ;;  %v796_v51 = vld [vmem:[%s3756_s1 + $0x198] sm:$0xff] }
  0x57   :  { %2063 = vmatprep.mubr.msk.f32.mxu1 %vm103_vm0, %v755_v52  ;;  %v797_v52 = vld [vmem:[%s3756_s1 + $0x1a0] sm:$0xff] }
  0x58   :  { %1869 = vmatmul.mubr.msk.f32.gmra.mxu0 %vm103_vm0, %v43_v56  ;;  %v64_v56 = vld [vmem:[%s3754_s0 + $0x148] sm:$0xff] }
  0x59   :  { %486 = vmatprep.mubr.f32.mxu0 %v2150_v3 }
  0x5a   :  { %2064 = vmatmul.mubr.msk.f32.gmra.mxu1 %vm103_vm0, %v756_v54  ;;  %v798_v54 = vld [vmem:[%s3756_s1 + $0x1a8] sm:$0xff] }
  0x5b   :  { %2066 = vmatprep.mubr.msk.f32.mxu1 %vm103_vm0, %v757_v55  ;;  %v799_v55 = vld [vmem:[%s3756_s1 + $0x1b0] sm:$0xff] }
  0x5c   :  { %1870 = vmatmul.mubr.msk.f32.gmra.mxu0 %vm103_vm0, %v44_v59  ;;  %v65_v59 = vld [vmem:[%s3754_s0 + $0x150] sm:$0xff] }
  0x5d   :  { %492 = vmatprep.mubr.f32.mxu0 %v2150_v3 }
  0x5e   :  { %2067 = vmatmul.mubr.msk.f32.gmra.mxu1 %vm103_vm0, %v758_v57  ;;  %v800_v57 = vld [vmem:[%s3756_s1 + $0x1b8] sm:$0xff] }
  0x5f   :  { %2069 = vmatprep.mubr.msk.f32.mxu1 %vm103_vm0, %v759_v58  ;;  %v801_v58 = vld [vmem:[%s3756_s1 + $0x1c0] sm:$0xff] }
  0x60   :  { %1871 = vmatmul.mubr.msk.f32.gmra.mxu0 %vm103_vm0, %v45_v62  ;;  %v66_v62 = vld [vmem:[%s3754_s0 + $0x158] sm:$0xff] }
  0x61   :  { %498 = vmatprep.mubr.f32.mxu0 %v2150_v3 }
  0x62   :  { %2070 = vmatmul.mubr.msk.f32.gmra.mxu1 %vm103_vm0, %v760_v60  ;;  %v802_v60 = vld [vmem:[%s3756_s1 + $0x1c8] sm:$0xff] }
  0x63   :  { %2072 = vmatprep.mubr.msk.f32.mxu1 %vm103_vm0, %v761_v61  ;;  %v803_v61 = vld [vmem:[%s3756_s1 + $0x1d0] sm:$0xff] }
  0x64   :  { %1872 = vmatmul.mubr.msk.f32.gmra.mxu0 %vm103_vm0, %v46_v1  ;;  %v805_v1 = vld [vmem:[%s3756_s1 + $0x1e0] sm:$0xff] }
  0x65   :  { %504 = vmatprep.mubr.f32.mxu0 %v2150_v3 }
  0x66   :  { %2073 = vmatmul.mubr.msk.f32.gmra.mxu1 %vm103_vm0, %v762_v63  ;;  %v804_v63 = vld [vmem:[%s3756_s1 + $0x1d8] sm:$0xff] }
  0x67   :  { %2075 = vmatprep.mubr.msk.f32.mxu1 %vm103_vm0, %v763_v0  ;;  %v93_v0 = vlaneseq }
  0x68   :  { %1873 = vmatmul.mubr.msk.f32.gmra.mxu0 %vm103_vm0, %v47_v5 }
  0x69   :  { %510 = vmatprep.mubr.f32.mxu0 %v2150_v3  ;;  %v94_v5 = vshrl.u32 %v93_v0, 7 }
  0x6a   :  { %2076 = vmatmul.mubr.msk.f32.gmra.mxu1 %vm103_vm0, %v764_v2  ;;  %v67_v2 = vld [vmem:[%s3754_s0 + $0x160] sm:$0xff] }
  0x6b   :  { %2078 = vmatprep.mubr.msk.f32.mxu1 %vm103_vm0, %v765_v4  ;;  %v806_v4 = vld [vmem:[%s3756_s1 + $0x1e8] sm:$0xff] }
  0x6c   :  { %1874 = vmatmul.mubr.msk.f32.gmra.mxu0 %vm103_vm0, %v48_v8  ;;  %v808_v8 = vld [vmem:[%s3756_s1 + $0x1f8] sm:$0xff] }
  0x6d   :  { %516 = vmatprep.mubr.f32.mxu0 %v2150_v3 }
  0x6e   :  { %2079 = vmatmul.mubr.msk.f32.gmra.mxu1 %vm103_vm0, %v766_v6  ;;  %v807_v6 = vld [vmem:[%s3756_s1 + $0x1f0] sm:$0xff] }
  0x6f   :  { %2081 = vmatprep.mubr.msk.f32.mxu1 %vm103_vm0, %v767_v7  ;;  %v68_v7 = vld [vmem:[%s3754_s0 + $0x168] sm:$0xff] }
  0x70   :  { %1875 = vmatmul.mubr.msk.f32.gmra.mxu0 %vm103_vm0, %v49_v11  ;;  %v99_v11 = vsub.s32 1, %v94_v5 }
  0x71   :  { %522 = vmatprep.mubr.f32.mxu0 %v2150_v3 }
  0x72   :  { %2082 = vmatmul.mubr.msk.f32.gmra.mxu1 %vm103_vm0, %v768_v9  ;;  %v95_v9 = vsub.s32 0, %v94_v5 }
  0x73   :  { %2084 = vmatprep.mubr.msk.f32.mxu1 %vm103_vm0, %v769_v10  ;;  %v91_v10 = vld [vmem:[%s3757_s3] sm:$0x3] }
  0x74   :  { %1876 = vmatmul.mubr.msk.f32.gmra.mxu0 %vm103_vm0, %v50_v14  ;;  %v2781_v14 = vrot.slane %v91_v10, %v99_v11 }
  0x75   :  { %528 = vmatprep.mubr.f32.mxu0 %v2150_v3 }
  0x76   :  { %2085 = vmatmul.mubr.msk.f32.gmra.mxu1 %vm103_vm0, %v770_v12  ;;  %v69_v12 = vld [vmem:[%s3754_s0 + $0x170] sm:$0xff] }
  0x77   :  { %2087 = vmatprep.mubr.msk.f32.mxu1 %vm103_vm0, %v771_v13  ;;  %v2778_v13 = vrot.slane %v91_v10, %v95_v9 }
  0x78   :  { %1877 = vmatmul.mubr.msk.f32.gmra.mxu0 %vm103_vm0, %v51_v17 }
  0x79   :  { %534 = vmatprep.mubr.f32.mxu0 %v2150_v3 }
  0x7a   :  { %2088 = vmatmul.mubr.msk.f32.gmra.mxu1 %vm103_vm0, %v772_v15  ;;  %v70_v15 = vld [vmem:[%s3754_s0 + $0x178] sm:$0xff] }
  0x7b   :  { %2090 = vmatprep.mubr.msk.f32.mxu1 %vm103_vm0, %v773_v16 }
  0x7c   :  { %1878 = vmatmul.mubr.msk.f32.gmra.mxu0 %vm103_vm0, %v52_v20 }
  0x7d   :  { %540 = vmatprep.mubr.f32.mxu0 %v2150_v3 }
  0x7e   :  { %2091 = vmatmul.mubr.msk.f32.gmra.mxu1 %vm103_vm0, %v774_v18 }
  0x7f   :  { %2093 = vmatprep.mubr.msk.f32.mxu1 %vm103_vm0, %v775_v19 }
  0x80   :  { %1879 = vmatmul.mubr.msk.f32.gmra.mxu0 %vm103_vm0, %v53_v23 }
  0x81   :  { %546 = vmatprep.mubr.f32.mxu0 %v2150_v3 }
  0x82   :  { %2094 = vmatmul.mubr.msk.f32.gmra.mxu1 %vm103_vm0, %v776_v21 }
  0x83   :  { %2096 = vmatprep.mubr.msk.f32.mxu1 %vm103_vm0, %v777_v22 }
  0x84   :  { %1880 = vmatmul.mubr.msk.f32.gmra.mxu0 %vm103_vm0, %v54_v26 }
  0x85   :  { %552 = vmatprep.mubr.f32.mxu0 %v2150_v3 }
  0x86   :  { %2097 = vmatmul.mubr.msk.f32.gmra.mxu1 %vm103_vm0, %v778_v24 }
  0x87   :  { %2099 = vmatprep.mubr.msk.f32.mxu1 %vm103_vm0, %v779_v25 }
  0x88   :  { %1881 = vmatmul.mubr.msk.f32.gmra.mxu0 %vm103_vm0, %v55_v29 }
  0x89   :  { %558 = vmatprep.mubr.f32.mxu0 %v2150_v3 }
  0x8a   :  { %2100 = vmatmul.mubr.msk.f32.gmra.mxu1 %vm103_vm0, %v780_v27 }
  0x8b   :  { %2102 = vmatprep.mubr.msk.f32.mxu1 %vm103_vm0, %v781_v28 }
  0x8c   :  { %1882 = vmatmul.mubr.msk.f32.gmra.mxu0 %vm103_vm0, %v56_v32 }
  0x8d   :  { %564 = vmatprep.mubr.f32.mxu0 %v2150_v3 }
  0x8e   :  { %2103 = vmatmul.mubr.msk.f32.gmra.mxu1 %vm103_vm0, %v782_v30 }
  0x8f   :  { %2105 = vmatprep.mubr.msk.f32.mxu1 %vm103_vm0, %v783_v31 }
  0x90   :  { %1883 = vmatmul.mubr.msk.f32.gmra.mxu0 %vm103_vm0, %v57_v35 }
  0x91   :  { %570 = vmatprep.mubr.f32.mxu0 %v2150_v3 }
  0x92   :  { %2106 = vmatmul.mubr.msk.f32.gmra.mxu1 %vm103_vm0, %v784_v33 }
  0x93   :  { %2108 = vmatprep.mubr.msk.f32.mxu1 %vm103_vm0, %v785_v34 }
  0x94   :  { %1884 = vmatmul.mubr.msk.f32.gmra.mxu0 %vm103_vm0, %v58_v38 }
  0x95   :  { %576 = vmatprep.mubr.f32.mxu0 %v2150_v3 }
  0x96   :  { %2109 = vmatmul.mubr.msk.f32.gmra.mxu1 %vm103_vm0, %v786_v36 }
  0x97   :  { %2111 = vmatprep.mubr.msk.f32.mxu1 %vm103_vm0, %v787_v37 }
  0x98   :  { %1885 = vmatmul.mubr.msk.f32.gmra.mxu0 %vm103_vm0, %v59_v41 }
  0x99   :  { %582 = vmatprep.mubr.f32.mxu0 %v2150_v3 }
  0x9a   :  { %2112 = vmatmul.mubr.msk.f32.gmra.mxu1 %vm103_vm0, %v788_v39 }
  0x9b   :  { %2114 = vmatprep.mubr.msk.f32.mxu1 %vm103_vm0, %v789_v40 }
  0x9c   :  { %1886 = vmatmul.mubr.msk.f32.gmra.mxu0 %vm103_vm0, %v60_v44 }
  0x9d   :  { %588 = vmatprep.mubr.f32.mxu0 %v2150_v3 }
  0x9e   :  { %2115 = vmatmul.mubr.msk.f32.gmra.mxu1 %vm103_vm0, %v790_v42 }
  0x9f   :  { %2117 = vmatprep.mubr.msk.f32.mxu1 %vm103_vm0, %v791_v43 }
  0xa0   :  { %1887 = vmatmul.mubr.msk.f32.gmra.mxu0 %vm103_vm0, %v61_v47 }
  0xa1   :  { %594 = vmatprep.mubr.f32.mxu0 %v2150_v3 }
  0xa2   :  { %2118 = vmatmul.mubr.msk.f32.gmra.mxu1 %vm103_vm0, %v792_v45 }
  0xa3   :  { %2120 = vmatprep.mubr.msk.f32.mxu1 %vm103_vm0, %v793_v46 }
  0xa4   :  { %1888 = vmatmul.mubr.msk.f32.gmra.mxu0 %vm103_vm0, %v62_v50 }
  0xa5   :  { %600 = vmatprep.mubr.f32.mxu0 %v2150_v3 }
  0xa6   :  { %2121 = vmatmul.mubr.msk.f32.gmra.mxu1 %vm103_vm0, %v794_v48 }
  0xa7   :  { %2123 = vmatprep.mubr.msk.f32.mxu1 %vm103_vm0, %v795_v49 }
  0xa8   :  { %1889 = vmatmul.mubr.msk.f32.gmra.mxu0 %vm103_vm0, %v63_v53 }
  0xa9   :  { %606 = vmatprep.mubr.f32.mxu0 %v2150_v3 }
  0xaa   :  { %2124 = vmatmul.mubr.msk.f32.gmra.mxu1 %vm103_vm0, %v796_v51 }
  0xab   :  { %2126 = vmatprep.mubr.msk.f32.mxu1 %vm103_vm0, %v797_v52 }
  0xac   :  { %1890 = vmatmul.mubr.msk.f32.gmra.mxu0 %vm103_vm0, %v64_v56 }
  0xad   :  { %612 = vmatprep.mubr.f32.mxu0 %v2150_v3 }
  0xae   :  { %2127 = vmatmul.mubr.msk.f32.gmra.mxu1 %vm103_vm0, %v798_v54 }
  0xaf   :  { %2129 = vmatprep.mubr.msk.f32.mxu1 %vm103_vm0, %v799_v55 }
  0xb0   :  { %1891 = vmatmul.mubr.msk.f32.gmra.mxu0 %vm103_vm0, %v65_v59 }
  0xb1   :  { %618 = vmatprep.mubr.f32.mxu0 %v2150_v3 }
  0xb2   :  { %2130 = vmatmul.mubr.msk.f32.gmra.mxu1 %vm103_vm0, %v800_v57 }
  0xb3   :  { %2132 = vmatprep.mubr.msk.f32.mxu1 %vm103_vm0, %v801_v58 }
  0xb4   :  { %1892 = vmatmul.mubr.msk.f32.gmra.mxu0 %vm103_vm0, %v66_v62 }
  0xb5   :  { %624 = vmatprep.mubr.f32.mxu0 %v2150_v3 }
  0xb6   :  { %2133 = vmatmul.mubr.msk.f32.gmra.mxu1 %vm103_vm0, %v802_v60 }
  0xb7   :  { %2135 = vmatprep.mubr.msk.f32.mxu1 %vm103_vm0, %v803_v61 }
  0xb8   :  { %1893 = vmatmul.mubr.msk.f32.gmra.mxu0 %vm103_vm0, %v67_v2 }
  0xb9   :  { %630 = vmatprep.mubr.f32.mxu0 %v2150_v3 }
  0xba   :  { %2136 = vmatmul.mubr.msk.f32.gmra.mxu1 %vm103_vm0, %v804_v63 }
  0xbb   :  { %2138 = vmatprep.mubr.msk.f32.mxu1 %vm103_vm0, %v805_v1 }
  0xbc   :  { %1894 = vmatmul.mubr.msk.f32.gmra.mxu0 %vm103_vm0, %v68_v7 }
  0xbd   :  { %636 = vmatprep.mubr.f32.mxu0 %v2150_v3 }
  0xbe   :  { %2139 = vmatmul.mubr.msk.f32.gmra.mxu1 %vm103_vm0, %v806_v4 }
  0xbf   :  { %2141 = vmatprep.mubr.msk.f32.mxu1 %vm103_vm0, %v807_v6 }
  0xc0   :  { %1895 = vmatmul.mubr.msk.f32.gmra.mxu0 %vm103_vm0, %v69_v12 }
  0xc1   :  { %642 = vmatprep.mubr.f32.mxu0 %v2150_v3 }
  0xc2   :  { %2142 = vmatmul.mubr.msk.f32.gmra.mxu1 %vm103_vm0, %v808_v8 }
  0xc4   :  { %1896 = vmatmul.mubr.msk.f32.gmra.mxu0 %vm103_vm0, %v70_v15 }
  0xc6   :  { %v650_v16 = vpop.f32.mrf.mxu1 }
  0xc7   :  { %v651_v17 = vadd.f32 %v650_v16, %v2778_v13 }
  0xc8   :  { %v652_v18 = vpop.f32.mrf.mxu1  ;;  %v362_v22 = vpop.f32.mrf.mxu0 }
  0xc9   :  { %1492 = vst [vmem:[%s3758_s6 + $0x300] sm:$0xff] %v651_v17  ;;  %v653_v19 = vadd.f32 %v652_v18, %v2781_v14  ;;  %v363_v24 = vadd.f32 %v362_v22, %v2778_v13 }
  0xca   :  { %v656_v20 = vpop.f32.mrf.mxu1  ;;  %v364_v26 = vpop.f32.mrf.mxu0 }
  0xcb   :  { %1493 = vst.msk [vmem:[%s3758_s6 + $0x308] sm:$0xff] %vm1396_vm1, %v653_v19  ;;  %v657_v3 = vadd.f32 %v656_v20, %v2778_v13  ;;  %1395 = vst [vmem:[%s3758_s6] sm:$0xff] %v363_v24  ;;  %v365_v28 = vadd.f32 %v364_v26, %v2781_v14 }
  0xcc   :  { %v658_v21 = vpop.f32.mrf.mxu1  ;;  %v368_v30 = vpop.f32.mrf.mxu0 }
  0xcd   :  { %1494 = vst [vmem:[%s3758_s6 + $0x310] sm:$0xff] %v657_v3  ;;  %v659_v23 = vadd.f32 %v658_v21, %v2781_v14  ;;  %1397 = vst.msk [vmem:[%s3758_s6 + $0x8] sm:$0xff] %vm1396_vm1, %v365_v28  ;;  %v369_v32 = vadd.f32 %v368_v30, %v2778_v13 }
  0xce   :  { %v662_v25 = vpop.f32.mrf.mxu1  ;;  %v370_v34 = vpop.f32.mrf.mxu0 }
  0xcf   :  { %1495 = vst.msk [vmem:[%s3758_s6 + $0x318] sm:$0xff] %vm1396_vm1, %v659_v23  ;;  %v663_v27 = vadd.f32 %v662_v25, %v2778_v13  ;;  %1398 = vst [vmem:[%s3758_s6 + $0x10] sm:$0xff] %v369_v32  ;;  %v371_v36 = vadd.f32 %v370_v34, %v2781_v14 }
  0xd0   :  { %v664_v29 = vpop.f32.mrf.mxu1  ;;  %v374_v38 = vpop.f32.mrf.mxu0 }
  0xd1   :  { %1496 = vst [vmem:[%s3758_s6 + $0x320] sm:$0xff] %v663_v27  ;;  %v665_v31 = vadd.f32 %v664_v29, %v2781_v14  ;;  %1399 = vst.msk [vmem:[%s3758_s6 + $0x18] sm:$0xff] %vm1396_vm1, %v371_v36  ;;  %v375_v40 = vadd.f32 %v374_v38, %v2778_v13 }
  0xd2   :  { %v668_v33 = vpop.f32.mrf.mxu1  ;;  %v376_v42 = vpop.f32.mrf.mxu0 }
  0xd3   :  { %1497 = vst.msk [vmem:[%s3758_s6 + $0x328] sm:$0xff] %vm1396_vm1, %v665_v31  ;;  %v669_v35 = vadd.f32 %v668_v33, %v2778_v13  ;;  %1400 = vst [vmem:[%s3758_s6 + $0x20] sm:$0xff] %v375_v40  ;;  %v377_v44 = vadd.f32 %v376_v42, %v2781_v14 }
  0xd4   :  { %v670_v37 = vpop.f32.mrf.mxu1  ;;  %v380_v46 = vpop.f32.mrf.mxu0 }
  0xd5   :  { %1498 = vst [vmem:[%s3758_s6 + $0x330] sm:$0xff] %v669_v35  ;;  %v671_v39 = vadd.f32 %v670_v37, %v2781_v14  ;;  %1401 = vst.msk [vmem:[%s3758_s6 + $0x28] sm:$0xff] %vm1396_vm1, %v377_v44  ;;  %v381_v48 = vadd.f32 %v380_v46, %v2778_v13 }
  0xd6   :  { %v674_v41 = vpop.f32.mrf.mxu1  ;;  %v382_v50 = vpop.f32.mrf.mxu0 }
  0xd7   :  { %1499 = vst.msk [vmem:[%s3758_s6 + $0x338] sm:$0xff] %vm1396_vm1, %v671_v39  ;;  %v675_v43 = vadd.f32 %v674_v41, %v2778_v13  ;;  %1402 = vst [vmem:[%s3758_s6 + $0x30] sm:$0xff] %v381_v48  ;;  %v383_v52 = vadd.f32 %v382_v50, %v2781_v14 }
  0xd8   :  { %v676_v45 = vpop.f32.mrf.mxu1  ;;  %v386_v54 = vpop.f32.mrf.mxu0 }
  0xd9   :  { %1500 = vst [vmem:[%s3758_s6 + $0x340] sm:$0xff] %v675_v43  ;;  %v677_v47 = vadd.f32 %v676_v45, %v2781_v14  ;;  %1403 = vst.msk [vmem:[%s3758_s6 + $0x38] sm:$0xff] %vm1396_vm1, %v383_v52  ;;  %v387_v56 = vadd.f32 %v386_v54, %v2778_v13 }
  0xda   :  { %v680_v49 = vpop.f32.mrf.mxu1  ;;  %v388_v58 = vpop.f32.mrf.mxu0 }
  0xdb   :  { %1501 = vst.msk [vmem:[%s3758_s6 + $0x348] sm:$0xff] %vm1396_vm1, %v677_v47  ;;  %v681_v51 = vadd.f32 %v680_v49, %v2778_v13  ;;  %1404 = vst [vmem:[%s3758_s6 + $0x40] sm:$0xff] %v387_v56  ;;  %v389_v60 = vadd.f32 %v388_v58, %v2781_v14 }
  0xdc   :  { %v682_v53 = vpop.f32.mrf.mxu1  ;;  %v392_v62 = vpop.f32.mrf.mxu0 }
  0xdd   :  { %1502 = vst [vmem:[%s3758_s6 + $0x350] sm:$0xff] %v681_v51  ;;  %v683_v55 = vadd.f32 %v682_v53, %v2781_v14  ;;  %1405 = vst.msk [vmem:[%s3758_s6 + $0x48] sm:$0xff] %vm1396_vm1, %v389_v60  ;;  %v393_v0 = vadd.f32 %v392_v62, %v2778_v13 }
  0xde   :  { %v686_v57 = vpop.f32.mrf.mxu1  ;;  %v394_v2 = vpop.f32.mrf.mxu0 }
  0xdf   :  { %1503 = vst.msk [vmem:[%s3758_s6 + $0x358] sm:$0xff] %vm1396_vm1, %v683_v55  ;;  %v687_v59 = vadd.f32 %v686_v57, %v2778_v13  ;;  %1406 = vst [vmem:[%s3758_s6 + $0x50] sm:$0xff] %v393_v0  ;;  %v395_v5 = vadd.f32 %v394_v2, %v2781_v14 }
  0xe0   :  { %v688_v61 = vpop.f32.mrf.mxu1  ;;  %v398_v7 = vpop.f32.mrf.mxu0 }
  0xe1   :  { %1504 = vst [vmem:[%s3758_s6 + $0x360] sm:$0xff] %v687_v59  ;;  %v689_v63 = vadd.f32 %v688_v61, %v2781_v14  ;;  %1407 = vst.msk [vmem:[%s3758_s6 + $0x58] sm:$0xff] %vm1396_vm1, %v395_v5  ;;  %v399_v9 = vadd.f32 %v398_v7, %v2778_v13 }
  0xe2   :  { %v692_v1 = vpop.f32.mrf.mxu1  ;;  %v400_v11 = vpop.f32.mrf.mxu0 }
  0xe3   :  { %1505 = vst.msk [vmem:[%s3758_s6 + $0x368] sm:$0xff] %vm1396_vm1, %v689_v63  ;;  %v693_v4 = vadd.f32 %v692_v1, %v2778_v13  ;;  %1408 = vst [vmem:[%s3758_s6 + $0x60] sm:$0xff] %v399_v9  ;;  %v401_v15 = vadd.f32 %v400_v11, %v2781_v14  ;;  %v3049_v9 = vld [vmem:[%s3759_s5] ss:$0 sm:$0xff] }
  0xe4   :  { %v694_v6 = vpop.f32.mrf.mxu1  ;;  %v404_v17 = vpop.f32.mrf.mxu0 }
  0xe5   :  { %1506 = vst [vmem:[%s3758_s6 + $0x370] sm:$0xff] %v693_v4  ;;  %v695_v8 = vadd.f32 %v694_v6, %v2781_v14  ;;  %1409 = vst.msk [vmem:[%s3758_s6 + $0x68] sm:$0xff] %vm1396_vm1, %v401_v15  ;;  %v405_v19 = vadd.f32 %v404_v17, %v2778_v13 }
  0xe6   :  { %v698_v10 = vpop.f32.mrf.mxu1  ;;  %v406_v3 = vpop.f32.mrf.mxu0 }
  0xe7   :  { %1507 = vst.msk [vmem:[%s3758_s6 + $0x378] sm:$0xff] %vm1396_vm1, %v695_v8  ;;  %v699_v12 = vadd.f32 %v698_v10, %v2778_v13  ;;  %1410 = vst [vmem:[%s3758_s6 + $0x70] sm:$0xff] %v405_v19  ;;  %v407_v22 = vadd.f32 %v406_v3, %v2781_v14 }
  0xe8   :  { %v700_v16 = vpop.f32.mrf.mxu1  ;;  %v410_v24 = vpop.f32.mrf.mxu0 }
  0xe9   :  { %1508 = vst [vmem:[%s3758_s6 + $0x380] sm:$0xff] %v699_v12  ;;  %v701_v18 = vadd.f32 %v700_v16, %v2781_v14  ;;  %1411 = vst.msk [vmem:[%s3758_s6 + $0x78] sm:$0xff] %vm1396_vm1, %v407_v22  ;;  %v411_v26 = vadd.f32 %v410_v24, %v2778_v13 }
  0xea   :  { %v704_v20 = vpop.f32.mrf.mxu1  ;;  %v412_v28 = vpop.f32.mrf.mxu0 }
  0xeb   :  { %1509 = vst.msk [vmem:[%s3758_s6 + $0x388] sm:$0xff] %vm1396_vm1, %v701_v18  ;;  %v705_v21 = vadd.f32 %v704_v20, %v2778_v13  ;;  %1412 = vst [vmem:[%s3758_s6 + $0x80] sm:$0xff] %v411_v26  ;;  %v413_v30 = vadd.f32 %v412_v28, %v2781_v14 }
  0xec   :  { %v706_v23 = vpop.f32.mrf.mxu1  ;;  %v416_v32 = vpop.f32.mrf.mxu0 }
  0xed   :  { %1510 = vst [vmem:[%s3758_s6 + $0x390] sm:$0xff] %v705_v21  ;;  %v707_v25 = vadd.f32 %v706_v23, %v2781_v14  ;;  %1413 = vst.msk [vmem:[%s3758_s6 + $0x88] sm:$0xff] %vm1396_vm1, %v413_v30  ;;  %v417_v34 = vadd.f32 %v416_v32, %v2778_v13 }
  0xee   :  { %v710_v27 = vpop.f32.mrf.mxu1  ;;  %v418_v36 = vpop.f32.mrf.mxu0 }
  0xef   :  { %1511 = vst.msk [vmem:[%s3758_s6 + $0x398] sm:$0xff] %vm1396_vm1, %v707_v25  ;;  %v711_v29 = vadd.f32 %v710_v27, %v2778_v13  ;;  %1414 = vst [vmem:[%s3758_s6 + $0x90] sm:$0xff] %v417_v34  ;;  %v419_v38 = vadd.f32 %v418_v36, %v2781_v14 }
  0xf0   :  { %v712_v31 = vpop.f32.mrf.mxu1  ;;  %v422_v40 = vpop.f32.mrf.mxu0 }
  0xf1   :  { %1512 = vst [vmem:[%s3758_s6 + $0x3a0] sm:$0xff] %v711_v29  ;;  %v713_v33 = vadd.f32 %v712_v31, %v2781_v14  ;;  %1415 = vst.msk [vmem:[%s3758_s6 + $0x98] sm:$0xff] %vm1396_vm1, %v419_v38  ;;  %v423_v42 = vadd.f32 %v422_v40, %v2778_v13 }
  0xf2   :  { %v716_v35 = vpop.f32.mrf.mxu1  ;;  %v424_v44 = vpop.f32.mrf.mxu0 }
  0xf3   :  { %1513 = vst.msk [vmem:[%s3758_s6 + $0x3a8] sm:$0xff] %vm1396_vm1, %v713_v33  ;;  %v717_v37 = vadd.f32 %v716_v35, %v2778_v13  ;;  %1416 = vst [vmem:[%s3758_s6 + $0xa0] sm:$0xff] %v423_v42  ;;  %v425_v46 = vadd.f32 %v424_v44, %v2781_v14 }
  0xf4   :  { %v718_v39 = vpop.f32.mrf.mxu1  ;;  %v428_v48 = vpop.f32.mrf.mxu0 }
  0xf5   :  { %1514 = vst [vmem:[%s3758_s6 + $0x3b0] sm:$0xff] %v717_v37  ;;  %v719_v41 = vadd.f32 %v718_v39, %v2781_v14  ;;  %1417 = vst.msk [vmem:[%s3758_s6 + $0xa8] sm:$0xff] %vm1396_vm1, %v425_v46  ;;  %v429_v50 = vadd.f32 %v428_v48, %v2778_v13 }
  0xf6   :  { %v722_v43 = vpop.f32.mrf.mxu1  ;;  %v430_v52 = vpop.f32.mrf.mxu0 }
  0xf7   :  { %1515 = vst.msk [vmem:[%s3758_s6 + $0x3b8] sm:$0xff] %vm1396_vm1, %v719_v41  ;;  %v723_v45 = vadd.f32 %v722_v43, %v2778_v13  ;;  %1418 = vst [vmem:[%s3758_s6 + $0xb0] sm:$0xff] %v429_v50  ;;  %v431_v54 = vadd.f32 %v430_v52, %v2781_v14 }
  0xf8   :  { %v724_v47 = vpop.f32.mrf.mxu1  ;;  %v434_v56 = vpop.f32.mrf.mxu0 }
  0xf9   :  { %1516 = vst [vmem:[%s3758_s6 + $0x3c0] sm:$0xff] %v723_v45  ;;  %v725_v49 = vadd.f32 %v724_v47, %v2781_v14  ;;  %1419 = vst.msk [vmem:[%s3758_s6 + $0xb8] sm:$0xff] %vm1396_vm1, %v431_v54  ;;  %v435_v58 = vadd.f32 %v434_v56, %v2778_v13 }
  0xfa   :  { %v728_v51 = vpop.f32.mrf.mxu1  ;;  %v436_v60 = vpop.f32.mrf.mxu0 }
  0xfb   :  { %1517 = vst.msk [vmem:[%s3758_s6 + $0x3c8] sm:$0xff] %vm1396_vm1, %v725_v49  ;;  %v729_v53 = vadd.f32 %v728_v51, %v2778_v13  ;;  %1420 = vst [vmem:[%s3758_s6 + $0xc0] sm:$0xff] %v435_v58  ;;  %v437_v62 = vadd.f32 %v436_v60, %v2781_v14 }
  0xfc   :  { %v730_v55 = vpop.f32.mrf.mxu1  ;;  %v440_v0 = vpop.f32.mrf.mxu0 }
  0xfd   :  { %1518 = vst [vmem:[%s3758_s6 + $0x3d0] sm:$0xff] %v729_v53  ;;  %v731_v57 = vadd.f32 %v730_v55, %v2781_v14  ;;  %1421 = vst.msk [vmem:[%s3758_s6 + $0xc8] sm:$0xff] %vm1396_vm1, %v437_v62  ;;  %v441_v2 = vadd.f32 %v440_v0, %v2778_v13 }
  0xfe   :  { %v734_v59 = vpop.f32.mrf.mxu1  ;;  %v442_v5 = vpop.f32.mrf.mxu0 }
  0xff   :  { %1519 = vst.msk [vmem:[%s3758_s6 + $0x3d8] sm:$0xff] %vm1396_vm1, %v731_v57  ;;  %v735_v61 = vadd.f32 %v734_v59, %v2778_v13  ;;  %1422 = vst [vmem:[%s3758_s6 + $0xd0] sm:$0xff] %v441_v2  ;;  %v443_v7 = vadd.f32 %v442_v5, %v2781_v14 }
 0x100   :  { %v736_v63 = vpop.f32.mrf.mxu1  ;;  %v446_v10 = vpop.f32.mrf.mxu0 }
 0x101   :  { %1520 = vst [vmem:[%s3758_s6 + $0x3e0] sm:$0xff] %v735_v61  ;;  %v737_v1 = vadd.f32 %v736_v63, %v2781_v14  ;;  %1423 = vst.msk [vmem:[%s3758_s6 + $0xd8] sm:$0xff] %vm1396_vm1, %v443_v7  ;;  %v447_v12 = vadd.f32 %v446_v10, %v2778_v13 }
 0x102   :  { %v740_v4 = vpop.f32.mrf.mxu1  ;;  %v448_v16 = vpop.f32.mrf.mxu0 }
 0x103   :  { %1521 = vst.msk [vmem:[%s3758_s6 + $0x3e8] sm:$0xff] %vm1396_vm1, %v737_v1  ;;  %v741_v6 = vadd.f32 %v740_v4, %v2778_v13  ;;  %1424 = vst [vmem:[%s3758_s6 + $0xe0] sm:$0xff] %v447_v12  ;;  %v449_v18 = vadd.f32 %v448_v16, %v2781_v14 }
 0x104   :  { %v742_v8 = vpop.f32.mrf.mxu1  ;;  %v452_v20 = vpop.f32.mrf.mxu0 }
 0x105   :  { %1522 = vst [vmem:[%s3758_s6 + $0x3f0] sm:$0xff] %v741_v6  ;;  %v743_v11 = vadd.f32 %v742_v8, %v2781_v14  ;;  %1425 = vst.msk [vmem:[%s3758_s6 + $0xe8] sm:$0xff] %vm1396_vm1, %v449_v18  ;;  %v453_v3 = vadd.f32 %v452_v20, %v2778_v13 }
 0x106   :  { %v2050_v15 = vpop.f32.mrf.mxu1  ;;  %v454_v22 = vpop.f32.mrf.mxu0 }
 0x107   :  { %1523 = vst.msk [vmem:[%s3758_s6 + $0x3f8] sm:$0xff] %vm1396_vm1, %v743_v11  ;;  %v1082_v17 = vadd.f32 %v2050_v15, %v3049_v9  ;;  %1426 = vst [vmem:[%s3758_s6 + $0xf0] sm:$0xff] %v453_v3  ;;  %v455_v25 = vadd.f32 %v454_v22, %v2781_v14 }
 0x108   :  { %v1076_v19 = vpop.f32.mrf.mxu1  ;;  %v458_v27 = vpop.f32.mrf.mxu0 }
 0x109   :  { %1590 = vrot.lane.b32.xlu0 %v1082_v17, %s2151_s2  ;;  %v1077_v23 = vadd.f32 %v3049_v9, %v1076_v19  ;;  %1427 = vst.msk [vmem:[%s3758_s6 + $0xf8] sm:$0xff] %vm1396_vm1, %v455_v25  ;;  %v459_v28 = vadd.f32 %v458_v27, %v2778_v13 }
 0x10a   :  { %v2053_v21 = vpop.f32.mrf.mxu1  ;;  %v460_v30 = vpop.f32.mrf.mxu0 }
 0x10b   :  { %v1092_v24 = vadd.f32 %v2053_v21, %v3049_v9  ;;  %1428 = vst [vmem:[%s3758_s6 + $0x100] sm:$0xff] %v459_v28  ;;  %v461_v32 = vadd.f32 %v460_v30, %v2781_v14 }
 0x10c   :  { %v1086_v26 = vpop.f32.mrf.mxu1  ;;  %v464_v34 = vpop.f32.mrf.mxu0 }
 0x10d   :  { %1594 = vrot.lane.b32.xlu1 %v1092_v24, %s2151_s2  ;;  %1588 = vrot.lane.b32.xlu0 %v1077_v23, %s2151_s2  ;;  %v1087_v31 = vadd.f32 %v3049_v9, %v1086_v26  ;;  %1429 = vst.msk [vmem:[%s3758_s6 + $0x108] sm:$0xff] %vm1396_vm1, %v461_v32  ;;  %v465_v36 = vadd.f32 %v464_v34, %v2778_v13 }
 0x10e   :  { %v2056_v29 = vpop.f32.mrf.mxu1  ;;  %v466_v38 = vpop.f32.mrf.mxu0 }
 0x10f   :  { %v1102_v39 = vadd.f32 %v2056_v29, %v3049_v9  ;;  %1430 = vst [vmem:[%s3758_s6 + $0x110] sm:$0xff] %v465_v36  ;;  %v467_v40 = vadd.f32 %v466_v38, %v2781_v14 }
 0x110   :  { %v1096_v33 = vpop.f32.mrf.mxu1  ;;  %v470_v42 = vpop.f32.mrf.mxu0 }
 0x111   :  { %v1097_v35 = vadd.f32 %v3049_v9, %v1096_v33  ;;  %1592 = vrot.lane.b32.xlu1 %v1087_v31, %s2151_s2  ;;  %1431 = vst.msk [vmem:[%s3758_s6 + $0x118] sm:$0xff] %vm1396_vm1, %v467_v40  ;;  %v471_v44 = vadd.f32 %v470_v42, %v2778_v13 }
 0x112   :  { %v2059_v37 = vpop.f32.mrf.mxu1  ;;  %v472_v46 = vpop.f32.mrf.mxu0 }
 0x113   :  { %1596 = vrot.lane.b32.xlu0 %v1097_v35, %s2151_s2  ;;  %v1112_v47 = vadd.f32 %v2059_v37, %v3049_v9  ;;  %1432 = vst [vmem:[%s3758_s6 + $0x120] sm:$0xff] %v471_v44  ;;  %v473_v48 = vadd.f32 %v472_v46, %v2781_v14 }
 0x114   :  { %v1106_v41 = vpop.f32.mrf.mxu1  ;;  %v476_v50 = vpop.f32.mrf.mxu0 }
 0x115   :  { %v1107_v43 = vadd.f32 %v3049_v9, %v1106_v41  ;;  %1598 = vrot.lane.b32.xlu1 %v1102_v39, %s2151_s2  ;;  %1433 = vst.msk [vmem:[%s3758_s6 + $0x128] sm:$0xff] %vm1396_vm1, %v473_v48  ;;  %v477_v52 = vadd.f32 %v476_v50, %v2778_v13 }
 0x116   :  { %v2062_v45 = vpop.f32.mrf.mxu1  ;;  %v478_v54 = vpop.f32.mrf.mxu0 }
 0x117   :  { %1600 = vrot.lane.b32.xlu0 %v1107_v43, %s2151_s2  ;;  %v1122_v55 = vadd.f32 %v2062_v45, %v3049_v9  ;;  %1434 = vst [vmem:[%s3758_s6 + $0x130] sm:$0xff] %v477_v52  ;;  %v479_v56 = vadd.f32 %v478_v54, %v2781_v14 }
 0x118   :  { %v1116_v49 = vpop.f32.mrf.mxu1  ;;  %v482_v58 = vpop.f32.mrf.mxu0 }
 0x119   :  { %v1117_v51 = vadd.f32 %v3049_v9, %v1116_v49  ;;  %1602 = vrot.lane.b32.xlu1 %v1112_v47, %s2151_s2  ;;  %1435 = vst.msk [vmem:[%s3758_s6 + $0x138] sm:$0xff] %vm1396_vm1, %v479_v56  ;;  %v483_v60 = vadd.f32 %v482_v58, %v2778_v13 }
 0x11a   :  { %v2065_v53 = vpop.f32.mrf.mxu1  ;;  %v484_v62 = vpop.f32.mrf.mxu0 }
 0x11b   :  { %1604 = vrot.lane.b32.xlu0 %v1117_v51, %s2151_s2  ;;  %v1132_v63 = vadd.f32 %v2065_v53, %v3049_v9  ;;  %1436 = vst [vmem:[%s3758_s6 + $0x140] sm:$0xff] %v483_v60  ;;  %v485_v0 = vadd.f32 %v484_v62, %v2781_v14 }
 0x11c   :  { %v1126_v57 = vpop.f32.mrf.mxu1  ;;  %v488_v2 = vpop.f32.mrf.mxu0 }
 0x11d   :  { %v1127_v59 = vadd.f32 %v3049_v9, %v1126_v57  ;;  %1606 = vrot.lane.b32.xlu1 %v1122_v55, %s2151_s2  ;;  %1437 = vst.msk [vmem:[%s3758_s6 + $0x148] sm:$0xff] %vm1396_vm1, %v485_v0  ;;  %v489_v5 = vadd.f32 %v488_v2, %v2778_v13 }
 0x11e   :  { %v2068_v61 = vpop.f32.mrf.mxu1  ;;  %v490_v7 = vpop.f32.mrf.mxu0 }
 0x11f   :  { %1608 = vrot.lane.b32.xlu0 %v1127_v59, %s2151_s2  ;;  %v1142_v8 = vadd.f32 %v2068_v61, %v3049_v9  ;;  %1438 = vst [vmem:[%s3758_s6 + $0x150] sm:$0xff] %v489_v5  ;;  %v491_v10 = vadd.f32 %v490_v7, %v2781_v14 }
 0x120   :  { %v1136_v1 = vpop.f32.mrf.mxu1  ;;  %v494_v12 = vpop.f32.mrf.mxu0 }
 0x121   :  { %v1137_v4 = vadd.f32 %v3049_v9, %v1136_v1  ;;  %1610 = vrot.lane.b32.xlu1 %v1132_v63, %s2151_s2  ;;  %1439 = vst.msk [vmem:[%s3758_s6 + $0x158] sm:$0xff] %vm1396_vm1, %v491_v10  ;;  %v495_v16 = vadd.f32 %v494_v12, %v2778_v13 }
 0x122   :  { %v2071_v6 = vpop.f32.mrf.mxu1  ;;  %v496_v18 = vpop.f32.mrf.mxu0 }
 0x123   :  { %1612 = vrot.lane.b32.xlu0 %v1137_v4, %s2151_s2  ;;  %v1152_v19 = vadd.f32 %v2071_v6, %v3049_v9  ;;  %1440 = vst [vmem:[%s3758_s6 + $0x160] sm:$0xff] %v495_v16  ;;  %v497_v20 = vadd.f32 %v496_v18, %v2781_v14 }
 0x124   :  { %v1146_v11 = vpop.f32.mrf.mxu1  ;;  %v500_v21 = vpop.f32.mrf.mxu0 }
 0x125   :  { %v1147_v15 = vadd.f32 %v3049_v9, %v1146_v11  ;;  %1614 = vrot.lane.b32.xlu1 %v1142_v8, %s2151_s2  ;;  %1441 = vst.msk [vmem:[%s3758_s6 + $0x168] sm:$0xff] %vm1396_vm1, %v497_v20  ;;  %v501_v23 = vadd.f32 %v500_v21, %v2778_v13 }
 0x126   :  { %v2074_v17 = vpop.f32.mrf.mxu1  ;;  %v502_v25 = vpop.f32.mrf.mxu0 }
 0x127   :  { %1616 = vrot.lane.b32.xlu0 %v1147_v15, %s2151_s2  ;;  %v1162_v26 = vadd.f32 %v2074_v17, %v3049_v9  ;;  %1442 = vst [vmem:[%s3758_s6 + $0x170] sm:$0xff] %v501_v23  ;;  %v503_v27 = vadd.f32 %v502_v25, %v2781_v14 }
 0x128   :  { %v1156_v3 = vpop.f32.mrf.mxu1  ;;  %v506_v29 = vpop.f32.mrf.mxu0 }
 0x129   :  { %v1157_v22 = vadd.f32 %v3049_v9, %v1156_v3  ;;  %1618 = vrot.lane.b32.xlu1 %v1152_v19, %s2151_s2  ;;  %1443 = vst.msk [vmem:[%s3758_s6 + $0x178] sm:$0xff] %vm1396_vm1, %v503_v27  ;;  %v507_v31 = vadd.f32 %v506_v29, %v2778_v13 }
 0x12a   :  { %v2077_v24 = vpop.f32.mrf.mxu1  ;;  %v508_v33 = vpop.f32.mrf.mxu0 }
 0x12b   :  { %1620 = vrot.lane.b32.xlu0 %v1157_v22, %s2151_s2  ;;  %v1172_v34 = vadd.f32 %v2077_v24, %v3049_v9  ;;  %1444 = vst [vmem:[%s3758_s6 + $0x180] sm:$0xff] %v507_v31  ;;  %v509_v35 = vadd.f32 %v508_v33, %v2781_v14 }
 0x12c   :  { %v1166_v28 = vpop.f32.mrf.mxu1  ;;  %v512_v37 = vpop.f32.mrf.mxu0 }
 0x12d   :  { %v1167_v30 = vadd.f32 %v3049_v9, %v1166_v28  ;;  %1622 = vrot.lane.b32.xlu1 %v1162_v26, %s2151_s2  ;;  %1445 = vst.msk [vmem:[%s3758_s6 + $0x188] sm:$0xff] %vm1396_vm1, %v509_v35  ;;  %v513_v39 = vadd.f32 %v512_v37, %v2778_v13 }
 0x12e   :  { %v2080_v32 = vpop.f32.mrf.mxu1  ;;  %v514_v41 = vpop.f32.mrf.mxu0 }
 0x12f   :  { %1624 = vrot.lane.b32.xlu0 %v1167_v30, %s2151_s2  ;;  %v1182_v42 = vadd.f32 %v2080_v32, %v3049_v9  ;;  %1446 = vst [vmem:[%s3758_s6 + $0x190] sm:$0xff] %v513_v39  ;;  %v515_v43 = vadd.f32 %v514_v41, %v2781_v14 }
 0x130   :  { %v1176_v36 = vpop.f32.mrf.mxu1  ;;  %v518_v45 = vpop.f32.mrf.mxu0 }
 0x131   :  { %v1177_v38 = vadd.f32 %v3049_v9, %v1176_v36  ;;  %1626 = vrot.lane.b32.xlu1 %v1172_v34, %s2151_s2  ;;  %1447 = vst.msk [vmem:[%s3758_s6 + $0x198] sm:$0xff] %vm1396_vm1, %v515_v43  ;;  %v519_v47 = vadd.f32 %v518_v45, %v2778_v13 }
 0x132   :  { %v2083_v40 = vpop.f32.mrf.mxu1  ;;  %v520_v49 = vpop.f32.mrf.mxu0 }
 0x133   :  { %1628 = vrot.lane.b32.xlu0 %v1177_v38, %s2151_s2  ;;  %v1192_v50 = vadd.f32 %v2083_v40, %v3049_v9  ;;  %1448 = vst [vmem:[%s3758_s6 + $0x1a0] sm:$0xff] %v519_v47  ;;  %v521_v51 = vadd.f32 %v520_v49, %v2781_v14 }
 0x134   :  { %v1186_v44 = vpop.f32.mrf.mxu1  ;;  %v524_v53 = vpop.f32.mrf.mxu0 }
 0x135   :  { %v1187_v46 = vadd.f32 %v3049_v9, %v1186_v44  ;;  %1630 = vrot.lane.b32.xlu1 %v1182_v42, %s2151_s2  ;;  %1449 = vst.msk [vmem:[%s3758_s6 + $0x1a8] sm:$0xff] %vm1396_vm1, %v521_v51  ;;  %v525_v55 = vadd.f32 %v524_v53, %v2778_v13 }
 0x136   :  { %v2086_v48 = vpop.f32.mrf.mxu1  ;;  %v526_v57 = vpop.f32.mrf.mxu0 }
 0x137   :  { %1632 = vrot.lane.b32.xlu0 %v1187_v46, %s2151_s2  ;;  %v1202_v58 = vadd.f32 %v2086_v48, %v3049_v9  ;;  %1450 = vst [vmem:[%s3758_s6 + $0x1b0] sm:$0xff] %v525_v55  ;;  %v527_v59 = vadd.f32 %v526_v57, %v2781_v14 }
 0x138   :  { %v1196_v52 = vpop.f32.mrf.mxu1  ;;  %v530_v61 = vpop.f32.mrf.mxu0 }
 0x139   :  { %v1197_v54 = vadd.f32 %v3049_v9, %v1196_v52  ;;  %1634 = vrot.lane.b32.xlu1 %v1192_v50, %s2151_s2  ;;  %1451 = vst.msk [vmem:[%s3758_s6 + $0x1b8] sm:$0xff] %vm1396_vm1, %v527_v59  ;;  %v531_v63 = vadd.f32 %v530_v61, %v2778_v13 }
 0x13a   :  { %v2089_v56 = vpop.f32.mrf.mxu1  ;;  %v532_v1 = vpop.f32.mrf.mxu0 }
 0x13b   :  { %1636 = vrot.lane.b32.xlu0 %v1197_v54, %s2151_s2  ;;  %v1212_v2 = vadd.f32 %v2089_v56, %v3049_v9  ;;  %1452 = vst [vmem:[%s3758_s6 + $0x1c0] sm:$0xff] %v531_v63  ;;  %v533_v4 = vadd.f32 %v532_v1, %v2781_v14 }
 0x13c   :  { %v1206_v60 = vpop.f32.mrf.mxu1  ;;  %v536_v6 = vpop.f32.mrf.mxu0 }
 0x13d   :  { %v1207_v62 = vadd.f32 %v3049_v9, %v1206_v60  ;;  %1638 = vrot.lane.b32.xlu1 %v1202_v58, %s2151_s2  ;;  %1453 = vst.msk [vmem:[%s3758_s6 + $0x1c8] sm:$0xff] %vm1396_vm1, %v533_v4  ;;  %v537_v8 = vadd.f32 %v536_v6, %v2778_v13 }
 0x13e   :  { %v2092_v0 = vpop.f32.mrf.mxu1  ;;  %v538_v11 = vpop.f32.mrf.mxu0 }
 0x13f   :  { %1640 = vrot.lane.b32.xlu0 %v1207_v62, %s2151_s2  ;;  %v1222_v12 = vadd.f32 %v2092_v0, %v3049_v9  ;;  %1454 = vst [vmem:[%s3758_s6 + $0x1d0] sm:$0xff] %v537_v8  ;;  %v539_v15 = vadd.f32 %v538_v11, %v2781_v14 }
 0x140   :  { %v1216_v5 = vpop.f32.mrf.mxu1  ;;  %v542_v17 = vpop.f32.mrf.mxu0 }
 0x141   :  { %v1217_v7 = vadd.f32 %v3049_v9, %v1216_v5  ;;  %1642 = vrot.lane.b32.xlu1 %v1212_v2, %s2151_s2  ;;  %1455 = vst.msk [vmem:[%s3758_s6 + $0x1d8] sm:$0xff] %vm1396_vm1, %v539_v15  ;;  %v543_v19 = vadd.f32 %v542_v17, %v2778_v13 }
 0x142   :  { %v2095_v10 = vpop.f32.mrf.mxu1  ;;  %v544_v3 = vpop.f32.mrf.mxu0 }
 0x143   :  { %1644 = vrot.lane.b32.xlu0 %v1217_v7, %s2151_s2  ;;  %v1232_v21 = vadd.f32 %v2095_v10, %v3049_v9  ;;  %1456 = vst [vmem:[%s3758_s6 + $0x1e0] sm:$0xff] %v543_v19  ;;  %v545_v22 = vadd.f32 %v544_v3, %v2781_v14 }
 0x144   :  { %v1226_v16 = vpop.f32.mrf.mxu1  ;;  %v548_v24 = vpop.f32.mrf.mxu0 }
 0x145   :  { %v1227_v18 = vadd.f32 %v3049_v9, %v1226_v16  ;;  %1646 = vrot.lane.b32.xlu1 %v1222_v12, %s2151_s2  ;;  %1457 = vst.msk [vmem:[%s3758_s6 + $0x1e8] sm:$0xff] %vm1396_vm1, %v545_v22  ;;  %v549_v26 = vadd.f32 %v548_v24, %v2778_v13 }
 0x146   :  { %v2098_v20 = vpop.f32.mrf.mxu1  ;;  %v550_v28 = vpop.f32.mrf.mxu0 }
 0x147   :  { %1648 = vrot.lane.b32.xlu0 %v1227_v18, %s2151_s2  ;;  %v1242_v29 = vadd.f32 %v2098_v20, %v3049_v9  ;;  %1458 = vst [vmem:[%s3758_s6 + $0x1f0] sm:$0xff] %v549_v26  ;;  %v551_v30 = vadd.f32 %v550_v28, %v2781_v14 }
 0x148   :  { %v1236_v23 = vpop.f32.mrf.mxu1  ;;  %v554_v32 = vpop.f32.mrf.mxu0 }
 0x149   :  { %v1237_v25 = vadd.f32 %v3049_v9, %v1236_v23  ;;  %1650 = vrot.lane.b32.xlu1 %v1232_v21, %s2151_s2  ;;  %1459 = vst.msk [vmem:[%s3758_s6 + $0x1f8] sm:$0xff] %vm1396_vm1, %v551_v30  ;;  %v555_v34 = vadd.f32 %v554_v32, %v2778_v13 }
 0x14a   :  { %v2101_v27 = vpop.f32.mrf.mxu1  ;;  %v556_v36 = vpop.f32.mrf.mxu0 }
 0x14b   :  { %1652 = vrot.lane.b32.xlu0 %v1237_v25, %s2151_s2  ;;  %v1252_v37 = vadd.f32 %v2101_v27, %v3049_v9  ;;  %1460 = vst [vmem:[%s3758_s6 + $0x200] sm:$0xff] %v555_v34  ;;  %v557_v38 = vadd.f32 %v556_v36, %v2781_v14 }
 0x14c   :  { %v1246_v31 = vpop.f32.mrf.mxu1  ;;  %v560_v40 = vpop.f32.mrf.mxu0 }
 0x14d   :  { %v1247_v33 = vadd.f32 %v3049_v9, %v1246_v31  ;;  %1654 = vrot.lane.b32.xlu1 %v1242_v29, %s2151_s2  ;;  %1461 = vst.msk [vmem:[%s3758_s6 + $0x208] sm:$0xff] %vm1396_vm1, %v557_v38  ;;  %v561_v42 = vadd.f32 %v560_v40, %v2778_v13 }
 0x14e   :  { %v2104_v35 = vpop.f32.mrf.mxu1  ;;  %v562_v44 = vpop.f32.mrf.mxu0 }
 0x14f   :  { %1656 = vrot.lane.b32.xlu0 %v1247_v33, %s2151_s2  ;;  %v1262_v45 = vadd.f32 %v2104_v35, %v3049_v9  ;;  %1462 = vst [vmem:[%s3758_s6 + $0x210] sm:$0xff] %v561_v42  ;;  %v563_v46 = vadd.f32 %v562_v44, %v2781_v14 }
 0x150   :  { %v1256_v39 = vpop.f32.mrf.mxu1  ;;  %v566_v48 = vpop.f32.mrf.mxu0 }
 0x151   :  { %v1257_v41 = vadd.f32 %v3049_v9, %v1256_v39  ;;  %1658 = vrot.lane.b32.xlu1 %v1252_v37, %s2151_s2  ;;  %1463 = vst.msk [vmem:[%s3758_s6 + $0x218] sm:$0xff] %vm1396_vm1, %v563_v46  ;;  %v567_v50 = vadd.f32 %v566_v48, %v2778_v13 }
 0x152   :  { %v2107_v43 = vpop.f32.mrf.mxu1  ;;  %v568_v52 = vpop.f32.mrf.mxu0 }
 0x153   :  { %1660 = vrot.lane.b32.xlu0 %v1257_v41, %s2151_s2  ;;  %v1272_v53 = vadd.f32 %v2107_v43, %v3049_v9  ;;  %1464 = vst [vmem:[%s3758_s6 + $0x220] sm:$0xff] %v567_v50  ;;  %v569_v54 = vadd.f32 %v568_v52, %v2781_v14 }
 0x154   :  { %v1266_v47 = vpop.f32.mrf.mxu1  ;;  %v572_v56 = vpop.f32.mrf.mxu0 }
 0x155   :  { %v1267_v49 = vadd.f32 %v3049_v9, %v1266_v47  ;;  %1662 = vrot.lane.b32.xlu1 %v1262_v45, %s2151_s2  ;;  %1465 = vst.msk [vmem:[%s3758_s6 + $0x228] sm:$0xff] %vm1396_vm1, %v569_v54  ;;  %v573_v58 = vadd.f32 %v572_v56, %v2778_v13 }
 0x156   :  { %v2110_v51 = vpop.f32.mrf.mxu1  ;;  %v574_v60 = vpop.f32.mrf.mxu0 }
 0x157   :  { %1664 = vrot.lane.b32.xlu0 %v1267_v49, %s2151_s2  ;;  %v1282_v61 = vadd.f32 %v2110_v51, %v3049_v9  ;;  %1466 = vst [vmem:[%s3758_s6 + $0x230] sm:$0xff] %v573_v58  ;;  %v575_v62 = vadd.f32 %v574_v60, %v2781_v14 }
 0x158   :  { %v1276_v55 = vpop.f32.mrf.mxu1  ;;  %v578_v0 = vpop.f32.mrf.mxu0 }
 0x159   :  { %v1277_v57 = vadd.f32 %v3049_v9, %v1276_v55  ;;  %1666 = vrot.lane.b32.xlu1 %v1272_v53, %s2151_s2  ;;  %1467 = vst.msk [vmem:[%s3758_s6 + $0x238] sm:$0xff] %vm1396_vm1, %v575_v62  ;;  %v579_v2 = vadd.f32 %v578_v0, %v2778_v13 }
 0x15a   :  { %v2113_v59 = vpop.f32.mrf.mxu1  ;;  %v580_v5 = vpop.f32.mrf.mxu0 }
 0x15b   :  { %1668 = vrot.lane.b32.xlu0 %v1277_v57, %s2151_s2  ;;  %v1292_v6 = vadd.f32 %v2113_v59, %v3049_v9  ;;  %1468 = vst [vmem:[%s3758_s6 + $0x240] sm:$0xff] %v579_v2  ;;  %v581_v7 = vadd.f32 %v580_v5, %v2781_v14 }
 0x15c   :  { %v1286_v63 = vpop.f32.mrf.mxu1  ;;  %v584_v10 = vpop.f32.mrf.mxu0 }
 0x15d   :  { %v1287_v1 = vadd.f32 %v3049_v9, %v1286_v63  ;;  %1670 = vrot.lane.b32.xlu1 %v1282_v61, %s2151_s2  ;;  %1469 = vst.msk [vmem:[%s3758_s6 + $0x248] sm:$0xff] %vm1396_vm1, %v581_v7  ;;  %v585_v12 = vadd.f32 %v584_v10, %v2778_v13 }
 0x15e   :  { %v2116_v4 = vpop.f32.mrf.mxu1  ;;  %v586_v16 = vpop.f32.mrf.mxu0 }
 0x15f   :  { %1672 = vrot.lane.b32.xlu0 %v1287_v1, %s2151_s2  ;;  %v1302_v17 = vadd.f32 %v2116_v4, %v3049_v9  ;;  %1470 = vst [vmem:[%s3758_s6 + $0x250] sm:$0xff] %v585_v12  ;;  %v587_v18 = vadd.f32 %v586_v16, %v2781_v14 }
 0x160   :  { %v1296_v8 = vpop.f32.mrf.mxu1  ;;  %v590_v20 = vpop.f32.mrf.mxu0 }
 0x161   :  { %v1297_v11 = vadd.f32 %v3049_v9, %v1296_v8  ;;  %1674 = vrot.lane.b32.xlu1 %v1292_v6, %s2151_s2  ;;  %1471 = vst.msk [vmem:[%s3758_s6 + $0x258] sm:$0xff] %vm1396_vm1, %v587_v18  ;;  %v591_v21 = vadd.f32 %v590_v20, %v2778_v13 }
 0x162   :  { %v2119_v15 = vpop.f32.mrf.mxu1  ;;  %v592_v23 = vpop.f32.mrf.mxu0 }
 0x163   :  { %1676 = vrot.lane.b32.xlu0 %v1297_v11, %s2151_s2  ;;  %v1312_v24 = vadd.f32 %v2119_v15, %v3049_v9  ;;  %1472 = vst [vmem:[%s3758_s6 + $0x260] sm:$0xff] %v591_v21  ;;  %v593_v25 = vadd.f32 %v592_v23, %v2781_v14 }
 0x164   :  { %v1306_v19 = vpop.f32.mrf.mxu1  ;;  %v596_v27 = vpop.f32.mrf.mxu0 }
 0x165   :  { %v1307_v3 = vadd.f32 %v3049_v9, %v1306_v19  ;;  %1678 = vrot.lane.b32.xlu1 %v1302_v17, %s2151_s2  ;;  %1473 = vst.msk [vmem:[%s3758_s6 + $0x268] sm:$0xff] %vm1396_vm1, %v593_v25  ;;  %v597_v29 = vadd.f32 %v596_v27, %v2778_v13 }
 0x166   :  { %v2122_v22 = vpop.f32.mrf.mxu1  ;;  %v598_v31 = vpop.f32.mrf.mxu0 }
 0x167   :  { %1680 = vrot.lane.b32.xlu0 %v1307_v3, %s2151_s2  ;;  %v1322_v32 = vadd.f32 %v2122_v22, %v3049_v9  ;;  %1474 = vst [vmem:[%s3758_s6 + $0x270] sm:$0xff] %v597_v29  ;;  %v599_v33 = vadd.f32 %v598_v31, %v2781_v14 }
 0x168   :  { %v1316_v26 = vpop.f32.mrf.mxu1  ;;  %v602_v35 = vpop.f32.mrf.mxu0 }
 0x169   :  { %v1317_v28 = vadd.f32 %v3049_v9, %v1316_v26  ;;  %1682 = vrot.lane.b32.xlu1 %v1312_v24, %s2151_s2  ;;  %1475 = vst.msk [vmem:[%s3758_s6 + $0x278] sm:$0xff] %vm1396_vm1, %v599_v33  ;;  %v603_v37 = vadd.f32 %v602_v35, %v2778_v13 }
 0x16a   :  { %v2125_v30 = vpop.f32.mrf.mxu1  ;;  %v604_v39 = vpop.f32.mrf.mxu0 }
 0x16b   :  { %1684 = vrot.lane.b32.xlu0 %v1317_v28, %s2151_s2  ;;  %v1332_v40 = vadd.f32 %v2125_v30, %v3049_v9  ;;  %1476 = vst [vmem:[%s3758_s6 + $0x280] sm:$0xff] %v603_v37  ;;  %v605_v41 = vadd.f32 %v604_v39, %v2781_v14 }
 0x16c   :  { %v1326_v34 = vpop.f32.mrf.mxu1  ;;  %v608_v43 = vpop.f32.mrf.mxu0 }
 0x16d   :  { %v1327_v36 = vadd.f32 %v3049_v9, %v1326_v34  ;;  %1686 = vrot.lane.b32.xlu1 %v1322_v32, %s2151_s2  ;;  %1477 = vst.msk [vmem:[%s3758_s6 + $0x288] sm:$0xff] %vm1396_vm1, %v605_v41  ;;  %v609_v45 = vadd.f32 %v608_v43, %v2778_v13 }
 0x16e   :  { %v2128_v38 = vpop.f32.mrf.mxu1  ;;  %v610_v47 = vpop.f32.mrf.mxu0 }
 0x16f   :  { %1688 = vrot.lane.b32.xlu0 %v1327_v36, %s2151_s2  ;;  %v1342_v48 = vadd.f32 %v2128_v38, %v3049_v9  ;;  %1478 = vst [vmem:[%s3758_s6 + $0x290] sm:$0xff] %v609_v45  ;;  %v611_v49 = vadd.f32 %v610_v47, %v2781_v14 }
 0x170   :  { %v1336_v42 = vpop.f32.mrf.mxu1  ;;  %v614_v51 = vpop.f32.mrf.mxu0 }
 0x171   :  { %v1337_v44 = vadd.f32 %v3049_v9, %v1336_v42  ;;  %1690 = vrot.lane.b32.xlu1 %v1332_v40, %s2151_s2  ;;  %1479 = vst.msk [vmem:[%s3758_s6 + $0x298] sm:$0xff] %vm1396_vm1, %v611_v49  ;;  %v615_v53 = vadd.f32 %v614_v51, %v2778_v13 }
 0x172   :  { %v2131_v46 = vpop.f32.mrf.mxu1  ;;  %v616_v55 = vpop.f32.mrf.mxu0 }
 0x173   :  { %1692 = vrot.lane.b32.xlu0 %v1337_v44, %s2151_s2  ;;  %v1352_v56 = vadd.f32 %v2131_v46, %v3049_v9  ;;  %1480 = vst [vmem:[%s3758_s6 + $0x2a0] sm:$0xff] %v615_v53  ;;  %v617_v57 = vadd.f32 %v616_v55, %v2781_v14 }
 0x174   :  { %v1346_v50 = vpop.f32.mrf.mxu1  ;;  %v620_v59 = vpop.f32.mrf.mxu0 }
 0x175   :  { %v1347_v52 = vadd.f32 %v3049_v9, %v1346_v50  ;;  %1694 = vrot.lane.b32.xlu1 %v1342_v48, %s2151_s2  ;;  %1481 = vst.msk [vmem:[%s3758_s6 + $0x2a8] sm:$0xff] %vm1396_vm1, %v617_v57  ;;  %v621_v61 = vadd.f32 %v620_v59, %v2778_v13 }
 0x176   :  { %v2134_v54 = vpop.f32.mrf.mxu1  ;;  %v622_v63 = vpop.f32.mrf.mxu0 }
 0x177   :  { %1696 = vrot.lane.b32.xlu0 %v1347_v52, %s2151_s2  ;;  %v1362_v0 = vadd.f32 %v2134_v54, %v3049_v9  ;;  %1482 = vst [vmem:[%s3758_s6 + $0x2b0] sm:$0xff] %v621_v61  ;;  %v623_v2 = vadd.f32 %v622_v63, %v2781_v14 }
 0x178   :  { %v1356_v58 = vpop.f32.mrf.mxu1  ;;  %v626_v5 = vpop.f32.mrf.mxu0 }
 0x179   :  { %v1357_v60 = vadd.f32 %v3049_v9, %v1356_v58  ;;  %1698 = vrot.lane.b32.xlu1 %v1352_v56, %s2151_s2  ;;  %1483 = vst.msk [vmem:[%s3758_s6 + $0x2b8] sm:$0xff] %vm1396_vm1, %v623_v2  ;;  %v627_v7 = vadd.f32 %v626_v5, %v2778_v13 }
 0x17a   :  { %v2137_v62 = vpop.f32.mrf.mxu1  ;;  %v628_v10 = vpop.f32.mrf.mxu0 }
 0x17b   :  { %v1591_v1 = vpop.permute.xlu0 %1590  ;;  %1700 = vrot.lane.b32.xlu0 %v1357_v60, %s2151_s2  ;;  %v1372_v11 = vadd.f32 %v2137_v62, %v3049_v9  ;;  %1484 = vst [vmem:[%s3758_s6 + $0x2c0] sm:$0xff] %v627_v7  ;;  %v629_v16 = vadd.f32 %v628_v10, %v2781_v14 }
 0x17c   :  { %1782 = vst.msk [vmem:[%s3758_s6 + $0x18] sm:$0xff] %vm1780_vm2, %v1591_v1  ;;  %v1366_v4 = vpop.f32.mrf.mxu1  ;;  %v632_v18 = vpop.f32.mrf.mxu0 }
 0x17d   :  { %v1367_v6 = vadd.f32 %v3049_v9, %v1366_v4  ;;  %1702 = vrot.lane.b32.xlu1 %v1362_v0, %s2151_s2  ;;  %1485 = vst.msk [vmem:[%s3758_s6 + $0x2c8] sm:$0xff] %vm1396_vm1, %v629_v16  ;;  %v633_v20 = vadd.f32 %v632_v18, %v2778_v13 }
 0x17e   :  { %v2140_v8 = vpop.f32.mrf.mxu1  ;;  %v634_v21 = vpop.f32.mrf.mxu0 }
 0x17f   :  { %v1595_v12 = vpop.permute.xlu1 %1594  ;;  %v1589_v15 = vpop.permute.xlu0 %1588  ;;  %1704 = vrot.lane.b32.xlu0 %v1367_v6, %s2151_s2  ;;  %v1382_v22 = vadd.f32 %v2140_v8, %v3049_v9  ;;  %1486 = vst [vmem:[%s3758_s6 + $0x2d0] sm:$0xff] %v633_v20  ;;  %v635_v24 = vadd.f32 %v634_v21, %v2781_v14 }
 0x180   :  { %1784 = vst.msk [vmem:[%s3758_s6 + $0x38] sm:$0xff] %vm1780_vm2, %v1595_v12  ;;  %1781 = vst.msk [vmem:[%s3758_s6 + $0x8] sm:$0xff] %vm1780_vm2, %v1589_v15  ;;  %v1376_v17 = vpop.f32.mrf.mxu1  ;;  %v638_v26 = vpop.f32.mrf.mxu0 }
 0x181   :  { %v1377_v19 = vadd.f32 %v3049_v9, %v1376_v17  ;;  %1706 = vrot.lane.b32.xlu1 %v1372_v11, %s2151_s2  ;;  %1487 = vst.msk [vmem:[%s3758_s6 + $0x2d8] sm:$0xff] %vm1396_vm1, %v635_v24  ;;  %v639_v29 = vadd.f32 %v638_v26, %v2778_v13 }
 0x182   :  { %v2143_v3 = vpop.f32.mrf.mxu1  ;;  %v640_v30 = vpop.f32.mrf.mxu0 }
 0x183   :  { %v1593_v23 = vpop.permute.xlu1 %1592  ;;  %1708 = vrot.lane.b32.xlu0 %v1377_v19, %s2151_s2  ;;  %v1392_v31 = vadd.f32 %v2143_v3, %v3049_v9  ;;  %1488 = vst [vmem:[%s3758_s6 + $0x2e0] sm:$0xff] %v639_v29  ;;  %v641_v33 = vadd.f32 %v640_v30, %v2781_v14 }
 0x184   :  { %1783 = vst.msk [vmem:[%s3758_s6 + $0x28] sm:$0xff] %vm1780_vm2, %v1593_v23  ;;  %v1386_v25 = vpop.f32.mrf.mxu1  ;;  %v644_v34 = vpop.f32.mrf.mxu0 }
 0x185   :  { %v1387_v27 = vadd.f32 %v3049_v9, %v1386_v25  ;;  %1710 = vrot.lane.b32.xlu1 %v1382_v22, %s2151_s2  ;;  %v1597_v28 = vpop.permute.xlu0 %1596  ;;  %1489 = vst.msk [vmem:[%s3758_s6 + $0x2e8] sm:$0xff] %vm1396_vm1, %v641_v33  ;;  %v645_v9 = vadd.f32 %v644_v34, %v2778_v13 }
 0x186   :  { %1785 = vst.msk [vmem:[%s3758_s6 + $0x48] sm:$0xff] %vm1780_vm2, %v1597_v28  ;;  %v646_v36 = vpop.f32.mrf.mxu0 }
 0x187   :  { %v1599_v32 = vpop.permute.xlu1 %1598  ;;  %1712 = vrot.lane.b32.xlu0 %v1387_v27, %s2151_s2  ;;  %1490 = vst [vmem:[%s3758_s6 + $0x2f0] sm:$0xff] %v645_v9  ;;  %v647_v38 = vadd.f32 %v646_v36, %v2781_v14 }
 0x188   :  { %1786 = vst.msk [vmem:[%s3758_s6 + $0x58] sm:$0xff] %vm1780_vm2, %v1599_v32 }
 0x189   :  { %1714 = vrot.lane.b32.xlu1 %v1392_v31, %s2151_s2  ;;  %v1601_v35 = vpop.permute.xlu0 %1600  ;;  %1491 = vst.msk [vmem:[%s3758_s6 + $0x2f8] sm:$0xff] %vm1396_vm1, %v647_v38 }
 0x18a   :  { %1787 = vst.msk [vmem:[%s3758_s6 + $0x68] sm:$0xff] %vm1780_vm2, %v1601_v35 }
 0x18b   :  { %v1603_v37 = vpop.permute.xlu1 %1602 }
 0x18c   :  { %1788 = vst.msk [vmem:[%s3758_s6 + $0x78] sm:$0xff] %vm1780_vm2, %v1603_v37 }
 0x18d   :  { %v1605_v39 = vpop.permute.xlu0 %1604 }
 0x18e   :  { %1789 = vst.msk [vmem:[%s3758_s6 + $0x88] sm:$0xff] %vm1780_vm2, %v1605_v39 }
 0x18f   :  { %v1607_v13 = vpop.permute.xlu1 %1606 }
 0x190   :  { %1790 = vst.msk [vmem:[%s3758_s6 + $0x98] sm:$0xff] %vm1780_vm2, %v1607_v13 }
 0x191   :  { %v1609_v14 = vpop.permute.xlu0 %1608 }
 0x192   :  { %1791 = vst.msk [vmem:[%s3758_s6 + $0xa8] sm:$0xff] %vm1780_vm2, %v1609_v14 }
 0x193   :  { %v1611_v40 = vpop.permute.xlu1 %1610 }
 0x194   :  { %1792 = vst.msk [vmem:[%s3758_s6 + $0xb8] sm:$0xff] %vm1780_vm2, %v1611_v40 }
 0x195   :  { %v1613_v41 = vpop.permute.xlu0 %1612 }
 0x196   :  { %1793 = vst.msk [vmem:[%s3758_s6 + $0xc8] sm:$0xff] %vm1780_vm2, %v1613_v41 }
 0x197   :  { %v1615_v42 = vpop.permute.xlu1 %1614 }
 0x198   :  { %1794 = vst.msk [vmem:[%s3758_s6 + $0xd8] sm:$0xff] %vm1780_vm2, %v1615_v42 }
 0x199   :  { %v1617_v43 = vpop.permute.xlu0 %1616 }
 0x19a   :  { %1795 = vst.msk [vmem:[%s3758_s6 + $0xe8] sm:$0xff] %vm1780_vm2, %v1617_v43 }
 0x19b   :  { %v1619_v44 = vpop.permute.xlu1 %1618 }
 0x19c   :  { %1796 = vst.msk [vmem:[%s3758_s6 + $0xf8] sm:$0xff] %vm1780_vm2, %v1619_v44 }
 0x19d   :  { %v1621_v45 = vpop.permute.xlu0 %1620 }
 0x19e   :  { %1797 = vst.msk [vmem:[%s3758_s6 + $0x108] sm:$0xff] %vm1780_vm2, %v1621_v45 }
 0x19f   :  { %v1623_v46 = vpop.permute.xlu1 %1622 }
 0x1a0   :  { %1798 = vst.msk [vmem:[%s3758_s6 + $0x118] sm:$0xff] %vm1780_vm2, %v1623_v46 }
 0x1a1   :  { %v1625_v47 = vpop.permute.xlu0 %1624 }
 0x1a2   :  { %1799 = vst.msk [vmem:[%s3758_s6 + $0x128] sm:$0xff] %vm1780_vm2, %v1625_v47 }
 0x1a3   :  { %v1627_v48 = vpop.permute.xlu1 %1626 }
 0x1a4   :  { %1800 = vst.msk [vmem:[%s3758_s6 + $0x138] sm:$0xff] %vm1780_vm2, %v1627_v48 }
 0x1a5   :  { %v1629_v49 = vpop.permute.xlu0 %1628 }
 0x1a6   :  { %1801 = vst.msk [vmem:[%s3758_s6 + $0x148] sm:$0xff] %vm1780_vm2, %v1629_v49 }
 0x1a7   :  { %v1631_v50 = vpop.permute.xlu1 %1630 }
 0x1a8   :  { %1802 = vst.msk [vmem:[%s3758_s6 + $0x158] sm:$0xff] %vm1780_vm2, %v1631_v50 }
 0x1a9   :  { %v1633_v51 = vpop.permute.xlu0 %1632 }
 0x1aa   :  { %1803 = vst.msk [vmem:[%s3758_s6 + $0x168] sm:$0xff] %vm1780_vm2, %v1633_v51 }
 0x1ab   :  { %v1635_v52 = vpop.permute.xlu1 %1634 }
 0x1ac   :  { %1804 = vst.msk [vmem:[%s3758_s6 + $0x178] sm:$0xff] %vm1780_vm2, %v1635_v52 }
 0x1ad   :  { %v1637_v53 = vpop.permute.xlu0 %1636 }
 0x1ae   :  { %1805 = vst.msk [vmem:[%s3758_s6 + $0x188] sm:$0xff] %vm1780_vm2, %v1637_v53 }
 0x1af   :  { %v1639_v54 = vpop.permute.xlu1 %1638 }
 0x1b0   :  { %1806 = vst.msk [vmem:[%s3758_s6 + $0x198] sm:$0xff] %vm1780_vm2, %v1639_v54 }
 0x1b1   :  { %v1641_v55 = vpop.permute.xlu0 %1640 }
 0x1b2   :  { %1807 = vst.msk [vmem:[%s3758_s6 + $0x1a8] sm:$0xff] %vm1780_vm2, %v1641_v55 }
 0x1b3   :  { %v1643_v56 = vpop.permute.xlu1 %1642 }
 0x1b4   :  { %1808 = vst.msk [vmem:[%s3758_s6 + $0x1b8] sm:$0xff] %vm1780_vm2, %v1643_v56 }
 0x1b5   :  { %v1645_v57 = vpop.permute.xlu0 %1644 }
 0x1b6   :  { %1809 = vst.msk [vmem:[%s3758_s6 + $0x1c8] sm:$0xff] %vm1780_vm2, %v1645_v57 }
 0x1b7   :  { %v1647_v58 = vpop.permute.xlu1 %1646 }
 0x1b8   :  { %1810 = vst.msk [vmem:[%s3758_s6 + $0x1d8] sm:$0xff] %vm1780_vm2, %v1647_v58 }
 0x1b9   :  { %v1649_v59 = vpop.permute.xlu0 %1648 }
 0x1ba   :  { %1811 = vst.msk [vmem:[%s3758_s6 + $0x1e8] sm:$0xff] %vm1780_vm2, %v1649_v59 }
 0x1bb   :  { %v1651_v60 = vpop.permute.xlu1 %1650 }
 0x1bc   :  { %1812 = vst.msk [vmem:[%s3758_s6 + $0x1f8] sm:$0xff] %vm1780_vm2, %v1651_v60 }
 0x1bd   :  { %v1653_v61 = vpop.permute.xlu0 %1652 }
 0x1be   :  { %1813 = vst.msk [vmem:[%s3758_s6 + $0x208] sm:$0xff] %vm1780_vm2, %v1653_v61 }
 0x1bf   :  { %v1655_v62 = vpop.permute.xlu1 %1654 }
 0x1c0   :  { %1814 = vst.msk [vmem:[%s3758_s6 + $0x218] sm:$0xff] %vm1780_vm2, %v1655_v62 }
 0x1c1   :  { %v1657_v63 = vpop.permute.xlu0 %1656 }
 0x1c2   :  { %1815 = vst.msk [vmem:[%s3758_s6 + $0x228] sm:$0xff] %vm1780_vm2, %v1657_v63 }
 0x1c3   :  { %v1659_v0 = vpop.permute.xlu1 %1658 }
 0x1c4   :  { %1816 = vst.msk [vmem:[%s3758_s6 + $0x238] sm:$0xff] %vm1780_vm2, %v1659_v0 }
 0x1c5   :  { %v1661_v1 = vpop.permute.xlu0 %1660 }
 0x1c6   :  { %1817 = vst.msk [vmem:[%s3758_s6 + $0x248] sm:$0xff] %vm1780_vm2, %v1661_v1 }
 0x1c7   :  { %v1663_v2 = vpop.permute.xlu1 %1662 }
 0x1c8   :  { %1818 = vst.msk [vmem:[%s3758_s6 + $0x258] sm:$0xff] %vm1780_vm2, %v1663_v2 }
 0x1c9   :  { %v1665_v4 = vpop.permute.xlu0 %1664 }
 0x1ca   :  { %1819 = vst.msk [vmem:[%s3758_s6 + $0x268] sm:$0xff] %vm1780_vm2, %v1665_v4 }
 0x1cb   :  { %v1667_v5 = vpop.permute.xlu1 %1666 }
 0x1cc   :  { %1820 = vst.msk [vmem:[%s3758_s6 + $0x278] sm:$0xff] %vm1780_vm2, %v1667_v5 }
 0x1cd   :  { %v1669_v6 = vpop.permute.xlu0 %1668 }
 0x1ce   :  { %1821 = vst.msk [vmem:[%s3758_s6 + $0x288] sm:$0xff] %vm1780_vm2, %v1669_v6 }
 0x1cf   :  { %v1671_v7 = vpop.permute.xlu1 %1670 }
 0x1d0   :  { %1822 = vst.msk [vmem:[%s3758_s6 + $0x298] sm:$0xff] %vm1780_vm2, %v1671_v7 }
 0x1d1   :  { %v1673_v8 = vpop.permute.xlu0 %1672 }
 0x1d2   :  { %1823 = vst.msk [vmem:[%s3758_s6 + $0x2a8] sm:$0xff] %vm1780_vm2, %v1673_v8 }
 0x1d3   :  { %v1675_v10 = vpop.permute.xlu1 %1674 }
 0x1d4   :  { %1824 = vst.msk [vmem:[%s3758_s6 + $0x2b8] sm:$0xff] %vm1780_vm2, %v1675_v10 }
 0x1d5   :  { %v1677_v11 = vpop.permute.xlu0 %1676 }
 0x1d6   :  { %1825 = vst.msk [vmem:[%s3758_s6 + $0x2c8] sm:$0xff] %vm1780_vm2, %v1677_v11 }
 0x1d7   :  { %v1679_v12 = vpop.permute.xlu1 %1678 }
 0x1d8   :  { %1826 = vst.msk [vmem:[%s3758_s6 + $0x2d8] sm:$0xff] %vm1780_vm2, %v1679_v12 }
 0x1d9   :  { %v1681_v15 = vpop.permute.xlu0 %1680 }
 0x1da   :  { %1827 = vst.msk [vmem:[%s3758_s6 + $0x2e8] sm:$0xff] %vm1780_vm2, %v1681_v15 }
 0x1db   :  { %v1683_v16 = vpop.permute.xlu1 %1682 }
 0x1dc   :  { %1828 = vst.msk [vmem:[%s3758_s6 + $0x2f8] sm:$0xff] %vm1780_vm2, %v1683_v16 }
 0x1dd   :  { %v1685_v17 = vpop.permute.xlu0 %1684 }
 0x1de   :  { %1829 = vst.msk [vmem:[%s3758_s6 + $0x308] sm:$0xff] %vm1780_vm2, %v1685_v17 }
 0x1df   :  { %v1687_v18 = vpop.permute.xlu1 %1686 }
 0x1e0   :  { %1830 = vst.msk [vmem:[%s3758_s6 + $0x318] sm:$0xff] %vm1780_vm2, %v1687_v18 }
 0x1e1   :  { %v1689_v19 = vpop.permute.xlu0 %1688 }
 0x1e2   :  { %1831 = vst.msk [vmem:[%s3758_s6 + $0x328] sm:$0xff] %vm1780_vm2, %v1689_v19 }
 0x1e3   :  { %v1691_v20 = vpop.permute.xlu1 %1690 }
 0x1e4   :  { %1832 = vst.msk [vmem:[%s3758_s6 + $0x338] sm:$0xff] %vm1780_vm2, %v1691_v20 }
 0x1e5   :  { %v1693_v3 = vpop.permute.xlu0 %1692 }
 0x1e6   :  { %1833 = vst.msk [vmem:[%s3758_s6 + $0x348] sm:$0xff] %vm1780_vm2, %v1693_v3 }
 0x1e7   :  { %v1695_v21 = vpop.permute.xlu1 %1694 }
 0x1e8   :  { %1834 = vst.msk [vmem:[%s3758_s6 + $0x358] sm:$0xff] %vm1780_vm2, %v1695_v21 }
 0x1e9   :  { %v1697_v22 = vpop.permute.xlu0 %1696 }
 0x1ea   :  { %1835 = vst.msk [vmem:[%s3758_s6 + $0x368] sm:$0xff] %vm1780_vm2, %v1697_v22 }
 0x1eb   :  { %v1699_v23 = vpop.permute.xlu1 %1698 }
 0x1ec   :  { %1836 = vst.msk [vmem:[%s3758_s6 + $0x378] sm:$0xff] %vm1780_vm2, %v1699_v23 }
 0x1ed   :  { %v1701_v24 = vpop.permute.xlu0 %1700 }
 0x1ee   :  { %1837 = vst.msk [vmem:[%s3758_s6 + $0x388] sm:$0xff] %vm1780_vm2, %v1701_v24 }
 0x1ef   :  { %v1703_v25 = vpop.permute.xlu1 %1702 }
 0x1f0   :  { %1838 = vst.msk [vmem:[%s3758_s6 + $0x398] sm:$0xff] %vm1780_vm2, %v1703_v25 }
 0x1f1   :  { %v1705_v26 = vpop.permute.xlu0 %1704 }
 0x1f2   :  { %1839 = vst.msk [vmem:[%s3758_s6 + $0x3a8] sm:$0xff] %vm1780_vm2, %v1705_v26 }
 0x1f3   :  { %v1707_v27 = vpop.permute.xlu1 %1706 }
 0x1f4   :  { %1840 = vst.msk [vmem:[%s3758_s6 + $0x3b8] sm:$0xff] %vm1780_vm2, %v1707_v27 }
 0x1f5   :  { %v1709_v28 = vpop.permute.xlu0 %1708 }
 0x1f6   :  { %1841 = vst.msk [vmem:[%s3758_s6 + $0x3c8] sm:$0xff] %vm1780_vm2, %v1709_v28 }
 0x1f7   :  { %v1711_v29 = vpop.permute.xlu1 %1710 }
 0x1f8   :  { %1842 = vst.msk [vmem:[%s3758_s6 + $0x3d8] sm:$0xff] %vm1780_vm2, %v1711_v29 }
 0x1f9   :  { %v1713_v30 = vpop.permute.xlu0 %1712 }
 0x1fa   :  { %1843 = vst.msk [vmem:[%s3758_s6 + $0x3e8] sm:$0xff] %vm1780_vm2, %v1713_v30 }
 0x1fb   :  { %v1715_v31 = vpop.permute.xlu1 %1714 }
 0x1fc   :  { %1844 = vst.msk [vmem:[%s3758_s6 + $0x3f8] sm:$0xff] %vm1780_vm2, %v1715_v31 }

</bundles_post_ra>
